<compile_context>
chip_gen: v7x
topology: tpu7x:2x2x1
jax: 0.10.0
libtpu: 0.0.40
codegen_flags: <defaults>
</compile_context>

<pallas_src>
import functools

import jax
import jax.numpy as jnp
from jax import lax
from jax.experimental import pallas as pl
from jax.experimental.pallas import tpu as pltpu


# --------------------------------------------------------------------------------------
# Fused kernel: CNN -> device/seq-mask mean -> biLSTM -> masked mean -> BN1d -> MLP.
# Lane layout: image index n = (b*T + t)*C + c lives on the 128-wide lane axis (padded to
# Npad); channels live on sublanes.  All conv work is 128-aligned lane shifts + tiny MXU ops.
# --------------------------------------------------------------------------------------
def tof_fused_kernel(x_ref, msel_ref, seq2_ref, mpair_ref, demo_ref,
                     w1_ref, t1_ref, w2_ref, t2_ref,
                     wtf_ref, wtr_ref, wbf_ref, wbr_ref, bg_ref, whh_ref,
                     bns_ref, bnt_ref, wm1_ref, bm1_ref, wm2_ref, bm2_ref,
                     o_ref, *, H, W):
    f32 = jnp.float32
    bf16 = jnp.bfloat16
    Cin = x_ref.shape[0]                    # 2 (tof, itof)
    Npad = msel_ref.shape[1]                # padded image-lane count (128)
    C1 = t1_ref.shape[0]                    # conv1 out channels (8)
    C2 = t2_ref.shape[0]                    # conv2 out channels (16)
    T, B, H2d = mpair_ref.shape
    Hd = H2d // 2
    TB = T * B
    H2, W2 = H // 2, W // 2
    rowW = W * Npad                         # lanes per image row
    rowW2 = W2 * Npad                       # lanes per pooled row

    t1 = t1_ref[...]                        # (C1, 1) folded conv1 bias + BN shift
    t2 = t2_ref[...]                        # (C2, 1) folded conv2 bias + BN shift
    zc_in = jnp.zeros((Cin, Npad), bf16)
    zc_p = jnp.zeros((C1, Npad), bf16)

    def shift_cols(slab, sx, zchunk):
        # Result chunk w holds input chunk w+sx (zero when out of range); 128-aligned only.
        if sx == 0:
            return slab
        if sx < 0:
            return jnp.concatenate([zchunk, slab[:, :-Npad]], axis=1)
        return jnp.concatenate([slab[:, Npad:], zchunk], axis=1)

    # ---- conv1 (3x3, pad 1) + folded BN + ReLU + 2x2 maxpool, streamed per output row ----
    pool_rows = []
    for i in range(H2):
        vmax = None
        for h in (2 * i, 2 * i + 1):
            acc = jnp.zeros((C1, rowW), f32)
            for dy in range(3):
                r = h + dy - 1
                if not (0 <= r < H):
                    continue                                  # zero padding row
                slab = x_ref[:, r * rowW:(r + 1) * rowW]      # (Cin, W*Npad) bf16
                for dx in range(3):
                    acc = acc + jnp.dot(w1_ref[dy * 3 + dx],
                                        shift_cols(slab, dx - 1, zc_in),
                                        preferred_element_type=f32)
            y = jnp.maximum(acc + t1, 0.0)                    # (C1, W*Npad)
            vmax = y if vmax is None else jnp.maximum(vmax, y)
        even = jnp.concatenate([vmax[:, (2 * j) * Npad:(2 * j + 1) * Npad]
                                for j in range(W2)], axis=1)
        odd = jnp.concatenate([vmax[:, (2 * j + 1) * Npad:(2 * j + 2) * Npad]
                               for j in range(W2)], axis=1)
        pool_rows.append(jnp.maximum(even, odd).astype(bf16))  # (C1, W2*Npad)

    # ---- conv2 (3x3, pad 1) per-tap accumulation + folded BN + ReLU + global spatial sum ----
    feat_sum = jnp.zeros((C2, Npad), f32)
    for ii in range(H2):
        acc = jnp.zeros((C2, rowW2), f32)
        for dy in range(3):
            r2 = ii + dy - 1
            if not (0 <= r2 < H2):
                continue
            prow = pool_rows[r2]
            for dx in range(3):
                acc = acc + jnp.dot(w2_ref[dy * 3 + dx],
                                    shift_cols(prow, dx - 1, zc_p),
                                    preferred_element_type=f32)
        yrow = jnp.maximum(acc + t2, 0.0)                     # (C2, W2*Npad)
        for jj in range(W2):
            feat_sum = feat_sum + yrow[:, jj * Npad:(jj + 1) * Npad]

    # ---- seq-mask + device mean + spatial mean (scales folded into msel), fwd & reversed ----
    NT = (((1,), (1,)), ((), ()))                             # A @ B^T (contract lane axes)
    x2tof = lax.dot_general(msel_ref[...], feat_sum, NT,
                            preferred_element_type=f32)       # (2TB, C2)

    # ---- LSTM input projection, hoisted out of the recurrence (fwd rows 0:TB, rev TB:2TB) ----
    seq2 = seq2_ref[...]
    gx = (jnp.dot(x2tof[:TB], wtf_ref[...], preferred_element_type=f32)
          + jnp.dot(x2tof[TB:], wtr_ref[...], preferred_element_type=f32)
          + jnp.dot(seq2[:TB], wbf_ref[...], preferred_element_type=f32)
          + jnp.dot(seq2[TB:], wbr_ref[...], preferred_element_type=f32)
          + bg_ref[...])                                      # (TB, 8Hd), cols [i|f|g|o]x[f,r]

    # ---- bidirectional recurrence: one MXU op per step, aligned gate groups ----
    whh = whh_ref[...]                                        # (2Hd, 8Hd)
    c_cat = jnp.zeros((B, 2 * Hd), f32)
    h_cat = jnp.zeros((B, 2 * Hd), f32)
    s_cat = jnp.zeros((B, 2 * Hd), f32)
    len_acc = jnp.zeros((B, 1), f32)
    for t in range(T):
        g = gx[t * B:(t + 1) * B, :] + jnp.dot(h_cat, whh, preferred_element_type=f32)
        if_sig = jax.nn.sigmoid(g[:, 0:4 * Hd])               # [i_f i_r f_f f_r]
        g_tanh = jnp.tanh(g[:, 4 * Hd:6 * Hd])                # [g_f g_r]
        o_sig = jax.nn.sigmoid(g[:, 6 * Hd:8 * Hd])           # [o_f o_r]
        i_cat = if_sig[:, 0:2 * Hd]
        f_cat = if_sig[:, 2 * Hd:4 * Hd]
        c_cat = f_cat * c_cat + i_cat * g_tanh
        h_cat = o_sig * jnp.tanh(c_cat)                       # [h_f | h_r]
        mp = mpair_ref[t]                                     # (B, 2Hd): [mask_t | mask_{T-1-t}]
        s_cat = s_cat + mp * h_cat
        len_acc = len_acc + mp[:, 0:1]

    pooled = s_cat / jnp.maximum(len_acc, 1e-6)
    pooled = pooled * bns_ref[...] + bnt_ref[...]             # BatchNorm1d (eval, folded)
    feat = jnp.concatenate([pooled, demo_ref[...]], axis=1)
    hid = jnp.maximum(jnp.dot(feat, wm1_ref[...], preferred_element_type=f32)
                      + bm1_ref[...], 0.0)
    o_ref[...] = (jnp.dot(hid, wm2_ref[...], preferred_element_type=f32) + bm2_ref[...])


# --------------------------------------------------------------------------------------
# Deterministic synthetic parameters (PyTorch-equivalent shapes / gate order).
# --------------------------------------------------------------------------------------
def init_params(key, *, num_classes=18, input_dim_demo=7, input_dim_1d=12,
                hidden_dim=32, num_2d_features=16):
    eps = 1e-5
    C1, C2, Hd = 8, num_2d_features, hidden_dim
    F = input_dim_1d + num_2d_features
    ks = iter(jax.random.split(key, 32))
    nrm = lambda shape, s=0.1: s * jax.random.normal(next(ks), shape, jnp.float32)
    uni = lambda shape: jax.random.uniform(next(ks), shape, jnp.float32, 0.5, 1.5)

    def bn_fold(cout, conv_bias):
        gamma = 1.0 + nrm((cout,))
        beta = nrm((cout,))
        mean = nrm((cout,))
        var = uni((cout,))
        s = gamma / jnp.sqrt(var + eps)
        t = (conv_bias - mean) * s + beta
        return s, t

    p = {}
    p['w1'] = nrm((3, 3, 2, C1))                       # conv1 weight (dy, dx, cin, cout)
    p['s1'], p['t1'] = bn_fold(C1, nrm((C1,)))         # conv1 bias + BN1 folded
    p['w2'] = nrm((3, 3, C1, C2))                      # conv2 weight
    p['s2'], p['t2'] = bn_fold(C2, nrm((C2,)))
    # bidirectional LSTM (transposed weights: (in, 4H), gate order i,f,g,o); b = b_ih + b_hh
    p['wih_f'] = nrm((F, 4 * Hd)); p['whh_f'] = nrm((Hd, 4 * Hd)); p['b_f'] = nrm((1, 4 * Hd))
    p['wih_r'] = nrm((F, 4 * Hd)); p['whh_r'] = nrm((Hd, 4 * Hd)); p['b_r'] = nrm((1, 4 * Hd))
    # lstm_bn = BatchNorm1d(2H), eval mode, folded into scale/shift
    gamma = 1.0 + nrm((2 * Hd,)); beta = nrm((2 * Hd,))
    mean = nrm((2 * Hd,)); var = uni((2 * Hd,))
    sc = gamma / jnp.sqrt(var + eps)
    p['bn_s'] = sc.reshape(1, 2 * Hd)
    p['bn_t'] = (beta - mean * sc).reshape(1, 2 * Hd)
    # MLP head
    p['wm1'] = nrm((2 * Hd + input_dim_demo, 2 * Hd)); p['bm1'] = nrm((1, 2 * Hd))
    p['wm2'] = nrm((2 * Hd, num_classes)); p['bm2'] = nrm((1, num_classes))
    return p


# --------------------------------------------------------------------------------------
# One-time parameter packing (outside the jitted forward).
# --------------------------------------------------------------------------------------
def prepare_params(p, *, B, T, C, H, W):
    f32 = jnp.float32
    C1 = p['w1'].shape[-1]
    C2 = p['w2'].shape[-1]
    Hd = p['whh_f'].shape[0]
    N = B * T * C
    Npad = max(128, ((N + 127) // 128) * 128)
    TB = T * B
    H2, W2 = H // 2, W // 2

    pp = {}
    # conv weights per 3x3 tap, BN scale folded, bf16 (f32 accumulation in the kernel)
    w1 = jnp.transpose(p['w1'], (0, 1, 3, 2)) * p['s1'][None, None, :, None]   # (3,3,C1,2)
    pp['w1t'] = w1.reshape(9, C1, 2).astype(jnp.bfloat16)
    pp['t1'] = p['t1'].reshape(C1, 1).astype(f32)
    w2 = jnp.transpose(p['w2'], (0, 1, 3, 2)) * p['s2'][None, None, :, None]   # (3,3,C2,C1)
    pp['w2t'] = w2.reshape(9, C2, C1).astype(jnp.bfloat16)
    pp['t2'] = p['t2'].reshape(C2, 1).astype(f32)

    # LSTM weights repacked into combined gate order [i_f i_r | f_f f_r | g_f g_r | o_f o_r]
    def interleave(wf, wr):
        cols = []
        for q in range(4):
            cols.append(wf[..., q * Hd:(q + 1) * Hd])
            cols.append(wr[..., q * Hd:(q + 1) * Hd])
        return jnp.concatenate(cols, axis=-1)

    z_ih = jnp.zeros_like(p['wih_f'])
    wih_fp = interleave(p['wih_f'], z_ih)          # fwd weights placed in fwd columns
    wih_rp = interleave(z_ih, p['wih_r'])          # rev weights placed in rev columns
    pp['wtop_f'] = wih_fp[:C2].astype(f32)         # TOF-feature rows
    pp['wtop_r'] = wih_rp[:C2].astype(f32)
    pp['wbot_f'] = wih_fp[C2:].astype(f32)         # seq_1d rows
    pp['wbot_r'] = wih_rp[C2:].astype(f32)
    pp['b_g'] = interleave(p['b_f'], p['b_r']).astype(f32)
    z_hh = jnp.zeros_like(p['whh_f'])
    pp['whh'] = jnp.concatenate([interleave(p['whh_f'], z_hh),
                                 interleave(z_hh, p['whh_r'])], axis=0).astype(f32)

    pp['bn_s'] = p['bn_s']; pp['bn_t'] = p['bn_t']
    pp['wm1'] = p['wm1']; pp['bm1'] = p['bm1']
    pp['wm2'] = p['wm2']; pp['bm2'] = p['bm2']

    # constant selection pattern (2TB, Npad): rows 0..TB-1 = forward time order t*B+b,
    # rows TB..2TB-1 = time-reversed; columns select the C devices of that (b, t) group.
    # Device-mean (1/C) and AdaptiveAvgPool (1/(H2*W2)) are folded in; the runtime seq mask
    # is applied per column in the forward wrapper.
    n = jnp.arange(Npad)
    b_of_n = n // (T * C)
    t_of_n = (n // C) % T
    valid = (n < N).astype(f32)
    rows = jnp.arange(TB)
    t_of_r = rows // B
    b_of_r = rows % B
    sel_f = ((t_of_n[None, :] == t_of_r[:, None]) &
             (b_of_n[None, :] == b_of_r[:, None])).astype(f32)
    sel_r = (((T - 1 - t_of_n)[None, :] == t_of_r[:, None]) &
             (b_of_n[None, :] == b_of_r[:, None])).astype(f32)
    pp['sel_const'] = (jnp.concatenate([sel_f, sel_r], axis=0)
                       * valid[None, :] * (1.0 / (C * H2 * W2)))
    return pp


# --------------------------------------------------------------------------------------
# Forward wrapper (jitted): only runtime-input-dependent, tiny layout prep + one pallas_call.
# --------------------------------------------------------------------------------------
def tof_model_forward(pp, demo, seq_1d, tof, itof, mask):
    B, T, C, H, W = tof.shape
    assert H % 2 == 0 and W % 2 == 0
    Hd = pp['whh'].shape[0] // 2
    num_classes = pp['wm2'].shape[-1]
    Dseq = seq_1d.shape[-1]
    N = B * T * C
    Npad = pp['sel_const'].shape[1]
    TB = T * B
    assert pp['sel_const'].shape[0] == 2 * TB and N <= Npad
    maskf = mask.astype(jnp.float32)

    # lane-dense frames (2, H*W*Npad): lane = (h*W + w)*Npad + n, image n = (b*T + t)*C + c
    x2 = jnp.stack([tof, itof], axis=3).reshape(N, 2, H, W)
    x2 = jnp.transpose(x2, (1, 2, 3, 0))
    x2 = jnp.pad(x2, ((0, 0), (0, 0), (0, 0), (0, Npad - N)))
    x_img = x2.reshape(2, H * W * Npad).astype(jnp.bfloat16)

    # runtime seq-mask applied per image column of the constant selection pattern
    mask_img = jnp.repeat(maskf.reshape(-1), C, total_repeat_length=N)
    mask_img = jnp.pad(mask_img, (0, Npad - N))
    msel2 = pp['sel_const'] * mask_img[None, :]                        # (2TB, Npad)

    # time-major and time-reversed 1-D sequence features (2TB, Dseq)
    seq_tm = jnp.transpose(seq_1d, (1, 0, 2))                          # (T, B, Dseq)
    seq2 = jnp.concatenate([seq_tm, seq_tm[::-1]], axis=0).reshape(2 * TB, Dseq)

    # per-step (fwd, rev) masks broadcast over hidden dims (T, B, 2Hd)
    m_t = jnp.transpose(maskf)                                         # (T, B)
    mpair = jnp.concatenate([jnp.broadcast_to(m_t[:, :, None], (T, B, Hd)),
                             jnp.broadcast_to(m_t[::-1][:, :, None], (T, B, Hd))], axis=2)

    vmem = lambda: pl.BlockSpec(memory_space=pltpu.MemorySpace.VMEM)
    args = (x_img, msel2, seq2, mpair, demo,
            pp['w1t'], pp['t1'], pp['w2t'], pp['t2'],
            pp['wtop_f'], pp['wtop_r'], pp['wbot_f'], pp['wbot_r'], pp['b_g'], pp['whh'],
            pp['bn_s'], pp['bn_t'], pp['wm1'], pp['bm1'], pp['wm2'], pp['bm2'])
    return pl.pallas_call(
        functools.partial(tof_fused_kernel, H=H, W=W),
        out_shape=jax.ShapeDtypeStruct((B, num_classes), jnp.float32),
        in_specs=[vmem() for _ in args],
        out_specs=vmem(),
    )(*args)


if __name__ == "__main__":
    key = jax.random.PRNGKey(0)
    kp, kd, ks, kt, ki = jax.random.split(key, 5)

    B, T, C, H, W = 2, 8, 5, 8, 8      # 5 TOF devices, 8x8 frames
    params = init_params(kp)
    pp = prepare_params(params, B=B, T=T, C=C, H=H, W=W)

    demo = jax.random.normal(kd, (B, 7), jnp.float32)
    seq_1d = jax.random.normal(ks, (B, T, 12), jnp.float32)
    tof = jax.random.normal(kt, (B, T, C, H, W), jnp.float32)
    itof = jax.random.normal(ki, (B, T, C, H, W), jnp.float32)
    lengths = jnp.array([T, 5])
    mask = (jnp.arange(T)[None, :] < lengths[:, None]).astype(jnp.float32)   # (B, T)

    fwd = jax.jit(tof_model_forward)
    logits = fwd(pp, demo, seq_1d, tof, itof, mask)
    logits = jax.block_until_ready(logits)

    assert logits.shape == (B, 18), logits.shape
    assert bool(jnp.all(jnp.isfinite(logits)))
    print("KERNEL_OK")
</pallas_src>

<mosaic_0001>
module attributes {stable_mosaic.version = 11 : i64} {
  func.func @tof_fused_kernel(%arg0: memref<2x8192xbf16, #tpu.memory_space<vmem>>, %arg1: memref<32x128xf32, #tpu.memory_space<vmem>>, %arg2: memref<32x12xf32, #tpu.memory_space<vmem>>, %arg3: memref<8x2x64xf32, #tpu.memory_space<vmem>>, %arg4: memref<2x7xf32, #tpu.memory_space<vmem>>, %arg5: memref<9x8x2xbf16, #tpu.memory_space<vmem>>, %arg6: memref<8x1xf32, #tpu.memory_space<vmem>>, %arg7: memref<9x16x8xbf16, #tpu.memory_space<vmem>>, %arg8: memref<16x1xf32, #tpu.memory_space<vmem>>, %arg9: memref<16x256xf32, #tpu.memory_space<vmem>>, %arg10: memref<16x256xf32, #tpu.memory_space<vmem>>, %arg11: memref<12x256xf32, #tpu.memory_space<vmem>>, %arg12: memref<12x256xf32, #tpu.memory_space<vmem>>, %arg13: memref<1x256xf32, #tpu.memory_space<vmem>>, %arg14: memref<64x256xf32, #tpu.memory_space<vmem>>, %arg15: memref<1x64xf32, #tpu.memory_space<vmem>>, %arg16: memref<1x64xf32, #tpu.memory_space<vmem>>, %arg17: memref<71x64xf32, #tpu.memory_space<vmem>>, %arg18: memref<1x64xf32, #tpu.memory_space<vmem>>, %arg19: memref<64x18xf32, #tpu.memory_space<vmem>>, %arg20: memref<1x18xf32, #tpu.memory_space<vmem>>, %arg21: memref<2x18xf32, #tpu.memory_space<vmem>>) attributes {dimension_semantics = [], scalar_prefetch = 0 : i64, scratch_operands = 0 : i64, tpu.core_type = #tpu.core_type<tc>} {
    %c0 = arith.constant 0 : index
    %c0_0 = arith.constant 0 : index
    %0 = vector.load %arg6[%c0, %c0_0] : memref<8x1xf32, #tpu.memory_space<vmem>>, vector<8x1xf32>
    %c0_1 = arith.constant 0 : index
    %c0_2 = arith.constant 0 : index
    %1 = vector.load %arg8[%c0_1, %c0_2] : memref<16x1xf32, #tpu.memory_space<vmem>>, vector<16x1xf32>
    %cst = arith.constant 0.000000e+00 : bf16
    %2 = vector.broadcast %cst : bf16 to vector<2x128xbf16>
    %cst_3 = arith.constant 0.000000e+00 : bf16
    %3 = vector.broadcast %cst_3 : bf16 to vector<8x128xbf16>
    %cst_4 = arith.constant 0.000000e+00 : f32
    %4 = vector.broadcast %cst_4 : f32 to vector<8x1024xf32>
    %c0_5 = arith.constant 0 : index
    %c0_6 = arith.constant 0 : index
    %5 = vector.load %arg0[%c0_5, %c0_6] : memref<2x8192xbf16, #tpu.memory_space<vmem>>, vector<2x1024xbf16>
    %c3 = arith.constant 3 : index
    %c0_7 = arith.constant 0 : index
    %c0_8 = arith.constant 0 : index
    %6 = vector.load %arg5[%c3, %c0_7, %c0_8] : memref<9x8x2xbf16, #tpu.memory_space<vmem>>, vector<1x8x2xbf16>
    %7 = vector.shape_cast %6 : vector<1x8x2xbf16> to vector<8x2xbf16>
    %8 = vector.extract_strided_slice %5 {offsets = [0, 0], sizes = [2, 896], strides = [1, 1]} : vector<2x1024xbf16> to vector<2x896xbf16>
    %9 = tpu.concatenate %2, %8 in 1 : vector<2x128xbf16>, vector<2x896xbf16> -> vector<2x1024xbf16>
    %cst_9 = arith.constant dense<0.000000e+00> : vector<8x1024xf32>
    %10 = tpu.matmul %7, %9, %cst_9 {dimension_numbers = #tpu.dot_dimension_numbers<[1], [0], [0], [1], [0, 0, 1, 1], [], []>} : vector<8x2xbf16>, vector<2x1024xbf16>, vector<8x1024xf32> -> vector<8x1024xf32>
    %11 = arith.addf %4, %10 : vector<8x1024xf32>
    %c4 = arith.constant 4 : index
    %c0_10 = arith.constant 0 : index
    %c0_11 = arith.constant 0 : index
    %12 = vector.load %arg5[%c4, %c0_10, %c0_11] : memref<9x8x2xbf16, #tpu.memory_space<vmem>>, vector<1x8x2xbf16>
    %13 = vector.shape_cast %12 : vector<1x8x2xbf16> to vector<8x2xbf16>
    %cst_12 = arith.constant dense<0.000000e+00> : vector<8x1024xf32>
    %14 = tpu.matmul %13, %5, %cst_12 {dimension_numbers = #tpu.dot_dimension_numbers<[1], [0], [0], [1], [0, 0, 1, 1], [], []>} : vector<8x2xbf16>, vector<2x1024xbf16>, vector<8x1024xf32> -> vector<8x1024xf32>
    %15 = arith.addf %11, %14 : vector<8x1024xf32>
    %c5 = arith.constant 5 : index
    %c0_13 = arith.constant 0 : index
    %c0_14 = arith.constant 0 : index
    %16 = vector.load %arg5[%c5, %c0_13, %c0_14] : memref<9x8x2xbf16, #tpu.memory_space<vmem>>, vector<1x8x2xbf16>
    %17 = vector.shape_cast %16 : vector<1x8x2xbf16> to vector<8x2xbf16>
    %18 = vector.extract_strided_slice %5 {offsets = [0, 128], sizes = [2, 896], strides = [1, 1]} : vector<2x1024xbf16> to vector<2x896xbf16>
    %19 = tpu.concatenate %18, %2 in 1 : vector<2x896xbf16>, vector<2x128xbf16> -> vector<2x1024xbf16>
    %cst_15 = arith.constant dense<0.000000e+00> : vector<8x1024xf32>
    %20 = tpu.matmul %17, %19, %cst_15 {dimension_numbers = #tpu.dot_dimension_numbers<[1], [0], [0], [1], [0, 0, 1, 1], [], []>} : vector<8x2xbf16>, vector<2x1024xbf16>, vector<8x1024xf32> -> vector<8x1024xf32>
    %21 = arith.addf %15, %20 : vector<8x1024xf32>
    %c0_16 = arith.constant 0 : index
    %c1024 = arith.constant 1024 : index
    %22 = vector.load %arg0[%c0_16, %c1024] : memref<2x8192xbf16, #tpu.memory_space<vmem>>, vector<2x1024xbf16>
    %c6 = arith.constant 6 : index
    %c0_17 = arith.constant 0 : index
    %c0_18 = arith.constant 0 : index
    %23 = vector.load %arg5[%c6, %c0_17, %c0_18] : memref<9x8x2xbf16, #tpu.memory_space<vmem>>, vector<1x8x2xbf16>
    %24 = vector.shape_cast %23 : vector<1x8x2xbf16> to vector<8x2xbf16>
    %25 = vector.extract_strided_slice %22 {offsets = [0, 0], sizes = [2, 896], strides = [1, 1]} : vector<2x1024xbf16> to vector<2x896xbf16>
    %26 = tpu.concatenate %2, %25 in 1 : vector<2x128xbf16>, vector<2x896xbf16> -> vector<2x1024xbf16>
    %cst_19 = arith.constant dense<0.000000e+00> : vector<8x1024xf32>
    %27 = tpu.matmul %24, %26, %cst_19 {dimension_numbers = #tpu.dot_dimension_numbers<[1], [0], [0], [1], [0, 0, 1, 1], [], []>} : vector<8x2xbf16>, vector<2x1024xbf16>, vector<8x1024xf32> -> vector<8x1024xf32>
    %28 = arith.addf %21, %27 : vector<8x1024xf32>
    %c7 = arith.constant 7 : index
    %c0_20 = arith.constant 0 : index
    %c0_21 = arith.constant 0 : index
    %29 = vector.load %arg5[%c7, %c0_20, %c0_21] : memref<9x8x2xbf16, #tpu.memory_space<vmem>>, vector<1x8x2xbf16>
    %30 = vector.shape_cast %29 : vector<1x8x2xbf16> to vector<8x2xbf16>
    %cst_22 = arith.constant dense<0.000000e+00> : vector<8x1024xf32>
    %31 = tpu.matmul %30, %22, %cst_22 {dimension_numbers = #tpu.dot_dimension_numbers<[1], [0], [0], [1], [0, 0, 1, 1], [], []>} : vector<8x2xbf16>, vector<2x1024xbf16>, vector<8x1024xf32> -> vector<8x1024xf32>
    %32 = arith.addf %28, %31 : vector<8x1024xf32>
    %c8 = arith.constant 8 : index
    %c0_23 = arith.constant 0 : index
    %c0_24 = arith.constant 0 : index
    %33 = vector.load %arg5[%c8, %c0_23, %c0_24] : memref<9x8x2xbf16, #tpu.memory_space<vmem>>, vector<1x8x2xbf16>
    %34 = vector.shape_cast %33 : vector<1x8x2xbf16> to vector<8x2xbf16>
    %35 = vector.extract_strided_slice %22 {offsets = [0, 128], sizes = [2, 896], strides = [1, 1]} : vector<2x1024xbf16> to vector<2x896xbf16>
    %36 = tpu.concatenate %35, %2 in 1 : vector<2x896xbf16>, vector<2x128xbf16> -> vector<2x1024xbf16>
    %cst_25 = arith.constant dense<0.000000e+00> : vector<8x1024xf32>
    %37 = tpu.matmul %34, %36, %cst_25 {dimension_numbers = #tpu.dot_dimension_numbers<[1], [0], [0], [1], [0, 0, 1, 1], [], []>} : vector<8x2xbf16>, vector<2x1024xbf16>, vector<8x1024xf32> -> vector<8x1024xf32>
    %38 = arith.addf %32, %37 : vector<8x1024xf32>
    %39 = vector.broadcast %0 : vector<8x1xf32> to vector<8x1024xf32>
    %40 = arith.addf %38, %39 : vector<8x1024xf32>
    %cst_26 = arith.constant 0.000000e+00 : f32
    %41 = vector.broadcast %cst_26 : f32 to vector<8x1024xf32>
    %42 = arith.maximumf %40, %41 : vector<8x1024xf32>
    %cst_27 = arith.constant 0.000000e+00 : f32
    %43 = vector.broadcast %cst_27 : f32 to vector<8x1024xf32>
    %c0_28 = arith.constant 0 : index
    %c0_29 = arith.constant 0 : index
    %44 = vector.load %arg0[%c0_28, %c0_29] : memref<2x8192xbf16, #tpu.memory_space<vmem>>, vector<2x1024xbf16>
    %c0_30 = arith.constant 0 : index
    %c0_31 = arith.constant 0 : index
    %c0_32 = arith.constant 0 : index
    %45 = vector.load %arg5[%c0_30, %c0_31, %c0_32] : memref<9x8x2xbf16, #tpu.memory_space<vmem>>, vector<1x8x2xbf16>
    %46 = vector.shape_cast %45 : vector<1x8x2xbf16> to vector<8x2xbf16>
    %47 = vector.extract_strided_slice %44 {offsets = [0, 0], sizes = [2, 896], strides = [1, 1]} : vector<2x1024xbf16> to vector<2x896xbf16>
    %48 = tpu.concatenate %2, %47 in 1 : vector<2x128xbf16>, vector<2x896xbf16> -> vector<2x1024xbf16>
    %cst_33 = arith.constant dense<0.000000e+00> : vector<8x1024xf32>
    %49 = tpu.matmul %46, %48, %cst_33 {dimension_numbers = #tpu.dot_dimension_numbers<[1], [0], [0], [1], [0, 0, 1, 1], [], []>} : vector<8x2xbf16>, vector<2x1024xbf16>, vector<8x1024xf32> -> vector<8x1024xf32>
    %50 = arith.addf %43, %49 : vector<8x1024xf32>
    %c1 = arith.constant 1 : index
    %c0_34 = arith.constant 0 : index
    %c0_35 = arith.constant 0 : index
    %51 = vector.load %arg5[%c1, %c0_34, %c0_35] : memref<9x8x2xbf16, #tpu.memory_space<vmem>>, vector<1x8x2xbf16>
    %52 = vector.shape_cast %51 : vector<1x8x2xbf16> to vector<8x2xbf16>
    %cst_36 = arith.constant dense<0.000000e+00> : vector<8x1024xf32>
    %53 = tpu.matmul %52, %44, %cst_36 {dimension_numbers = #tpu.dot_dimension_numbers<[1], [0], [0], [1], [0, 0, 1, 1], [], []>} : vector<8x2xbf16>, vector<2x1024xbf16>, vector<8x1024xf32> -> vector<8x1024xf32>
    %54 = arith.addf %50, %53 : vector<8x1024xf32>
    %c2 = arith.constant 2 : index
    %c0_37 = arith.constant 0 : index
    %c0_38 = arith.constant 0 : index
    %55 = vector.load %arg5[%c2, %c0_37, %c0_38] : memref<9x8x2xbf16, #tpu.memory_space<vmem>>, vector<1x8x2xbf16>
    %56 = vector.shape_cast %55 : vector<1x8x2xbf16> to vector<8x2xbf16>
    %57 = vector.extract_strided_slice %44 {offsets = [0, 128], sizes = [2, 896], strides = [1, 1]} : vector<2x1024xbf16> to vector<2x896xbf16>
    %58 = tpu.concatenate %57, %2 in 1 : vector<2x896xbf16>, vector<2x128xbf16> -> vector<2x1024xbf16>
    %cst_39 = arith.constant dense<0.000000e+00> : vector<8x1024xf32>
    %59 = tpu.matmul %56, %58, %cst_39 {dimension_numbers = #tpu.dot_dimension_numbers<[1], [0], [0], [1], [0, 0, 1, 1], [], []>} : vector<8x2xbf16>, vector<2x1024xbf16>, vector<8x1024xf32> -> vector<8x1024xf32>
    %60 = arith.addf %54, %59 : vector<8x1024xf32>
    %c0_40 = arith.constant 0 : index
    %c1024_41 = arith.constant 1024 : index
    %61 = vector.load %arg0[%c0_40, %c1024_41] : memref<2x8192xbf16, #tpu.memory_space<vmem>>, vector<2x1024xbf16>
    %c3_42 = arith.constant 3 : index
    %c0_43 = arith.constant 0 : index
    %c0_44 = arith.constant 0 : index
    %62 = vector.load %arg5[%c3_42, %c0_43, %c0_44] : memref<9x8x2xbf16, #tpu.memory_space<vmem>>, vector<1x8x2xbf16>
    %63 = vector.shape_cast %62 : vector<1x8x2xbf16> to vector<8x2xbf16>
    %64 = vector.extract_strided_slice %61 {offsets = [0, 0], sizes = [2, 896], strides = [1, 1]} : vector<2x1024xbf16> to vector<2x896xbf16>
    %65 = tpu.concatenate %2, %64 in 1 : vector<2x128xbf16>, vector<2x896xbf16> -> vector<2x1024xbf16>
    %cst_45 = arith.constant dense<0.000000e+00> : vector<8x1024xf32>
    %66 = tpu.matmul %63, %65, %cst_45 {dimension_numbers = #tpu.dot_dimension_numbers<[1], [0], [0], [1], [0, 0, 1, 1], [], []>} : vector<8x2xbf16>, vector<2x1024xbf16>, vector<8x1024xf32> -> vector<8x1024xf32>
    %67 = arith.addf %60, %66 : vector<8x1024xf32>
    %c4_46 = arith.constant 4 : index
    %c0_47 = arith.constant 0 : index
    %c0_48 = arith.constant 0 : index
    %68 = vector.load %arg5[%c4_46, %c0_47, %c0_48] : memref<9x8x2xbf16, #tpu.memory_space<vmem>>, vector<1x8x2xbf16>
    %69 = vector.shape_cast %68 : vector<1x8x2xbf16> to vector<8x2xbf16>
    %cst_49 = arith.constant dense<0.000000e+00> : vector<8x1024xf32>
    %70 = tpu.matmul %69, %61, %cst_49 {dimension_numbers = #tpu.dot_dimension_numbers<[1], [0], [0], [1], [0, 0, 1, 1], [], []>} : vector<8x2xbf16>, vector<2x1024xbf16>, vector<8x1024xf32> -> vector<8x1024xf32>
    %71 = arith.addf %67, %70 : vector<8x1024xf32>
    %c5_50 = arith.constant 5 : index
    %c0_51 = arith.constant 0 : index
    %c0_52 = arith.constant 0 : index
    %72 = vector.load %arg5[%c5_50, %c0_51, %c0_52] : memref<9x8x2xbf16, #tpu.memory_space<vmem>>, vector<1x8x2xbf16>
    %73 = vector.shape_cast %72 : vector<1x8x2xbf16> to vector<8x2xbf16>
    %74 = vector.extract_strided_slice %61 {offsets = [0, 128], sizes = [2, 896], strides = [1, 1]} : vector<2x1024xbf16> to vector<2x896xbf16>
    %75 = tpu.concatenate %74, %2 in 1 : vector<2x896xbf16>, vector<2x128xbf16> -> vector<2x1024xbf16>
    %cst_53 = arith.constant dense<0.000000e+00> : vector<8x1024xf32>
    %76 = tpu.matmul %73, %75, %cst_53 {dimension_numbers = #tpu.dot_dimension_numbers<[1], [0], [0], [1], [0, 0, 1, 1], [], []>} : vector<8x2xbf16>, vector<2x1024xbf16>, vector<8x1024xf32> -> vector<8x1024xf32>
    %77 = arith.addf %71, %76 : vector<8x1024xf32>
    %c0_54 = arith.constant 0 : index
    %c2048 = arith.constant 2048 : index
    %78 = vector.load %arg0[%c0_54, %c2048] : memref<2x8192xbf16, #tpu.memory_space<vmem>>, vector<2x1024xbf16>
    %c6_55 = arith.constant 6 : index
    %c0_56 = arith.constant 0 : index
    %c0_57 = arith.constant 0 : index
    %79 = vector.load %arg5[%c6_55, %c0_56, %c0_57] : memref<9x8x2xbf16, #tpu.memory_space<vmem>>, vector<1x8x2xbf16>
    %80 = vector.shape_cast %79 : vector<1x8x2xbf16> to vector<8x2xbf16>
    %81 = vector.extract_strided_slice %78 {offsets = [0, 0], sizes = [2, 896], strides = [1, 1]} : vector<2x1024xbf16> to vector<2x896xbf16>
    %82 = tpu.concatenate %2, %81 in 1 : vector<2x128xbf16>, vector<2x896xbf16> -> vector<2x1024xbf16>
    %cst_58 = arith.constant dense<0.000000e+00> : vector<8x1024xf32>
    %83 = tpu.matmul %80, %82, %cst_58 {dimension_numbers = #tpu.dot_dimension_numbers<[1], [0], [0], [1], [0, 0, 1, 1], [], []>} : vector<8x2xbf16>, vector<2x1024xbf16>, vector<8x1024xf32> -> vector<8x1024xf32>
    %84 = arith.addf %77, %83 : vector<8x1024xf32>
    %c7_59 = arith.constant 7 : index
    %c0_60 = arith.constant 0 : index
    %c0_61 = arith.constant 0 : index
    %85 = vector.load %arg5[%c7_59, %c0_60, %c0_61] : memref<9x8x2xbf16, #tpu.memory_space<vmem>>, vector<1x8x2xbf16>
    %86 = vector.shape_cast %85 : vector<1x8x2xbf16> to vector<8x2xbf16>
    %cst_62 = arith.constant dense<0.000000e+00> : vector<8x1024xf32>
    %87 = tpu.matmul %86, %78, %cst_62 {dimension_numbers = #tpu.dot_dimension_numbers<[1], [0], [0], [1], [0, 0, 1, 1], [], []>} : vector<8x2xbf16>, vector<2x1024xbf16>, vector<8x1024xf32> -> vector<8x1024xf32>
    %88 = arith.addf %84, %87 : vector<8x1024xf32>
    %c8_63 = arith.constant 8 : index
    %c0_64 = arith.constant 0 : index
    %c0_65 = arith.constant 0 : index
    %89 = vector.load %arg5[%c8_63, %c0_64, %c0_65] : memref<9x8x2xbf16, #tpu.memory_space<vmem>>, vector<1x8x2xbf16>
    %90 = vector.shape_cast %89 : vector<1x8x2xbf16> to vector<8x2xbf16>
    %91 = vector.extract_strided_slice %78 {offsets = [0, 128], sizes = [2, 896], strides = [1, 1]} : vector<2x1024xbf16> to vector<2x896xbf16>
    %92 = tpu.concatenate %91, %2 in 1 : vector<2x896xbf16>, vector<2x128xbf16> -> vector<2x1024xbf16>
    %cst_66 = arith.constant dense<0.000000e+00> : vector<8x1024xf32>
    %93 = tpu.matmul %90, %92, %cst_66 {dimension_numbers = #tpu.dot_dimension_numbers<[1], [0], [0], [1], [0, 0, 1, 1], [], []>} : vector<8x2xbf16>, vector<2x1024xbf16>, vector<8x1024xf32> -> vector<8x1024xf32>
    %94 = arith.addf %88, %93 : vector<8x1024xf32>
    %95 = vector.broadcast %0 : vector<8x1xf32> to vector<8x1024xf32>
    %96 = arith.addf %94, %95 : vector<8x1024xf32>
    %cst_67 = arith.constant 0.000000e+00 : f32
    %97 = vector.broadcast %cst_67 : f32 to vector<8x1024xf32>
    %98 = arith.maximumf %96, %97 : vector<8x1024xf32>
    %99 = arith.maximumf %42, %98 : vector<8x1024xf32>
    %100 = vector.extract_strided_slice %99 {offsets = [0, 0], sizes = [8, 128], strides = [1, 1]} : vector<8x1024xf32> to vector<8x128xf32>
    %101 = vector.extract_strided_slice %99 {offsets = [0, 256], sizes = [8, 128], strides = [1, 1]} : vector<8x1024xf32> to vector<8x128xf32>
    %102 = vector.extract_strided_slice %99 {offsets = [0, 512], sizes = [8, 128], strides = [1, 1]} : vector<8x1024xf32> to vector<8x128xf32>
    %103 = vector.extract_strided_slice %99 {offsets = [0, 768], sizes = [8, 128], strides = [1, 1]} : vector<8x1024xf32> to vector<8x128xf32>
    %104 = tpu.concatenate %100, %101, %102, %103 in 1 : vector<8x128xf32>, vector<8x128xf32>, vector<8x128xf32>, vector<8x128xf32> -> vector<8x512xf32>
    %105 = vector.extract_strided_slice %99 {offsets = [0, 128], sizes = [8, 128], strides = [1, 1]} : vector<8x1024xf32> to vector<8x128xf32>
    %106 = vector.extract_strided_slice %99 {offsets = [0, 384], sizes = [8, 128], strides = [1, 1]} : vector<8x1024xf32> to vector<8x128xf32>
    %107 = vector.extract_strided_slice %99 {offsets = [0, 640], sizes = [8, 128], strides = [1, 1]} : vector<8x1024xf32> to vector<8x128xf32>
    %108 = vector.extract_strided_slice %99 {offsets = [0, 896], sizes = [8, 128], strides = [1, 1]} : vector<8x1024xf32> to vector<8x128xf32>
    %109 = tpu.concatenate %105, %106, %107, %108 in 1 : vector<8x128xf32>, vector<8x128xf32>, vector<8x128xf32>, vector<8x128xf32> -> vector<8x512xf32>
    %110 = arith.maximumf %104, %109 : vector<8x512xf32>
    %111 = arith.truncf %110 : vector<8x512xf32> to vector<8x512xbf16>
    %cst_68 = arith.constant 0.000000e+00 : f32
    %112 = vector.broadcast %cst_68 : f32 to vector<8x1024xf32>
    %c0_69 = arith.constant 0 : index
    %c1024_70 = arith.constant 1024 : index
    %113 = vector.load %arg0[%c0_69, %c1024_70] : memref<2x8192xbf16, #tpu.memory_space<vmem>>, vector<2x1024xbf16>
    %c0_71 = arith.constant 0 : index
    %c0_72 = arith.constant 0 : index
    %c0_73 = arith.constant 0 : index
    %114 = vector.load %arg5[%c0_71, %c0_72, %c0_73] : memref<9x8x2xbf16, #tpu.memory_space<vmem>>, vector<1x8x2xbf16>
    %115 = vector.shape_cast %114 : vector<1x8x2xbf16> to vector<8x2xbf16>
    %116 = vector.extract_strided_slice %113 {offsets = [0, 0], sizes = [2, 896], strides = [1, 1]} : vector<2x1024xbf16> to vector<2x896xbf16>
    %117 = tpu.concatenate %2, %116 in 1 : vector<2x128xbf16>, vector<2x896xbf16> -> vector<2x1024xbf16>
    %cst_74 = arith.constant dense<0.000000e+00> : vector<8x1024xf32>
    %118 = tpu.matmul %115, %117, %cst_74 {dimension_numbers = #tpu.dot_dimension_numbers<[1], [0], [0], [1], [0, 0, 1, 1], [], []>} : vector<8x2xbf16>, vector<2x1024xbf16>, vector<8x1024xf32> -> vector<8x1024xf32>
    %119 = arith.addf %112, %118 : vector<8x1024xf32>
    %c1_75 = arith.constant 1 : index
    %c0_76 = arith.constant 0 : index
    %c0_77 = arith.constant 0 : index
    %120 = vector.load %arg5[%c1_75, %c0_76, %c0_77] : memref<9x8x2xbf16, #tpu.memory_space<vmem>>, vector<1x8x2xbf16>
    %121 = vector.shape_cast %120 : vector<1x8x2xbf16> to vector<8x2xbf16>
    %cst_78 = arith.constant dense<0.000000e+00> : vector<8x1024xf32>
    %122 = tpu.matmul %121, %113, %cst_78 {dimension_numbers = #tpu.dot_dimension_numbers<[1], [0], [0], [1], [0, 0, 1, 1], [], []>} : vector<8x2xbf16>, vector<2x1024xbf16>, vector<8x1024xf32> -> vector<8x1024xf32>
    %123 = arith.addf %119, %122 : vector<8x1024xf32>
    %c2_79 = arith.constant 2 : index
    %c0_80 = arith.constant 0 : index
    %c0_81 = arith.constant 0 : index
    %124 = vector.load %arg5[%c2_79, %c0_80, %c0_81] : memref<9x8x2xbf16, #tpu.memory_space<vmem>>, vector<1x8x2xbf16>
    %125 = vector.shape_cast %124 : vector<1x8x2xbf16> to vector<8x2xbf16>
    %126 = vector.extract_strided_slice %113 {offsets = [0, 128], sizes = [2, 896], strides = [1, 1]} : vector<2x1024xbf16> to vector<2x896xbf16>
    %127 = tpu.concatenate %126, %2 in 1 : vector<2x896xbf16>, vector<2x128xbf16> -> vector<2x1024xbf16>
    %cst_82 = arith.constant dense<0.000000e+00> : vector<8x1024xf32>
    %128 = tpu.matmul %125, %127, %cst_82 {dimension_numbers = #tpu.dot_dimension_numbers<[1], [0], [0], [1], [0, 0, 1, 1], [], []>} : vector<8x2xbf16>, vector<2x1024xbf16>, vector<8x1024xf32> -> vector<8x1024xf32>
    %129 = arith.addf %123, %128 : vector<8x1024xf32>
    %c0_83 = arith.constant 0 : index
    %c2048_84 = arith.constant 2048 : index
    %130 = vector.load %arg0[%c0_83, %c2048_84] : memref<2x8192xbf16, #tpu.memory_space<vmem>>, vector<2x1024xbf16>
    %c3_85 = arith.constant 3 : index
    %c0_86 = arith.constant 0 : index
    %c0_87 = arith.constant 0 : index
    %131 = vector.load %arg5[%c3_85, %c0_86, %c0_87] : memref<9x8x2xbf16, #tpu.memory_space<vmem>>, vector<1x8x2xbf16>
    %132 = vector.shape_cast %131 : vector<1x8x2xbf16> to vector<8x2xbf16>
    %133 = vector.extract_strided_slice %130 {offsets = [0, 0], sizes = [2, 896], strides = [1, 1]} : vector<2x1024xbf16> to vector<2x896xbf16>
    %134 = tpu.concatenate %2, %133 in 1 : vector<2x128xbf16>, vector<2x896xbf16> -> vector<2x1024xbf16>
    %cst_88 = arith.constant dense<0.000000e+00> : vector<8x1024xf32>
    %135 = tpu.matmul %132, %134, %cst_88 {dimension_numbers = #tpu.dot_dimension_numbers<[1], [0], [0], [1], [0, 0, 1, 1], [], []>} : vector<8x2xbf16>, vector<2x1024xbf16>, vector<8x1024xf32> -> vector<8x1024xf32>
    %136 = arith.addf %129, %135 : vector<8x1024xf32>
    %c4_89 = arith.constant 4 : index
    %c0_90 = arith.constant 0 : index
    %c0_91 = arith.constant 0 : index
    %137 = vector.load %arg5[%c4_89, %c0_90, %c0_91] : memref<9x8x2xbf16, #tpu.memory_space<vmem>>, vector<1x8x2xbf16>
    %138 = vector.shape_cast %137 : vector<1x8x2xbf16> to vector<8x2xbf16>
    %cst_92 = arith.constant dense<0.000000e+00> : vector<8x1024xf32>
    %139 = tpu.matmul %138, %130, %cst_92 {dimension_numbers = #tpu.dot_dimension_numbers<[1], [0], [0], [1], [0, 0, 1, 1], [], []>} : vector<8x2xbf16>, vector<2x1024xbf16>, vector<8x1024xf32> -> vector<8x1024xf32>
    %140 = arith.addf %136, %139 : vector<8x1024xf32>
    %c5_93 = arith.constant 5 : index
    %c0_94 = arith.constant 0 : index
    %c0_95 = arith.constant 0 : index
    %141 = vector.load %arg5[%c5_93, %c0_94, %c0_95] : memref<9x8x2xbf16, #tpu.memory_space<vmem>>, vector<1x8x2xbf16>
    %142 = vector.shape_cast %141 : vector<1x8x2xbf16> to vector<8x2xbf16>
    %143 = vector.extract_strided_slice %130 {offsets = [0, 128], sizes = [2, 896], strides = [1, 1]} : vector<2x1024xbf16> to vector<2x896xbf16>
    %144 = tpu.concatenate %143, %2 in 1 : vector<2x896xbf16>, vector<2x128xbf16> -> vector<2x1024xbf16>
    %cst_96 = arith.constant dense<0.000000e+00> : vector<8x1024xf32>
    %145 = tpu.matmul %142, %144, %cst_96 {dimension_numbers = #tpu.dot_dimension_numbers<[1], [0], [0], [1], [0, 0, 1, 1], [], []>} : vector<8x2xbf16>, vector<2x1024xbf16>, vector<8x1024xf32> -> vector<8x1024xf32>
    %146 = arith.addf %140, %145 : vector<8x1024xf32>
    %c0_97 = arith.constant 0 : index
    %c3072 = arith.constant 3072 : index
    %147 = vector.load %arg0[%c0_97, %c3072] : memref<2x8192xbf16, #tpu.memory_space<vmem>>, vector<2x1024xbf16>
    %c6_98 = arith.constant 6 : index
    %c0_99 = arith.constant 0 : index
    %c0_100 = arith.constant 0 : index
    %148 = vector.load %arg5[%c6_98, %c0_99, %c0_100] : memref<9x8x2xbf16, #tpu.memory_space<vmem>>, vector<1x8x2xbf16>
    %149 = vector.shape_cast %148 : vector<1x8x2xbf16> to vector<8x2xbf16>
    %150 = vector.extract_strided_slice %147 {offsets = [0, 0], sizes = [2, 896], strides = [1, 1]} : vector<2x1024xbf16> to vector<2x896xbf16>
    %151 = tpu.concatenate %2, %150 in 1 : vector<2x128xbf16>, vector<2x896xbf16> -> vector<2x1024xbf16>
    %cst_101 = arith.constant dense<0.000000e+00> : vector<8x1024xf32>
    %152 = tpu.matmul %149, %151, %cst_101 {dimension_numbers = #tpu.dot_dimension_numbers<[1], [0], [0], [1], [0, 0, 1, 1], [], []>} : vector<8x2xbf16>, vector<2x1024xbf16>, vector<8x1024xf32> -> vector<8x1024xf32>
    %153 = arith.addf %146, %152 : vector<8x1024xf32>
    %c7_102 = arith.constant 7 : index
    %c0_103 = arith.constant 0 : index
    %c0_104 = arith.constant 0 : index
    %154 = vector.load %arg5[%c7_102, %c0_103, %c0_104] : memref<9x8x2xbf16, #tpu.memory_space<vmem>>, vector<1x8x2xbf16>
    %155 = vector.shape_cast %154 : vector<1x8x2xbf16> to vector<8x2xbf16>
    %cst_105 = arith.constant dense<0.000000e+00> : vector<8x1024xf32>
    %156 = tpu.matmul %155, %147, %cst_105 {dimension_numbers = #tpu.dot_dimension_numbers<[1], [0], [0], [1], [0, 0, 1, 1], [], []>} : vector<8x2xbf16>, vector<2x1024xbf16>, vector<8x1024xf32> -> vector<8x1024xf32>
    %157 = arith.addf %153, %156 : vector<8x1024xf32>
    %c8_106 = arith.constant 8 : index
    %c0_107 = arith.constant 0 : index
    %c0_108 = arith.constant 0 : index
    %158 = vector.load %arg5[%c8_106, %c0_107, %c0_108] : memref<9x8x2xbf16, #tpu.memory_space<vmem>>, vector<1x8x2xbf16>
    %159 = vector.shape_cast %158 : vector<1x8x2xbf16> to vector<8x2xbf16>
    %160 = vector.extract_strided_slice %147 {offsets = [0, 128], sizes = [2, 896], strides = [1, 1]} : vector<2x1024xbf16> to vector<2x896xbf16>
    %161 = tpu.concatenate %160, %2 in 1 : vector<2x896xbf16>, vector<2x128xbf16> -> vector<2x1024xbf16>
    %cst_109 = arith.constant dense<0.000000e+00> : vector<8x1024xf32>
    %162 = tpu.matmul %159, %161, %cst_109 {dimension_numbers = #tpu.dot_dimension_numbers<[1], [0], [0], [1], [0, 0, 1, 1], [], []>} : vector<8x2xbf16>, vector<2x1024xbf16>, vector<8x1024xf32> -> vector<8x1024xf32>
    %163 = arith.addf %157, %162 : vector<8x1024xf32>
    %164 = vector.broadcast %0 : vector<8x1xf32> to vector<8x1024xf32>
    %165 = arith.addf %163, %164 : vector<8x1024xf32>
    %cst_110 = arith.constant 0.000000e+00 : f32
    %166 = vector.broadcast %cst_110 : f32 to vector<8x1024xf32>
    %167 = arith.maximumf %165, %166 : vector<8x1024xf32>
    %cst_111 = arith.constant 0.000000e+00 : f32
    %168 = vector.broadcast %cst_111 : f32 to vector<8x1024xf32>
    %c0_112 = arith.constant 0 : index
    %c2048_113 = arith.constant 2048 : index
    %169 = vector.load %arg0[%c0_112, %c2048_113] : memref<2x8192xbf16, #tpu.memory_space<vmem>>, vector<2x1024xbf16>
    %c0_114 = arith.constant 0 : index
    %c0_115 = arith.constant 0 : index
    %c0_116 = arith.constant 0 : index
    %170 = vector.load %arg5[%c0_114, %c0_115, %c0_116] : memref<9x8x2xbf16, #tpu.memory_space<vmem>>, vector<1x8x2xbf16>
    %171 = vector.shape_cast %170 : vector<1x8x2xbf16> to vector<8x2xbf16>
    %172 = vector.extract_strided_slice %169 {offsets = [0, 0], sizes = [2, 896], strides = [1, 1]} : vector<2x1024xbf16> to vector<2x896xbf16>
    %173 = tpu.concatenate %2, %172 in 1 : vector<2x128xbf16>, vector<2x896xbf16> -> vector<2x1024xbf16>
    %cst_117 = arith.constant dense<0.000000e+00> : vector<8x1024xf32>
    %174 = tpu.matmul %171, %173, %cst_117 {dimension_numbers = #tpu.dot_dimension_numbers<[1], [0], [0], [1], [0, 0, 1, 1], [], []>} : vector<8x2xbf16>, vector<2x1024xbf16>, vector<8x1024xf32> -> vector<8x1024xf32>
    %175 = arith.addf %168, %174 : vector<8x1024xf32>
    %c1_118 = arith.constant 1 : index
    %c0_119 = arith.constant 0 : index
    %c0_120 = arith.constant 0 : index
    %176 = vector.load %arg5[%c1_118, %c0_119, %c0_120] : memref<9x8x2xbf16, #tpu.memory_space<vmem>>, vector<1x8x2xbf16>
    %177 = vector.shape_cast %176 : vector<1x8x2xbf16> to vector<8x2xbf16>
    %cst_121 = arith.constant dense<0.000000e+00> : vector<8x1024xf32>
    %178 = tpu.matmul %177, %169, %cst_121 {dimension_numbers = #tpu.dot_dimension_numbers<[1], [0], [0], [1], [0, 0, 1, 1], [], []>} : vector<8x2xbf16>, vector<2x1024xbf16>, vector<8x1024xf32> -> vector<8x1024xf32>
    %179 = arith.addf %175, %178 : vector<8x1024xf32>
    %c2_122 = arith.constant 2 : index
    %c0_123 = arith.constant 0 : index
    %c0_124 = arith.constant 0 : index
    %180 = vector.load %arg5[%c2_122, %c0_123, %c0_124] : memref<9x8x2xbf16, #tpu.memory_space<vmem>>, vector<1x8x2xbf16>
    %181 = vector.shape_cast %180 : vector<1x8x2xbf16> to vector<8x2xbf16>
    %182 = vector.extract_strided_slice %169 {offsets = [0, 128], sizes = [2, 896], strides = [1, 1]} : vector<2x1024xbf16> to vector<2x896xbf16>
    %183 = tpu.concatenate %182, %2 in 1 : vector<2x896xbf16>, vector<2x128xbf16> -> vector<2x1024xbf16>
    %cst_125 = arith.constant dense<0.000000e+00> : vector<8x1024xf32>
    %184 = tpu.matmul %181, %183, %cst_125 {dimension_numbers = #tpu.dot_dimension_numbers<[1], [0], [0], [1], [0, 0, 1, 1], [], []>} : vector<8x2xbf16>, vector<2x1024xbf16>, vector<8x1024xf32> -> vector<8x1024xf32>
    %185 = arith.addf %179, %184 : vector<8x1024xf32>
    %c0_126 = arith.constant 0 : index
    %c3072_127 = arith.constant 3072 : index
    %186 = vector.load %arg0[%c0_126, %c3072_127] : memref<2x8192xbf16, #tpu.memory_space<vmem>>, vector<2x1024xbf16>
    %c3_128 = arith.constant 3 : index
    %c0_129 = arith.constant 0 : index
    %c0_130 = arith.constant 0 : index
    %187 = vector.load %arg5[%c3_128, %c0_129, %c0_130] : memref<9x8x2xbf16, #tpu.memory_space<vmem>>, vector<1x8x2xbf16>
    %188 = vector.shape_cast %187 : vector<1x8x2xbf16> to vector<8x2xbf16>
    %189 = vector.extract_strided_slice %186 {offsets = [0, 0], sizes = [2, 896], strides = [1, 1]} : vector<2x1024xbf16> to vector<2x896xbf16>
    %190 = tpu.concatenate %2, %189 in 1 : vector<2x128xbf16>, vector<2x896xbf16> -> vector<2x1024xbf16>
    %cst_131 = arith.constant dense<0.000000e+00> : vector<8x1024xf32>
    %191 = tpu.matmul %188, %190, %cst_131 {dimension_numbers = #tpu.dot_dimension_numbers<[1], [0], [0], [1], [0, 0, 1, 1], [], []>} : vector<8x2xbf16>, vector<2x1024xbf16>, vector<8x1024xf32> -> vector<8x1024xf32>
    %192 = arith.addf %185, %191 : vector<8x1024xf32>
    %c4_132 = arith.constant 4 : index
    %c0_133 = arith.constant 0 : index
    %c0_134 = arith.constant 0 : index
    %193 = vector.load %arg5[%c4_132, %c0_133, %c0_134] : memref<9x8x2xbf16, #tpu.memory_space<vmem>>, vector<1x8x2xbf16>
    %194 = vector.shape_cast %193 : vector<1x8x2xbf16> to vector<8x2xbf16>
    %cst_135 = arith.constant dense<0.000000e+00> : vector<8x1024xf32>
    %195 = tpu.matmul %194, %186, %cst_135 {dimension_numbers = #tpu.dot_dimension_numbers<[1], [0], [0], [1], [0, 0, 1, 1], [], []>} : vector<8x2xbf16>, vector<2x1024xbf16>, vector<8x1024xf32> -> vector<8x1024xf32>
    %196 = arith.addf %192, %195 : vector<8x1024xf32>
    %c5_136 = arith.constant 5 : index
    %c0_137 = arith.constant 0 : index
    %c0_138 = arith.constant 0 : index
    %197 = vector.load %arg5[%c5_136, %c0_137, %c0_138] : memref<9x8x2xbf16, #tpu.memory_space<vmem>>, vector<1x8x2xbf16>
    %198 = vector.shape_cast %197 : vector<1x8x2xbf16> to vector<8x2xbf16>
    %199 = vector.extract_strided_slice %186 {offsets = [0, 128], sizes = [2, 896], strides = [1, 1]} : vector<2x1024xbf16> to vector<2x896xbf16>
    %200 = tpu.concatenate %199, %2 in 1 : vector<2x896xbf16>, vector<2x128xbf16> -> vector<2x1024xbf16>
    %cst_139 = arith.constant dense<0.000000e+00> : vector<8x1024xf32>
    %201 = tpu.matmul %198, %200, %cst_139 {dimension_numbers = #tpu.dot_dimension_numbers<[1], [0], [0], [1], [0, 0, 1, 1], [], []>} : vector<8x2xbf16>, vector<2x1024xbf16>, vector<8x1024xf32> -> vector<8x1024xf32>
    %202 = arith.addf %196, %201 : vector<8x1024xf32>
    %c0_140 = arith.constant 0 : index
    %c4096 = arith.constant 4096 : index
    %203 = vector.load %arg0[%c0_140, %c4096] : memref<2x8192xbf16, #tpu.memory_space<vmem>>, vector<2x1024xbf16>
    %c6_141 = arith.constant 6 : index
    %c0_142 = arith.constant 0 : index
    %c0_143 = arith.constant 0 : index
    %204 = vector.load %arg5[%c6_141, %c0_142, %c0_143] : memref<9x8x2xbf16, #tpu.memory_space<vmem>>, vector<1x8x2xbf16>
    %205 = vector.shape_cast %204 : vector<1x8x2xbf16> to vector<8x2xbf16>
    %206 = vector.extract_strided_slice %203 {offsets = [0, 0], sizes = [2, 896], strides = [1, 1]} : vector<2x1024xbf16> to vector<2x896xbf16>
    %207 = tpu.concatenate %2, %206 in 1 : vector<2x128xbf16>, vector<2x896xbf16> -> vector<2x1024xbf16>
    %cst_144 = arith.constant dense<0.000000e+00> : vector<8x1024xf32>
    %208 = tpu.matmul %205, %207, %cst_144 {dimension_numbers = #tpu.dot_dimension_numbers<[1], [0], [0], [1], [0, 0, 1, 1], [], []>} : vector<8x2xbf16>, vector<2x1024xbf16>, vector<8x1024xf32> -> vector<8x1024xf32>
    %209 = arith.addf %202, %208 : vector<8x1024xf32>
    %c7_145 = arith.constant 7 : index
    %c0_146 = arith.constant 0 : index
    %c0_147 = arith.constant 0 : index
    %210 = vector.load %arg5[%c7_145, %c0_146, %c0_147] : memref<9x8x2xbf16, #tpu.memory_space<vmem>>, vector<1x8x2xbf16>
    %211 = vector.shape_cast %210 : vector<1x8x2xbf16> to vector<8x2xbf16>
    %cst_148 = arith.constant dense<0.000000e+00> : vector<8x1024xf32>
    %212 = tpu.matmul %211, %203, %cst_148 {dimension_numbers = #tpu.dot_dimension_numbers<[1], [0], [0], [1], [0, 0, 1, 1], [], []>} : vector<8x2xbf16>, vector<2x1024xbf16>, vector<8x1024xf32> -> vector<8x1024xf32>
    %213 = arith.addf %209, %212 : vector<8x1024xf32>
    %c8_149 = arith.constant 8 : index
    %c0_150 = arith.constant 0 : index
    %c0_151 = arith.constant 0 : index
    %214 = vector.load %arg5[%c8_149, %c0_150, %c0_151] : memref<9x8x2xbf16, #tpu.memory_space<vmem>>, vector<1x8x2xbf16>
    %215 = vector.shape_cast %214 : vector<1x8x2xbf16> to vector<8x2xbf16>
    %216 = vector.extract_strided_slice %203 {offsets = [0, 128], sizes = [2, 896], strides = [1, 1]} : vector<2x1024xbf16> to vector<2x896xbf16>
    %217 = tpu.concatenate %216, %2 in 1 : vector<2x896xbf16>, vector<2x128xbf16> -> vector<2x1024xbf16>
    %cst_152 = arith.constant dense<0.000000e+00> : vector<8x1024xf32>
    %218 = tpu.matmul %215, %217, %cst_152 {dimension_numbers = #tpu.dot_dimension_numbers<[1], [0], [0], [1], [0, 0, 1, 1], [], []>} : vector<8x2xbf16>, vector<2x1024xbf16>, vector<8x1024xf32> -> vector<8x1024xf32>
    %219 = arith.addf %213, %218 : vector<8x1024xf32>
    %220 = vector.broadcast %0 : vector<8x1xf32> to vector<8x1024xf32>
    %221 = arith.addf %219, %220 : vector<8x1024xf32>
    %cst_153 = arith.constant 0.000000e+00 : f32
    %222 = vector.broadcast %cst_153 : f32 to vector<8x1024xf32>
    %223 = arith.maximumf %221, %222 : vector<8x1024xf32>
    %224 = arith.maximumf %167, %223 : vector<8x1024xf32>
    %225 = vector.extract_strided_slice %224 {offsets = [0, 0], sizes = [8, 128], strides = [1, 1]} : vector<8x1024xf32> to vector<8x128xf32>
    %226 = vector.extract_strided_slice %224 {offsets = [0, 256], sizes = [8, 128], strides = [1, 1]} : vector<8x1024xf32> to vector<8x128xf32>
    %227 = vector.extract_strided_slice %224 {offsets = [0, 512], sizes = [8, 128], strides = [1, 1]} : vector<8x1024xf32> to vector<8x128xf32>
    %228 = vector.extract_strided_slice %224 {offsets = [0, 768], sizes = [8, 128], strides = [1, 1]} : vector<8x1024xf32> to vector<8x128xf32>
    %229 = tpu.concatenate %225, %226, %227, %228 in 1 : vector<8x128xf32>, vector<8x128xf32>, vector<8x128xf32>, vector<8x128xf32> -> vector<8x512xf32>
    %230 = vector.extract_strided_slice %224 {offsets = [0, 128], sizes = [8, 128], strides = [1, 1]} : vector<8x1024xf32> to vector<8x128xf32>
    %231 = vector.extract_strided_slice %224 {offsets = [0, 384], sizes = [8, 128], strides = [1, 1]} : vector<8x1024xf32> to vector<8x128xf32>
    %232 = vector.extract_strided_slice %224 {offsets = [0, 640], sizes = [8, 128], strides = [1, 1]} : vector<8x1024xf32> to vector<8x128xf32>
    %233 = vector.extract_strided_slice %224 {offsets = [0, 896], sizes = [8, 128], strides = [1, 1]} : vector<8x1024xf32> to vector<8x128xf32>
    %234 = tpu.concatenate %230, %231, %232, %233 in 1 : vector<8x128xf32>, vector<8x128xf32>, vector<8x128xf32>, vector<8x128xf32> -> vector<8x512xf32>
    %235 = arith.maximumf %229, %234 : vector<8x512xf32>
    %236 = arith.truncf %235 : vector<8x512xf32> to vector<8x512xbf16>
    %cst_154 = arith.constant 0.000000e+00 : f32
    %237 = vector.broadcast %cst_154 : f32 to vector<8x1024xf32>
    %c0_155 = arith.constant 0 : index
    %c3072_156 = arith.constant 3072 : index
    %238 = vector.load %arg0[%c0_155, %c3072_156] : memref<2x8192xbf16, #tpu.memory_space<vmem>>, vector<2x1024xbf16>
    %c0_157 = arith.constant 0 : index
    %c0_158 = arith.constant 0 : index
    %c0_159 = arith.constant 0 : index
    %239 = vector.load %arg5[%c0_157, %c0_158, %c0_159] : memref<9x8x2xbf16, #tpu.memory_space<vmem>>, vector<1x8x2xbf16>
    %240 = vector.shape_cast %239 : vector<1x8x2xbf16> to vector<8x2xbf16>
    %241 = vector.extract_strided_slice %238 {offsets = [0, 0], sizes = [2, 896], strides = [1, 1]} : vector<2x1024xbf16> to vector<2x896xbf16>
    %242 = tpu.concatenate %2, %241 in 1 : vector<2x128xbf16>, vector<2x896xbf16> -> vector<2x1024xbf16>
    %cst_160 = arith.constant dense<0.000000e+00> : vector<8x1024xf32>
    %243 = tpu.matmul %240, %242, %cst_160 {dimension_numbers = #tpu.dot_dimension_numbers<[1], [0], [0], [1], [0, 0, 1, 1], [], []>} : vector<8x2xbf16>, vector<2x1024xbf16>, vector<8x1024xf32> -> vector<8x1024xf32>
    %244 = arith.addf %237, %243 : vector<8x1024xf32>
    %c1_161 = arith.constant 1 : index
    %c0_162 = arith.constant 0 : index
    %c0_163 = arith.constant 0 : index
    %245 = vector.load %arg5[%c1_161, %c0_162, %c0_163] : memref<9x8x2xbf16, #tpu.memory_space<vmem>>, vector<1x8x2xbf16>
    %246 = vector.shape_cast %245 : vector<1x8x2xbf16> to vector<8x2xbf16>
    %cst_164 = arith.constant dense<0.000000e+00> : vector<8x1024xf32>
    %247 = tpu.matmul %246, %238, %cst_164 {dimension_numbers = #tpu.dot_dimension_numbers<[1], [0], [0], [1], [0, 0, 1, 1], [], []>} : vector<8x2xbf16>, vector<2x1024xbf16>, vector<8x1024xf32> -> vector<8x1024xf32>
    %248 = arith.addf %244, %247 : vector<8x1024xf32>
    %c2_165 = arith.constant 2 : index
    %c0_166 = arith.constant 0 : index
    %c0_167 = arith.constant 0 : index
    %249 = vector.load %arg5[%c2_165, %c0_166, %c0_167] : memref<9x8x2xbf16, #tpu.memory_space<vmem>>, vector<1x8x2xbf16>
    %250 = vector.shape_cast %249 : vector<1x8x2xbf16> to vector<8x2xbf16>
    %251 = vector.extract_strided_slice %238 {offsets = [0, 128], sizes = [2, 896], strides = [1, 1]} : vector<2x1024xbf16> to vector<2x896xbf16>
    %252 = tpu.concatenate %251, %2 in 1 : vector<2x896xbf16>, vector<2x128xbf16> -> vector<2x1024xbf16>
    %cst_168 = arith.constant dense<0.000000e+00> : vector<8x1024xf32>
    %253 = tpu.matmul %250, %252, %cst_168 {dimension_numbers = #tpu.dot_dimension_numbers<[1], [0], [0], [1], [0, 0, 1, 1], [], []>} : vector<8x2xbf16>, vector<2x1024xbf16>, vector<8x1024xf32> -> vector<8x1024xf32>
    %254 = arith.addf %248, %253 : vector<8x1024xf32>
    %c0_169 = arith.constant 0 : index
    %c4096_170 = arith.constant 4096 : index
    %255 = vector.load %arg0[%c0_169, %c4096_170] : memref<2x8192xbf16, #tpu.memory_space<vmem>>, vector<2x1024xbf16>
    %c3_171 = arith.constant 3 : index
    %c0_172 = arith.constant 0 : index
    %c0_173 = arith.constant 0 : index
    %256 = vector.load %arg5[%c3_171, %c0_172, %c0_173] : memref<9x8x2xbf16, #tpu.memory_space<vmem>>, vector<1x8x2xbf16>
    %257 = vector.shape_cast %256 : vector<1x8x2xbf16> to vector<8x2xbf16>
    %258 = vector.extract_strided_slice %255 {offsets = [0, 0], sizes = [2, 896], strides = [1, 1]} : vector<2x1024xbf16> to vector<2x896xbf16>
    %259 = tpu.concatenate %2, %258 in 1 : vector<2x128xbf16>, vector<2x896xbf16> -> vector<2x1024xbf16>
    %cst_174 = arith.constant dense<0.000000e+00> : vector<8x1024xf32>
    %260 = tpu.matmul %257, %259, %cst_174 {dimension_numbers = #tpu.dot_dimension_numbers<[1], [0], [0], [1], [0, 0, 1, 1], [], []>} : vector<8x2xbf16>, vector<2x1024xbf16>, vector<8x1024xf32> -> vector<8x1024xf32>
    %261 = arith.addf %254, %260 : vector<8x1024xf32>
    %c4_175 = arith.constant 4 : index
    %c0_176 = arith.constant 0 : index
    %c0_177 = arith.constant 0 : index
    %262 = vector.load %arg5[%c4_175, %c0_176, %c0_177] : memref<9x8x2xbf16, #tpu.memory_space<vmem>>, vector<1x8x2xbf16>
    %263 = vector.shape_cast %262 : vector<1x8x2xbf16> to vector<8x2xbf16>
    %cst_178 = arith.constant dense<0.000000e+00> : vector<8x1024xf32>
    %264 = tpu.matmul %263, %255, %cst_178 {dimension_numbers = #tpu.dot_dimension_numbers<[1], [0], [0], [1], [0, 0, 1, 1], [], []>} : vector<8x2xbf16>, vector<2x1024xbf16>, vector<8x1024xf32> -> vector<8x1024xf32>
    %265 = arith.addf %261, %264 : vector<8x1024xf32>
    %c5_179 = arith.constant 5 : index
    %c0_180 = arith.constant 0 : index
    %c0_181 = arith.constant 0 : index
    %266 = vector.load %arg5[%c5_179, %c0_180, %c0_181] : memref<9x8x2xbf16, #tpu.memory_space<vmem>>, vector<1x8x2xbf16>
    %267 = vector.shape_cast %266 : vector<1x8x2xbf16> to vector<8x2xbf16>
    %268 = vector.extract_strided_slice %255 {offsets = [0, 128], sizes = [2, 896], strides = [1, 1]} : vector<2x1024xbf16> to vector<2x896xbf16>
    %269 = tpu.concatenate %268, %2 in 1 : vector<2x896xbf16>, vector<2x128xbf16> -> vector<2x1024xbf16>
    %cst_182 = arith.constant dense<0.000000e+00> : vector<8x1024xf32>
    %270 = tpu.matmul %267, %269, %cst_182 {dimension_numbers = #tpu.dot_dimension_numbers<[1], [0], [0], [1], [0, 0, 1, 1], [], []>} : vector<8x2xbf16>, vector<2x1024xbf16>, vector<8x1024xf32> -> vector<8x1024xf32>
    %271 = arith.addf %265, %270 : vector<8x1024xf32>
    %c0_183 = arith.constant 0 : index
    %c5120 = arith.constant 5120 : index
    %272 = vector.load %arg0[%c0_183, %c5120] : memref<2x8192xbf16, #tpu.memory_space<vmem>>, vector<2x1024xbf16>
    %c6_184 = arith.constant 6 : index
    %c0_185 = arith.constant 0 : index
    %c0_186 = arith.constant 0 : index
    %273 = vector.load %arg5[%c6_184, %c0_185, %c0_186] : memref<9x8x2xbf16, #tpu.memory_space<vmem>>, vector<1x8x2xbf16>
    %274 = vector.shape_cast %273 : vector<1x8x2xbf16> to vector<8x2xbf16>
    %275 = vector.extract_strided_slice %272 {offsets = [0, 0], sizes = [2, 896], strides = [1, 1]} : vector<2x1024xbf16> to vector<2x896xbf16>
    %276 = tpu.concatenate %2, %275 in 1 : vector<2x128xbf16>, vector<2x896xbf16> -> vector<2x1024xbf16>
    %cst_187 = arith.constant dense<0.000000e+00> : vector<8x1024xf32>
    %277 = tpu.matmul %274, %276, %cst_187 {dimension_numbers = #tpu.dot_dimension_numbers<[1], [0], [0], [1], [0, 0, 1, 1], [], []>} : vector<8x2xbf16>, vector<2x1024xbf16>, vector<8x1024xf32> -> vector<8x1024xf32>
    %278 = arith.addf %271, %277 : vector<8x1024xf32>
    %c7_188 = arith.constant 7 : index
    %c0_189 = arith.constant 0 : index
    %c0_190 = arith.constant 0 : index
    %279 = vector.load %arg5[%c7_188, %c0_189, %c0_190] : memref<9x8x2xbf16, #tpu.memory_space<vmem>>, vector<1x8x2xbf16>
    %280 = vector.shape_cast %279 : vector<1x8x2xbf16> to vector<8x2xbf16>
    %cst_191 = arith.constant dense<0.000000e+00> : vector<8x1024xf32>
    %281 = tpu.matmul %280, %272, %cst_191 {dimension_numbers = #tpu.dot_dimension_numbers<[1], [0], [0], [1], [0, 0, 1, 1], [], []>} : vector<8x2xbf16>, vector<2x1024xbf16>, vector<8x1024xf32> -> vector<8x1024xf32>
    %282 = arith.addf %278, %281 : vector<8x1024xf32>
    %c8_192 = arith.constant 8 : index
    %c0_193 = arith.constant 0 : index
    %c0_194 = arith.constant 0 : index
    %283 = vector.load %arg5[%c8_192, %c0_193, %c0_194] : memref<9x8x2xbf16, #tpu.memory_space<vmem>>, vector<1x8x2xbf16>
    %284 = vector.shape_cast %283 : vector<1x8x2xbf16> to vector<8x2xbf16>
    %285 = vector.extract_strided_slice %272 {offsets = [0, 128], sizes = [2, 896], strides = [1, 1]} : vector<2x1024xbf16> to vector<2x896xbf16>
    %286 = tpu.concatenate %285, %2 in 1 : vector<2x896xbf16>, vector<2x128xbf16> -> vector<2x1024xbf16>
    %cst_195 = arith.constant dense<0.000000e+00> : vector<8x1024xf32>
    %287 = tpu.matmul %284, %286, %cst_195 {dimension_numbers = #tpu.dot_dimension_numbers<[1], [0], [0], [1], [0, 0, 1, 1], [], []>} : vector<8x2xbf16>, vector<2x1024xbf16>, vector<8x1024xf32> -> vector<8x1024xf32>
    %288 = arith.addf %282, %287 : vector<8x1024xf32>
    %289 = vector.broadcast %0 : vector<8x1xf32> to vector<8x1024xf32>
    %290 = arith.addf %288, %289 : vector<8x1024xf32>
    %cst_196 = arith.constant 0.000000e+00 : f32
    %291 = vector.broadcast %cst_196 : f32 to vector<8x1024xf32>
    %292 = arith.maximumf %290, %291 : vector<8x1024xf32>
    %cst_197 = arith.constant 0.000000e+00 : f32
    %293 = vector.broadcast %cst_197 : f32 to vector<8x1024xf32>
    %c0_198 = arith.constant 0 : index
    %c4096_199 = arith.constant 4096 : index
    %294 = vector.load %arg0[%c0_198, %c4096_199] : memref<2x8192xbf16, #tpu.memory_space<vmem>>, vector<2x1024xbf16>
    %c0_200 = arith.constant 0 : index
    %c0_201 = arith.constant 0 : index
    %c0_202 = arith.constant 0 : index
    %295 = vector.load %arg5[%c0_200, %c0_201, %c0_202] : memref<9x8x2xbf16, #tpu.memory_space<vmem>>, vector<1x8x2xbf16>
    %296 = vector.shape_cast %295 : vector<1x8x2xbf16> to vector<8x2xbf16>
    %297 = vector.extract_strided_slice %294 {offsets = [0, 0], sizes = [2, 896], strides = [1, 1]} : vector<2x1024xbf16> to vector<2x896xbf16>
    %298 = tpu.concatenate %2, %297 in 1 : vector<2x128xbf16>, vector<2x896xbf16> -> vector<2x1024xbf16>
    %cst_203 = arith.constant dense<0.000000e+00> : vector<8x1024xf32>
    %299 = tpu.matmul %296, %298, %cst_203 {dimension_numbers = #tpu.dot_dimension_numbers<[1], [0], [0], [1], [0, 0, 1, 1], [], []>} : vector<8x2xbf16>, vector<2x1024xbf16>, vector<8x1024xf32> -> vector<8x1024xf32>
    %300 = arith.addf %293, %299 : vector<8x1024xf32>
    %c1_204 = arith.constant 1 : index
    %c0_205 = arith.constant 0 : index
    %c0_206 = arith.constant 0 : index
    %301 = vector.load %arg5[%c1_204, %c0_205, %c0_206] : memref<9x8x2xbf16, #tpu.memory_space<vmem>>, vector<1x8x2xbf16>
    %302 = vector.shape_cast %301 : vector<1x8x2xbf16> to vector<8x2xbf16>
    %cst_207 = arith.constant dense<0.000000e+00> : vector<8x1024xf32>
    %303 = tpu.matmul %302, %294, %cst_207 {dimension_numbers = #tpu.dot_dimension_numbers<[1], [0], [0], [1], [0, 0, 1, 1], [], []>} : vector<8x2xbf16>, vector<2x1024xbf16>, vector<8x1024xf32> -> vector<8x1024xf32>
    %304 = arith.addf %300, %303 : vector<8x1024xf32>
    %c2_208 = arith.constant 2 : index
    %c0_209 = arith.constant 0 : index
    %c0_210 = arith.constant 0 : index
    %305 = vector.load %arg5[%c2_208, %c0_209, %c0_210] : memref<9x8x2xbf16, #tpu.memory_space<vmem>>, vector<1x8x2xbf16>
    %306 = vector.shape_cast %305 : vector<1x8x2xbf16> to vector<8x2xbf16>
    %307 = vector.extract_strided_slice %294 {offsets = [0, 128], sizes = [2, 896], strides = [1, 1]} : vector<2x1024xbf16> to vector<2x896xbf16>
    %308 = tpu.concatenate %307, %2 in 1 : vector<2x896xbf16>, vector<2x128xbf16> -> vector<2x1024xbf16>
    %cst_211 = arith.constant dense<0.000000e+00> : vector<8x1024xf32>
    %309 = tpu.matmul %306, %308, %cst_211 {dimension_numbers = #tpu.dot_dimension_numbers<[1], [0], [0], [1], [0, 0, 1, 1], [], []>} : vector<8x2xbf16>, vector<2x1024xbf16>, vector<8x1024xf32> -> vector<8x1024xf32>
    %310 = arith.addf %304, %309 : vector<8x1024xf32>
    %c0_212 = arith.constant 0 : index
    %c5120_213 = arith.constant 5120 : index
    %311 = vector.load %arg0[%c0_212, %c5120_213] : memref<2x8192xbf16, #tpu.memory_space<vmem>>, vector<2x1024xbf16>
    %c3_214 = arith.constant 3 : index
    %c0_215 = arith.constant 0 : index
    %c0_216 = arith.constant 0 : index
    %312 = vector.load %arg5[%c3_214, %c0_215, %c0_216] : memref<9x8x2xbf16, #tpu.memory_space<vmem>>, vector<1x8x2xbf16>
    %313 = vector.shape_cast %312 : vector<1x8x2xbf16> to vector<8x2xbf16>
    %314 = vector.extract_strided_slice %311 {offsets = [0, 0], sizes = [2, 896], strides = [1, 1]} : vector<2x1024xbf16> to vector<2x896xbf16>
    %315 = tpu.concatenate %2, %314 in 1 : vector<2x128xbf16>, vector<2x896xbf16> -> vector<2x1024xbf16>
    %cst_217 = arith.constant dense<0.000000e+00> : vector<8x1024xf32>
    %316 = tpu.matmul %313, %315, %cst_217 {dimension_numbers = #tpu.dot_dimension_numbers<[1], [0], [0], [1], [0, 0, 1, 1], [], []>} : vector<8x2xbf16>, vector<2x1024xbf16>, vector<8x1024xf32> -> vector<8x1024xf32>
    %317 = arith.addf %310, %316 : vector<8x1024xf32>
    %c4_218 = arith.constant 4 : index
    %c0_219 = arith.constant 0 : index
    %c0_220 = arith.constant 0 : index
    %318 = vector.load %arg5[%c4_218, %c0_219, %c0_220] : memref<9x8x2xbf16, #tpu.memory_space<vmem>>, vector<1x8x2xbf16>
    %319 = vector.shape_cast %318 : vector<1x8x2xbf16> to vector<8x2xbf16>
    %cst_221 = arith.constant dense<0.000000e+00> : vector<8x1024xf32>
    %320 = tpu.matmul %319, %311, %cst_221 {dimension_numbers = #tpu.dot_dimension_numbers<[1], [0], [0], [1], [0, 0, 1, 1], [], []>} : vector<8x2xbf16>, vector<2x1024xbf16>, vector<8x1024xf32> -> vector<8x1024xf32>
    %321 = arith.addf %317, %320 : vector<8x1024xf32>
    %c5_222 = arith.constant 5 : index
    %c0_223 = arith.constant 0 : index
    %c0_224 = arith.constant 0 : index
    %322 = vector.load %arg5[%c5_222, %c0_223, %c0_224] : memref<9x8x2xbf16, #tpu.memory_space<vmem>>, vector<1x8x2xbf16>
    %323 = vector.shape_cast %322 : vector<1x8x2xbf16> to vector<8x2xbf16>
    %324 = vector.extract_strided_slice %311 {offsets = [0, 128], sizes = [2, 896], strides = [1, 1]} : vector<2x1024xbf16> to vector<2x896xbf16>
    %325 = tpu.concatenate %324, %2 in 1 : vector<2x896xbf16>, vector<2x128xbf16> -> vector<2x1024xbf16>
    %cst_225 = arith.constant dense<0.000000e+00> : vector<8x1024xf32>
    %326 = tpu.matmul %323, %325, %cst_225 {dimension_numbers = #tpu.dot_dimension_numbers<[1], [0], [0], [1], [0, 0, 1, 1], [], []>} : vector<8x2xbf16>, vector<2x1024xbf16>, vector<8x1024xf32> -> vector<8x1024xf32>
    %327 = arith.addf %321, %326 : vector<8x1024xf32>
    %c0_226 = arith.constant 0 : index
    %c6144 = arith.constant 6144 : index
    %328 = vector.load %arg0[%c0_226, %c6144] : memref<2x8192xbf16, #tpu.memory_space<vmem>>, vector<2x1024xbf16>
    %c6_227 = arith.constant 6 : index
    %c0_228 = arith.constant 0 : index
    %c0_229 = arith.constant 0 : index
    %329 = vector.load %arg5[%c6_227, %c0_228, %c0_229] : memref<9x8x2xbf16, #tpu.memory_space<vmem>>, vector<1x8x2xbf16>
    %330 = vector.shape_cast %329 : vector<1x8x2xbf16> to vector<8x2xbf16>
    %331 = vector.extract_strided_slice %328 {offsets = [0, 0], sizes = [2, 896], strides = [1, 1]} : vector<2x1024xbf16> to vector<2x896xbf16>
    %332 = tpu.concatenate %2, %331 in 1 : vector<2x128xbf16>, vector<2x896xbf16> -> vector<2x1024xbf16>
    %cst_230 = arith.constant dense<0.000000e+00> : vector<8x1024xf32>
    %333 = tpu.matmul %330, %332, %cst_230 {dimension_numbers = #tpu.dot_dimension_numbers<[1], [0], [0], [1], [0, 0, 1, 1], [], []>} : vector<8x2xbf16>, vector<2x1024xbf16>, vector<8x1024xf32> -> vector<8x1024xf32>
    %334 = arith.addf %327, %333 : vector<8x1024xf32>
    %c7_231 = arith.constant 7 : index
    %c0_232 = arith.constant 0 : index
    %c0_233 = arith.constant 0 : index
    %335 = vector.load %arg5[%c7_231, %c0_232, %c0_233] : memref<9x8x2xbf16, #tpu.memory_space<vmem>>, vector<1x8x2xbf16>
    %336 = vector.shape_cast %335 : vector<1x8x2xbf16> to vector<8x2xbf16>
    %cst_234 = arith.constant dense<0.000000e+00> : vector<8x1024xf32>
    %337 = tpu.matmul %336, %328, %cst_234 {dimension_numbers = #tpu.dot_dimension_numbers<[1], [0], [0], [1], [0, 0, 1, 1], [], []>} : vector<8x2xbf16>, vector<2x1024xbf16>, vector<8x1024xf32> -> vector<8x1024xf32>
    %338 = arith.addf %334, %337 : vector<8x1024xf32>
    %c8_235 = arith.constant 8 : index
    %c0_236 = arith.constant 0 : index
    %c0_237 = arith.constant 0 : index
    %339 = vector.load %arg5[%c8_235, %c0_236, %c0_237] : memref<9x8x2xbf16, #tpu.memory_space<vmem>>, vector<1x8x2xbf16>
    %340 = vector.shape_cast %339 : vector<1x8x2xbf16> to vector<8x2xbf16>
    %341 = vector.extract_strided_slice %328 {offsets = [0, 128], sizes = [2, 896], strides = [1, 1]} : vector<2x1024xbf16> to vector<2x896xbf16>
    %342 = tpu.concatenate %341, %2 in 1 : vector<2x896xbf16>, vector<2x128xbf16> -> vector<2x1024xbf16>
    %cst_238 = arith.constant dense<0.000000e+00> : vector<8x1024xf32>
    %343 = tpu.matmul %340, %342, %cst_238 {dimension_numbers = #tpu.dot_dimension_numbers<[1], [0], [0], [1], [0, 0, 1, 1], [], []>} : vector<8x2xbf16>, vector<2x1024xbf16>, vector<8x1024xf32> -> vector<8x1024xf32>
    %344 = arith.addf %338, %343 : vector<8x1024xf32>
    %345 = vector.broadcast %0 : vector<8x1xf32> to vector<8x1024xf32>
    %346 = arith.addf %344, %345 : vector<8x1024xf32>
    %cst_239 = arith.constant 0.000000e+00 : f32
    %347 = vector.broadcast %cst_239 : f32 to vector<8x1024xf32>
    %348 = arith.maximumf %346, %347 : vector<8x1024xf32>
    %349 = arith.maximumf %292, %348 : vector<8x1024xf32>
    %350 = vector.extract_strided_slice %349 {offsets = [0, 0], sizes = [8, 128], strides = [1, 1]} : vector<8x1024xf32> to vector<8x128xf32>
    %351 = vector.extract_strided_slice %349 {offsets = [0, 256], sizes = [8, 128], strides = [1, 1]} : vector<8x1024xf32> to vector<8x128xf32>
    %352 = vector.extract_strided_slice %349 {offsets = [0, 512], sizes = [8, 128], strides = [1, 1]} : vector<8x1024xf32> to vector<8x128xf32>
    %353 = vector.extract_strided_slice %349 {offsets = [0, 768], sizes = [8, 128], strides = [1, 1]} : vector<8x1024xf32> to vector<8x128xf32>
    %354 = tpu.concatenate %350, %351, %352, %353 in 1 : vector<8x128xf32>, vector<8x128xf32>, vector<8x128xf32>, vector<8x128xf32> -> vector<8x512xf32>
    %355 = vector.extract_strided_slice %349 {offsets = [0, 128], sizes = [8, 128], strides = [1, 1]} : vector<8x1024xf32> to vector<8x128xf32>
    %356 = vector.extract_strided_slice %349 {offsets = [0, 384], sizes = [8, 128], strides = [1, 1]} : vector<8x1024xf32> to vector<8x128xf32>
    %357 = vector.extract_strided_slice %349 {offsets = [0, 640], sizes = [8, 128], strides = [1, 1]} : vector<8x1024xf32> to vector<8x128xf32>
    %358 = vector.extract_strided_slice %349 {offsets = [0, 896], sizes = [8, 128], strides = [1, 1]} : vector<8x1024xf32> to vector<8x128xf32>
    %359 = tpu.concatenate %355, %356, %357, %358 in 1 : vector<8x128xf32>, vector<8x128xf32>, vector<8x128xf32>, vector<8x128xf32> -> vector<8x512xf32>
    %360 = arith.maximumf %354, %359 : vector<8x512xf32>
    %361 = arith.truncf %360 : vector<8x512xf32> to vector<8x512xbf16>
    %cst_240 = arith.constant 0.000000e+00 : f32
    %362 = vector.broadcast %cst_240 : f32 to vector<8x1024xf32>
    %c0_241 = arith.constant 0 : index
    %c5120_242 = arith.constant 5120 : index
    %363 = vector.load %arg0[%c0_241, %c5120_242] : memref<2x8192xbf16, #tpu.memory_space<vmem>>, vector<2x1024xbf16>
    %c0_243 = arith.constant 0 : index
    %c0_244 = arith.constant 0 : index
    %c0_245 = arith.constant 0 : index
    %364 = vector.load %arg5[%c0_243, %c0_244, %c0_245] : memref<9x8x2xbf16, #tpu.memory_space<vmem>>, vector<1x8x2xbf16>
    %365 = vector.shape_cast %364 : vector<1x8x2xbf16> to vector<8x2xbf16>
    %366 = vector.extract_strided_slice %363 {offsets = [0, 0], sizes = [2, 896], strides = [1, 1]} : vector<2x1024xbf16> to vector<2x896xbf16>
    %367 = tpu.concatenate %2, %366 in 1 : vector<2x128xbf16>, vector<2x896xbf16> -> vector<2x1024xbf16>
    %cst_246 = arith.constant dense<0.000000e+00> : vector<8x1024xf32>
    %368 = tpu.matmul %365, %367, %cst_246 {dimension_numbers = #tpu.dot_dimension_numbers<[1], [0], [0], [1], [0, 0, 1, 1], [], []>} : vector<8x2xbf16>, vector<2x1024xbf16>, vector<8x1024xf32> -> vector<8x1024xf32>
    %369 = arith.addf %362, %368 : vector<8x1024xf32>
    %c1_247 = arith.constant 1 : index
    %c0_248 = arith.constant 0 : index
    %c0_249 = arith.constant 0 : index
    %370 = vector.load %arg5[%c1_247, %c0_248, %c0_249] : memref<9x8x2xbf16, #tpu.memory_space<vmem>>, vector<1x8x2xbf16>
    %371 = vector.shape_cast %370 : vector<1x8x2xbf16> to vector<8x2xbf16>
    %cst_250 = arith.constant dense<0.000000e+00> : vector<8x1024xf32>
    %372 = tpu.matmul %371, %363, %cst_250 {dimension_numbers = #tpu.dot_dimension_numbers<[1], [0], [0], [1], [0, 0, 1, 1], [], []>} : vector<8x2xbf16>, vector<2x1024xbf16>, vector<8x1024xf32> -> vector<8x1024xf32>
    %373 = arith.addf %369, %372 : vector<8x1024xf32>
    %c2_251 = arith.constant 2 : index
    %c0_252 = arith.constant 0 : index
    %c0_253 = arith.constant 0 : index
    %374 = vector.load %arg5[%c2_251, %c0_252, %c0_253] : memref<9x8x2xbf16, #tpu.memory_space<vmem>>, vector<1x8x2xbf16>
    %375 = vector.shape_cast %374 : vector<1x8x2xbf16> to vector<8x2xbf16>
    %376 = vector.extract_strided_slice %363 {offsets = [0, 128], sizes = [2, 896], strides = [1, 1]} : vector<2x1024xbf16> to vector<2x896xbf16>
    %377 = tpu.concatenate %376, %2 in 1 : vector<2x896xbf16>, vector<2x128xbf16> -> vector<2x1024xbf16>
    %cst_254 = arith.constant dense<0.000000e+00> : vector<8x1024xf32>
    %378 = tpu.matmul %375, %377, %cst_254 {dimension_numbers = #tpu.dot_dimension_numbers<[1], [0], [0], [1], [0, 0, 1, 1], [], []>} : vector<8x2xbf16>, vector<2x1024xbf16>, vector<8x1024xf32> -> vector<8x1024xf32>
    %379 = arith.addf %373, %378 : vector<8x1024xf32>
    %c0_255 = arith.constant 0 : index
    %c6144_256 = arith.constant 6144 : index
    %380 = vector.load %arg0[%c0_255, %c6144_256] : memref<2x8192xbf16, #tpu.memory_space<vmem>>, vector<2x1024xbf16>
    %c3_257 = arith.constant 3 : index
    %c0_258 = arith.constant 0 : index
    %c0_259 = arith.constant 0 : index
    %381 = vector.load %arg5[%c3_257, %c0_258, %c0_259] : memref<9x8x2xbf16, #tpu.memory_space<vmem>>, vector<1x8x2xbf16>
    %382 = vector.shape_cast %381 : vector<1x8x2xbf16> to vector<8x2xbf16>
    %383 = vector.extract_strided_slice %380 {offsets = [0, 0], sizes = [2, 896], strides = [1, 1]} : vector<2x1024xbf16> to vector<2x896xbf16>
    %384 = tpu.concatenate %2, %383 in 1 : vector<2x128xbf16>, vector<2x896xbf16> -> vector<2x1024xbf16>
    %cst_260 = arith.constant dense<0.000000e+00> : vector<8x1024xf32>
    %385 = tpu.matmul %382, %384, %cst_260 {dimension_numbers = #tpu.dot_dimension_numbers<[1], [0], [0], [1], [0, 0, 1, 1], [], []>} : vector<8x2xbf16>, vector<2x1024xbf16>, vector<8x1024xf32> -> vector<8x1024xf32>
    %386 = arith.addf %379, %385 : vector<8x1024xf32>
    %c4_261 = arith.constant 4 : index
    %c0_262 = arith.constant 0 : index
    %c0_263 = arith.constant 0 : index
    %387 = vector.load %arg5[%c4_261, %c0_262, %c0_263] : memref<9x8x2xbf16, #tpu.memory_space<vmem>>, vector<1x8x2xbf16>
    %388 = vector.shape_cast %387 : vector<1x8x2xbf16> to vector<8x2xbf16>
    %cst_264 = arith.constant dense<0.000000e+00> : vector<8x1024xf32>
    %389 = tpu.matmul %388, %380, %cst_264 {dimension_numbers = #tpu.dot_dimension_numbers<[1], [0], [0], [1], [0, 0, 1, 1], [], []>} : vector<8x2xbf16>, vector<2x1024xbf16>, vector<8x1024xf32> -> vector<8x1024xf32>
    %390 = arith.addf %386, %389 : vector<8x1024xf32>
    %c5_265 = arith.constant 5 : index
    %c0_266 = arith.constant 0 : index
    %c0_267 = arith.constant 0 : index
    %391 = vector.load %arg5[%c5_265, %c0_266, %c0_267] : memref<9x8x2xbf16, #tpu.memory_space<vmem>>, vector<1x8x2xbf16>
    %392 = vector.shape_cast %391 : vector<1x8x2xbf16> to vector<8x2xbf16>
    %393 = vector.extract_strided_slice %380 {offsets = [0, 128], sizes = [2, 896], strides = [1, 1]} : vector<2x1024xbf16> to vector<2x896xbf16>
    %394 = tpu.concatenate %393, %2 in 1 : vector<2x896xbf16>, vector<2x128xbf16> -> vector<2x1024xbf16>
    %cst_268 = arith.constant dense<0.000000e+00> : vector<8x1024xf32>
    %395 = tpu.matmul %392, %394, %cst_268 {dimension_numbers = #tpu.dot_dimension_numbers<[1], [0], [0], [1], [0, 0, 1, 1], [], []>} : vector<8x2xbf16>, vector<2x1024xbf16>, vector<8x1024xf32> -> vector<8x1024xf32>
    %396 = arith.addf %390, %395 : vector<8x1024xf32>
    %c0_269 = arith.constant 0 : index
    %c7168 = arith.constant 7168 : index
    %397 = vector.load %arg0[%c0_269, %c7168] : memref<2x8192xbf16, #tpu.memory_space<vmem>>, vector<2x1024xbf16>
    %c6_270 = arith.constant 6 : index
    %c0_271 = arith.constant 0 : index
    %c0_272 = arith.constant 0 : index
    %398 = vector.load %arg5[%c6_270, %c0_271, %c0_272] : memref<9x8x2xbf16, #tpu.memory_space<vmem>>, vector<1x8x2xbf16>
    %399 = vector.shape_cast %398 : vector<1x8x2xbf16> to vector<8x2xbf16>
    %400 = vector.extract_strided_slice %397 {offsets = [0, 0], sizes = [2, 896], strides = [1, 1]} : vector<2x1024xbf16> to vector<2x896xbf16>
    %401 = tpu.concatenate %2, %400 in 1 : vector<2x128xbf16>, vector<2x896xbf16> -> vector<2x1024xbf16>
    %cst_273 = arith.constant dense<0.000000e+00> : vector<8x1024xf32>
    %402 = tpu.matmul %399, %401, %cst_273 {dimension_numbers = #tpu.dot_dimension_numbers<[1], [0], [0], [1], [0, 0, 1, 1], [], []>} : vector<8x2xbf16>, vector<2x1024xbf16>, vector<8x1024xf32> -> vector<8x1024xf32>
    %403 = arith.addf %396, %402 : vector<8x1024xf32>
    %c7_274 = arith.constant 7 : index
    %c0_275 = arith.constant 0 : index
    %c0_276 = arith.constant 0 : index
    %404 = vector.load %arg5[%c7_274, %c0_275, %c0_276] : memref<9x8x2xbf16, #tpu.memory_space<vmem>>, vector<1x8x2xbf16>
    %405 = vector.shape_cast %404 : vector<1x8x2xbf16> to vector<8x2xbf16>
    %cst_277 = arith.constant dense<0.000000e+00> : vector<8x1024xf32>
    %406 = tpu.matmul %405, %397, %cst_277 {dimension_numbers = #tpu.dot_dimension_numbers<[1], [0], [0], [1], [0, 0, 1, 1], [], []>} : vector<8x2xbf16>, vector<2x1024xbf16>, vector<8x1024xf32> -> vector<8x1024xf32>
    %407 = arith.addf %403, %406 : vector<8x1024xf32>
    %c8_278 = arith.constant 8 : index
    %c0_279 = arith.constant 0 : index
    %c0_280 = arith.constant 0 : index
    %408 = vector.load %arg5[%c8_278, %c0_279, %c0_280] : memref<9x8x2xbf16, #tpu.memory_space<vmem>>, vector<1x8x2xbf16>
    %409 = vector.shape_cast %408 : vector<1x8x2xbf16> to vector<8x2xbf16>
    %410 = vector.extract_strided_slice %397 {offsets = [0, 128], sizes = [2, 896], strides = [1, 1]} : vector<2x1024xbf16> to vector<2x896xbf16>
    %411 = tpu.concatenate %410, %2 in 1 : vector<2x896xbf16>, vector<2x128xbf16> -> vector<2x1024xbf16>
    %cst_281 = arith.constant dense<0.000000e+00> : vector<8x1024xf32>
    %412 = tpu.matmul %409, %411, %cst_281 {dimension_numbers = #tpu.dot_dimension_numbers<[1], [0], [0], [1], [0, 0, 1, 1], [], []>} : vector<8x2xbf16>, vector<2x1024xbf16>, vector<8x1024xf32> -> vector<8x1024xf32>
    %413 = arith.addf %407, %412 : vector<8x1024xf32>
    %414 = vector.broadcast %0 : vector<8x1xf32> to vector<8x1024xf32>
    %415 = arith.addf %413, %414 : vector<8x1024xf32>
    %cst_282 = arith.constant 0.000000e+00 : f32
    %416 = vector.broadcast %cst_282 : f32 to vector<8x1024xf32>
    %417 = arith.maximumf %415, %416 : vector<8x1024xf32>
    %cst_283 = arith.constant 0.000000e+00 : f32
    %418 = vector.broadcast %cst_283 : f32 to vector<8x1024xf32>
    %c0_284 = arith.constant 0 : index
    %c6144_285 = arith.constant 6144 : index
    %419 = vector.load %arg0[%c0_284, %c6144_285] : memref<2x8192xbf16, #tpu.memory_space<vmem>>, vector<2x1024xbf16>
    %c0_286 = arith.constant 0 : index
    %c0_287 = arith.constant 0 : index
    %c0_288 = arith.constant 0 : index
    %420 = vector.load %arg5[%c0_286, %c0_287, %c0_288] : memref<9x8x2xbf16, #tpu.memory_space<vmem>>, vector<1x8x2xbf16>
    %421 = vector.shape_cast %420 : vector<1x8x2xbf16> to vector<8x2xbf16>
    %422 = vector.extract_strided_slice %419 {offsets = [0, 0], sizes = [2, 896], strides = [1, 1]} : vector<2x1024xbf16> to vector<2x896xbf16>
    %423 = tpu.concatenate %2, %422 in 1 : vector<2x128xbf16>, vector<2x896xbf16> -> vector<2x1024xbf16>
    %cst_289 = arith.constant dense<0.000000e+00> : vector<8x1024xf32>
    %424 = tpu.matmul %421, %423, %cst_289 {dimension_numbers = #tpu.dot_dimension_numbers<[1], [0], [0], [1], [0, 0, 1, 1], [], []>} : vector<8x2xbf16>, vector<2x1024xbf16>, vector<8x1024xf32> -> vector<8x1024xf32>
    %425 = arith.addf %418, %424 : vector<8x1024xf32>
    %c1_290 = arith.constant 1 : index
    %c0_291 = arith.constant 0 : index
    %c0_292 = arith.constant 0 : index
    %426 = vector.load %arg5[%c1_290, %c0_291, %c0_292] : memref<9x8x2xbf16, #tpu.memory_space<vmem>>, vector<1x8x2xbf16>
    %427 = vector.shape_cast %426 : vector<1x8x2xbf16> to vector<8x2xbf16>
    %cst_293 = arith.constant dense<0.000000e+00> : vector<8x1024xf32>
    %428 = tpu.matmul %427, %419, %cst_293 {dimension_numbers = #tpu.dot_dimension_numbers<[1], [0], [0], [1], [0, 0, 1, 1], [], []>} : vector<8x2xbf16>, vector<2x1024xbf16>, vector<8x1024xf32> -> vector<8x1024xf32>
    %429 = arith.addf %425, %428 : vector<8x1024xf32>
    %c2_294 = arith.constant 2 : index
    %c0_295 = arith.constant 0 : index
    %c0_296 = arith.constant 0 : index
    %430 = vector.load %arg5[%c2_294, %c0_295, %c0_296] : memref<9x8x2xbf16, #tpu.memory_space<vmem>>, vector<1x8x2xbf16>
    %431 = vector.shape_cast %430 : vector<1x8x2xbf16> to vector<8x2xbf16>
    %432 = vector.extract_strided_slice %419 {offsets = [0, 128], sizes = [2, 896], strides = [1, 1]} : vector<2x1024xbf16> to vector<2x896xbf16>
    %433 = tpu.concatenate %432, %2 in 1 : vector<2x896xbf16>, vector<2x128xbf16> -> vector<2x1024xbf16>
    %cst_297 = arith.constant dense<0.000000e+00> : vector<8x1024xf32>
    %434 = tpu.matmul %431, %433, %cst_297 {dimension_numbers = #tpu.dot_dimension_numbers<[1], [0], [0], [1], [0, 0, 1, 1], [], []>} : vector<8x2xbf16>, vector<2x1024xbf16>, vector<8x1024xf32> -> vector<8x1024xf32>
    %435 = arith.addf %429, %434 : vector<8x1024xf32>
    %c0_298 = arith.constant 0 : index
    %c7168_299 = arith.constant 7168 : index
    %436 = vector.load %arg0[%c0_298, %c7168_299] : memref<2x8192xbf16, #tpu.memory_space<vmem>>, vector<2x1024xbf16>
    %c3_300 = arith.constant 3 : index
    %c0_301 = arith.constant 0 : index
    %c0_302 = arith.constant 0 : index
    %437 = vector.load %arg5[%c3_300, %c0_301, %c0_302] : memref<9x8x2xbf16, #tpu.memory_space<vmem>>, vector<1x8x2xbf16>
    %438 = vector.shape_cast %437 : vector<1x8x2xbf16> to vector<8x2xbf16>
    %439 = vector.extract_strided_slice %436 {offsets = [0, 0], sizes = [2, 896], strides = [1, 1]} : vector<2x1024xbf16> to vector<2x896xbf16>
    %440 = tpu.concatenate %2, %439 in 1 : vector<2x128xbf16>, vector<2x896xbf16> -> vector<2x1024xbf16>
    %cst_303 = arith.constant dense<0.000000e+00> : vector<8x1024xf32>
    %441 = tpu.matmul %438, %440, %cst_303 {dimension_numbers = #tpu.dot_dimension_numbers<[1], [0], [0], [1], [0, 0, 1, 1], [], []>} : vector<8x2xbf16>, vector<2x1024xbf16>, vector<8x1024xf32> -> vector<8x1024xf32>
    %442 = arith.addf %435, %441 : vector<8x1024xf32>
    %c4_304 = arith.constant 4 : index
    %c0_305 = arith.constant 0 : index
    %c0_306 = arith.constant 0 : index
    %443 = vector.load %arg5[%c4_304, %c0_305, %c0_306] : memref<9x8x2xbf16, #tpu.memory_space<vmem>>, vector<1x8x2xbf16>
    %444 = vector.shape_cast %443 : vector<1x8x2xbf16> to vector<8x2xbf16>
    %cst_307 = arith.constant dense<0.000000e+00> : vector<8x1024xf32>
    %445 = tpu.matmul %444, %436, %cst_307 {dimension_numbers = #tpu.dot_dimension_numbers<[1], [0], [0], [1], [0, 0, 1, 1], [], []>} : vector<8x2xbf16>, vector<2x1024xbf16>, vector<8x1024xf32> -> vector<8x1024xf32>
    %446 = arith.addf %442, %445 : vector<8x1024xf32>
    %c5_308 = arith.constant 5 : index
    %c0_309 = arith.constant 0 : index
    %c0_310 = arith.constant 0 : index
    %447 = vector.load %arg5[%c5_308, %c0_309, %c0_310] : memref<9x8x2xbf16, #tpu.memory_space<vmem>>, vector<1x8x2xbf16>
    %448 = vector.shape_cast %447 : vector<1x8x2xbf16> to vector<8x2xbf16>
    %449 = vector.extract_strided_slice %436 {offsets = [0, 128], sizes = [2, 896], strides = [1, 1]} : vector<2x1024xbf16> to vector<2x896xbf16>
    %450 = tpu.concatenate %449, %2 in 1 : vector<2x896xbf16>, vector<2x128xbf16> -> vector<2x1024xbf16>
    %cst_311 = arith.constant dense<0.000000e+00> : vector<8x1024xf32>
    %451 = tpu.matmul %448, %450, %cst_311 {dimension_numbers = #tpu.dot_dimension_numbers<[1], [0], [0], [1], [0, 0, 1, 1], [], []>} : vector<8x2xbf16>, vector<2x1024xbf16>, vector<8x1024xf32> -> vector<8x1024xf32>
    %452 = arith.addf %446, %451 : vector<8x1024xf32>
    %453 = vector.broadcast %0 : vector<8x1xf32> to vector<8x1024xf32>
    %454 = arith.addf %452, %453 : vector<8x1024xf32>
    %cst_312 = arith.constant 0.000000e+00 : f32
    %455 = vector.broadcast %cst_312 : f32 to vector<8x1024xf32>
    %456 = arith.maximumf %454, %455 : vector<8x1024xf32>
    %457 = arith.maximumf %417, %456 : vector<8x1024xf32>
    %458 = vector.extract_strided_slice %457 {offsets = [0, 0], sizes = [8, 128], strides = [1, 1]} : vector<8x1024xf32> to vector<8x128xf32>
    %459 = vector.extract_strided_slice %457 {offsets = [0, 256], sizes = [8, 128], strides = [1, 1]} : vector<8x1024xf32> to vector<8x128xf32>
    %460 = vector.extract_strided_slice %457 {offsets = [0, 512], sizes = [8, 128], strides = [1, 1]} : vector<8x1024xf32> to vector<8x128xf32>
    %461 = vector.extract_strided_slice %457 {offsets = [0, 768], sizes = [8, 128], strides = [1, 1]} : vector<8x1024xf32> to vector<8x128xf32>
    %462 = tpu.concatenate %458, %459, %460, %461 in 1 : vector<8x128xf32>, vector<8x128xf32>, vector<8x128xf32>, vector<8x128xf32> -> vector<8x512xf32>
    %463 = vector.extract_strided_slice %457 {offsets = [0, 128], sizes = [8, 128], strides = [1, 1]} : vector<8x1024xf32> to vector<8x128xf32>
    %464 = vector.extract_strided_slice %457 {offsets = [0, 384], sizes = [8, 128], strides = [1, 1]} : vector<8x1024xf32> to vector<8x128xf32>
    %465 = vector.extract_strided_slice %457 {offsets = [0, 640], sizes = [8, 128], strides = [1, 1]} : vector<8x1024xf32> to vector<8x128xf32>
    %466 = vector.extract_strided_slice %457 {offsets = [0, 896], sizes = [8, 128], strides = [1, 1]} : vector<8x1024xf32> to vector<8x128xf32>
    %467 = tpu.concatenate %463, %464, %465, %466 in 1 : vector<8x128xf32>, vector<8x128xf32>, vector<8x128xf32>, vector<8x128xf32> -> vector<8x512xf32>
    %468 = arith.maximumf %462, %467 : vector<8x512xf32>
    %469 = arith.truncf %468 : vector<8x512xf32> to vector<8x512xbf16>
    %cst_313 = arith.constant 0.000000e+00 : f32
    %470 = vector.broadcast %cst_313 : f32 to vector<16x128xf32>
    %cst_314 = arith.constant 0.000000e+00 : f32
    %471 = vector.broadcast %cst_314 : f32 to vector<16x512xf32>
    %c3_315 = arith.constant 3 : index
    %c0_316 = arith.constant 0 : index
    %c0_317 = arith.constant 0 : index
    %472 = vector.load %arg7[%c3_315, %c0_316, %c0_317] : memref<9x16x8xbf16, #tpu.memory_space<vmem>>, vector<1x16x8xbf16>
    %473 = vector.shape_cast %472 : vector<1x16x8xbf16> to vector<16x8xbf16>
    %474 = vector.extract_strided_slice %111 {offsets = [0, 0], sizes = [8, 384], strides = [1, 1]} : vector<8x512xbf16> to vector<8x384xbf16>
    %475 = tpu.concatenate %3, %474 in 1 : vector<8x128xbf16>, vector<8x384xbf16> -> vector<8x512xbf16>
    %cst_318 = arith.constant dense<0.000000e+00> : vector<16x512xf32>
    %476 = tpu.matmul %473, %475, %cst_318 {dimension_numbers = #tpu.dot_dimension_numbers<[1], [0], [0], [1], [0, 0, 1, 1], [], []>} : vector<16x8xbf16>, vector<8x512xbf16>, vector<16x512xf32> -> vector<16x512xf32>
    %477 = arith.addf %471, %476 : vector<16x512xf32>
    %c4_319 = arith.constant 4 : index
    %c0_320 = arith.constant 0 : index
    %c0_321 = arith.constant 0 : index
    %478 = vector.load %arg7[%c4_319, %c0_320, %c0_321] : memref<9x16x8xbf16, #tpu.memory_space<vmem>>, vector<1x16x8xbf16>
    %479 = vector.shape_cast %478 : vector<1x16x8xbf16> to vector<16x8xbf16>
    %cst_322 = arith.constant dense<0.000000e+00> : vector<16x512xf32>
    %480 = tpu.matmul %479, %111, %cst_322 {dimension_numbers = #tpu.dot_dimension_numbers<[1], [0], [0], [1], [0, 0, 1, 1], [], []>} : vector<16x8xbf16>, vector<8x512xbf16>, vector<16x512xf32> -> vector<16x512xf32>
    %481 = arith.addf %477, %480 : vector<16x512xf32>
    %c5_323 = arith.constant 5 : index
    %c0_324 = arith.constant 0 : index
    %c0_325 = arith.constant 0 : index
    %482 = vector.load %arg7[%c5_323, %c0_324, %c0_325] : memref<9x16x8xbf16, #tpu.memory_space<vmem>>, vector<1x16x8xbf16>
    %483 = vector.shape_cast %482 : vector<1x16x8xbf16> to vector<16x8xbf16>
    %484 = vector.extract_strided_slice %111 {offsets = [0, 128], sizes = [8, 384], strides = [1, 1]} : vector<8x512xbf16> to vector<8x384xbf16>
    %485 = tpu.concatenate %484, %3 in 1 : vector<8x384xbf16>, vector<8x128xbf16> -> vector<8x512xbf16>
    %cst_326 = arith.constant dense<0.000000e+00> : vector<16x512xf32>
    %486 = tpu.matmul %483, %485, %cst_326 {dimension_numbers = #tpu.dot_dimension_numbers<[1], [0], [0], [1], [0, 0, 1, 1], [], []>} : vector<16x8xbf16>, vector<8x512xbf16>, vector<16x512xf32> -> vector<16x512xf32>
    %487 = arith.addf %481, %486 : vector<16x512xf32>
    %c6_327 = arith.constant 6 : index
    %c0_328 = arith.constant 0 : index
    %c0_329 = arith.constant 0 : index
    %488 = vector.load %arg7[%c6_327, %c0_328, %c0_329] : memref<9x16x8xbf16, #tpu.memory_space<vmem>>, vector<1x16x8xbf16>
    %489 = vector.shape_cast %488 : vector<1x16x8xbf16> to vector<16x8xbf16>
    %490 = vector.extract_strided_slice %236 {offsets = [0, 0], sizes = [8, 384], strides = [1, 1]} : vector<8x512xbf16> to vector<8x384xbf16>
    %491 = tpu.concatenate %3, %490 in 1 : vector<8x128xbf16>, vector<8x384xbf16> -> vector<8x512xbf16>
    %cst_330 = arith.constant dense<0.000000e+00> : vector<16x512xf32>
    %492 = tpu.matmul %489, %491, %cst_330 {dimension_numbers = #tpu.dot_dimension_numbers<[1], [0], [0], [1], [0, 0, 1, 1], [], []>} : vector<16x8xbf16>, vector<8x512xbf16>, vector<16x512xf32> -> vector<16x512xf32>
    %493 = arith.addf %487, %492 : vector<16x512xf32>
    %c7_331 = arith.constant 7 : index
    %c0_332 = arith.constant 0 : index
    %c0_333 = arith.constant 0 : index
    %494 = vector.load %arg7[%c7_331, %c0_332, %c0_333] : memref<9x16x8xbf16, #tpu.memory_space<vmem>>, vector<1x16x8xbf16>
    %495 = vector.shape_cast %494 : vector<1x16x8xbf16> to vector<16x8xbf16>
    %cst_334 = arith.constant dense<0.000000e+00> : vector<16x512xf32>
    %496 = tpu.matmul %495, %236, %cst_334 {dimension_numbers = #tpu.dot_dimension_numbers<[1], [0], [0], [1], [0, 0, 1, 1], [], []>} : vector<16x8xbf16>, vector<8x512xbf16>, vector<16x512xf32> -> vector<16x512xf32>
    %497 = arith.addf %493, %496 : vector<16x512xf32>
    %c8_335 = arith.constant 8 : index
    %c0_336 = arith.constant 0 : index
    %c0_337 = arith.constant 0 : index
    %498 = vector.load %arg7[%c8_335, %c0_336, %c0_337] : memref<9x16x8xbf16, #tpu.memory_space<vmem>>, vector<1x16x8xbf16>
    %499 = vector.shape_cast %498 : vector<1x16x8xbf16> to vector<16x8xbf16>
    %500 = vector.extract_strided_slice %236 {offsets = [0, 128], sizes = [8, 384], strides = [1, 1]} : vector<8x512xbf16> to vector<8x384xbf16>
    %501 = tpu.concatenate %500, %3 in 1 : vector<8x384xbf16>, vector<8x128xbf16> -> vector<8x512xbf16>
    %cst_338 = arith.constant dense<0.000000e+00> : vector<16x512xf32>
    %502 = tpu.matmul %499, %501, %cst_338 {dimension_numbers = #tpu.dot_dimension_numbers<[1], [0], [0], [1], [0, 0, 1, 1], [], []>} : vector<16x8xbf16>, vector<8x512xbf16>, vector<16x512xf32> -> vector<16x512xf32>
    %503 = arith.addf %497, %502 : vector<16x512xf32>
    %504 = vector.broadcast %1 : vector<16x1xf32> to vector<16x512xf32>
    %505 = arith.addf %503, %504 : vector<16x512xf32>
    %cst_339 = arith.constant 0.000000e+00 : f32
    %506 = vector.broadcast %cst_339 : f32 to vector<16x512xf32>
    %507 = arith.maximumf %505, %506 : vector<16x512xf32>
    %508 = vector.extract_strided_slice %507 {offsets = [0, 0], sizes = [16, 128], strides = [1, 1]} : vector<16x512xf32> to vector<16x128xf32>
    %509 = arith.addf %470, %508 : vector<16x128xf32>
    %510 = vector.extract_strided_slice %507 {offsets = [0, 128], sizes = [16, 128], strides = [1, 1]} : vector<16x512xf32> to vector<16x128xf32>
    %511 = arith.addf %509, %510 : vector<16x128xf32>
    %512 = vector.extract_strided_slice %507 {offsets = [0, 256], sizes = [16, 128], strides = [1, 1]} : vector<16x512xf32> to vector<16x128xf32>
    %513 = arith.addf %511, %512 : vector<16x128xf32>
    %514 = vector.extract_strided_slice %507 {offsets = [0, 384], sizes = [16, 128], strides = [1, 1]} : vector<16x512xf32> to vector<16x128xf32>
    %515 = arith.addf %513, %514 : vector<16x128xf32>
    %cst_340 = arith.constant 0.000000e+00 : f32
    %516 = vector.broadcast %cst_340 : f32 to vector<16x512xf32>
    %c0_341 = arith.constant 0 : index
    %c0_342 = arith.constant 0 : index
    %c0_343 = arith.constant 0 : index
    %517 = vector.load %arg7[%c0_341, %c0_342, %c0_343] : memref<9x16x8xbf16, #tpu.memory_space<vmem>>, vector<1x16x8xbf16>
    %518 = vector.shape_cast %517 : vector<1x16x8xbf16> to vector<16x8xbf16>
    %519 = vector.extract_strided_slice %111 {offsets = [0, 0], sizes = [8, 384], strides = [1, 1]} : vector<8x512xbf16> to vector<8x384xbf16>
    %520 = tpu.concatenate %3, %519 in 1 : vector<8x128xbf16>, vector<8x384xbf16> -> vector<8x512xbf16>
    %cst_344 = arith.constant dense<0.000000e+00> : vector<16x512xf32>
    %521 = tpu.matmul %518, %520, %cst_344 {dimension_numbers = #tpu.dot_dimension_numbers<[1], [0], [0], [1], [0, 0, 1, 1], [], []>} : vector<16x8xbf16>, vector<8x512xbf16>, vector<16x512xf32> -> vector<16x512xf32>
    %522 = arith.addf %516, %521 : vector<16x512xf32>
    %c1_345 = arith.constant 1 : index
    %c0_346 = arith.constant 0 : index
    %c0_347 = arith.constant 0 : index
    %523 = vector.load %arg7[%c1_345, %c0_346, %c0_347] : memref<9x16x8xbf16, #tpu.memory_space<vmem>>, vector<1x16x8xbf16>
    %524 = vector.shape_cast %523 : vector<1x16x8xbf16> to vector<16x8xbf16>
    %cst_348 = arith.constant dense<0.000000e+00> : vector<16x512xf32>
    %525 = tpu.matmul %524, %111, %cst_348 {dimension_numbers = #tpu.dot_dimension_numbers<[1], [0], [0], [1], [0, 0, 1, 1], [], []>} : vector<16x8xbf16>, vector<8x512xbf16>, vector<16x512xf32> -> vector<16x512xf32>
    %526 = arith.addf %522, %525 : vector<16x512xf32>
    %c2_349 = arith.constant 2 : index
    %c0_350 = arith.constant 0 : index
    %c0_351 = arith.constant 0 : index
    %527 = vector.load %arg7[%c2_349, %c0_350, %c0_351] : memref<9x16x8xbf16, #tpu.memory_space<vmem>>, vector<1x16x8xbf16>
    %528 = vector.shape_cast %527 : vector<1x16x8xbf16> to vector<16x8xbf16>
    %529 = vector.extract_strided_slice %111 {offsets = [0, 128], sizes = [8, 384], strides = [1, 1]} : vector<8x512xbf16> to vector<8x384xbf16>
    %530 = tpu.concatenate %529, %3 in 1 : vector<8x384xbf16>, vector<8x128xbf16> -> vector<8x512xbf16>
    %cst_352 = arith.constant dense<0.000000e+00> : vector<16x512xf32>
    %531 = tpu.matmul %528, %530, %cst_352 {dimension_numbers = #tpu.dot_dimension_numbers<[1], [0], [0], [1], [0, 0, 1, 1], [], []>} : vector<16x8xbf16>, vector<8x512xbf16>, vector<16x512xf32> -> vector<16x512xf32>
    %532 = arith.addf %526, %531 : vector<16x512xf32>
    %c3_353 = arith.constant 3 : index
    %c0_354 = arith.constant 0 : index
    %c0_355 = arith.constant 0 : index
    %533 = vector.load %arg7[%c3_353, %c0_354, %c0_355] : memref<9x16x8xbf16, #tpu.memory_space<vmem>>, vector<1x16x8xbf16>
    %534 = vector.shape_cast %533 : vector<1x16x8xbf16> to vector<16x8xbf16>
    %535 = vector.extract_strided_slice %236 {offsets = [0, 0], sizes = [8, 384], strides = [1, 1]} : vector<8x512xbf16> to vector<8x384xbf16>
    %536 = tpu.concatenate %3, %535 in 1 : vector<8x128xbf16>, vector<8x384xbf16> -> vector<8x512xbf16>
    %cst_356 = arith.constant dense<0.000000e+00> : vector<16x512xf32>
    %537 = tpu.matmul %534, %536, %cst_356 {dimension_numbers = #tpu.dot_dimension_numbers<[1], [0], [0], [1], [0, 0, 1, 1], [], []>} : vector<16x8xbf16>, vector<8x512xbf16>, vector<16x512xf32> -> vector<16x512xf32>
    %538 = arith.addf %532, %537 : vector<16x512xf32>
    %c4_357 = arith.constant 4 : index
    %c0_358 = arith.constant 0 : index
    %c0_359 = arith.constant 0 : index
    %539 = vector.load %arg7[%c4_357, %c0_358, %c0_359] : memref<9x16x8xbf16, #tpu.memory_space<vmem>>, vector<1x16x8xbf16>
    %540 = vector.shape_cast %539 : vector<1x16x8xbf16> to vector<16x8xbf16>
    %cst_360 = arith.constant dense<0.000000e+00> : vector<16x512xf32>
    %541 = tpu.matmul %540, %236, %cst_360 {dimension_numbers = #tpu.dot_dimension_numbers<[1], [0], [0], [1], [0, 0, 1, 1], [], []>} : vector<16x8xbf16>, vector<8x512xbf16>, vector<16x512xf32> -> vector<16x512xf32>
    %542 = arith.addf %538, %541 : vector<16x512xf32>
    %c5_361 = arith.constant 5 : index
    %c0_362 = arith.constant 0 : index
    %c0_363 = arith.constant 0 : index
    %543 = vector.load %arg7[%c5_361, %c0_362, %c0_363] : memref<9x16x8xbf16, #tpu.memory_space<vmem>>, vector<1x16x8xbf16>
    %544 = vector.shape_cast %543 : vector<1x16x8xbf16> to vector<16x8xbf16>
    %545 = vector.extract_strided_slice %236 {offsets = [0, 128], sizes = [8, 384], strides = [1, 1]} : vector<8x512xbf16> to vector<8x384xbf16>
    %546 = tpu.concatenate %545, %3 in 1 : vector<8x384xbf16>, vector<8x128xbf16> -> vector<8x512xbf16>
    %cst_364 = arith.constant dense<0.000000e+00> : vector<16x512xf32>
    %547 = tpu.matmul %544, %546, %cst_364 {dimension_numbers = #tpu.dot_dimension_numbers<[1], [0], [0], [1], [0, 0, 1, 1], [], []>} : vector<16x8xbf16>, vector<8x512xbf16>, vector<16x512xf32> -> vector<16x512xf32>
    %548 = arith.addf %542, %547 : vector<16x512xf32>
    %c6_365 = arith.constant 6 : index
    %c0_366 = arith.constant 0 : index
    %c0_367 = arith.constant 0 : index
    %549 = vector.load %arg7[%c6_365, %c0_366, %c0_367] : memref<9x16x8xbf16, #tpu.memory_space<vmem>>, vector<1x16x8xbf16>
    %550 = vector.shape_cast %549 : vector<1x16x8xbf16> to vector<16x8xbf16>
    %551 = vector.extract_strided_slice %361 {offsets = [0, 0], sizes = [8, 384], strides = [1, 1]} : vector<8x512xbf16> to vector<8x384xbf16>
    %552 = tpu.concatenate %3, %551 in 1 : vector<8x128xbf16>, vector<8x384xbf16> -> vector<8x512xbf16>
    %cst_368 = arith.constant dense<0.000000e+00> : vector<16x512xf32>
    %553 = tpu.matmul %550, %552, %cst_368 {dimension_numbers = #tpu.dot_dimension_numbers<[1], [0], [0], [1], [0, 0, 1, 1], [], []>} : vector<16x8xbf16>, vector<8x512xbf16>, vector<16x512xf32> -> vector<16x512xf32>
    %554 = arith.addf %548, %553 : vector<16x512xf32>
    %c7_369 = arith.constant 7 : index
    %c0_370 = arith.constant 0 : index
    %c0_371 = arith.constant 0 : index
    %555 = vector.load %arg7[%c7_369, %c0_370, %c0_371] : memref<9x16x8xbf16, #tpu.memory_space<vmem>>, vector<1x16x8xbf16>
    %556 = vector.shape_cast %555 : vector<1x16x8xbf16> to vector<16x8xbf16>
    %cst_372 = arith.constant dense<0.000000e+00> : vector<16x512xf32>
    %557 = tpu.matmul %556, %361, %cst_372 {dimension_numbers = #tpu.dot_dimension_numbers<[1], [0], [0], [1], [0, 0, 1, 1], [], []>} : vector<16x8xbf16>, vector<8x512xbf16>, vector<16x512xf32> -> vector<16x512xf32>
    %558 = arith.addf %554, %557 : vector<16x512xf32>
    %c8_373 = arith.constant 8 : index
    %c0_374 = arith.constant 0 : index
    %c0_375 = arith.constant 0 : index
    %559 = vector.load %arg7[%c8_373, %c0_374, %c0_375] : memref<9x16x8xbf16, #tpu.memory_space<vmem>>, vector<1x16x8xbf16>
    %560 = vector.shape_cast %559 : vector<1x16x8xbf16> to vector<16x8xbf16>
    %561 = vector.extract_strided_slice %361 {offsets = [0, 128], sizes = [8, 384], strides = [1, 1]} : vector<8x512xbf16> to vector<8x384xbf16>
    %562 = tpu.concatenate %561, %3 in 1 : vector<8x384xbf16>, vector<8x128xbf16> -> vector<8x512xbf16>
    %cst_376 = arith.constant dense<0.000000e+00> : vector<16x512xf32>
    %563 = tpu.matmul %560, %562, %cst_376 {dimension_numbers = #tpu.dot_dimension_numbers<[1], [0], [0], [1], [0, 0, 1, 1], [], []>} : vector<16x8xbf16>, vector<8x512xbf16>, vector<16x512xf32> -> vector<16x512xf32>
    %564 = arith.addf %558, %563 : vector<16x512xf32>
    %565 = vector.broadcast %1 : vector<16x1xf32> to vector<16x512xf32>
    %566 = arith.addf %564, %565 : vector<16x512xf32>
    %cst_377 = arith.constant 0.000000e+00 : f32
    %567 = vector.broadcast %cst_377 : f32 to vector<16x512xf32>
    %568 = arith.maximumf %566, %567 : vector<16x512xf32>
    %569 = vector.extract_strided_slice %568 {offsets = [0, 0], sizes = [16, 128], strides = [1, 1]} : vector<16x512xf32> to vector<16x128xf32>
    %570 = arith.addf %515, %569 : vector<16x128xf32>
    %571 = vector.extract_strided_slice %568 {offsets = [0, 128], sizes = [16, 128], strides = [1, 1]} : vector<16x512xf32> to vector<16x128xf32>
    %572 = arith.addf %570, %571 : vector<16x128xf32>
    %573 = vector.extract_strided_slice %568 {offsets = [0, 256], sizes = [16, 128], strides = [1, 1]} : vector<16x512xf32> to vector<16x128xf32>
    %574 = arith.addf %572, %573 : vector<16x128xf32>
    %575 = vector.extract_strided_slice %568 {offsets = [0, 384], sizes = [16, 128], strides = [1, 1]} : vector<16x512xf32> to vector<16x128xf32>
    %576 = arith.addf %574, %575 : vector<16x128xf32>
    %cst_378 = arith.constant 0.000000e+00 : f32
    %577 = vector.broadcast %cst_378 : f32 to vector<16x512xf32>
    %c0_379 = arith.constant 0 : index
    %c0_380 = arith.constant 0 : index
    %c0_381 = arith.constant 0 : index
    %578 = vector.load %arg7[%c0_379, %c0_380, %c0_381] : memref<9x16x8xbf16, #tpu.memory_space<vmem>>, vector<1x16x8xbf16>
    %579 = vector.shape_cast %578 : vector<1x16x8xbf16> to vector<16x8xbf16>
    %580 = vector.extract_strided_slice %236 {offsets = [0, 0], sizes = [8, 384], strides = [1, 1]} : vector<8x512xbf16> to vector<8x384xbf16>
    %581 = tpu.concatenate %3, %580 in 1 : vector<8x128xbf16>, vector<8x384xbf16> -> vector<8x512xbf16>
    %cst_382 = arith.constant dense<0.000000e+00> : vector<16x512xf32>
    %582 = tpu.matmul %579, %581, %cst_382 {dimension_numbers = #tpu.dot_dimension_numbers<[1], [0], [0], [1], [0, 0, 1, 1], [], []>} : vector<16x8xbf16>, vector<8x512xbf16>, vector<16x512xf32> -> vector<16x512xf32>
    %583 = arith.addf %577, %582 : vector<16x512xf32>
    %c1_383 = arith.constant 1 : index
    %c0_384 = arith.constant 0 : index
    %c0_385 = arith.constant 0 : index
    %584 = vector.load %arg7[%c1_383, %c0_384, %c0_385] : memref<9x16x8xbf16, #tpu.memory_space<vmem>>, vector<1x16x8xbf16>
    %585 = vector.shape_cast %584 : vector<1x16x8xbf16> to vector<16x8xbf16>
    %cst_386 = arith.constant dense<0.000000e+00> : vector<16x512xf32>
    %586 = tpu.matmul %585, %236, %cst_386 {dimension_numbers = #tpu.dot_dimension_numbers<[1], [0], [0], [1], [0, 0, 1, 1], [], []>} : vector<16x8xbf16>, vector<8x512xbf16>, vector<16x512xf32> -> vector<16x512xf32>
    %587 = arith.addf %583, %586 : vector<16x512xf32>
    %c2_387 = arith.constant 2 : index
    %c0_388 = arith.constant 0 : index
    %c0_389 = arith.constant 0 : index
    %588 = vector.load %arg7[%c2_387, %c0_388, %c0_389] : memref<9x16x8xbf16, #tpu.memory_space<vmem>>, vector<1x16x8xbf16>
    %589 = vector.shape_cast %588 : vector<1x16x8xbf16> to vector<16x8xbf16>
    %590 = vector.extract_strided_slice %236 {offsets = [0, 128], sizes = [8, 384], strides = [1, 1]} : vector<8x512xbf16> to vector<8x384xbf16>
    %591 = tpu.concatenate %590, %3 in 1 : vector<8x384xbf16>, vector<8x128xbf16> -> vector<8x512xbf16>
    %cst_390 = arith.constant dense<0.000000e+00> : vector<16x512xf32>
    %592 = tpu.matmul %589, %591, %cst_390 {dimension_numbers = #tpu.dot_dimension_numbers<[1], [0], [0], [1], [0, 0, 1, 1], [], []>} : vector<16x8xbf16>, vector<8x512xbf16>, vector<16x512xf32> -> vector<16x512xf32>
    %593 = arith.addf %587, %592 : vector<16x512xf32>
    %c3_391 = arith.constant 3 : index
    %c0_392 = arith.constant 0 : index
    %c0_393 = arith.constant 0 : index
    %594 = vector.load %arg7[%c3_391, %c0_392, %c0_393] : memref<9x16x8xbf16, #tpu.memory_space<vmem>>, vector<1x16x8xbf16>
    %595 = vector.shape_cast %594 : vector<1x16x8xbf16> to vector<16x8xbf16>
    %596 = vector.extract_strided_slice %361 {offsets = [0, 0], sizes = [8, 384], strides = [1, 1]} : vector<8x512xbf16> to vector<8x384xbf16>
    %597 = tpu.concatenate %3, %596 in 1 : vector<8x128xbf16>, vector<8x384xbf16> -> vector<8x512xbf16>
    %cst_394 = arith.constant dense<0.000000e+00> : vector<16x512xf32>
    %598 = tpu.matmul %595, %597, %cst_394 {dimension_numbers = #tpu.dot_dimension_numbers<[1], [0], [0], [1], [0, 0, 1, 1], [], []>} : vector<16x8xbf16>, vector<8x512xbf16>, vector<16x512xf32> -> vector<16x512xf32>
    %599 = arith.addf %593, %598 : vector<16x512xf32>
    %c4_395 = arith.constant 4 : index
    %c0_396 = arith.constant 0 : index
    %c0_397 = arith.constant 0 : index
    %600 = vector.load %arg7[%c4_395, %c0_396, %c0_397] : memref<9x16x8xbf16, #tpu.memory_space<vmem>>, vector<1x16x8xbf16>
    %601 = vector.shape_cast %600 : vector<1x16x8xbf16> to vector<16x8xbf16>
    %cst_398 = arith.constant dense<0.000000e+00> : vector<16x512xf32>
    %602 = tpu.matmul %601, %361, %cst_398 {dimension_numbers = #tpu.dot_dimension_numbers<[1], [0], [0], [1], [0, 0, 1, 1], [], []>} : vector<16x8xbf16>, vector<8x512xbf16>, vector<16x512xf32> -> vector<16x512xf32>
    %603 = arith.addf %599, %602 : vector<16x512xf32>
    %c5_399 = arith.constant 5 : index
    %c0_400 = arith.constant 0 : index
    %c0_401 = arith.constant 0 : index
    %604 = vector.load %arg7[%c5_399, %c0_400, %c0_401] : memref<9x16x8xbf16, #tpu.memory_space<vmem>>, vector<1x16x8xbf16>
    %605 = vector.shape_cast %604 : vector<1x16x8xbf16> to vector<16x8xbf16>
    %606 = vector.extract_strided_slice %361 {offsets = [0, 128], sizes = [8, 384], strides = [1, 1]} : vector<8x512xbf16> to vector<8x384xbf16>
    %607 = tpu.concatenate %606, %3 in 1 : vector<8x384xbf16>, vector<8x128xbf16> -> vector<8x512xbf16>
    %cst_402 = arith.constant dense<0.000000e+00> : vector<16x512xf32>
    %608 = tpu.matmul %605, %607, %cst_402 {dimension_numbers = #tpu.dot_dimension_numbers<[1], [0], [0], [1], [0, 0, 1, 1], [], []>} : vector<16x8xbf16>, vector<8x512xbf16>, vector<16x512xf32> -> vector<16x512xf32>
    %609 = arith.addf %603, %608 : vector<16x512xf32>
    %c6_403 = arith.constant 6 : index
    %c0_404 = arith.constant 0 : index
    %c0_405 = arith.constant 0 : index
    %610 = vector.load %arg7[%c6_403, %c0_404, %c0_405] : memref<9x16x8xbf16, #tpu.memory_space<vmem>>, vector<1x16x8xbf16>
    %611 = vector.shape_cast %610 : vector<1x16x8xbf16> to vector<16x8xbf16>
    %612 = vector.extract_strided_slice %469 {offsets = [0, 0], sizes = [8, 384], strides = [1, 1]} : vector<8x512xbf16> to vector<8x384xbf16>
    %613 = tpu.concatenate %3, %612 in 1 : vector<8x128xbf16>, vector<8x384xbf16> -> vector<8x512xbf16>
    %cst_406 = arith.constant dense<0.000000e+00> : vector<16x512xf32>
    %614 = tpu.matmul %611, %613, %cst_406 {dimension_numbers = #tpu.dot_dimension_numbers<[1], [0], [0], [1], [0, 0, 1, 1], [], []>} : vector<16x8xbf16>, vector<8x512xbf16>, vector<16x512xf32> -> vector<16x512xf32>
    %615 = arith.addf %609, %614 : vector<16x512xf32>
    %c7_407 = arith.constant 7 : index
    %c0_408 = arith.constant 0 : index
    %c0_409 = arith.constant 0 : index
    %616 = vector.load %arg7[%c7_407, %c0_408, %c0_409] : memref<9x16x8xbf16, #tpu.memory_space<vmem>>, vector<1x16x8xbf16>
    %617 = vector.shape_cast %616 : vector<1x16x8xbf16> to vector<16x8xbf16>
    %cst_410 = arith.constant dense<0.000000e+00> : vector<16x512xf32>
    %618 = tpu.matmul %617, %469, %cst_410 {dimension_numbers = #tpu.dot_dimension_numbers<[1], [0], [0], [1], [0, 0, 1, 1], [], []>} : vector<16x8xbf16>, vector<8x512xbf16>, vector<16x512xf32> -> vector<16x512xf32>
    %619 = arith.addf %615, %618 : vector<16x512xf32>
    %c8_411 = arith.constant 8 : index
    %c0_412 = arith.constant 0 : index
    %c0_413 = arith.constant 0 : index
    %620 = vector.load %arg7[%c8_411, %c0_412, %c0_413] : memref<9x16x8xbf16, #tpu.memory_space<vmem>>, vector<1x16x8xbf16>
    %621 = vector.shape_cast %620 : vector<1x16x8xbf16> to vector<16x8xbf16>
    %622 = vector.extract_strided_slice %469 {offsets = [0, 128], sizes = [8, 384], strides = [1, 1]} : vector<8x512xbf16> to vector<8x384xbf16>
    %623 = tpu.concatenate %622, %3 in 1 : vector<8x384xbf16>, vector<8x128xbf16> -> vector<8x512xbf16>
    %cst_414 = arith.constant dense<0.000000e+00> : vector<16x512xf32>
    %624 = tpu.matmul %621, %623, %cst_414 {dimension_numbers = #tpu.dot_dimension_numbers<[1], [0], [0], [1], [0, 0, 1, 1], [], []>} : vector<16x8xbf16>, vector<8x512xbf16>, vector<16x512xf32> -> vector<16x512xf32>
    %625 = arith.addf %619, %624 : vector<16x512xf32>
    %626 = vector.broadcast %1 : vector<16x1xf32> to vector<16x512xf32>
    %627 = arith.addf %625, %626 : vector<16x512xf32>
    %cst_415 = arith.constant 0.000000e+00 : f32
    %628 = vector.broadcast %cst_415 : f32 to vector<16x512xf32>
    %629 = arith.maximumf %627, %628 : vector<16x512xf32>
    %630 = vector.extract_strided_slice %629 {offsets = [0, 0], sizes = [16, 128], strides = [1, 1]} : vector<16x512xf32> to vector<16x128xf32>
    %631 = arith.addf %576, %630 : vector<16x128xf32>
    %632 = vector.extract_strided_slice %629 {offsets = [0, 128], sizes = [16, 128], strides = [1, 1]} : vector<16x512xf32> to vector<16x128xf32>
    %633 = arith.addf %631, %632 : vector<16x128xf32>
    %634 = vector.extract_strided_slice %629 {offsets = [0, 256], sizes = [16, 128], strides = [1, 1]} : vector<16x512xf32> to vector<16x128xf32>
    %635 = arith.addf %633, %634 : vector<16x128xf32>
    %636 = vector.extract_strided_slice %629 {offsets = [0, 384], sizes = [16, 128], strides = [1, 1]} : vector<16x512xf32> to vector<16x128xf32>
    %637 = arith.addf %635, %636 : vector<16x128xf32>
    %cst_416 = arith.constant 0.000000e+00 : f32
    %638 = vector.broadcast %cst_416 : f32 to vector<16x512xf32>
    %c0_417 = arith.constant 0 : index
    %c0_418 = arith.constant 0 : index
    %c0_419 = arith.constant 0 : index
    %639 = vector.load %arg7[%c0_417, %c0_418, %c0_419] : memref<9x16x8xbf16, #tpu.memory_space<vmem>>, vector<1x16x8xbf16>
    %640 = vector.shape_cast %639 : vector<1x16x8xbf16> to vector<16x8xbf16>
    %641 = vector.extract_strided_slice %361 {offsets = [0, 0], sizes = [8, 384], strides = [1, 1]} : vector<8x512xbf16> to vector<8x384xbf16>
    %642 = tpu.concatenate %3, %641 in 1 : vector<8x128xbf16>, vector<8x384xbf16> -> vector<8x512xbf16>
    %cst_420 = arith.constant dense<0.000000e+00> : vector<16x512xf32>
    %643 = tpu.matmul %640, %642, %cst_420 {dimension_numbers = #tpu.dot_dimension_numbers<[1], [0], [0], [1], [0, 0, 1, 1], [], []>} : vector<16x8xbf16>, vector<8x512xbf16>, vector<16x512xf32> -> vector<16x512xf32>
    %644 = arith.addf %638, %643 : vector<16x512xf32>
    %c1_421 = arith.constant 1 : index
    %c0_422 = arith.constant 0 : index
    %c0_423 = arith.constant 0 : index
    %645 = vector.load %arg7[%c1_421, %c0_422, %c0_423] : memref<9x16x8xbf16, #tpu.memory_space<vmem>>, vector<1x16x8xbf16>
    %646 = vector.shape_cast %645 : vector<1x16x8xbf16> to vector<16x8xbf16>
    %cst_424 = arith.constant dense<0.000000e+00> : vector<16x512xf32>
    %647 = tpu.matmul %646, %361, %cst_424 {dimension_numbers = #tpu.dot_dimension_numbers<[1], [0], [0], [1], [0, 0, 1, 1], [], []>} : vector<16x8xbf16>, vector<8x512xbf16>, vector<16x512xf32> -> vector<16x512xf32>
    %648 = arith.addf %644, %647 : vector<16x512xf32>
    %c2_425 = arith.constant 2 : index
    %c0_426 = arith.constant 0 : index
    %c0_427 = arith.constant 0 : index
    %649 = vector.load %arg7[%c2_425, %c0_426, %c0_427] : memref<9x16x8xbf16, #tpu.memory_space<vmem>>, vector<1x16x8xbf16>
    %650 = vector.shape_cast %649 : vector<1x16x8xbf16> to vector<16x8xbf16>
    %651 = vector.extract_strided_slice %361 {offsets = [0, 128], sizes = [8, 384], strides = [1, 1]} : vector<8x512xbf16> to vector<8x384xbf16>
    %652 = tpu.concatenate %651, %3 in 1 : vector<8x384xbf16>, vector<8x128xbf16> -> vector<8x512xbf16>
    %cst_428 = arith.constant dense<0.000000e+00> : vector<16x512xf32>
    %653 = tpu.matmul %650, %652, %cst_428 {dimension_numbers = #tpu.dot_dimension_numbers<[1], [0], [0], [1], [0, 0, 1, 1], [], []>} : vector<16x8xbf16>, vector<8x512xbf16>, vector<16x512xf32> -> vector<16x512xf32>
    %654 = arith.addf %648, %653 : vector<16x512xf32>
    %c3_429 = arith.constant 3 : index
    %c0_430 = arith.constant 0 : index
    %c0_431 = arith.constant 0 : index
    %655 = vector.load %arg7[%c3_429, %c0_430, %c0_431] : memref<9x16x8xbf16, #tpu.memory_space<vmem>>, vector<1x16x8xbf16>
    %656 = vector.shape_cast %655 : vector<1x16x8xbf16> to vector<16x8xbf16>
    %657 = vector.extract_strided_slice %469 {offsets = [0, 0], sizes = [8, 384], strides = [1, 1]} : vector<8x512xbf16> to vector<8x384xbf16>
    %658 = tpu.concatenate %3, %657 in 1 : vector<8x128xbf16>, vector<8x384xbf16> -> vector<8x512xbf16>
    %cst_432 = arith.constant dense<0.000000e+00> : vector<16x512xf32>
    %659 = tpu.matmul %656, %658, %cst_432 {dimension_numbers = #tpu.dot_dimension_numbers<[1], [0], [0], [1], [0, 0, 1, 1], [], []>} : vector<16x8xbf16>, vector<8x512xbf16>, vector<16x512xf32> -> vector<16x512xf32>
    %660 = arith.addf %654, %659 : vector<16x512xf32>
    %c4_433 = arith.constant 4 : index
    %c0_434 = arith.constant 0 : index
    %c0_435 = arith.constant 0 : index
    %661 = vector.load %arg7[%c4_433, %c0_434, %c0_435] : memref<9x16x8xbf16, #tpu.memory_space<vmem>>, vector<1x16x8xbf16>
    %662 = vector.shape_cast %661 : vector<1x16x8xbf16> to vector<16x8xbf16>
    %cst_436 = arith.constant dense<0.000000e+00> : vector<16x512xf32>
    %663 = tpu.matmul %662, %469, %cst_436 {dimension_numbers = #tpu.dot_dimension_numbers<[1], [0], [0], [1], [0, 0, 1, 1], [], []>} : vector<16x8xbf16>, vector<8x512xbf16>, vector<16x512xf32> -> vector<16x512xf32>
    %664 = arith.addf %660, %663 : vector<16x512xf32>
    %c5_437 = arith.constant 5 : index
    %c0_438 = arith.constant 0 : index
    %c0_439 = arith.constant 0 : index
    %665 = vector.load %arg7[%c5_437, %c0_438, %c0_439] : memref<9x16x8xbf16, #tpu.memory_space<vmem>>, vector<1x16x8xbf16>
    %666 = vector.shape_cast %665 : vector<1x16x8xbf16> to vector<16x8xbf16>
    %667 = vector.extract_strided_slice %469 {offsets = [0, 128], sizes = [8, 384], strides = [1, 1]} : vector<8x512xbf16> to vector<8x384xbf16>
    %668 = tpu.concatenate %667, %3 in 1 : vector<8x384xbf16>, vector<8x128xbf16> -> vector<8x512xbf16>
    %cst_440 = arith.constant dense<0.000000e+00> : vector<16x512xf32>
    %669 = tpu.matmul %666, %668, %cst_440 {dimension_numbers = #tpu.dot_dimension_numbers<[1], [0], [0], [1], [0, 0, 1, 1], [], []>} : vector<16x8xbf16>, vector<8x512xbf16>, vector<16x512xf32> -> vector<16x512xf32>
    %670 = arith.addf %664, %669 : vector<16x512xf32>
    %671 = vector.broadcast %1 : vector<16x1xf32> to vector<16x512xf32>
    %672 = arith.addf %670, %671 : vector<16x512xf32>
    %cst_441 = arith.constant 0.000000e+00 : f32
    %673 = vector.broadcast %cst_441 : f32 to vector<16x512xf32>
    %674 = arith.maximumf %672, %673 : vector<16x512xf32>
    %675 = vector.extract_strided_slice %674 {offsets = [0, 0], sizes = [16, 128], strides = [1, 1]} : vector<16x512xf32> to vector<16x128xf32>
    %676 = arith.addf %637, %675 : vector<16x128xf32>
    %677 = vector.extract_strided_slice %674 {offsets = [0, 128], sizes = [16, 128], strides = [1, 1]} : vector<16x512xf32> to vector<16x128xf32>
    %678 = arith.addf %676, %677 : vector<16x128xf32>
    %679 = vector.extract_strided_slice %674 {offsets = [0, 256], sizes = [16, 128], strides = [1, 1]} : vector<16x512xf32> to vector<16x128xf32>
    %680 = arith.addf %678, %679 : vector<16x128xf32>
    %681 = vector.extract_strided_slice %674 {offsets = [0, 384], sizes = [16, 128], strides = [1, 1]} : vector<16x512xf32> to vector<16x128xf32>
    %682 = arith.addf %680, %681 : vector<16x128xf32>
    %c0_442 = arith.constant 0 : index
    %c0_443 = arith.constant 0 : index
    %683 = vector.load %arg1[%c0_442, %c0_443] : memref<32x128xf32, #tpu.memory_space<vmem>>, vector<32x128xf32>
    %cst_444 = arith.constant dense<0.000000e+00> : vector<32x16xf32>
    %684 = tpu.matmul %683, %682, %cst_444 {dimension_numbers = #tpu.dot_dimension_numbers<[1], [1], [0], [0], [0, 0, 1, 0], [], []>} : vector<32x128xf32>, vector<16x128xf32>, vector<32x16xf32> -> vector<32x16xf32>
    %c0_445 = arith.constant 0 : index
    %c0_446 = arith.constant 0 : index
    %685 = vector.load %arg2[%c0_445, %c0_446] : memref<32x12xf32, #tpu.memory_space<vmem>>, vector<32x12xf32>
    %686 = vector.extract_strided_slice %684 {offsets = [0, 0], sizes = [16, 16], strides = [1, 1]} : vector<32x16xf32> to vector<16x16xf32>
    %c0_447 = arith.constant 0 : index
    %c0_448 = arith.constant 0 : index
    %687 = vector.load %arg9[%c0_447, %c0_448] : memref<16x256xf32, #tpu.memory_space<vmem>>, vector<16x256xf32>
    %cst_449 = arith.constant dense<0.000000e+00> : vector<16x256xf32>
    %688 = tpu.matmul %686, %687, %cst_449 {dimension_numbers = #tpu.dot_dimension_numbers<[1], [0], [0], [1], [0, 0, 1, 1], [], []>} : vector<16x16xf32>, vector<16x256xf32>, vector<16x256xf32> -> vector<16x256xf32>
    %689 = vector.extract_strided_slice %684 {offsets = [16, 0], sizes = [16, 16], strides = [1, 1]} : vector<32x16xf32> to vector<16x16xf32>
    %c0_450 = arith.constant 0 : index
    %c0_451 = arith.constant 0 : index
    %690 = vector.load %arg10[%c0_450, %c0_451] : memref<16x256xf32, #tpu.memory_space<vmem>>, vector<16x256xf32>
    %cst_452 = arith.constant dense<0.000000e+00> : vector<16x256xf32>
    %691 = tpu.matmul %689, %690, %cst_452 {dimension_numbers = #tpu.dot_dimension_numbers<[1], [0], [0], [1], [0, 0, 1, 1], [], []>} : vector<16x16xf32>, vector<16x256xf32>, vector<16x256xf32> -> vector<16x256xf32>
    %692 = arith.addf %688, %691 : vector<16x256xf32>
    %693 = vector.extract_strided_slice %685 {offsets = [0, 0], sizes = [16, 12], strides = [1, 1]} : vector<32x12xf32> to vector<16x12xf32>
    %c0_453 = arith.constant 0 : index
    %c0_454 = arith.constant 0 : index
    %694 = vector.load %arg11[%c0_453, %c0_454] : memref<12x256xf32, #tpu.memory_space<vmem>>, vector<12x256xf32>
    %cst_455 = arith.constant dense<0.000000e+00> : vector<16x256xf32>
    %695 = tpu.matmul %693, %694, %cst_455 {dimension_numbers = #tpu.dot_dimension_numbers<[1], [0], [0], [1], [0, 0, 1, 1], [], []>} : vector<16x12xf32>, vector<12x256xf32>, vector<16x256xf32> -> vector<16x256xf32>
    %696 = arith.addf %692, %695 : vector<16x256xf32>
    %697 = vector.extract_strided_slice %685 {offsets = [16, 0], sizes = [16, 12], strides = [1, 1]} : vector<32x12xf32> to vector<16x12xf32>
    %c0_456 = arith.constant 0 : index
    %c0_457 = arith.constant 0 : index
    %698 = vector.load %arg12[%c0_456, %c0_457] : memref<12x256xf32, #tpu.memory_space<vmem>>, vector<12x256xf32>
    %cst_458 = arith.constant dense<0.000000e+00> : vector<16x256xf32>
    %699 = tpu.matmul %697, %698, %cst_458 {dimension_numbers = #tpu.dot_dimension_numbers<[1], [0], [0], [1], [0, 0, 1, 1], [], []>} : vector<16x12xf32>, vector<12x256xf32>, vector<16x256xf32> -> vector<16x256xf32>
    %700 = arith.addf %696, %699 : vector<16x256xf32>
    %c0_459 = arith.constant 0 : index
    %c0_460 = arith.constant 0 : index
    %701 = vector.load %arg13[%c0_459, %c0_460] : memref<1x256xf32, #tpu.memory_space<vmem>>, vector<1x256xf32>
    %702 = vector.broadcast %701 : vector<1x256xf32> to vector<16x256xf32>
    %703 = arith.addf %700, %702 : vector<16x256xf32>
    %c0_461 = arith.constant 0 : index
    %c0_462 = arith.constant 0 : index
    %704 = vector.load %arg14[%c0_461, %c0_462] : memref<64x256xf32, #tpu.memory_space<vmem>>, vector<64x256xf32>
    %cst_463 = arith.constant 0.000000e+00 : f32
    %705 = vector.broadcast %cst_463 : f32 to vector<2x64xf32>
    %cst_464 = arith.constant 0.000000e+00 : f32
    %706 = vector.broadcast %cst_464 : f32 to vector<2x64xf32>
    %cst_465 = arith.constant 0.000000e+00 : f32
    %707 = vector.broadcast %cst_465 : f32 to vector<2x64xf32>
    %cst_466 = arith.constant 0.000000e+00 : f32
    %708 = vector.broadcast %cst_466 : f32 to vector<2x1xf32>
    %709 = vector.extract_strided_slice %703 {offsets = [0, 0], sizes = [2, 256], strides = [1, 1]} : vector<16x256xf32> to vector<2x256xf32>
    %cst_467 = arith.constant dense<0.000000e+00> : vector<2x256xf32>
    %710 = tpu.matmul %706, %704, %cst_467 {dimension_numbers = #tpu.dot_dimension_numbers<[1], [0], [0], [1], [0, 0, 1, 1], [], []>} : vector<2x64xf32>, vector<64x256xf32>, vector<2x256xf32> -> vector<2x256xf32>
    %711 = arith.addf %709, %710 : vector<2x256xf32>
    %712 = vector.extract_strided_slice %711 {offsets = [0, 0], sizes = [2, 128], strides = [1, 1]} : vector<2x256xf32> to vector<2x128xf32>
    %713 = arith.negf %712 : vector<2x128xf32>
    %714 = math.exp %713 : vector<2x128xf32>
    %cst_468 = arith.constant 1.000000e+00 : f32
    %715 = vector.broadcast %cst_468 : f32 to vector<2x128xf32>
    %716 = arith.addf %715, %714 : vector<2x128xf32>
    %717 = arith.divf %715, %716 : vector<2x128xf32>
    %718 = vector.extract_strided_slice %711 {offsets = [0, 128], sizes = [2, 64], strides = [1, 1]} : vector<2x256xf32> to vector<2x64xf32>
    %719 = math.tanh %718 : vector<2x64xf32>
    %720 = vector.extract_strided_slice %711 {offsets = [0, 192], sizes = [2, 64], strides = [1, 1]} : vector<2x256xf32> to vector<2x64xf32>
    %721 = arith.negf %720 : vector<2x64xf32>
    %722 = math.exp %721 : vector<2x64xf32>
    %cst_469 = arith.constant 1.000000e+00 : f32
    %723 = vector.broadcast %cst_469 : f32 to vector<2x64xf32>
    %724 = arith.addf %723, %722 : vector<2x64xf32>
    %725 = arith.divf %723, %724 : vector<2x64xf32>
    %726 = vector.extract_strided_slice %717 {offsets = [0, 0], sizes = [2, 64], strides = [1, 1]} : vector<2x128xf32> to vector<2x64xf32>
    %727 = vector.extract_strided_slice %717 {offsets = [0, 64], sizes = [2, 64], strides = [1, 1]} : vector<2x128xf32> to vector<2x64xf32>
    %728 = arith.mulf %727, %705 : vector<2x64xf32>
    %729 = arith.mulf %726, %719 : vector<2x64xf32>
    %730 = arith.addf %728, %729 : vector<2x64xf32>
    %731 = math.tanh %730 : vector<2x64xf32>
    %732 = arith.mulf %725, %731 : vector<2x64xf32>
    %c0_470 = arith.constant 0 : index
    %c0_471 = arith.constant 0 : index
    %c0_472 = arith.constant 0 : index
    %733 = vector.load %arg3[%c0_470, %c0_471, %c0_472] : memref<8x2x64xf32, #tpu.memory_space<vmem>>, vector<1x2x64xf32>
    %734 = vector.shape_cast %733 : vector<1x2x64xf32> to vector<2x64xf32>
    %735 = arith.mulf %734, %732 : vector<2x64xf32>
    %736 = arith.addf %707, %735 : vector<2x64xf32>
    %737 = vector.extract_strided_slice %734 {offsets = [0, 0], sizes = [2, 1], strides = [1, 1]} : vector<2x64xf32> to vector<2x1xf32>
    %738 = arith.addf %708, %737 : vector<2x1xf32>
    %739 = vector.extract_strided_slice %703 {offsets = [2, 0], sizes = [2, 256], strides = [1, 1]} : vector<16x256xf32> to vector<2x256xf32>
    %cst_473 = arith.constant dense<0.000000e+00> : vector<2x256xf32>
    %740 = tpu.matmul %732, %704, %cst_473 {dimension_numbers = #tpu.dot_dimension_numbers<[1], [0], [0], [1], [0, 0, 1, 1], [], []>} : vector<2x64xf32>, vector<64x256xf32>, vector<2x256xf32> -> vector<2x256xf32>
    %741 = arith.addf %739, %740 : vector<2x256xf32>
    %742 = vector.extract_strided_slice %741 {offsets = [0, 0], sizes = [2, 128], strides = [1, 1]} : vector<2x256xf32> to vector<2x128xf32>
    %743 = arith.negf %742 : vector<2x128xf32>
    %744 = math.exp %743 : vector<2x128xf32>
    %cst_474 = arith.constant 1.000000e+00 : f32
    %745 = vector.broadcast %cst_474 : f32 to vector<2x128xf32>
    %746 = arith.addf %745, %744 : vector<2x128xf32>
    %747 = arith.divf %745, %746 : vector<2x128xf32>
    %748 = vector.extract_strided_slice %741 {offsets = [0, 128], sizes = [2, 64], strides = [1, 1]} : vector<2x256xf32> to vector<2x64xf32>
    %749 = math.tanh %748 : vector<2x64xf32>
    %750 = vector.extract_strided_slice %741 {offsets = [0, 192], sizes = [2, 64], strides = [1, 1]} : vector<2x256xf32> to vector<2x64xf32>
    %751 = arith.negf %750 : vector<2x64xf32>
    %752 = math.exp %751 : vector<2x64xf32>
    %cst_475 = arith.constant 1.000000e+00 : f32
    %753 = vector.broadcast %cst_475 : f32 to vector<2x64xf32>
    %754 = arith.addf %753, %752 : vector<2x64xf32>
    %755 = arith.divf %753, %754 : vector<2x64xf32>
    %756 = vector.extract_strided_slice %747 {offsets = [0, 0], sizes = [2, 64], strides = [1, 1]} : vector<2x128xf32> to vector<2x64xf32>
    %757 = vector.extract_strided_slice %747 {offsets = [0, 64], sizes = [2, 64], strides = [1, 1]} : vector<2x128xf32> to vector<2x64xf32>
    %758 = arith.mulf %757, %730 : vector<2x64xf32>
    %759 = arith.mulf %756, %749 : vector<2x64xf32>
    %760 = arith.addf %758, %759 : vector<2x64xf32>
    %761 = math.tanh %760 : vector<2x64xf32>
    %762 = arith.mulf %755, %761 : vector<2x64xf32>
    %c1_476 = arith.constant 1 : index
    %c0_477 = arith.constant 0 : index
    %c0_478 = arith.constant 0 : index
    %763 = vector.load %arg3[%c1_476, %c0_477, %c0_478] : memref<8x2x64xf32, #tpu.memory_space<vmem>>, vector<1x2x64xf32>
    %764 = vector.shape_cast %763 : vector<1x2x64xf32> to vector<2x64xf32>
    %765 = arith.mulf %764, %762 : vector<2x64xf32>
    %766 = arith.addf %736, %765 : vector<2x64xf32>
    %767 = vector.extract_strided_slice %764 {offsets = [0, 0], sizes = [2, 1], strides = [1, 1]} : vector<2x64xf32> to vector<2x1xf32>
    %768 = arith.addf %738, %767 : vector<2x1xf32>
    %769 = vector.extract_strided_slice %703 {offsets = [4, 0], sizes = [2, 256], strides = [1, 1]} : vector<16x256xf32> to vector<2x256xf32>
    %cst_479 = arith.constant dense<0.000000e+00> : vector<2x256xf32>
    %770 = tpu.matmul %762, %704, %cst_479 {dimension_numbers = #tpu.dot_dimension_numbers<[1], [0], [0], [1], [0, 0, 1, 1], [], []>} : vector<2x64xf32>, vector<64x256xf32>, vector<2x256xf32> -> vector<2x256xf32>
    %771 = arith.addf %769, %770 : vector<2x256xf32>
    %772 = vector.extract_strided_slice %771 {offsets = [0, 0], sizes = [2, 128], strides = [1, 1]} : vector<2x256xf32> to vector<2x128xf32>
    %773 = arith.negf %772 : vector<2x128xf32>
    %774 = math.exp %773 : vector<2x128xf32>
    %cst_480 = arith.constant 1.000000e+00 : f32
    %775 = vector.broadcast %cst_480 : f32 to vector<2x128xf32>
    %776 = arith.addf %775, %774 : vector<2x128xf32>
    %777 = arith.divf %775, %776 : vector<2x128xf32>
    %778 = vector.extract_strided_slice %771 {offsets = [0, 128], sizes = [2, 64], strides = [1, 1]} : vector<2x256xf32> to vector<2x64xf32>
    %779 = math.tanh %778 : vector<2x64xf32>
    %780 = vector.extract_strided_slice %771 {offsets = [0, 192], sizes = [2, 64], strides = [1, 1]} : vector<2x256xf32> to vector<2x64xf32>
    %781 = arith.negf %780 : vector<2x64xf32>
    %782 = math.exp %781 : vector<2x64xf32>
    %cst_481 = arith.constant 1.000000e+00 : f32
    %783 = vector.broadcast %cst_481 : f32 to vector<2x64xf32>
    %784 = arith.addf %783, %782 : vector<2x64xf32>
    %785 = arith.divf %783, %784 : vector<2x64xf32>
    %786 = vector.extract_strided_slice %777 {offsets = [0, 0], sizes = [2, 64], strides = [1, 1]} : vector<2x128xf32> to vector<2x64xf32>
    %787 = vector.extract_strided_slice %777 {offsets = [0, 64], sizes = [2, 64], strides = [1, 1]} : vector<2x128xf32> to vector<2x64xf32>
    %788 = arith.mulf %787, %760 : vector<2x64xf32>
    %789 = arith.mulf %786, %779 : vector<2x64xf32>
    %790 = arith.addf %788, %789 : vector<2x64xf32>
    %791 = math.tanh %790 : vector<2x64xf32>
    %792 = arith.mulf %785, %791 : vector<2x64xf32>
    %c2_482 = arith.constant 2 : index
    %c0_483 = arith.constant 0 : index
    %c0_484 = arith.constant 0 : index
    %793 = vector.load %arg3[%c2_482, %c0_483, %c0_484] : memref<8x2x64xf32, #tpu.memory_space<vmem>>, vector<1x2x64xf32>
    %794 = vector.shape_cast %793 : vector<1x2x64xf32> to vector<2x64xf32>
    %795 = arith.mulf %794, %792 : vector<2x64xf32>
    %796 = arith.addf %766, %795 : vector<2x64xf32>
    %797 = vector.extract_strided_slice %794 {offsets = [0, 0], sizes = [2, 1], strides = [1, 1]} : vector<2x64xf32> to vector<2x1xf32>
    %798 = arith.addf %768, %797 : vector<2x1xf32>
    %799 = vector.extract_strided_slice %703 {offsets = [6, 0], sizes = [2, 256], strides = [1, 1]} : vector<16x256xf32> to vector<2x256xf32>
    %cst_485 = arith.constant dense<0.000000e+00> : vector<2x256xf32>
    %800 = tpu.matmul %792, %704, %cst_485 {dimension_numbers = #tpu.dot_dimension_numbers<[1], [0], [0], [1], [0, 0, 1, 1], [], []>} : vector<2x64xf32>, vector<64x256xf32>, vector<2x256xf32> -> vector<2x256xf32>
    %801 = arith.addf %799, %800 : vector<2x256xf32>
    %802 = vector.extract_strided_slice %801 {offsets = [0, 0], sizes = [2, 128], strides = [1, 1]} : vector<2x256xf32> to vector<2x128xf32>
    %803 = arith.negf %802 : vector<2x128xf32>
    %804 = math.exp %803 : vector<2x128xf32>
    %cst_486 = arith.constant 1.000000e+00 : f32
    %805 = vector.broadcast %cst_486 : f32 to vector<2x128xf32>
    %806 = arith.addf %805, %804 : vector<2x128xf32>
    %807 = arith.divf %805, %806 : vector<2x128xf32>
    %808 = vector.extract_strided_slice %801 {offsets = [0, 128], sizes = [2, 64], strides = [1, 1]} : vector<2x256xf32> to vector<2x64xf32>
    %809 = math.tanh %808 : vector<2x64xf32>
    %810 = vector.extract_strided_slice %801 {offsets = [0, 192], sizes = [2, 64], strides = [1, 1]} : vector<2x256xf32> to vector<2x64xf32>
    %811 = arith.negf %810 : vector<2x64xf32>
    %812 = math.exp %811 : vector<2x64xf32>
    %cst_487 = arith.constant 1.000000e+00 : f32
    %813 = vector.broadcast %cst_487 : f32 to vector<2x64xf32>
    %814 = arith.addf %813, %812 : vector<2x64xf32>
    %815 = arith.divf %813, %814 : vector<2x64xf32>
    %816 = vector.extract_strided_slice %807 {offsets = [0, 0], sizes = [2, 64], strides = [1, 1]} : vector<2x128xf32> to vector<2x64xf32>
    %817 = vector.extract_strided_slice %807 {offsets = [0, 64], sizes = [2, 64], strides = [1, 1]} : vector<2x128xf32> to vector<2x64xf32>
    %818 = arith.mulf %817, %790 : vector<2x64xf32>
    %819 = arith.mulf %816, %809 : vector<2x64xf32>
    %820 = arith.addf %818, %819 : vector<2x64xf32>
    %821 = math.tanh %820 : vector<2x64xf32>
    %822 = arith.mulf %815, %821 : vector<2x64xf32>
    %c3_488 = arith.constant 3 : index
    %c0_489 = arith.constant 0 : index
    %c0_490 = arith.constant 0 : index
    %823 = vector.load %arg3[%c3_488, %c0_489, %c0_490] : memref<8x2x64xf32, #tpu.memory_space<vmem>>, vector<1x2x64xf32>
    %824 = vector.shape_cast %823 : vector<1x2x64xf32> to vector<2x64xf32>
    %825 = arith.mulf %824, %822 : vector<2x64xf32>
    %826 = arith.addf %796, %825 : vector<2x64xf32>
    %827 = vector.extract_strided_slice %824 {offsets = [0, 0], sizes = [2, 1], strides = [1, 1]} : vector<2x64xf32> to vector<2x1xf32>
    %828 = arith.addf %798, %827 : vector<2x1xf32>
    %829 = vector.extract_strided_slice %703 {offsets = [8, 0], sizes = [2, 256], strides = [1, 1]} : vector<16x256xf32> to vector<2x256xf32>
    %cst_491 = arith.constant dense<0.000000e+00> : vector<2x256xf32>
    %830 = tpu.matmul %822, %704, %cst_491 {dimension_numbers = #tpu.dot_dimension_numbers<[1], [0], [0], [1], [0, 0, 1, 1], [], []>} : vector<2x64xf32>, vector<64x256xf32>, vector<2x256xf32> -> vector<2x256xf32>
    %831 = arith.addf %829, %830 : vector<2x256xf32>
    %832 = vector.extract_strided_slice %831 {offsets = [0, 0], sizes = [2, 128], strides = [1, 1]} : vector<2x256xf32> to vector<2x128xf32>
    %833 = arith.negf %832 : vector<2x128xf32>
    %834 = math.exp %833 : vector<2x128xf32>
    %cst_492 = arith.constant 1.000000e+00 : f32
    %835 = vector.broadcast %cst_492 : f32 to vector<2x128xf32>
    %836 = arith.addf %835, %834 : vector<2x128xf32>
    %837 = arith.divf %835, %836 : vector<2x128xf32>
    %838 = vector.extract_strided_slice %831 {offsets = [0, 128], sizes = [2, 64], strides = [1, 1]} : vector<2x256xf32> to vector<2x64xf32>
    %839 = math.tanh %838 : vector<2x64xf32>
    %840 = vector.extract_strided_slice %831 {offsets = [0, 192], sizes = [2, 64], strides = [1, 1]} : vector<2x256xf32> to vector<2x64xf32>
    %841 = arith.negf %840 : vector<2x64xf32>
    %842 = math.exp %841 : vector<2x64xf32>
    %cst_493 = arith.constant 1.000000e+00 : f32
    %843 = vector.broadcast %cst_493 : f32 to vector<2x64xf32>
    %844 = arith.addf %843, %842 : vector<2x64xf32>
    %845 = arith.divf %843, %844 : vector<2x64xf32>
    %846 = vector.extract_strided_slice %837 {offsets = [0, 0], sizes = [2, 64], strides = [1, 1]} : vector<2x128xf32> to vector<2x64xf32>
    %847 = vector.extract_strided_slice %837 {offsets = [0, 64], sizes = [2, 64], strides = [1, 1]} : vector<2x128xf32> to vector<2x64xf32>
    %848 = arith.mulf %847, %820 : vector<2x64xf32>
    %849 = arith.mulf %846, %839 : vector<2x64xf32>
    %850 = arith.addf %848, %849 : vector<2x64xf32>
    %851 = math.tanh %850 : vector<2x64xf32>
    %852 = arith.mulf %845, %851 : vector<2x64xf32>
    %c4_494 = arith.constant 4 : index
    %c0_495 = arith.constant 0 : index
    %c0_496 = arith.constant 0 : index
    %853 = vector.load %arg3[%c4_494, %c0_495, %c0_496] : memref<8x2x64xf32, #tpu.memory_space<vmem>>, vector<1x2x64xf32>
    %854 = vector.shape_cast %853 : vector<1x2x64xf32> to vector<2x64xf32>
    %855 = arith.mulf %854, %852 : vector<2x64xf32>
    %856 = arith.addf %826, %855 : vector<2x64xf32>
    %857 = vector.extract_strided_slice %854 {offsets = [0, 0], sizes = [2, 1], strides = [1, 1]} : vector<2x64xf32> to vector<2x1xf32>
    %858 = arith.addf %828, %857 : vector<2x1xf32>
    %859 = vector.extract_strided_slice %703 {offsets = [10, 0], sizes = [2, 256], strides = [1, 1]} : vector<16x256xf32> to vector<2x256xf32>
    %cst_497 = arith.constant dense<0.000000e+00> : vector<2x256xf32>
    %860 = tpu.matmul %852, %704, %cst_497 {dimension_numbers = #tpu.dot_dimension_numbers<[1], [0], [0], [1], [0, 0, 1, 1], [], []>} : vector<2x64xf32>, vector<64x256xf32>, vector<2x256xf32> -> vector<2x256xf32>
    %861 = arith.addf %859, %860 : vector<2x256xf32>
    %862 = vector.extract_strided_slice %861 {offsets = [0, 0], sizes = [2, 128], strides = [1, 1]} : vector<2x256xf32> to vector<2x128xf32>
    %863 = arith.negf %862 : vector<2x128xf32>
    %864 = math.exp %863 : vector<2x128xf32>
    %cst_498 = arith.constant 1.000000e+00 : f32
    %865 = vector.broadcast %cst_498 : f32 to vector<2x128xf32>
    %866 = arith.addf %865, %864 : vector<2x128xf32>
    %867 = arith.divf %865, %866 : vector<2x128xf32>
    %868 = vector.extract_strided_slice %861 {offsets = [0, 128], sizes = [2, 64], strides = [1, 1]} : vector<2x256xf32> to vector<2x64xf32>
    %869 = math.tanh %868 : vector<2x64xf32>
    %870 = vector.extract_strided_slice %861 {offsets = [0, 192], sizes = [2, 64], strides = [1, 1]} : vector<2x256xf32> to vector<2x64xf32>
    %871 = arith.negf %870 : vector<2x64xf32>
    %872 = math.exp %871 : vector<2x64xf32>
    %cst_499 = arith.constant 1.000000e+00 : f32
    %873 = vector.broadcast %cst_499 : f32 to vector<2x64xf32>
    %874 = arith.addf %873, %872 : vector<2x64xf32>
    %875 = arith.divf %873, %874 : vector<2x64xf32>
    %876 = vector.extract_strided_slice %867 {offsets = [0, 0], sizes = [2, 64], strides = [1, 1]} : vector<2x128xf32> to vector<2x64xf32>
    %877 = vector.extract_strided_slice %867 {offsets = [0, 64], sizes = [2, 64], strides = [1, 1]} : vector<2x128xf32> to vector<2x64xf32>
    %878 = arith.mulf %877, %850 : vector<2x64xf32>
    %879 = arith.mulf %876, %869 : vector<2x64xf32>
    %880 = arith.addf %878, %879 : vector<2x64xf32>
    %881 = math.tanh %880 : vector<2x64xf32>
    %882 = arith.mulf %875, %881 : vector<2x64xf32>
    %c5_500 = arith.constant 5 : index
    %c0_501 = arith.constant 0 : index
    %c0_502 = arith.constant 0 : index
    %883 = vector.load %arg3[%c5_500, %c0_501, %c0_502] : memref<8x2x64xf32, #tpu.memory_space<vmem>>, vector<1x2x64xf32>
    %884 = vector.shape_cast %883 : vector<1x2x64xf32> to vector<2x64xf32>
    %885 = arith.mulf %884, %882 : vector<2x64xf32>
    %886 = arith.addf %856, %885 : vector<2x64xf32>
    %887 = vector.extract_strided_slice %884 {offsets = [0, 0], sizes = [2, 1], strides = [1, 1]} : vector<2x64xf32> to vector<2x1xf32>
    %888 = arith.addf %858, %887 : vector<2x1xf32>
    %889 = vector.extract_strided_slice %703 {offsets = [12, 0], sizes = [2, 256], strides = [1, 1]} : vector<16x256xf32> to vector<2x256xf32>
    %cst_503 = arith.constant dense<0.000000e+00> : vector<2x256xf32>
    %890 = tpu.matmul %882, %704, %cst_503 {dimension_numbers = #tpu.dot_dimension_numbers<[1], [0], [0], [1], [0, 0, 1, 1], [], []>} : vector<2x64xf32>, vector<64x256xf32>, vector<2x256xf32> -> vector<2x256xf32>
    %891 = arith.addf %889, %890 : vector<2x256xf32>
    %892 = vector.extract_strided_slice %891 {offsets = [0, 0], sizes = [2, 128], strides = [1, 1]} : vector<2x256xf32> to vector<2x128xf32>
    %893 = arith.negf %892 : vector<2x128xf32>
    %894 = math.exp %893 : vector<2x128xf32>
    %cst_504 = arith.constant 1.000000e+00 : f32
    %895 = vector.broadcast %cst_504 : f32 to vector<2x128xf32>
    %896 = arith.addf %895, %894 : vector<2x128xf32>
    %897 = arith.divf %895, %896 : vector<2x128xf32>
    %898 = vector.extract_strided_slice %891 {offsets = [0, 128], sizes = [2, 64], strides = [1, 1]} : vector<2x256xf32> to vector<2x64xf32>
    %899 = math.tanh %898 : vector<2x64xf32>
    %900 = vector.extract_strided_slice %891 {offsets = [0, 192], sizes = [2, 64], strides = [1, 1]} : vector<2x256xf32> to vector<2x64xf32>
    %901 = arith.negf %900 : vector<2x64xf32>
    %902 = math.exp %901 : vector<2x64xf32>
    %cst_505 = arith.constant 1.000000e+00 : f32
    %903 = vector.broadcast %cst_505 : f32 to vector<2x64xf32>
    %904 = arith.addf %903, %902 : vector<2x64xf32>
    %905 = arith.divf %903, %904 : vector<2x64xf32>
    %906 = vector.extract_strided_slice %897 {offsets = [0, 0], sizes = [2, 64], strides = [1, 1]} : vector<2x128xf32> to vector<2x64xf32>
    %907 = vector.extract_strided_slice %897 {offsets = [0, 64], sizes = [2, 64], strides = [1, 1]} : vector<2x128xf32> to vector<2x64xf32>
    %908 = arith.mulf %907, %880 : vector<2x64xf32>
    %909 = arith.mulf %906, %899 : vector<2x64xf32>
    %910 = arith.addf %908, %909 : vector<2x64xf32>
    %911 = math.tanh %910 : vector<2x64xf32>
    %912 = arith.mulf %905, %911 : vector<2x64xf32>
    %c6_506 = arith.constant 6 : index
    %c0_507 = arith.constant 0 : index
    %c0_508 = arith.constant 0 : index
    %913 = vector.load %arg3[%c6_506, %c0_507, %c0_508] : memref<8x2x64xf32, #tpu.memory_space<vmem>>, vector<1x2x64xf32>
    %914 = vector.shape_cast %913 : vector<1x2x64xf32> to vector<2x64xf32>
    %915 = arith.mulf %914, %912 : vector<2x64xf32>
    %916 = arith.addf %886, %915 : vector<2x64xf32>
    %917 = vector.extract_strided_slice %914 {offsets = [0, 0], sizes = [2, 1], strides = [1, 1]} : vector<2x64xf32> to vector<2x1xf32>
    %918 = arith.addf %888, %917 : vector<2x1xf32>
    %919 = vector.extract_strided_slice %703 {offsets = [14, 0], sizes = [2, 256], strides = [1, 1]} : vector<16x256xf32> to vector<2x256xf32>
    %cst_509 = arith.constant dense<0.000000e+00> : vector<2x256xf32>
    %920 = tpu.matmul %912, %704, %cst_509 {dimension_numbers = #tpu.dot_dimension_numbers<[1], [0], [0], [1], [0, 0, 1, 1], [], []>} : vector<2x64xf32>, vector<64x256xf32>, vector<2x256xf32> -> vector<2x256xf32>
    %921 = arith.addf %919, %920 : vector<2x256xf32>
    %922 = vector.extract_strided_slice %921 {offsets = [0, 0], sizes = [2, 128], strides = [1, 1]} : vector<2x256xf32> to vector<2x128xf32>
    %923 = arith.negf %922 : vector<2x128xf32>
    %924 = math.exp %923 : vector<2x128xf32>
    %cst_510 = arith.constant 1.000000e+00 : f32
    %925 = vector.broadcast %cst_510 : f32 to vector<2x128xf32>
    %926 = arith.addf %925, %924 : vector<2x128xf32>
    %927 = arith.divf %925, %926 : vector<2x128xf32>
    %928 = vector.extract_strided_slice %921 {offsets = [0, 128], sizes = [2, 64], strides = [1, 1]} : vector<2x256xf32> to vector<2x64xf32>
    %929 = math.tanh %928 : vector<2x64xf32>
    %930 = vector.extract_strided_slice %921 {offsets = [0, 192], sizes = [2, 64], strides = [1, 1]} : vector<2x256xf32> to vector<2x64xf32>
    %931 = arith.negf %930 : vector<2x64xf32>
    %932 = math.exp %931 : vector<2x64xf32>
    %cst_511 = arith.constant 1.000000e+00 : f32
    %933 = vector.broadcast %cst_511 : f32 to vector<2x64xf32>
    %934 = arith.addf %933, %932 : vector<2x64xf32>
    %935 = arith.divf %933, %934 : vector<2x64xf32>
    %936 = vector.extract_strided_slice %927 {offsets = [0, 0], sizes = [2, 64], strides = [1, 1]} : vector<2x128xf32> to vector<2x64xf32>
    %937 = vector.extract_strided_slice %927 {offsets = [0, 64], sizes = [2, 64], strides = [1, 1]} : vector<2x128xf32> to vector<2x64xf32>
    %938 = arith.mulf %937, %910 : vector<2x64xf32>
    %939 = arith.mulf %936, %929 : vector<2x64xf32>
    %940 = arith.addf %938, %939 : vector<2x64xf32>
    %941 = math.tanh %940 : vector<2x64xf32>
    %942 = arith.mulf %935, %941 : vector<2x64xf32>
    %c7_512 = arith.constant 7 : index
    %c0_513 = arith.constant 0 : index
    %c0_514 = arith.constant 0 : index
    %943 = vector.load %arg3[%c7_512, %c0_513, %c0_514] : memref<8x2x64xf32, #tpu.memory_space<vmem>>, vector<1x2x64xf32>
    %944 = vector.shape_cast %943 : vector<1x2x64xf32> to vector<2x64xf32>
    %945 = arith.mulf %944, %942 : vector<2x64xf32>
    %946 = arith.addf %916, %945 : vector<2x64xf32>
    %947 = vector.extract_strided_slice %944 {offsets = [0, 0], sizes = [2, 1], strides = [1, 1]} : vector<2x64xf32> to vector<2x1xf32>
    %948 = arith.addf %918, %947 : vector<2x1xf32>
    %cst_515 = arith.constant 9.99999997E-7 : f32
    %949 = vector.broadcast %cst_515 : f32 to vector<2x1xf32>
    %950 = arith.maximumf %948, %949 : vector<2x1xf32>
    %951 = vector.broadcast %950 : vector<2x1xf32> to vector<2x64xf32>
    %952 = arith.divf %946, %951 : vector<2x64xf32>
    %c0_516 = arith.constant 0 : index
    %c0_517 = arith.constant 0 : index
    %953 = vector.load %arg15[%c0_516, %c0_517] : memref<1x64xf32, #tpu.memory_space<vmem>>, vector<1x64xf32>
    %954 = vector.broadcast %953 : vector<1x64xf32> to vector<2x64xf32>
    %955 = arith.mulf %952, %954 : vector<2x64xf32>
    %c0_518 = arith.constant 0 : index
    %c0_519 = arith.constant 0 : index
    %956 = vector.load %arg16[%c0_518, %c0_519] : memref<1x64xf32, #tpu.memory_space<vmem>>, vector<1x64xf32>
    %957 = vector.broadcast %956 : vector<1x64xf32> to vector<2x64xf32>
    %958 = arith.addf %955, %957 : vector<2x64xf32>
    %c0_520 = arith.constant 0 : index
    %c0_521 = arith.constant 0 : index
    %959 = vector.load %arg4[%c0_520, %c0_521] : memref<2x7xf32, #tpu.memory_space<vmem>>, vector<2x7xf32>
    %960 = tpu.concatenate %958, %959 in 1 : vector<2x64xf32>, vector<2x7xf32> -> vector<2x71xf32>
    %c0_522 = arith.constant 0 : index
    %c0_523 = arith.constant 0 : index
    %961 = vector.load %arg17[%c0_522, %c0_523] : memref<71x64xf32, #tpu.memory_space<vmem>>, vector<71x64xf32>
    %cst_524 = arith.constant dense<0.000000e+00> : vector<2x64xf32>
    %962 = tpu.matmul %960, %961, %cst_524 {dimension_numbers = #tpu.dot_dimension_numbers<[1], [0], [0], [1], [0, 0, 1, 1], [], []>} : vector<2x71xf32>, vector<71x64xf32>, vector<2x64xf32> -> vector<2x64xf32>
    %c0_525 = arith.constant 0 : index
    %c0_526 = arith.constant 0 : index
    %963 = vector.load %arg18[%c0_525, %c0_526] : memref<1x64xf32, #tpu.memory_space<vmem>>, vector<1x64xf32>
    %964 = vector.broadcast %963 : vector<1x64xf32> to vector<2x64xf32>
    %965 = arith.addf %962, %964 : vector<2x64xf32>
    %cst_527 = arith.constant 0.000000e+00 : f32
    %966 = vector.broadcast %cst_527 : f32 to vector<2x64xf32>
    %967 = arith.maximumf %965, %966 : vector<2x64xf32>
    %c0_528 = arith.constant 0 : index
    %c0_529 = arith.constant 0 : index
    %968 = vector.load %arg19[%c0_528, %c0_529] : memref<64x18xf32, #tpu.memory_space<vmem>>, vector<64x18xf32>
    %cst_530 = arith.constant dense<0.000000e+00> : vector<2x18xf32>
    %969 = tpu.matmul %967, %968, %cst_530 {dimension_numbers = #tpu.dot_dimension_numbers<[1], [0], [0], [1], [0, 0, 1, 1], [], []>} : vector<2x64xf32>, vector<64x18xf32>, vector<2x18xf32> -> vector<2x18xf32>
    %c0_531 = arith.constant 0 : index
    %c0_532 = arith.constant 0 : index
    %970 = vector.load %arg20[%c0_531, %c0_532] : memref<1x18xf32, #tpu.memory_space<vmem>>, vector<1x18xf32>
    %971 = vector.broadcast %970 : vector<1x18xf32> to vector<2x18xf32>
    %972 = arith.addf %969, %971 : vector<2x18xf32>
    %c0_533 = arith.constant 0 : index
    %c0_534 = arith.constant 0 : index
    %973 = vector.load %arg21[%c0_533, %c0_534] : memref<2x18xf32, #tpu.memory_space<vmem>>, vector<2x18xf32>
    tpu.vector_store %arg21[%c0_533, %c0_534], %972 {strides = array<i32>} : memref<2x18xf32, #tpu.memory_space<vmem>>, vector<2x18xf32>,
    return
  }
}

</mosaic_0001>

<bundles_post_ra>
// kernel: tof_model_forward.1
= control target key start
LH: loop header
LB: loop body
LE: loop exit
PB: predicated region body
PF: predicated region fallthrough
CT: control target
= control target key end

     0   :  { %s21987_s0 = inlined_call_operand.vmem [shape: bf16[2,8192], index: 0, kind: input, shape index: {}]   ;;  %s21988_s1 = inlined_call_operand.vmem [shape: f32[32,128], index: 1, kind: input, shape index: {}]   ;;  %s21989_s2 = inlined_call_operand.vmem [shape: f32[32,12], index: 2, kind: input, shape index: {}]   ;;  %s21990_s3 = inlined_call_operand.vmem [shape: f32[8,2,64], index: 3, kind: input, shape index: {}]   ;;  %s21991_s4 = inlined_call_operand.vmem [shape: f32[2,7], index: 4, kind: input, shape index: {}]   ;;  %s21992_s5 = inlined_call_operand.vmem [shape: bf16[9,8,2], index: 5, kind: input, shape index: {}]   ;;  %s21993_s6 = inlined_call_operand.vmem [shape: f32[8,1], index: 6, kind: input, shape index: {}]   ;;  %s21994_s7 = inlined_call_operand.vmem [shape: bf16[9,16,8], index: 7, kind: input, shape index: {}]   ;;  %s21995_s8 = inlined_call_operand.vmem [shape: f32[16,1], index: 8, kind: input, shape index: {}]   ;;  %s21996_s9 = inlined_call_operand.vmem [shape: f32[16,256], index: 9, kind: input, shape index: {}]   ;;  %s21997_s10 = inlined_call_operand.vmem [shape: f32[16,256], index: 10, kind: input, shape index: {}]   ;;  %s21998_s11 = inlined_call_operand.vmem [shape: f32[12,256], index: 11, kind: input, shape index: {}]   ;;  %s21999_s12 = inlined_call_operand.vmem [shape: f32[12,256], index: 12, kind: input, shape index: {}]   ;;  %s22000_s13 = inlined_call_operand.vmem [shape: f32[1,256], index: 13, kind: input, shape index: {}]   ;;  %s22001_s14 = inlined_call_operand.vmem [shape: f32[64,256], index: 14, kind: input, shape index: {}]   ;;  %s22002_s15 = inlined_call_operand.vmem [shape: f32[1,64], index: 15, kind: input, shape index: {}]   ;;  %s22003_s16 = inlined_call_operand.vmem [shape: f32[1,64], index: 16, kind: input, shape index: {}]   ;;  %s22004_s17 = inlined_call_operand.vmem [shape: f32[71,64], index: 17, kind: input, shape index: {}]   ;;  %s22005_s18 = inlined_call_operand.vmem [shape: f32[1,64], index: 18, kind: input, shape index: {}]   ;;  %s22006_s19 = inlined_call_operand.vmem [shape: f32[64,18], index: 19, kind: input, shape index: {}]   ;;  %s22007_s20 = inlined_call_operand.vmem [shape: f32[1,18], index: 20, kind: input, shape index: {}]   ;;  %s22008_s21 = inlined_call_operand.hbm [shape: f32[2,18], index: 21, kind: output, shape index: {}]  }
   0x1   :  { %22036 = sst [smem:[#allocation18_spill]] %s21987_s0 }
   0x2   :  { %22037 = sst [smem:[#allocation19_spill]] %s21988_s1 }
   0x3   :  { %22038 = sst [smem:[#allocation20_spill]] %s21989_s2 }
   0x4   :  { %22039 = sst [smem:[#allocation21_spill]] %s21990_s3 }
   0x5   :  { %22040 = sst [smem:[#allocation22_spill]] %s21991_s4 }
   0x6   :  { %22041 = sst [smem:[#allocation23_spill]] %s21992_s5 }
   0x7   :  { %v81_v0 = vlaneseq  ;;  %v18307_v1 = vmov 1966171168   ;;  %v22022_v3 = vmov 0   ;;  %s22042_s26 = sld [smem:[#allocation18_spill]]  ;;  %vm132_vm0 = vcmask 1040384  }
   0x8   :  { %v79_v2 = vunpack.c.l.s4 %v18307_v1  ;;  %189 = vmatprep.mubr.bf16.mxu0 %v22022_v3  ;;  %230 = vmatprep.mubr.bf16.mxu1 %v22022_v3 }
   0x9   :  { %v18430_v5 = vshrl.u32 %v81_v0, 7  ;;  %18136 = vset.pattern.permute.xlu0 %v22022_v3  ;;  %18137 = vset.pattern.permute.xlu1 %v22022_v3 }
   0xa   :  { %v80_v6 = vunpack.c.0.s8 %v79_v2 }
   0xb   :  { %22043 = vst [vmem:[#allocation5_spill] sm:$0xff] %v18430_v5 }
   0xc   :  { %v18435_v8 = vsub.s32 %v80_v6, %v18430_v5 }
   0xd   :  { %v73_v4 = vld [vmem:[%s22042_s26] sm:$0xff] }
   0xe   :  { %v77_v7 = vcombine.high %v73_v4, %v73_v4  ;;  %22044 = vst [vmem:[#allocation6_spill] sm:$0xff] %v18435_v8  ;;  %v84_v9 = vrot.slane %v73_v4, %v18435_v8 }
  0x10   :  { %v91_v10 = vrot.slane %v77_v7, %v18435_v8  ;;  %v92_v11 = vcombine.high %v84_v9, %v84_v9  ;;  %v18440_v12 = vrot.slane %v84_v9, %v18435_v8 }
  0x12   :  { %v93_v13 = vcombine.high %v91_v10, %v91_v10  ;;  %v18443_v14 = vrot.slane %v91_v10, %v18435_v8 }
  0x13   :  { %26 = vsyncpa [#allocation3], 0  ;;  %v18446_v15 = vrot.slane %v92_v11, %v18435_v8  ;;  %v18450_v16 = vsel %vm132_vm0, %v18440_v12, 0  ;;  %v18454_v17 = vcombine.high %v18440_v12, %v18440_v12  ;;  %s22045_s28 = sld [smem:[#allocation23_spill]]  ;;  %vm128_vm1 = vcmask 15360   ;;  %v668_v30 = vld [vmem:[%s22042_s26 + $0x8] sm:$0xff] }
  0x14   :  { %v18457_v18 = vrot.slane %v93_v13, %v18435_v8  ;;  %v18475_v22 = vcombine.high %v18443_v14, %v18443_v14  ;;  %v18489_v24 = vsel %vm132_vm0, %v18443_v14, 0  ;;  %v679_v31 = vrot.slane %v668_v30, %v18435_v8  ;;  %v70_v40 = vld [vmem:[%s21993_s6] sm:$0xff]  ;;  %v2325_v62 = vld [vmem:[%s22042_s26 + $0x10] sm:$0xff]  ;;  %s22079_s2 = sld [smem:[#allocation19_spill]]  ;;  %s22084_s3 = sld [smem:[#allocation21_spill]] }
  0x15   :  { %16793 = vmatprep.subr.msk.bf16.mxu0 %vm132_vm0, %v18446_v15  ;;  %v18463_v19 = vcombine.high %v18446_v15, %v18446_v15  ;;  %v18467_v20 = vsel %vm132_vm0, %v18454_v17, 0  ;;  %v18514_v26 = vsel %vm132_vm0, %v18446_v15, 0  ;;  %v22014_v32 = vmov 0.0   ;;  %1276 = vperm.xlu0 %18136, %v70_v40   ;;  %s18314_s5 = smov [#allocation2]  }
  0x16   :  { %v18471_v21 = vcombine.high %v18457_v18, %v18457_v18  ;;  %158 = vmatpush1.bf16.msra.mxu0 %v18450_v16  ;;  %v18498_v25 = vsel %vm132_vm0, %v18475_v22, 0  ;;  %v18539_v29 = vsel %vm132_vm0, %v18457_v18, 0  ;;  %v672_v33 = vcombine.high %v668_v30, %v668_v30  ;;  %s16783_s22 = sshll.u32 %s18314_s5, 4  ;;  %s16784_s22 = int_to_ptr.vmem [resolvable:$true] %s16783_s22 }
  0x17   :  { %16795 = vmatprep.subr.msk.bf16.mxu1 %vm132_vm0, %v18463_v19  ;;  %16797 = vmatprep.subr.msk.bf16.mxu0 %vm132_vm0, %v18457_v18  ;;  %v18533_v28 = vsel %vm132_vm0, %v18463_v19, 0  ;;  %v18567_v34 = vrot.slane %v679_v31, %v18435_v8  ;;  %v687_v38 = vcombine.high %v679_v31, %v679_v31  ;;  %vm18310_vm2 = vmmov 0   ;;  %p18288_p1 = scmp.lt.s32.totalorder %s16784_s22, %s16784_s22 }
  0x18   :  { %199 = vmatpush1.bf16.msra.mxu1 %v18467_v20  ;;  %v18578_v36 = vsel %vm132_vm0, %v18471_v21, 0  ;;  %v686_v37 = vrot.slane %v672_v33, %v18435_v8  ;;  %v2334_v63 = vrot.slane %v2325_v62, %v18435_v8  ;;  %v2327_v0 = vcombine.high %v2325_v62, %v2325_v62 }
  0x19   :  { %v18481_v23 = vld [vmem:[%s22045_s28 + $0x10] sm:$0xf]  ;;  %16799 = vmatprep.subr.msk.bf16.mxu1 %vm132_vm0, %v18471_v21  ;;  %v18529_v27 = vld [vmem:[%s22045_s28 + $0xc] sm:$0xf]  ;;  %v18572_v35 = vld [vmem:[%s22045_s28 + $0x14] sm:$0xf]  ;;  %v18583_v39 = vcombine.high %v18567_v34, %v18567_v34  ;;  %v18601_v42 = vrot.slane %v687_v38, %v18435_v8 }
  0x1a   :  { %16794 = vmatmul.mubr.msk.bf16.vlgmr.msra.gmra.mrb[0].mxu0 %vm128_vm1, %v18481_v23  ;;  %v18598_v41 = vrot.slane %v686_v37, %v18435_v8  ;;  %v688_v43 = vcombine.high %v686_v37, %v686_v37  ;;  %v18635_v48 = vld [vmem:[%s22045_s28 + $0x18] sm:$0xf]  ;;  %v18659_v51 = vsel %vm132_vm0, %v18567_v34, 0  ;;  %v18684_v54 = vld [vmem:[%s22045_s28 + $0x1c] sm:$0xf]  ;;  %v18890_v1 = vrot.slane %v2334_v63, %v18435_v8 }
  0x1b   :  { %240 = vmatpush1.bf16.msra.mxu0 %v18489_v24  ;;  %271 = vmatprep.mubr.bf16.mxu0 %v22022_v3  ;;  %v18609_v44 = vsel %vm132_vm0, %v18601_v42, 0  ;;  %v18623_v46 = vcombine.high %v18601_v42, %v18601_v42  ;;  %v18665_v52 = vsel %vm132_vm0, %v18583_v39, 0  ;;  %v18720_v57 = vld [vmem:[%s22045_s28 + $0x20] sm:$0xf]  ;;  %v18754_v59 = vld [vmem:[%s22045_s28 + $0x4] sm:$0xf]  ;;  %v2341_v2 = vrot.slane %v2327_v0, %v18435_v8 }
  0x1c   :  { %16796 = vmatmul.mubr.msk.bf16.vlgmr.msra.gmra.mrb[0].mxu1 %vm128_vm1, %v18481_v23  ;;  %16801 = vmatprep.subr.msk.bf16.mxu0 %vm132_vm0, %v18440_v12  ;;  %v18613_v45 = vcombine.high %v18598_v41, %v18598_v41  ;;  %v18630_v47 = vrot.slane %v688_v43, %v18435_v8  ;;  %v18688_v55 = vsel %vm132_vm0, %v18598_v41, 0  ;;  %v18783_v60 = vld [vmem:[%s22045_s28] sm:$0xf]  ;;  %v18811_v61 = vld [vmem:[%s22045_s28 + $0x8] sm:$0xf]  ;;  %v2342_v4 = vcombine.high %v2334_v63, %v2334_v63 }
  0x1d   :  { %281 = vmatpush1.bf16.msra.mxu1 %v18498_v25  ;;  %312 = vmatprep.mubr.bf16.mxu1 %v22022_v3  ;;  %v18639_v49 = vsel %vm132_vm0, %v18623_v46, 0  ;;  %v18897_v6 = vcombine.high %v18890_v1, %v18890_v1  ;;  %v18909_v7 = vrot.slane %v2341_v2, %v18435_v8  ;;  %v2343_v10 = vcombine.high %v2341_v2, %v2341_v2 }
  0x1e   :  { %16803 = vmatprep.subr.msk.bf16.mxu1 %vm132_vm0, %v18454_v17  ;;  %v18645_v50 = vsel %vm132_vm0, %v18630_v47, 0  ;;  %v18669_v53 = vcombine.high %v18630_v47, %v18630_v47  ;;  %v18694_v56 = vsel %vm132_vm0, %v18613_v45, 0  ;;  %v18912_v9 = vrot.slane %v2342_v4, %v18435_v8 }
  0x1f   :  { %vm12158_vm3 = vcmask 1043456   ;;  %vm12154_vm4 = vcmask 64512   ;;  %vm15256_vm5 = vcmask 130048   ;;  %vm18311_vm6 = vmmov 1  }
  0x20   :  { %v18726_v58 = vsel %vm132_vm0, %v18669_v53, 0  ;;  %v18920_v11 = vsel %vm132_vm0, %v18912_v9, 0  ;;  %v18934_v13 = vcombine.high %v18912_v9, %v18912_v9  ;;  %vm21659_vm7 = vmpackc.low %vm12158_vm3, %vm18311_vm6  ;;  %vm15427_vm8 = vcmask 97280  }
  0x21   :  { %vm15650_vm9 = vcmask 523264   ;;  %vm16612_vm10 = vcmask 1046528   ;;  %vm16608_vm11 = vcmask 580608   ;;  %vm16775_vm12 = vcmask 140288  }
  0x22   :  { %16798 = vmatmul.mubr.msk.bf16.vlgmr.msra.gmra.mrb[4].mxu0 %vm128_vm1, %v18481_v23 }
  0x23   :  { %328 = vmatpush1.bf16.msra.mxu0 %v22022_v3  ;;  %359 = vmatprep.mubr.bf16.mxu0 %v22022_v3 }
  0x24   :  { %16800 = vmatmul.mubr.msk.bf16.vlgmr.msra.gmra.mrb[4].mxu1 %vm128_vm1, %v18481_v23  ;;  %16805 = vmatprep.subr.msk.bf16.mxu0 %vm132_vm0, %v18443_v14 }
  0x25   :  { %369 = vmatpush1.bf16.msra.mxu1 %v18514_v26  ;;  %400 = vmatprep.mubr.bf16.mxu1 %v22022_v3 }
  0x26   :  { %16807 = vmatprep.subr.msk.bf16.mxu1 %vm132_vm0, %v18475_v22 }
  0x2a   :  { %16802 = vmatmul.mubr.msk.bf16.vlgmr.msra.gmra.mrb[8].mxu0 %vm128_vm1, %v18529_v27 }
  0x2b   :  { %410 = vmatpush1.bf16.msra.mxu0 %v18533_v28  ;;  %441 = vmatprep.mubr.bf16.mxu0 %v22022_v3 }
  0x2c   :  { %16804 = vmatmul.mubr.msk.bf16.vlgmr.msra.gmra.mrb[8].mxu1 %vm128_vm1, %v18529_v27  ;;  %16810 = vmatprep.subr.msk.bf16.mxu0 %vm132_vm0, %v18454_v17 }
  0x2d   :  { %451 = vmatpush1.bf16.msra.mxu1 %v18539_v29  ;;  %482 = vmatprep.mubr.bf16.mxu1 %v22022_v3 }
  0x2e   :  { %16812 = vmatprep.subr.msk.bf16.mxu1 %vm132_vm0, %v18443_v14 }
  0x32   :  { %16806 = vmatmul.mubr.msk.bf16.vlgmr.msra.gmra.mrb[12].mxu0 %vm128_vm1, %v18529_v27 }
  0x33   :  { %497 = vmatpush1.bf16.msra.mxu0 %v18514_v26  ;;  %528 = vmatprep.mubr.bf16.mxu0 %v22022_v3 }
  0x34   :  { %16808 = vmatmul.mubr.msk.bf16.vlgmr.msra.gmra.mrb[12].mxu1 %vm128_vm1, %v18529_v27  ;;  %16814 = vmatprep.subr.msk.bf16.mxu0 %vm132_vm0, %v18475_v22 }
  0x35   :  { %538 = vmatpush1.bf16.msra.mxu1 %v18533_v28  ;;  %569 = vmatprep.mubr.bf16.mxu1 %v22022_v3 }
  0x36   :  { %17578 = vmatprep.subr.bf16.mxu1 %v22014_v32 }
  0x3a   :  { %16811 = vmatmul.mubr.msk.bf16.vlgmr.msra.gmra.mrb[16].mxu0 %vm128_vm1, %v18572_v35 }
  0x3b   :  { %579 = vmatpush1.bf16.msra.mxu0 %v18539_v29  ;;  %610 = vmatprep.mubr.bf16.mxu0 %v22022_v3 }
  0x3c   :  { %16813 = vmatmul.mubr.msk.bf16.vlgmr.msra.gmra.mrb[16].mxu1 %vm128_vm1, %v18572_v35  ;;  %16818 = vmatprep.subr.msk.bf16.mxu0 %vm132_vm0, %v18567_v34 }
  0x3d   :  { %17579 = vmatpush3.bf16.msra.mxu1 %v18578_v36  ;;  %17580 = vmatprep.mubr.msk.bf16.mxu1 %vm18310_vm2, %v22014_v32 }
  0x3e   :  { %16820 = vmatprep.subr.msk.bf16.mxu1 %vm132_vm0, %v18583_v39 }
  0x42   :  { %16815 = vmatmul.mubr.msk.bf16.vlgmr.msra.gmra.mrb[20].mxu0 %vm128_vm1, %v18572_v35 }
  0x43   :  { %745 = vmatpush1.bf16.msra.mxu0 %v22022_v3  ;;  %776 = vmatprep.mubr.bf16.mxu0 %v22022_v3 }
  0x44   :  { %17581 = vmatmul.mubr.msk.bf16.vlgmr.msra.gmra.mrb[20].mxu1 %vm128_vm1, %v18572_v35  ;;  %16822 = vmatprep.subr.msk.bf16.mxu0 %vm132_vm0, %v18598_v41 }
  0x45   :  { %786 = vmatpush1.bf16.msra.mxu1 %v18609_v44  ;;  %817 = vmatprep.mubr.bf16.mxu1 %v22022_v3 }
  0x46   :  { %16824 = vmatprep.subr.msk.bf16.mxu1 %vm132_vm0, %v18613_v45 }
  0x4a   :  { %16819 = vmatmul.mubr.msk.bf16.vlgmr.msra.gmra.mrb[24].mxu0 %vm128_vm1, %v18635_v48 }
  0x4b   :  { %827 = vmatpush1.bf16.msra.mxu0 %v18639_v49  ;;  %858 = vmatprep.mubr.bf16.mxu0 %v22022_v3 }
  0x4c   :  { %16821 = vmatmul.mubr.msk.bf16.vlgmr.msra.gmra.mrb[24].mxu1 %vm128_vm1, %v18635_v48  ;;  %16827 = vmatprep.subr.msk.bf16.mxu0 %vm132_vm0, %v18601_v42 }
  0x4d   :  { %868 = vmatpush1.bf16.msra.mxu1 %v18645_v50  ;;  %899 = vmatprep.mubr.bf16.mxu1 %v22022_v3 }
  0x4e   :  { %16829 = vmatprep.subr.msk.bf16.mxu1 %vm132_vm0, %v18623_v46 }
  0x52   :  { %16823 = vmatmul.mubr.msk.bf16.vlgmr.msra.gmra.mrb[28].mxu0 %vm128_vm1, %v18635_v48 }
  0x53   :  { %926 = vmatpush1.bf16.msra.mxu0 %v18659_v51  ;;  %957 = vmatprep.mubr.bf16.mxu0 %v22022_v3 }
  0x54   :  { %16825 = vmatmul.mubr.msk.bf16.vlgmr.msra.gmra.mrb[28].mxu1 %vm128_vm1, %v18635_v48  ;;  %16831 = vmatprep.subr.msk.bf16.mxu0 %vm132_vm0, %v18630_v47 }
  0x55   :  { %967 = vmatpush1.bf16.msra.mxu1 %v18665_v52  ;;  %998 = vmatprep.mubr.bf16.mxu1 %v22022_v3 }
  0x56   :  { %16833 = vmatprep.subr.msk.bf16.mxu1 %vm132_vm0, %v18669_v53 }
  0x5a   :  { %16828 = vmatmul.mubr.msk.bf16.vlgmr.msra.gmra.mrb[32].mxu0 %vm128_vm1, %v18684_v54 }
  0x5b   :  { %1008 = vmatpush1.bf16.msra.mxu0 %v18688_v55  ;;  %1039 = vmatprep.mubr.bf16.mxu0 %v22022_v3 }
  0x5c   :  { %16830 = vmatmul.mubr.msk.bf16.vlgmr.msra.gmra.mrb[32].mxu1 %vm128_vm1, %v18684_v54  ;;  %16836 = vmatprep.subr.msk.bf16.mxu0 %vm132_vm0, %v18583_v39 }
  0x5d   :  { %1049 = vmatpush1.bf16.msra.mxu1 %v18694_v56  ;;  %1080 = vmatprep.mubr.bf16.mxu1 %v22022_v3 }
  0x5e   :  { %16838 = vmatprep.subr.msk.bf16.mxu1 %vm132_vm0, %v18598_v41 }
  0x62   :  { %16832 = vmatmul.mubr.msk.bf16.vlgmr.msra.gmra.mrb[36].mxu0 %vm128_vm1, %v18684_v54 }
  0x63   :  { %1103 = vmatpush1.bf16.msra.mxu0 %v18609_v44  ;;  %1134 = vmatprep.mubr.bf16.mxu0 %v22022_v3 }
  0x64   :  { %16834 = vmatmul.mubr.msk.bf16.vlgmr.msra.gmra.mrb[36].mxu1 %vm128_vm1, %v18684_v54  ;;  %16840 = vmatprep.subr.msk.bf16.mxu0 %vm132_vm0, %v18613_v45 }
  0x65   :  { %1144 = vmatpush1.bf16.msra.mxu1 %v18639_v49  ;;  %1175 = vmatprep.mubr.bf16.mxu1 %v22022_v3 }
  0x66   :  { %17584 = vmatprep.subr.bf16.mxu1 %v22014_v32 }
  0x6a   :  { %16837 = vmatmul.mubr.msk.bf16.vlgmr.msra.gmra.mrb[40].mxu0 %vm128_vm1, %v18720_v57 }
  0x6b   :  { %1185 = vmatpush1.bf16.msra.mxu0 %v18645_v50  ;;  %1216 = vmatprep.mubr.bf16.mxu0 %v22022_v3 }
  0x6c   :  { %16839 = vmatmul.mubr.msk.bf16.vlgmr.msra.gmra.mrb[40].mxu1 %vm128_vm1, %v18720_v57  ;;  %16844 = vmatprep.subr.msk.bf16.mxu0 %vm132_vm0, %v18446_v15  ;;  %v18945_v15 = vsel %vm132_vm0, %v18934_v13, 0 }
  0x6d   :  { %17585 = vmatpush3.bf16.msra.mxu1 %v18726_v58  ;;  %17586 = vmatprep.mubr.msk.bf16.mxu1 %vm18310_vm2, %v22014_v32 }
  0x6e   :  { %16846 = vmatprep.subr.msk.bf16.mxu1 %vm132_vm0, %v18463_v19 }
  0x72   :  { %16841 = vmatmul.mubr.msk.bf16.vlgmr.msra.gmra.mrb[44].mxu0 %vm128_vm1, %v18720_v57 }
  0x73   :  { %1302 = vmatpush1.bf16.msra.mxu0 %v18450_v16  ;;  %1333 = vmatprep.mubr.bf16.mxu0 %v22022_v3 }
  0x74   :  { %17587 = vmatmul.mubr.msk.bf16.vlgmr.msra.gmra.mrb[44].mxu1 %vm128_vm1, %v18720_v57  ;;  %16848 = vmatprep.subr.msk.bf16.mxu0 %vm132_vm0, %v18457_v18  ;;  %v18971_v18 = vsel %vm132_vm0, %v18897_v6, 0 }
  0x75   :  { %1343 = vmatpush1.bf16.msra.mxu1 %v18467_v20  ;;  %1374 = vmatprep.mubr.bf16.mxu1 %v22022_v3  ;;  %v18989_v20 = vsel %vm132_vm0, %v18909_v7, 0 }
  0x76   :  { %16850 = vmatprep.subr.msk.bf16.mxu1 %vm132_vm0, %v18471_v21 }
  0x7a   :  { %16845 = vmatmul.mubr.msk.bf16.vlgmr.msra.gmra.mrb[48].mxu0 %vm128_vm1, %v18754_v59 }
  0x7b   :  { %1384 = vmatpush1.bf16.msra.mxu0 %v18489_v24  ;;  %1415 = vmatprep.mubr.bf16.mxu0 %v22022_v3 }
  0x7c   :  { %16847 = vmatmul.mubr.msk.bf16.vlgmr.msra.gmra.mrb[48].mxu1 %vm128_vm1, %v18754_v59  ;;  %16852 = vmatprep.subr.msk.bf16.mxu0 %vm132_vm0, %v18440_v12  ;;  %v18924_v12 = vcombine.high %v18909_v7, %v18909_v7 }
  0x7d   :  { %1425 = vmatpush1.bf16.msra.mxu1 %v18498_v25  ;;  %1456 = vmatprep.mubr.bf16.mxu1 %v22022_v3 }
  0x7e   :  { %16854 = vmatprep.subr.msk.bf16.mxu1 %vm132_vm0, %v18454_v17  ;;  %v18995_v21 = vsel %vm132_vm0, %v18924_v12, 0 }
  0x82   :  { %16849 = vmatmul.mubr.msk.bf16.vlgmr.msra.gmra.mrb[52].mxu0 %vm128_vm1, %v18754_v59 }
  0x83   :  { %1469 = vmatpush1.bf16.msra.mxu0 %v22022_v3  ;;  %1500 = vmatprep.mubr.bf16.mxu0 %v22022_v3 }
  0x84   :  { %16851 = vmatmul.mubr.msk.bf16.vlgmr.msra.gmra.mrb[52].mxu1 %vm128_vm1, %v18754_v59  ;;  %16856 = vmatprep.subr.msk.bf16.mxu0 %vm132_vm0, %v18443_v14 }
  0x85   :  { %1510 = vmatpush1.bf16.msra.mxu1 %v18514_v26  ;;  %1541 = vmatprep.mubr.bf16.mxu1 %v22022_v3 }
  0x86   :  { %16858 = vmatprep.subr.msk.bf16.mxu1 %vm132_vm0, %v18475_v22 }
  0x8a   :  { %16853 = vmatmul.mubr.msk.bf16.vlgmr.msra.gmra.mrb[56].mxu0 %vm128_vm1, %v18783_v60 }
  0x8b   :  { %1551 = vmatpush1.bf16.msra.mxu0 %v18533_v28  ;;  %1582 = vmatprep.mubr.bf16.mxu0 %v22022_v3 }
  0x8c   :  { %16855 = vmatmul.mubr.msk.bf16.vlgmr.msra.gmra.mrb[56].mxu1 %vm128_vm1, %v18783_v60  ;;  %16861 = vmatprep.subr.msk.bf16.mxu0 %vm132_vm0, %v18454_v17  ;;  %v18965_v17 = vsel %vm132_vm0, %v18890_v1, 0 }
  0x8d   :  { %1592 = vmatpush1.bf16.msra.mxu1 %v18539_v29  ;;  %1623 = vmatprep.mubr.bf16.mxu1 %v22022_v3 }
  0x8e   :  { %16863 = vmatprep.subr.msk.bf16.mxu1 %vm132_vm0, %v18443_v14  ;;  %v18941_v14 = vrot.slane %v2343_v10, %v18435_v8 }
  0x90   :  { %v18951_v16 = vsel %vm132_vm0, %v18941_v14, 0  ;;  %v18975_v19 = vcombine.high %v18941_v14, %v18941_v14 }
  0x92   :  { %16857 = vmatmul.mubr.msk.bf16.vlgmr.msra.gmra.mrb[60].mxu0 %vm128_vm1, %v18783_v60 }
  0x93   :  { %1638 = vmatpush1.bf16.msra.mxu0 %v18514_v26  ;;  %1669 = vmatprep.mubr.bf16.mxu0 %v22022_v3 }
  0x94   :  { %16859 = vmatmul.mubr.msk.bf16.vlgmr.msra.gmra.mrb[60].mxu1 %vm128_vm1, %v18783_v60  ;;  %16865 = vmatprep.subr.msk.bf16.mxu0 %vm132_vm0, %v18475_v22 }
  0x95   :  { %1679 = vmatpush1.bf16.msra.mxu1 %v18533_v28  ;;  %1710 = vmatprep.mubr.bf16.mxu1 %v22022_v3 }
  0x96   :  { %17590 = vmatprep.subr.bf16.mxu1 %v22014_v32 }
  0x9a   :  { %16862 = vmatmul.mubr.msk.bf16.vlgmr.msra.gmra.mrb[64].mxu0 %vm128_vm1, %v18811_v61 }
  0x9b   :  { %1720 = vmatpush1.bf16.msra.mxu0 %v18539_v29  ;;  %1751 = vmatprep.mubr.bf16.mxu0 %v22022_v3 }
  0x9c   :  { %16864 = vmatmul.mubr.msk.bf16.vlgmr.msra.gmra.mrb[64].mxu1 %vm128_vm1, %v18811_v61  ;;  %16868 = vmatprep.subr.msk.bf16.mxu0 %vm132_vm0, %v18567_v34 }
  0x9d   :  { %17591 = vmatpush3.bf16.msra.mxu1 %v18578_v36  ;;  %17592 = vmatprep.mubr.msk.bf16.mxu1 %vm18310_vm2, %v22014_v32 }
  0x9e   :  { %16870 = vmatprep.subr.msk.bf16.mxu1 %vm132_vm0, %v18583_v39 }
  0xa2   :  { %16866 = vmatmul.mubr.msk.bf16.vlgmr.msra.gmra.mrb[68].mxu0 %vm128_vm1, %v18811_v61 }
  0xa3   :  { %1810 = vmatpush1.bf16.msra.mxu0 %v22022_v3  ;;  %1841 = vmatprep.mubr.bf16.mxu0 %v22022_v3 }
  0xa4   :  { %17593 = vmatmul.mubr.msk.bf16.vlgmr.msra.gmra.mrb[68].mxu1 %vm128_vm1, %v18811_v61  ;;  %16872 = vmatprep.subr.msk.bf16.mxu0 %vm132_vm0, %v18598_v41 }
  0xa5   :  { %1851 = vmatpush1.bf16.msra.mxu1 %v18609_v44  ;;  %1882 = vmatprep.mubr.bf16.mxu1 %v22022_v3 }
  0xa6   :  { %16874 = vmatprep.subr.msk.bf16.mxu1 %vm132_vm0, %v18613_v45 }
  0xaa   :  { %16869 = vmatmul.mubr.msk.bf16.vlgmr.msra.gmra.mrb[72].mxu0 %vm128_vm1, %v18529_v27 }
  0xab   :  { %1892 = vmatpush1.bf16.msra.mxu0 %v18639_v49  ;;  %1923 = vmatprep.mubr.bf16.mxu0 %v22022_v3 }
  0xac   :  { %16871 = vmatmul.mubr.msk.bf16.vlgmr.msra.gmra.mrb[72].mxu1 %vm128_vm1, %v18529_v27  ;;  %16876 = vmatprep.subr.msk.bf16.mxu0 %vm132_vm0, %v18601_v42 }
  0xad   :  { %1933 = vmatpush1.bf16.msra.mxu1 %v18645_v50  ;;  %1964 = vmatprep.mubr.bf16.mxu1 %v22022_v3 }
  0xae   :  { %16878 = vmatprep.subr.msk.bf16.mxu1 %vm132_vm0, %v18623_v46 }
  0xb2   :  { %16873 = vmatmul.mubr.msk.bf16.vlgmr.msra.gmra.mrb[76].mxu0 %vm128_vm1, %v18529_v27 }
  0xb3   :  { %1982 = vmatpush1.bf16.msra.mxu0 %v18659_v51  ;;  %2013 = vmatprep.mubr.bf16.mxu0 %v22022_v3 }
  0xb4   :  { %16875 = vmatmul.mubr.msk.bf16.vlgmr.msra.gmra.mrb[76].mxu1 %vm128_vm1, %v18529_v27  ;;  %16880 = vmatprep.subr.msk.bf16.mxu0 %vm132_vm0, %v18630_v47 }
  0xb5   :  { %2023 = vmatpush1.bf16.msra.mxu1 %v18665_v52  ;;  %2054 = vmatprep.mubr.bf16.mxu1 %v22022_v3 }
  0xb6   :  { %16882 = vmatprep.subr.msk.bf16.mxu1 %vm132_vm0, %v18669_v53 }
  0xba   :  { %16877 = vmatmul.mubr.msk.bf16.vlgmr.msra.gmra.mrb[80].mxu0 %vm128_vm1, %v18481_v23 }
  0xbb   :  { %2064 = vmatpush1.bf16.msra.mxu0 %v18688_v55  ;;  %2095 = vmatprep.mubr.bf16.mxu0 %v22022_v3 }
  0xbc   :  { %16879 = vmatmul.mubr.msk.bf16.vlgmr.msra.gmra.mrb[80].mxu1 %vm128_vm1, %v18481_v23  ;;  %16884 = vmatprep.subr.msk.bf16.mxu0 %vm132_vm0, %v18583_v39 }
  0xbd   :  { %2105 = vmatpush1.bf16.msra.mxu1 %v18694_v56  ;;  %2136 = vmatprep.mubr.bf16.mxu1 %v22022_v3 }
  0xbe   :  { %16886 = vmatprep.subr.msk.bf16.mxu1 %vm132_vm0, %v18598_v41 }
  0xc2   :  { %16881 = vmatmul.mubr.msk.bf16.vlgmr.msra.gmra.mrb[84].mxu0 %vm128_vm1, %v18481_v23 }
  0xc3   :  { %2154 = vmatpush1.bf16.msra.mxu0 %v18609_v44  ;;  %2185 = vmatprep.mubr.bf16.mxu0 %v22022_v3 }
  0xc4   :  { %16883 = vmatmul.mubr.msk.bf16.vlgmr.msra.gmra.mrb[84].mxu1 %vm128_vm1, %v18481_v23  ;;  %16888 = vmatprep.subr.msk.bf16.mxu0 %vm132_vm0, %v18613_v45 }
  0xc5   :  { %2195 = vmatpush1.bf16.msra.mxu1 %v18639_v49  ;;  %2226 = vmatprep.mubr.bf16.mxu1 %v22022_v3 }
  0xc6   :  { %17596 = vmatprep.subr.bf16.mxu1 %v22014_v32 }
  0xca   :  { %16885 = vmatmul.mubr.msk.bf16.vlgmr.msra.gmra.mrb[88].mxu0 %vm128_vm1, %v18572_v35 }
  0xcb   :  { %2236 = vmatpush1.bf16.msra.mxu0 %v18645_v50  ;;  %2267 = vmatprep.mubr.bf16.mxu0 %v22022_v3 }
  0xcc   :  { %16887 = vmatmul.mubr.msk.bf16.vlgmr.msra.gmra.mrb[88].mxu1 %vm128_vm1, %v18572_v35  ;;  %16891 = vmatprep.subr.msk.bf16.mxu0 %vm132_vm0, %v18890_v1 }
  0xcd   :  { %17597 = vmatpush3.bf16.msra.mxu1 %v18726_v58  ;;  %17598 = vmatprep.mubr.msk.bf16.mxu1 %vm18310_vm2, %v22014_v32 }
  0xce   :  { %16893 = vmatprep.subr.msk.bf16.mxu1 %vm132_vm0, %v18897_v6 }
  0xd2   :  { %16889 = vmatmul.mubr.msk.bf16.vlgmr.msra.gmra.mrb[92].mxu0 %vm128_vm1, %v18572_v35 }
  0xd3   :  { %2397 = vmatpush1.bf16.msra.mxu0 %v22022_v3  ;;  %2428 = vmatprep.mubr.bf16.mxu0 %v22022_v3 }
  0xd4   :  { %17599 = vmatmul.mubr.msk.bf16.vlgmr.msra.gmra.mrb[92].mxu1 %vm128_vm1, %v18572_v35  ;;  %16895 = vmatprep.subr.msk.bf16.mxu0 %vm132_vm0, %v18909_v7 }
  0xd5   :  { %2438 = vmatpush1.bf16.msra.mxu1 %v18920_v11  ;;  %2469 = vmatprep.mubr.bf16.mxu1 %v22022_v3 }
  0xd6   :  { %16897 = vmatprep.subr.msk.bf16.mxu1 %vm132_vm0, %v18924_v12 }
  0xda   :  { %16892 = vmatmul.mubr.msk.bf16.vlgmr.msra.gmra.mrb[96].mxu0 %vm128_vm1, %v18635_v48 }
  0xdb   :  { %2479 = vmatpush1.bf16.msra.mxu0 %v18945_v15  ;;  %2510 = vmatprep.mubr.bf16.mxu0 %v22022_v3 }
  0xdc   :  { %16894 = vmatmul.mubr.msk.bf16.vlgmr.msra.gmra.mrb[96].mxu1 %vm128_vm1, %v18635_v48  ;;  %16899 = vmatprep.subr.msk.bf16.mxu0 %vm132_vm0, %v18912_v9 }
  0xdd   :  { %2520 = vmatpush1.bf16.msra.mxu1 %v18951_v16  ;;  %2551 = vmatprep.mubr.bf16.mxu1 %v22022_v3 }
  0xde   :  { %16901 = vmatprep.subr.msk.bf16.mxu1 %vm132_vm0, %v18934_v13 }
  0xe2   :  { %16896 = vmatmul.mubr.msk.bf16.vlgmr.msra.gmra.mrb[100].mxu0 %vm128_vm1, %v18635_v48 }
  0xe3   :  { %2573 = vmatpush1.bf16.msra.mxu0 %v18965_v17  ;;  %2604 = vmatprep.mubr.bf16.mxu0 %v22022_v3 }
  0xe4   :  { %16898 = vmatmul.mubr.msk.bf16.vlgmr.msra.gmra.mrb[100].mxu1 %vm128_vm1, %v18635_v48  ;;  %16903 = vmatprep.subr.msk.bf16.mxu0 %vm132_vm0, %v18941_v14 }
  0xe5   :  { %2614 = vmatpush1.bf16.msra.mxu1 %v18971_v18  ;;  %2645 = vmatprep.mubr.bf16.mxu1 %v22022_v3 }
  0xe6   :  { %16905 = vmatprep.subr.msk.bf16.mxu1 %vm132_vm0, %v18975_v19 }
  0xea   :  { %16900 = vmatmul.mubr.msk.bf16.vlgmr.msra.gmra.mrb[104].mxu0 %vm128_vm1, %v18684_v54 }
  0xeb   :  { %2655 = vmatpush1.bf16.msra.mxu0 %v18989_v20  ;;  %2686 = vmatprep.mubr.bf16.mxu0 %v22022_v3 }
  0xec   :  { %16902 = vmatmul.mubr.msk.bf16.vlgmr.msra.gmra.mrb[104].mxu1 %vm128_vm1, %v18684_v54  ;;  %16907 = vmatprep.subr.msk.bf16.mxu0 %vm132_vm0, %v18897_v6 }
  0xed   :  { %v191_v22 = vpop.f32.mrb[0].mxu0  ;;  %2696 = vmatpush1.bf16.msra.mxu1 %v18995_v21  ;;  %2727 = vmatprep.mubr.bf16.mxu1 %v22022_v3 }
  0xee   :  { %v193_v24 = vpop.f32.mrb[1].mxu0  ;;  %16909 = vmatprep.subr.msk.bf16.mxu1 %vm132_vm0, %v18909_v7 }
  0xef   :  { %v195_v25 = vpop.f32.mrb[2].mxu0  ;;  %v232_v26 = vpop.f32.mrb[0].mxu1 }
  0xf0   :  { %v196_v28 = vpop.f32.mrb[3].mxu0  ;;  %v234_v29 = vpop.f32.mrb[1].mxu1 }
  0xf1   :  { %v236_v30 = vpop.f32.mrb[2].mxu1 }
  0xf2   :  { %16904 = vmatmul.mubr.msk.bf16.vlgmr.msra.gmra.mrb[108].mxu0 %vm128_vm1, %v18684_v54  ;;  %v237_v31 = vpop.f32.mrb[3].mxu1 }
  0xf3   :  { %2745 = vmatpush1.bf16.msra.mxu0 %v18920_v11  ;;  %2776 = vmatprep.mubr.bf16.mxu0 %v22022_v3 }
  0xf4   :  { %16906 = vmatmul.mubr.msk.bf16.vlgmr.msra.gmra.mrb[108].mxu1 %vm128_vm1, %v18684_v54  ;;  %16911 = vmatprep.subr.msk.bf16.mxu0 %vm132_vm0, %v18924_v12  ;;  %v19022_v54 = vsel %vm132_vm0, %v18975_v19, 0 }
  0xf5   :  { %v273_v33 = vpop.f32.mrb[4].mxu0  ;;  %2786 = vmatpush1.bf16.msra.mxu1 %v18945_v15  ;;  %2817 = vmatprep.mubr.bf16.mxu1 %v22022_v3 }
  0xf6   :  { %v275_v36 = vpop.f32.mrb[5].mxu0  ;;  %17602 = vmatprep.subr.bf16.mxu1 %v22014_v32 }
  0xf7   :  { %v277_v37 = vpop.f32.mrb[6].mxu0  ;;  %v314_v38 = vpop.f32.mrb[4].mxu1 }
  0xf8   :  { %v278_v40 = vpop.f32.mrb[7].mxu0  ;;  %v316_v43 = vpop.f32.mrb[5].mxu1 }
  0xf9   :  { %v318_v48 = vpop.f32.mrb[6].mxu1 }
  0xfa   :  { %16908 = vmatmul.mubr.msk.bf16.vlgmr.msra.gmra.mrb[112].mxu0 %vm128_vm1, %v18720_v57  ;;  %v319_v62 = vpop.f32.mrb[7].mxu1 }
  0xfb   :  { %2827 = vmatpush1.bf16.msra.mxu0 %v18951_v16  ;;  %2858 = vmatprep.mubr.bf16.mxu0 %v22022_v3 }
  0xfc   :  { %16910 = vmatmul.mubr.msk.bf16.vlgmr.msra.gmra.mrb[112].mxu1 %vm128_vm1, %v18720_v57  ;;  %16914 = vmatprep.subr.msk.bf16.mxu0 %vm132_vm0, %v18601_v42 }
  0xfd   :  { %v361_v63 = vpop.f32.mrb[8].mxu0  ;;  %17603 = vmatpush3.bf16.msra.mxu1 %v19022_v54  ;;  %17604 = vmatprep.mubr.msk.bf16.mxu1 %vm18310_vm2, %v22014_v32 }
  0xfe   :  { %v362_v0 = vadd.f32 %v361_v63, %v191_v22  ;;  %v363_v2 = vpop.f32.mrb[9].mxu0  ;;  %16916 = vmatprep.subr.msk.bf16.mxu1 %vm132_vm0, %v18623_v46 }
  0xff   :  { %v364_v4 = vadd.f32 %v363_v2, %v193_v24  ;;  %v365_v10 = vpop.f32.mrb[10].mxu0  ;;  %v402_v25 = vpop.f32.mrb[8].mxu1 }
 0x100   :  { %v366_v28 = vpop.f32.mrb[11].mxu0  ;;  %v403_v30 = vadd.f32 %v402_v25, %v232_v26  ;;  %v404_v31 = vpop.f32.mrb[9].mxu1 }
 0x101   :  { %v405_v37 = vadd.f32 %v404_v31, %v234_v29  ;;  %v406_v40 = vpop.f32.mrb[10].mxu1 }
 0x102   :  { %16912 = vmatmul.mubr.msk.bf16.vlgmr.msra.gmra.mrb[116].mxu0 %vm128_vm1, %v18720_v57  ;;  %v407_v42 = vpop.f32.mrb[11].mxu1 }
 0x103   :  { %2949 = vmatpush1.bf16.msra.mxu0 %v18659_v51  ;;  %2980 = vmatprep.mubr.bf16.mxu0 %v22022_v3 }
 0x104   :  { %17605 = vmatmul.mubr.msk.bf16.vlgmr.msra.gmra.mrb[116].mxu1 %vm128_vm1, %v18720_v57  ;;  %16918 = vmatprep.subr.msk.bf16.mxu0 %vm132_vm0, %v18630_v47 }
 0x105   :  { %v443_v46 = vpop.f32.mrb[12].mxu0  ;;  %2990 = vmatpush1.bf16.msra.mxu1 %v18665_v52  ;;  %3021 = vmatprep.mubr.bf16.mxu1 %v22022_v3 }
 0x106   :  { %v444_v22 = vadd.f32 %v443_v46, %v273_v33  ;;  %v445_v24 = vpop.f32.mrb[13].mxu0  ;;  %16920 = vmatprep.subr.msk.bf16.mxu1 %vm132_vm0, %v18669_v53 }
 0x107   :  { %v446_v26 = vadd.f32 %v445_v24, %v275_v36  ;;  %v447_v51 = vpop.f32.mrb[14].mxu0  ;;  %v484_v29 = vpop.f32.mrb[12].mxu1 }
 0x108   :  { %v448_v48 = vpop.f32.mrb[15].mxu0  ;;  %v485_v62 = vadd.f32 %v484_v29, %v314_v38  ;;  %v486_v63 = vpop.f32.mrb[13].mxu1 }
 0x109   :  { %v19047_v57 = vadd.f32 %v486_v63, %v316_v43  ;;  %v488_v2 = vpop.f32.mrb[14].mxu1 }
 0x10a   :  { %16915 = vmatmul.mubr.msk.bf16.vlgmr.msra.gmra.mrb[120].mxu0 %vm128_vm1, %v18754_v59  ;;  %v489_v47 = vpop.f32.mrb[15].mxu1 }
 0x10b   :  { %3031 = vmatpush1.bf16.msra.mxu0 %v18688_v55  ;;  %3062 = vmatprep.mubr.bf16.mxu0 %v22022_v3 }
 0x10c   :  { %16917 = vmatmul.mubr.msk.bf16.vlgmr.msra.gmra.mrb[120].mxu1 %vm128_vm1, %v18754_v59  ;;  %16922 = vmatprep.subr.msk.bf16.mxu0 %vm132_vm0, %v18567_v34 }
 0x10d   :  { %v530_v52 = vpop.f32.mrb[16].mxu0  ;;  %3072 = vmatpush1.bf16.msra.mxu1 %v18694_v56  ;;  %3103 = vmatprep.mubr.bf16.mxu1 %v22022_v3 }
 0x10e   :  { %v660_v53 = vadd.f32 %v530_v52, %v362_v0  ;;  %v532_v33 = vpop.f32.mrb[17].mxu0  ;;  %16924 = vmatprep.subr.msk.bf16.mxu1 %vm132_vm0, %v18583_v39 }
 0x10f   :  { %v661_v36 = vadd.f32 %v532_v33, %v364_v4  ;;  %v534_v55 = vpop.f32.mrb[18].mxu0  ;;  %v571_v38 = vpop.f32.mrb[16].mxu1 }
 0x110   :  { %v535_v43 = vpop.f32.mrb[19].mxu0  ;;  %v662_v10 = vadd.f32 %v571_v38, %v403_v30  ;;  %v573_v25 = vpop.f32.mrb[17].mxu1 }
 0x111   :  { %v663_v28 = vadd.f32 %v573_v25, %v405_v37  ;;  %v575_v31 = vpop.f32.mrb[18].mxu1 }
 0x112   :  { %16919 = vmatmul.mubr.msk.bf16.vlgmr.msra.gmra.mrb[124].mxu0 %vm128_vm1, %v18754_v59  ;;  %v576_v34 = vpop.f32.mrb[19].mxu1 }
 0x113   :  { %3113 = vmatpush1.bf16.msra.mxu0 %v22022_v3  ;;  %3144 = vmatprep.mubr.bf16.mxu0 %v22022_v3 }
 0x114   :  { %16921 = vmatmul.mubr.msk.bf16.vlgmr.msra.gmra.mrb[124].mxu1 %vm128_vm1, %v18754_v59  ;;  %16926 = vmatprep.subr.msk.bf16.mxu0 %vm132_vm0, %v18598_v41 }
 0x115   :  { %v612_v56 = vpop.f32.mrb[20].mxu0  ;;  %3154 = vmatpush1.bf16.msra.mxu1 %v18609_v44  ;;  %3185 = vmatprep.mubr.bf16.mxu1 %v22022_v3 }
 0x116   :  { %v664_v0 = vadd.f32 %v612_v56, %v444_v22  ;;  %v614_v4 = vpop.f32.mrb[21].mxu0  ;;  %16928 = vmatprep.subr.msk.bf16.mxu1 %vm132_vm0, %v18613_v45 }
 0x117   :  { %v665_v30 = vadd.f32 %v614_v4, %v446_v26  ;;  %v616_v37 = vpop.f32.mrb[22].mxu0  ;;  %v653_v40 = vpop.f32.mrb[20].mxu1 }
 0x118   :  { %v617_v42 = vpop.f32.mrb[23].mxu0  ;;  %v666_v46 = vadd.f32 %v653_v40, %v485_v62  ;;  %v17582_v24 = vpop.f32.mrb[21].mxu1 }
 0x119   :  { %v657_v59 = vpop.f32.mrb[22].mxu1 }
 0x11a   :  { %16923 = vmatmul.mubr.msk.bf16.vlgmr.msra.gmra.mrb[128].mxu0 %vm128_vm1, %v18783_v60  ;;  %v17583_v51 = vpop.f32.mrb[23].mxu1 }
 0x11b   :  { %3195 = vmatpush1.bf16.msra.mxu0 %v18639_v49  ;;  %3226 = vmatprep.mubr.bf16.mxu0 %v22022_v3 }
 0x11c   :  { %16925 = vmatmul.mubr.msk.bf16.vlgmr.msra.gmra.mrb[128].mxu1 %vm128_vm1, %v18783_v60  ;;  %16930 = vmatprep.subr.msk.bf16.mxu0 %vm132_vm0, %v18583_v39 }
 0x11d   :  { %v778_v22 = vpop.f32.mrb[24].mxu0  ;;  %3236 = vmatpush1.bf16.msra.mxu1 %v18645_v50  ;;  %3267 = vmatprep.mubr.bf16.mxu1 %v22022_v3 }
 0x11e   :  { %v908_v26 = vadd.f32 %v778_v22, %v660_v53  ;;  %v780_v29 = vpop.f32.mrb[25].mxu0  ;;  %16932 = vmatprep.subr.msk.bf16.mxu1 %vm132_vm0, %v18598_v41 }
 0x11f   :  { %v909_v48 = vadd.f32 %v780_v29, %v661_v36  ;;  %v782_v62 = vpop.f32.mrb[26].mxu0  ;;  %v819_v63 = vpop.f32.mrb[24].mxu1 }
 0x120   :  { %v910_v2 = vadd.f32 %v819_v63, %v662_v10  ;;  %v783_v47 = vpop.f32.mrb[27].mxu0  ;;  %v821_v52 = vpop.f32.mrb[25].mxu1 }
 0x121   :  { %v911_v33 = vadd.f32 %v821_v52, %v663_v28  ;;  %v823_v55 = vpop.f32.mrb[26].mxu1 }
 0x122   :  { %16927 = vmatmul.mubr.msk.bf16.vlgmr.msra.gmra.mrb[132].mxu0 %vm128_vm1, %v18783_v60  ;;  %v824_v39 = vpop.f32.mrb[27].mxu1 }
 0x123   :  { %3277 = vmatpush1.bf16.msra.mxu0 %v18609_v44  ;;  %3308 = vmatprep.mubr.bf16.mxu0 %v22022_v3 }
 0x124   :  { %16929 = vmatmul.mubr.msk.bf16.vlgmr.msra.gmra.mrb[132].mxu1 %vm128_vm1, %v18783_v60  ;;  %16934 = vmatprep.subr.msk.bf16.mxu0 %vm132_vm0, %v18613_v45 }
 0x125   :  { %v860_v41 = vpop.f32.mrb[28].mxu0  ;;  %3318 = vmatpush1.bf16.msra.mxu1 %v18639_v49  ;;  %3349 = vmatprep.mubr.bf16.mxu1 %v22022_v3 }
 0x126   :  { %v912_v53 = vadd.f32 %v860_v41, %v664_v0  ;;  %v862_v36 = vpop.f32.mrb[29].mxu0  ;;  %17608 = vmatprep.subr.bf16.mxu1 %v22014_v32 }
 0x127   :  { %v913_v38 = vadd.f32 %v862_v36, %v665_v30  ;;  %v864_v43 = vpop.f32.mrb[30].mxu0  ;;  %v901_v44 = vpop.f32.mrb[28].mxu1 }
 0x128   :  { %v914_v10 = vadd.f32 %v901_v44, %v666_v46  ;;  %v865_v25 = vpop.f32.mrb[31].mxu0  ;;  %v903_v28 = vpop.f32.mrb[29].mxu1 }
 0x129   :  { %v915_v60 = vadd.f32 %v903_v28, %v19047_v57  ;;  %v905_v31 = vpop.f32.mrb[30].mxu1 }
 0x12a   :  { %16931 = vmatmul.mubr.msk.bf16.vlgmr.msra.gmra.mrb[136].mxu0 %vm128_vm1, %v18811_v61  ;;  %v906_v45 = vpop.f32.mrb[31].mxu1 }
 0x12b   :  { %3359 = vmatpush1.bf16.msra.mxu0 %v18645_v50  ;;  %3390 = vmatprep.mubr.bf16.mxu0 %v22022_v3 }
 0x12c   :  { %16933 = vmatmul.mubr.msk.bf16.vlgmr.msra.gmra.mrb[136].mxu1 %vm128_vm1, %v18811_v61  ;;  %16937 = vmatprep.subr.msk.bf16.mxu0 %vm132_vm0, %v18890_v1 }
 0x12d   :  { %v959_v49 = vpop.f32.mrb[32].mxu0  ;;  %17609 = vmatpush3.bf16.msra.mxu1 %v18726_v58  ;;  %17610 = vmatprep.mubr.msk.bf16.mxu1 %vm18310_vm2, %v22014_v32 }
 0x12e   :  { %v1089_v57 = vadd.f32 %v959_v49, %v908_v26  ;;  %v961_v34 = vpop.f32.mrb[33].mxu0  ;;  %16939 = vmatprep.subr.msk.bf16.mxu1 %vm132_vm0, %v18897_v6 }
 0x12f   :  { %v1090_v50 = vadd.f32 %v961_v34, %v909_v48  ;;  %v963_v56 = vpop.f32.mrb[34].mxu0  ;;  %v1000_v0 = vpop.f32.mrb[32].mxu1 }
 0x130   :  { %v1091_v4 = vadd.f32 %v1000_v0, %v910_v2  ;;  %v964_v30 = vpop.f32.mrb[35].mxu0  ;;  %v1002_v37 = vpop.f32.mrb[33].mxu1 }
 0x131   :  { %v1092_v40 = vadd.f32 %v1002_v37, %v911_v33  ;;  %v1004_v42 = vpop.f32.mrb[34].mxu1 }
 0x132   :  { %16935 = vmatmul.mubr.msk.bf16.vlgmr.msra.gmra.mrb[140].mxu0 %vm128_vm1, %v18811_v61  ;;  %v1005_v58 = vpop.f32.mrb[35].mxu1 }
 0x133   :  { %3449 = vmatpush1.bf16.msra.mxu0 %v22022_v3  ;;  %3480 = vmatprep.mubr.bf16.mxu0 %v22022_v3 }
 0x134   :  { %17611 = vmatmul.mubr.msk.bf16.vlgmr.msra.gmra.mrb[140].mxu1 %vm128_vm1, %v18811_v61  ;;  %16941 = vmatprep.subr.msk.bf16.mxu0 %vm132_vm0, %v18909_v7 }
 0x135   :  { %v1041_v46 = vpop.f32.mrb[36].mxu0  ;;  %3490 = vmatpush1.bf16.msra.mxu1 %v18920_v11  ;;  %3521 = vmatprep.mubr.bf16.mxu1 %v22022_v3 }
 0x136   :  { %v1093_v24 = vadd.f32 %v1041_v46, %v912_v53  ;;  %v1043_v59 = vpop.f32.mrb[37].mxu0  ;;  %16943 = vmatprep.subr.msk.bf16.mxu1 %vm132_vm0, %v18924_v12  ;;  %v19180_v46 = vld [vmem:[%s22045_s28 + $0x10] sm:$0xf] }
 0x137   :  { %v1094_v51 = vadd.f32 %v1043_v59, %v913_v38  ;;  %v1045_v22 = vpop.f32.mrb[38].mxu0  ;;  %v1082_v26 = vpop.f32.mrb[36].mxu1 }
 0x138   :  { %v1095_v29 = vadd.f32 %v1082_v26, %v914_v10  ;;  %v1046_v48 = vpop.f32.mrb[39].mxu0  ;;  %v1084_v62 = vpop.f32.mrb[37].mxu1 }
 0x139   :  { %v19122_v61 = vadd.f32 %v1084_v62, %v915_v60  ;;  %v1086_v63 = vpop.f32.mrb[38].mxu1 }
 0x13a   :  { %16938 = vmatmul.mubr.msk.bf16.vlgmr.msra.gmra.mrb[144].mxu0 %vm128_vm1, %v18529_v27  ;;  %v1087_v2 = vpop.f32.mrb[39].mxu1 }
 0x13b   :  { %3531 = vmatpush1.bf16.msra.mxu0 %v18945_v15  ;;  %3562 = vmatprep.mubr.bf16.mxu0 %v22022_v3 }
 0x13c   :  { %16940 = vmatmul.mubr.msk.bf16.vlgmr.msra.gmra.mrb[144].mxu1 %vm128_vm1, %v18529_v27  ;;  %16945 = vmatprep.subr.msk.bf16.mxu0 %vm132_vm0, %v18912_v9 }
 0x13d   :  { %v1136_v47 = vpop.f32.mrb[40].mxu0  ;;  %3572 = vmatpush1.bf16.msra.mxu1 %v18951_v16  ;;  %3603 = vmatprep.mubr.bf16.mxu1 %v22022_v3 }
 0x13e   :  { %v19134_v52 = vadd.f32 %v1136_v47, %v1089_v57  ;;  %v1138_v33 = vpop.f32.mrb[41].mxu0  ;;  %16947 = vmatprep.subr.msk.bf16.mxu1 %vm132_vm0, %v18934_v13 }
 0x13f   :  { %v19138_v55 = vadd.f32 %v1138_v33, %v1090_v50  ;;  %v1140_v39 = vpop.f32.mrb[42].mxu0  ;;  %v1177_v41 = vpop.f32.mrb[40].mxu1 }
 0x140   :  { %v19140_v53 = vadd.f32 %v1177_v41, %v1091_v4  ;;  %v1141_v36 = vpop.f32.mrb[43].mxu0  ;;  %v1179_v38 = vpop.f32.mrb[41].mxu1 }
 0x141   :  { %v19142_v43 = vadd.f32 %v1179_v38, %v1092_v40  ;;  %v1181_v44 = vpop.f32.mrb[42].mxu1  ;;  %v3964_v40 = vld [vmem:[%s22042_s26 + $0x18] sm:$0xff] }
 0x142   :  { %16942 = vmatmul.mubr.msk.bf16.vlgmr.msra.gmra.mrb[148].mxu0 %vm128_vm1, %v18529_v27  ;;  %v1182_v10 = vpop.f32.mrb[43].mxu1  ;;  %v3966_v26 = vcombine.high %v3964_v40, %v3964_v40 }
 0x143   :  { %3621 = vmatpush1.bf16.msra.mxu0 %v18965_v17  ;;  %3652 = vmatprep.mubr.bf16.mxu0 %v22022_v3 }
 0x144   :  { %16944 = vmatmul.mubr.msk.bf16.vlgmr.msra.gmra.mrb[148].mxu1 %vm128_vm1, %v18529_v27  ;;  %16949 = vmatprep.subr.msk.bf16.mxu0 %vm132_vm0, %v18941_v14  ;;  %v3980_v33 = vrot.slane %v3966_v26, %v18435_v8 }
 0x145   :  { %v1218_v25 = vpop.f32.mrb[44].mxu0  ;;  %3662 = vmatpush1.bf16.msra.mxu1 %v18971_v18  ;;  %3693 = vmatprep.mubr.bf16.mxu1 %v22022_v3 }
 0x146   :  { %v19154_v28 = vadd.f32 %v1218_v25, %v1093_v24  ;;  %v1220_v60 = vpop.f32.mrb[45].mxu0  ;;  %16951 = vmatprep.subr.msk.bf16.mxu1 %vm132_vm0, %v18975_v19  ;;  %v3973_v24 = vrot.slane %v3964_v40, %v18435_v8  ;;  %v19214_v25 = vrot.slane %v3980_v33, %v18435_v8  ;;  %v3982_v40 = vcombine.high %v3980_v33, %v3980_v33 }
 0x147   :  { %v19158_v31 = vadd.f32 %v1220_v60, %v1094_v51  ;;  %v1222_v45 = vpop.f32.mrb[46].mxu0  ;;  %v1259_v49 = vpop.f32.mrb[44].mxu1 }
 0x148   :  { %v19160_v57 = vadd.f32 %v1259_v49, %v1095_v29  ;;  %v1223_v27 = vpop.f32.mrb[47].mxu0  ;;  %v17588_v34 = vpop.f32.mrb[45].mxu1  ;;  %v19195_v29 = vrot.slane %v3973_v24, %v18435_v8  ;;  %v3981_v39 = vcombine.high %v3973_v24, %v3973_v24  ;;  %v19251_v26 = vrot.slane %v3982_v40, %v18435_v8 }
 0x149   :  { %v1263_v50 = vpop.f32.mrb[46].mxu1 }
 0x14a   :  { %16946 = vmatmul.mubr.msk.bf16.vlgmr.msra.gmra.mrb[152].mxu0 %vm128_vm1, %v18481_v23  ;;  %v17589_v56 = vpop.f32.mrb[47].mxu1  ;;  %v19202_v36 = vcombine.high %v19195_v29, %v19195_v29  ;;  %v19217_v60 = vrot.slane %v3981_v39, %v18435_v8 }
 0x14b   :  { %3703 = vmatpush1.bf16.msra.mxu0 %v18989_v20  ;;  %3734 = vmatprep.mubr.bf16.mxu0 %v22022_v3 }
 0x14c   :  { %16948 = vmatmul.mubr.msk.bf16.vlgmr.msra.gmra.mrb[152].mxu1 %vm128_vm1, %v18481_v23  ;;  %16953 = vmatprep.subr.msk.bf16.mxu0 %vm132_vm0, %v18897_v6 }
 0x14d   :  { %v1335_v0 = vpop.f32.mrb[48].mxu0  ;;  %3744 = vmatpush1.bf16.msra.mxu1 %v18995_v21  ;;  %3775 = vmatprep.mubr.bf16.mxu1 %v22022_v3 }
 0x14e   :  { %v1337_v4 = vpop.f32.mrb[49].mxu0  ;;  %16955 = vmatprep.subr.msk.bf16.mxu1 %vm132_vm0, %v18909_v7 }
 0x14f   :  { %v1339_v30 = vpop.f32.mrb[50].mxu0  ;;  %v1376_v37 = vpop.f32.mrb[48].mxu1 }
 0x150   :  { %v1340_v42 = vpop.f32.mrb[51].mxu0  ;;  %v1378_v23 = vpop.f32.mrb[49].mxu1 }
 0x151   :  { %v1380_v58 = vpop.f32.mrb[50].mxu1  ;;  %v19230_v42 = vsel %vm132_vm0, %v19217_v60, 0 }
 0x152   :  { %16950 = vmatmul.mubr.msk.bf16.vlgmr.msra.gmra.mrb[156].mxu0 %vm128_vm1, %v19180_v46  ;;  %v1381_v59 = vpop.f32.mrb[51].mxu1 }
 0x153   :  { %3793 = vmatpush1.bf16.msra.mxu0 %v18920_v11  ;;  %3824 = vmatprep.mubr.bf16.mxu0 %v22022_v3 }
 0x154   :  { %16952 = vmatmul.mubr.msk.bf16.vlgmr.msra.gmra.mrb[156].mxu1 %vm128_vm1, %v19180_v46  ;;  %16957 = vmatprep.subr.msk.bf16.mxu0 %vm132_vm0, %v18924_v12 }
 0x155   :  { %v1417_v51 = vpop.f32.mrb[52].mxu0  ;;  %3834 = vmatpush1.bf16.msra.mxu1 %v18945_v15  ;;  %3865 = vmatprep.mubr.bf16.mxu1 %v22022_v3 }
 0x156   :  { %v1419_v22 = vpop.f32.mrb[53].mxu0  ;;  %17614 = vmatprep.subr.bf16.mxu1 %v22014_v32 }
 0x157   :  { %v1421_v48 = vpop.f32.mrb[54].mxu0  ;;  %v1458_v62 = vpop.f32.mrb[52].mxu1 }
 0x158   :  { %v1422_v63 = vpop.f32.mrb[55].mxu0  ;;  %v1460_v2 = vpop.f32.mrb[53].mxu1 }
 0x159   :  { %v1462_v47 = vpop.f32.mrb[54].mxu1 }
 0x15a   :  { %16954 = vmatmul.mubr.msk.bf16.vlgmr.msra.gmra.mrb[160].mxu0 %vm128_vm1, %v18572_v35  ;;  %v1463_v41 = vpop.f32.mrb[55].mxu1 }
 0x15b   :  { %3875 = vmatpush1.bf16.msra.mxu0 %v18951_v16  ;;  %3906 = vmatprep.mubr.bf16.mxu0 %v22022_v3 }
 0x15c   :  { %16956 = vmatmul.mubr.msk.bf16.vlgmr.msra.gmra.mrb[160].mxu1 %vm128_vm1, %v18572_v35  ;;  %16960 = vmatprep.subr.msk.bf16.mxu0 %vm132_vm0, %v19195_v29 }
 0x15d   :  { %v1502_v38 = vpop.f32.mrb[56].mxu0  ;;  %17615 = vmatpush3.bf16.msra.mxu1 %v19022_v54  ;;  %17616 = vmatprep.mubr.msk.bf16.mxu1 %vm18310_vm2, %v22014_v32 }
 0x15e   :  { %v1503_v44 = vadd.f32 %v1502_v38, %v1335_v0  ;;  %v1504_v10 = vpop.f32.mrb[57].mxu0  ;;  %16962 = vmatprep.subr.msk.bf16.mxu1 %vm132_vm0, %v19202_v36  ;;  %v19224_v0 = vld [vmem:[%s22045_s28 + $0x14] sm:$0xf] }
 0x15f   :  { %v1505_v35 = vadd.f32 %v1504_v10, %v1337_v4  ;;  %v1506_v45 = vpop.f32.mrb[58].mxu0  ;;  %v1543_v49 = vpop.f32.mrb[56].mxu1 }
 0x160   :  { %v1507_v27 = vpop.f32.mrb[59].mxu0  ;;  %v1544_v34 = vadd.f32 %v1543_v49, %v1376_v37  ;;  %v1545_v50 = vpop.f32.mrb[57].mxu1  ;;  %v19234_v37 = vcombine.high %v19214_v25, %v19214_v25  ;;  %v19262_v45 = vld [vmem:[%s22045_s28 + $0x18] sm:$0xf]  ;;  %v19268_v49 = vsel %vm132_vm0, %v19251_v26, 0 }
 0x161   :  { %v1546_v56 = vadd.f32 %v1545_v50, %v1378_v23  ;;  %v1547_v30 = vpop.f32.mrb[58].mxu1  ;;  %v19244_v23 = vcombine.high %v19217_v60, %v19217_v60  ;;  %22046 = vst [vmem:[#allocation7_spill] sm:$0xff] %v19262_v45 }
 0x162   :  { %16958 = vmatmul.mubr.msk.bf16.vlgmr.msra.gmra.mrb[164].mxu0 %vm128_vm1, %v19224_v0  ;;  %v1548_v4 = vpop.f32.mrb[59].mxu1 }
 0x163   :  { %4036 = vmatpush1.bf16.msra.mxu0 %v22022_v3  ;;  %4067 = vmatprep.mubr.bf16.mxu0 %v22022_v3  ;;  %v19255_v39 = vsel %vm132_vm0, %v19244_v23, 0 }
 0x164   :  { %17617 = vmatmul.mubr.msk.bf16.vlgmr.msra.gmra.mrb[164].mxu1 %vm128_vm1, %v19224_v0  ;;  %16964 = vmatprep.subr.msk.bf16.mxu0 %vm132_vm0, %v19214_v25 }
 0x165   :  { %v1584_v58 = vpop.f32.mrb[60].mxu0  ;;  %4077 = vmatpush1.bf16.msra.mxu1 %v19230_v42  ;;  %4108 = vmatprep.mubr.bf16.mxu1 %v22022_v3 }
 0x166   :  { %v1585_v24 = vadd.f32 %v1584_v58, %v1417_v51  ;;  %v1586_v59 = vpop.f32.mrb[61].mxu0  ;;  %16966 = vmatprep.subr.msk.bf16.mxu1 %vm132_vm0, %v19234_v37 }
 0x167   :  { %v1587_v48 = vadd.f32 %v1586_v59, %v1419_v22  ;;  %v1588_v63 = vpop.f32.mrb[62].mxu0  ;;  %v1625_v47 = vpop.f32.mrb[60].mxu1 }
 0x168   :  { %v1589_v33 = vpop.f32.mrb[63].mxu0  ;;  %v1626_v41 = vadd.f32 %v1625_v47, %v1458_v62  ;;  %v1627_v38 = vpop.f32.mrb[61].mxu1  ;;  %v19282_v63 = vsel %vm132_vm0, %v19195_v29, 0 }
 0x169   :  { %v19257_v10 = vadd.f32 %v1627_v38, %v1460_v2  ;;  %v1629_v51 = vpop.f32.mrb[62].mxu1  ;;  %v19288_v38 = vsel %vm132_vm0, %v19202_v36, 0 }
 0x16a   :  { %16961 = vmatmul.mubr.msk.bf16.vlgmr.msra.gmra.mrb[168].mxu0 %vm128_vm1, %v19262_v45  ;;  %v1630_v22 = vpop.f32.mrb[63].mxu1 }
 0x16b   :  { %4118 = vmatpush1.bf16.msra.mxu0 %v19255_v39  ;;  %4149 = vmatprep.mubr.bf16.mxu0 %v22022_v3 }
 0x16c   :  { %16963 = vmatmul.mubr.msk.bf16.vlgmr.msra.gmra.mrb[168].mxu1 %vm128_vm1, %v19262_v45  ;;  %16968 = vmatprep.subr.msk.bf16.mxu0 %vm132_vm0, %v19217_v60 }
 0x16d   :  { %v1671_v62 = vpop.f32.mrb[64].mxu0  ;;  %4159 = vmatpush1.bf16.msra.mxu1 %v19268_v49  ;;  %4190 = vmatprep.mubr.bf16.mxu1 %v22022_v3 }
 0x16e   :  { %v1801_v2 = vadd.f32 %v1671_v62, %v1503_v44  ;;  %v1673_v27 = vpop.f32.mrb[65].mxu0  ;;  %16970 = vmatprep.subr.msk.bf16.mxu1 %vm132_vm0, %v19244_v23 }
 0x16f   :  { %v1802_v50 = vadd.f32 %v1673_v27, %v1505_v35  ;;  %v1675_v30 = vpop.f32.mrb[66].mxu0  ;;  %v1712_v40 = vpop.f32.mrb[64].mxu1  ;;  %v19292_v35 = vcombine.high %v19251_v26, %v19251_v26 }
 0x170   :  { %v1676_v4 = vpop.f32.mrb[67].mxu0  ;;  %v1803_v58 = vadd.f32 %v1712_v40, %v1544_v34  ;;  %v1714_v59 = vpop.f32.mrb[65].mxu1 }
 0x171   :  { %v1804_v47 = vadd.f32 %v1714_v59, %v1546_v56  ;;  %v1716_v33 = vpop.f32.mrb[66].mxu1  ;;  %v19306_v4 = vsel %vm132_vm0, %v19214_v25, 0 }
 0x172   :  { %16965 = vmatmul.mubr.msk.bf16.vlgmr.msra.gmra.mrb[172].mxu0 %vm128_vm1, %v19262_v45  ;;  %v1717_v44 = vpop.f32.mrb[67].mxu1 }
 0x173   :  { %4212 = vmatpush1.bf16.msra.mxu0 %v19282_v63  ;;  %4243 = vmatprep.mubr.bf16.mxu0 %v22022_v3  ;;  %v19311_v44 = vld [vmem:[%s22045_s28 + $0x1c] sm:$0xf] }
 0x174   :  { %16967 = vmatmul.mubr.msk.bf16.vlgmr.msra.gmra.mrb[172].mxu1 %vm128_vm1, %v19262_v45  ;;  %16972 = vmatprep.subr.msk.bf16.mxu0 %vm132_vm0, %v19251_v26  ;;  %22047 = vst [vmem:[#allocation8_spill] sm:$0xff] %v19311_v44 }
 0x175   :  { %v1753_v34 = vpop.f32.mrb[68].mxu0  ;;  %4253 = vmatpush1.bf16.msra.mxu1 %v19288_v38  ;;  %4284 = vmatprep.mubr.bf16.mxu1 %v22022_v3 }
 0x176   :  { %v1805_v56 = vadd.f32 %v1753_v34, %v1585_v24  ;;  %v1755_v51 = vpop.f32.mrb[69].mxu0  ;;  %16974 = vmatprep.subr.msk.bf16.mxu1 %vm132_vm0, %v19292_v35 }
 0x177   :  { %v1806_v22 = vadd.f32 %v1755_v51, %v1587_v48  ;;  %v1757_v62 = vpop.f32.mrb[70].mxu0  ;;  %v1794_v27 = vpop.f32.mrb[68].mxu1  ;;  %v19317_v48 = vsel %vm132_vm0, %v19234_v37, 0 }
 0x178   :  { %v1758_v30 = vpop.f32.mrb[71].mxu0  ;;  %v1807_v40 = vadd.f32 %v1794_v27, %v1626_v41  ;;  %v17594_v59 = vpop.f32.mrb[69].mxu1 }
 0x179   :  { %v1798_v33 = vpop.f32.mrb[70].mxu1 }
 0x17a   :  { %16969 = vmatmul.mubr.msk.bf16.vlgmr.msra.gmra.mrb[176].mxu0 %vm128_vm1, %v19311_v44  ;;  %v17595_v24 = vpop.f32.mrb[71].mxu1 }
 0x17b   :  { %4294 = vmatpush1.bf16.msra.mxu0 %v19306_v4  ;;  %4325 = vmatprep.mubr.bf16.mxu0 %v22022_v3 }
 0x17c   :  { %16971 = vmatmul.mubr.msk.bf16.vlgmr.msra.gmra.mrb[176].mxu1 %vm128_vm1, %v19311_v44  ;;  %16976 = vmatprep.subr.msk.bf16.mxu0 %vm132_vm0, %v19202_v36 }
 0x17d   :  { %v1843_v41 = vpop.f32.mrb[72].mxu0  ;;  %4335 = vmatpush1.bf16.msra.mxu1 %v19317_v48  ;;  %4366 = vmatprep.mubr.bf16.mxu1 %v22022_v3 }
 0x17e   :  { %v1973_v34 = vadd.f32 %v1843_v41, %v1801_v2  ;;  %v1845_v51 = vpop.f32.mrb[73].mxu0  ;;  %16978 = vmatprep.subr.msk.bf16.mxu1 %vm132_vm0, %v19214_v25 }
 0x17f   :  { %v1974_v62 = vadd.f32 %v1845_v51, %v1802_v50  ;;  %v1847_v27 = vpop.f32.mrb[74].mxu0  ;;  %v1884_v30 = vpop.f32.mrb[72].mxu1 }
 0x180   :  { %v1975_v59 = vadd.f32 %v1884_v30, %v1803_v58  ;;  %v1848_v33 = vpop.f32.mrb[75].mxu0  ;;  %v1886_v24 = vpop.f32.mrb[73].mxu1  ;;  %v22048_v58 = vmov 0.0  }
 0x181   :  { %v1976_v32 = vadd.f32 %v1886_v24, %v1804_v47  ;;  %v1888_v5 = vpop.f32.mrb[74].mxu1 }
 0x182   :  { %16973 = vmatmul.mubr.msk.bf16.vlgmr.msra.gmra.mrb[180].mxu0 %vm128_vm1, %v19311_v44  ;;  %v1889_v45 = vpop.f32.mrb[75].mxu1 }
 0x183   :  { %4384 = vmatpush1.bf16.msra.mxu0 %v19230_v42  ;;  %4415 = vmatprep.mubr.bf16.mxu0 %v22022_v3 }
 0x184   :  { %16975 = vmatmul.mubr.msk.bf16.vlgmr.msra.gmra.mrb[180].mxu1 %vm128_vm1, %v19311_v44  ;;  %16980 = vmatprep.subr.msk.bf16.mxu0 %vm132_vm0, %v19234_v37  ;;  %v19344_v44 = vld [vmem:[%s22045_s28 + $0x20] sm:$0xf] }
 0x185   :  { %v1925_v2 = vpop.f32.mrb[76].mxu0  ;;  %4425 = vmatpush1.bf16.msra.mxu1 %v19255_v39  ;;  %4456 = vmatprep.mubr.bf16.mxu1 %v22022_v3 }
 0x186   :  { %v1977_v5 = vadd.f32 %v1925_v2, %v1805_v56  ;;  %v1927_v50 = vpop.f32.mrb[77].mxu0  ;;  %17620 = vmatprep.subr.bf16.mxu1 %v22048_v58 }
 0x187   :  { %v1978_v45 = vadd.f32 %v1927_v50, %v1806_v22  ;;  %v1929_v47 = vpop.f32.mrb[78].mxu0  ;;  %v1966_v41 = vpop.f32.mrb[76].mxu1  ;;  %v19350_v22 = vsel %vm132_vm0, %v19292_v35, 0 }
 0x188   :  { %v1979_v51 = vadd.f32 %v1966_v41, %v1807_v40  ;;  %v1930_v27 = vpop.f32.mrb[79].mxu0  ;;  %v1968_v30 = vpop.f32.mrb[77].mxu1  ;;  %22049 = vst [vmem:[#allocation9_spill] sm:$0xff] %v19350_v22 }
 0x189   :  { %v1980_v33 = vadd.f32 %v1968_v30, %v19257_v10  ;;  %v1970_v24 = vpop.f32.mrb[78].mxu1 }
 0x18a   :  { %16977 = vmatmul.mubr.msk.bf16.vlgmr.msra.gmra.mrb[184].mxu0 %vm128_vm1, %v19344_v44  ;;  %v1971_v56 = vpop.f32.mrb[79].mxu1 }
 0x18b   :  { %4466 = vmatpush1.bf16.msra.mxu0 %v19268_v49  ;;  %4497 = vmatprep.mubr.bf16.mxu0 %v22022_v3 }
 0x18c   :  { %16979 = vmatmul.mubr.msk.bf16.vlgmr.msra.gmra.mrb[184].mxu1 %vm128_vm1, %v19344_v44  ;;  %16983 = vmatprep.subr.msk.bf16.mxu0 %vm132_vm0, %v18912_v9 }
 0x18d   :  { %v2015_v10 = vpop.f32.mrb[80].mxu0  ;;  %17621 = vmatpush3.bf16.msra.mxu1 %v19350_v22  ;;  %17622 = vmatprep.mubr.msk.bf16.mxu1 %vm18310_vm2, %v22048_v58  ;;  %v22050_v22 = vmov 0  }
 0x18e   :  { %v2145_v40 = vadd.f32 %v2015_v10, %v1973_v34  ;;  %v2017_v2 = vpop.f32.mrb[81].mxu0  ;;  %16985 = vmatprep.subr.msk.bf16.mxu1 %vm132_vm0, %v18934_v13 }
 0x18f   :  { %v2146_v50 = vadd.f32 %v2017_v2, %v1974_v62  ;;  %v2019_v47 = vpop.f32.mrb[82].mxu0  ;;  %v2056_v41 = vpop.f32.mrb[80].mxu1 }
 0x190   :  { %v2147_v27 = vadd.f32 %v2056_v41, %v1975_v59  ;;  %v2020_v30 = vpop.f32.mrb[83].mxu0  ;;  %v2058_v24 = vpop.f32.mrb[81].mxu1 }
 0x191   :  { %v2148_v56 = vadd.f32 %v2058_v24, %v1976_v32  ;;  %v2060_v3 = vpop.f32.mrb[82].mxu1 }
 0x192   :  { %16981 = vmatmul.mubr.msk.bf16.vlgmr.msra.gmra.mrb[188].mxu0 %vm128_vm1, %v19344_v44  ;;  %v2061_v9 = vpop.f32.mrb[83].mxu1 }
 0x193   :  { %4572 = vmatpush1.bf16.msra.mxu0 %v18965_v17  ;;  %4603 = vmatprep.mubr.bf16.mxu0 %v22050_v22 }
 0x194   :  { %17623 = vmatmul.mubr.msk.bf16.vlgmr.msra.gmra.mrb[188].mxu1 %vm128_vm1, %v19344_v44  ;;  %16987 = vmatprep.subr.msk.bf16.mxu0 %vm132_vm0, %v18941_v14  ;;  %v19380_v14 = vld [vmem:[%s22045_s28 + $0x4] sm:$0xf] }
 0x195   :  { %v2097_v13 = vpop.f32.mrb[84].mxu0  ;;  %4613 = vmatpush1.bf16.msra.mxu1 %v18971_v18  ;;  %4644 = vmatprep.mubr.bf16.mxu1 %v22050_v22 }
 0x196   :  { %v2149_v3 = vadd.f32 %v2097_v13, %v1977_v5  ;;  %v2099_v32 = vpop.f32.mrb[85].mxu0  ;;  %16989 = vmatprep.subr.msk.bf16.mxu1 %vm132_vm0, %v18975_v19 }
 0x197   :  { %v2150_v34 = vadd.f32 %v2099_v32, %v1978_v45  ;;  %v2101_v17 = vpop.f32.mrb[86].mxu0  ;;  %v2138_v62 = vpop.f32.mrb[84].mxu1 }
 0x198   :  { %v2151_v59 = vadd.f32 %v2138_v62, %v1979_v51  ;;  %v2102_v10 = vpop.f32.mrb[87].mxu0  ;;  %v2140_v2 = vpop.f32.mrb[85].mxu1 }
 0x199   :  { %v19375_v47 = vadd.f32 %v2140_v2, %v1980_v33  ;;  %v2142_v41 = vpop.f32.mrb[86].mxu1 }
 0x19a   :  { %16984 = vmatmul.mubr.msk.bf16.vlgmr.msra.gmra.mrb[192].mxu0 %vm128_vm1, %v19380_v14  ;;  %v2143_v18 = vpop.f32.mrb[87].mxu1 }
 0x19b   :  { %4654 = vmatpush1.bf16.msra.mxu0 %v18989_v20  ;;  %4685 = vmatprep.mubr.bf16.mxu0 %v22050_v22  ;;  %v19409_v18 = vld [vmem:[%s22045_s28] sm:$0xf] }
 0x19c   :  { %16986 = vmatmul.mubr.msk.bf16.vlgmr.msra.gmra.mrb[192].mxu1 %vm128_vm1, %v19380_v14  ;;  %16991 = vmatprep.subr.msk.bf16.mxu0 %vm132_vm0, %v18890_v1 }
 0x19d   :  { %v2187_v19 = vpop.f32.mrb[88].mxu0  ;;  %4695 = vmatpush1.bf16.msra.mxu1 %v18995_v21  ;;  %4726 = vmatprep.mubr.bf16.mxu1 %v22050_v22 }
 0x19e   :  { %v2317_v5 = vadd.f32 %v2187_v19, %v2145_v40  ;;  %v2189_v45 = vpop.f32.mrb[89].mxu0  ;;  %16993 = vmatprep.subr.msk.bf16.mxu1 %vm132_vm0, %v18897_v6 }
 0x19f   :  { %v2318_v51 = vadd.f32 %v2189_v45, %v2146_v50  ;;  %v2191_v20 = vpop.f32.mrb[90].mxu0  ;;  %v2228_v33 = vpop.f32.mrb[88].mxu1 }
 0x1a0   :  { %v2319_v30 = vadd.f32 %v2228_v33, %v2147_v27  ;;  %v2192_v24 = vpop.f32.mrb[91].mxu0  ;;  %v2230_v9 = vpop.f32.mrb[89].mxu1 }
 0x1a1   :  { %v2320_v13 = vadd.f32 %v2230_v9, %v2148_v56  ;;  %v2232_v32 = vpop.f32.mrb[90].mxu1 }
 0x1a2   :  { %16988 = vmatmul.mubr.msk.bf16.vlgmr.msra.gmra.mrb[196].mxu0 %vm128_vm1, %v19380_v14  ;;  %v2233_v1 = vpop.f32.mrb[91].mxu1 }
 0x1a3   :  { %4736 = vmatpush1.bf16.msra.mxu0 %v22050_v22  ;;  %4767 = vmatprep.mubr.bf16.mxu0 %v22050_v22 }
 0x1a4   :  { %16990 = vmatmul.mubr.msk.bf16.vlgmr.msra.gmra.mrb[196].mxu1 %vm128_vm1, %v19380_v14  ;;  %16995 = vmatprep.subr.msk.bf16.mxu0 %vm132_vm0, %v18909_v7 }
 0x1a5   :  { %v2269_v21 = vpop.f32.mrb[92].mxu0  ;;  %4777 = vmatpush1.bf16.msra.mxu1 %v18920_v11  ;;  %4808 = vmatprep.mubr.bf16.mxu1 %v22050_v22 }
 0x1a6   :  { %v2321_v40 = vadd.f32 %v2269_v21, %v2149_v3  ;;  %v2271_v50 = vpop.f32.mrb[93].mxu0  ;;  %16997 = vmatprep.subr.msk.bf16.mxu1 %vm132_vm0, %v18924_v12 }
 0x1a7   :  { %v2322_v27 = vadd.f32 %v2271_v50, %v2150_v34  ;;  %v2273_v56 = vpop.f32.mrb[94].mxu0  ;;  %v2310_v17 = vpop.f32.mrb[92].mxu1 }
 0x1a8   :  { %v2323_v62 = vadd.f32 %v2310_v17, %v2151_v59  ;;  %v2274_v10 = vpop.f32.mrb[95].mxu0  ;;  %v17600_v2 = vpop.f32.mrb[93].mxu1 }
 0x1a9   :  { %v2314_v41 = vpop.f32.mrb[94].mxu1 }
 0x1aa   :  { %16992 = vmatmul.mubr.msk.bf16.vlgmr.msra.gmra.mrb[200].mxu0 %vm128_vm1, %v19409_v18  ;;  %v17601_v3 = vpop.f32.mrb[95].mxu1 }
 0x1ab   :  { %4818 = vmatpush1.bf16.msra.mxu0 %v18945_v15  ;;  %4849 = vmatprep.mubr.bf16.mxu0 %v22050_v22 }
 0x1ac   :  { %16994 = vmatmul.mubr.msk.bf16.vlgmr.msra.gmra.mrb[200].mxu1 %vm128_vm1, %v19409_v18  ;;  %16999 = vmatprep.subr.msk.bf16.mxu0 %vm132_vm0, %v18897_v6 }
 0x1ad   :  { %v2430_v34 = vpop.f32.mrb[96].mxu0  ;;  %4859 = vmatpush1.bf16.msra.mxu1 %v18951_v16  ;;  %4890 = vmatprep.mubr.bf16.mxu1 %v22050_v22 }
 0x1ae   :  { %v2560_v59 = vadd.f32 %v2430_v34, %v2317_v5  ;;  %v2432_v19 = vpop.f32.mrb[97].mxu0  ;;  %17001 = vmatprep.subr.msk.bf16.mxu1 %vm132_vm0, %v18909_v7 }
 0x1af   :  { %v2561_v45 = vadd.f32 %v2432_v19, %v2318_v51  ;;  %v2434_v20 = vpop.f32.mrb[98].mxu0  ;;  %v2471_v33 = vpop.f32.mrb[96].mxu1 }
 0x1b0   :  { %v2562_v24 = vadd.f32 %v2471_v33, %v2319_v30  ;;  %v2435_v9 = vpop.f32.mrb[99].mxu0  ;;  %v2473_v32 = vpop.f32.mrb[97].mxu1 }
 0x1b1   :  { %v2563_v1 = vadd.f32 %v2473_v32, %v2320_v13  ;;  %v2475_v21 = vpop.f32.mrb[98].mxu1 }
 0x1b2   :  { %16996 = vmatmul.mubr.msk.bf16.vlgmr.msra.gmra.mrb[204].mxu0 %vm128_vm1, %v19409_v18  ;;  %v2476_v6 = vpop.f32.mrb[99].mxu1 }
 0x1b3   :  { %4900 = vmatpush1.bf16.msra.mxu0 %v18920_v11  ;;  %4931 = vmatprep.mubr.bf16.mxu0 %v22050_v22 }
 0x1b4   :  { %16998 = vmatmul.mubr.msk.bf16.vlgmr.msra.gmra.mrb[204].mxu1 %vm128_vm1, %v19409_v18  ;;  %17003 = vmatprep.subr.msk.bf16.mxu0 %vm132_vm0, %v18924_v12  ;;  %v19438_v12 = vld [vmem:[%s22045_s28 + $0x8] sm:$0xf] }
 0x1b5   :  { %v2512_v7 = vpop.f32.mrb[100].mxu0  ;;  %4941 = vmatpush1.bf16.msra.mxu1 %v18945_v15  ;;  %4972 = vmatprep.mubr.bf16.mxu1 %v22050_v22 }
 0x1b6   :  { %v2564_v5 = vadd.f32 %v2512_v7, %v2321_v40  ;;  %v2514_v51 = vpop.f32.mrb[101].mxu0  ;;  %17626 = vmatprep.subr.bf16.mxu1 %v22048_v58 }
 0x1b7   :  { %v2565_v30 = vadd.f32 %v2514_v51, %v2322_v27  ;;  %v2516_v13 = vpop.f32.mrb[102].mxu0  ;;  %v2553_v11 = vpop.f32.mrb[100].mxu1 }
 0x1b8   :  { %v2566_v50 = vadd.f32 %v2553_v11, %v2323_v62  ;;  %v2517_v56 = vpop.f32.mrb[103].mxu0  ;;  %v2555_v17 = vpop.f32.mrb[101].mxu1 }
 0x1b9   :  { %v2567_v10 = vadd.f32 %v2555_v17, %v19375_v47  ;;  %v2557_v2 = vpop.f32.mrb[102].mxu1 }
 0x1ba   :  { %17000 = vmatmul.mubr.msk.bf16.vlgmr.msra.gmra.mrb[208].mxu0 %vm128_vm1, %v19438_v12  ;;  %v2558_v15 = vpop.f32.mrb[103].mxu1 }
 0x1bb   :  { %4982 = vmatpush1.bf16.msra.mxu0 %v18951_v16  ;;  %5013 = vmatprep.mubr.bf16.mxu0 %v22050_v22 }
 0x1bc   :  { %17002 = vmatmul.mubr.msk.bf16.vlgmr.msra.gmra.mrb[208].mxu1 %vm128_vm1, %v19438_v12  ;;  %17006 = vmatprep.subr.msk.bf16.mxu0 %vm132_vm0, %v19195_v29 }
 0x1bd   :  { %v2606_v47 = vpop.f32.mrb[104].mxu0  ;;  %17627 = vmatpush3.bf16.msra.mxu1 %v19022_v54  ;;  %17628 = vmatprep.mubr.msk.bf16.mxu1 %vm18310_vm2, %v22048_v58 }
 0x1be   :  { %v2736_v40 = vadd.f32 %v2606_v47, %v2560_v59  ;;  %v2608_v27 = vpop.f32.mrb[105].mxu0  ;;  %17008 = vmatprep.subr.msk.bf16.mxu1 %vm132_vm0, %v19202_v36 }
 0x1bf   :  { %v2737_v16 = vadd.f32 %v2608_v27, %v2561_v45  ;;  %v2610_v62 = vpop.f32.mrb[106].mxu0  ;;  %v2647_v41 = vpop.f32.mrb[104].mxu1 }
 0x1c0   :  { %v2738_v3 = vadd.f32 %v2647_v41, %v2562_v24  ;;  %v2611_v34 = vpop.f32.mrb[107].mxu0  ;;  %v2649_v19 = vpop.f32.mrb[105].mxu1 }
 0x1c1   :  { %v2739_v20 = vadd.f32 %v2649_v19, %v2563_v1  ;;  %v2651_v33 = vpop.f32.mrb[106].mxu1  ;;  %v19463_v45 = vpop.permute.xlu0 %1276 }
 0x1c2   :  { %17004 = vmatmul.mubr.msk.bf16.vlgmr.msra.gmra.mrb[212].mxu0 %vm128_vm1, %v19438_v12  ;;  %v2652_v54 = vpop.f32.mrb[107].mxu1  ;;  %v1286_v13 = vadd.f32 %v19463_v45, %v19122_v61  ;;  %v1279_v2 = vadd.f32 %v19463_v45, %v19134_v52  ;;  %v1280_v27 = vadd.f32 %v19463_v45, %v19138_v55  ;;  %v1281_v33 = vadd.f32 %v19463_v45, %v19140_v53 }
 0x1c3   :  { %5072 = vmatpush1.bf16.msra.mxu0 %v22050_v22  ;;  %5103 = vmatprep.mubr.bf16.mxu0 %v22050_v22 }
 0x1c4   :  { %17629 = vmatmul.mubr.msk.bf16.vlgmr.msra.gmra.mrb[212].mxu1 %vm128_vm1, %v19438_v12  ;;  %17010 = vmatprep.subr.msk.bf16.mxu0 %vm132_vm0, %v19214_v25  ;;  %v1294_v61 = vmax.f32 %v1286_v13, 0.0  ;;  %v1288_v13 = vmax.f32 %v1280_v27, 0.0  ;;  %v1284_v27 = vadd.f32 %v19463_v45, %v19158_v31 }
 0x1c5   :  { %v2688_v59 = vpop.f32.mrb[108].mxu0  ;;  %5113 = vmatpush1.bf16.msra.mxu1 %v19230_v42  ;;  %5144 = vmatprep.mubr.bf16.mxu1 %v22050_v22 }
 0x1c6   :  { %v19465_v24 = vadd.f32 %v2688_v59, %v2564_v5  ;;  %v2690_v9 = vpop.f32.mrb[109].mxu0  ;;  %17012 = vmatprep.subr.msk.bf16.mxu1 %vm132_vm0, %v19234_v37  ;;  %v19478_v5 = vld [vmem:[%s22045_s28 + $0xc] sm:$0xf] }
 0x1c7   :  { %v19469_v32 = vadd.f32 %v2690_v9, %v2565_v30  ;;  %v2692_v1 = vpop.f32.mrb[110].mxu0  ;;  %v2729_v21 = vpop.f32.mrb[108].mxu1  ;;  %v1282_v9 = vadd.f32 %v19463_v45, %v19142_v43  ;;  %v1289_v43 = vmax.f32 %v1281_v33, 0.0 }
 0x1c8   :  { %v19471_v6 = vadd.f32 %v2729_v21, %v2566_v50  ;;  %v2693_v7 = vpop.f32.mrb[111].mxu0  ;;  %v2731_v51 = vpop.f32.mrb[109].mxu1 }
 0x1c9   :  { %v2743_v11 = vadd.f32 %v2731_v51, %v2567_v10  ;;  %v2733_v56 = vpop.f32.mrb[110].mxu1  ;;  %v1287_v7 = vmax.f32 %v1279_v2, 0.0 }
 0x1ca   :  { %17007 = vmatmul.mubr.msk.bf16.vlgmr.msra.gmra.mrb[216].mxu0 %vm128_vm1, %v19478_v5  ;;  %v2734_v30 = vpop.f32.mrb[111].mxu1 }
 0x1cb   :  { %v2923_v17 = vadd.f32 %v2743_v11, %v19463_v45  ;;  %5154 = vmatpush1.bf16.msra.mxu0 %v19255_v39  ;;  %5185 = vmatprep.mubr.bf16.mxu0 %v22050_v22  ;;  %v1290_v30 = vmax.f32 %v1282_v9, 0.0 }
 0x1cc   :  { %17009 = vmatmul.mubr.msk.bf16.vlgmr.msra.gmra.mrb[216].mxu1 %vm128_vm1, %v19478_v5  ;;  %17014 = vmatprep.subr.msk.bf16.mxu0 %vm132_vm0, %v19217_v60 }
 0x1cd   :  { %v2931_v50 = vmax.f32 %v2923_v17, 0.0  ;;  %v2778_v10 = vpop.f32.mrb[112].mxu0  ;;  %5195 = vmatpush1.bf16.msra.mxu1 %v19268_v49  ;;  %5226 = vmatprep.mubr.bf16.mxu1 %v22050_v22 }
 0x1ce   :  { %v2908_v15 = vadd.f32 %v2778_v10, %v2736_v40  ;;  %v2780_v47 = vpop.f32.mrb[113].mxu0  ;;  %17016 = vmatprep.subr.msk.bf16.mxu1 %vm132_vm0, %v19244_v23  ;;  %v1283_v10 = vadd.f32 %v19463_v45, %v19154_v28  ;;  %v1285_v28 = vadd.f32 %v19463_v45, %v19160_v57  ;;  %v1292_v57 = vmax.f32 %v1284_v27, 0.0 }
 0x1cf   :  { %v19497_v62 = vmax.f32 %v1294_v61, %v2931_v50  ;;  %v2909_v41 = vadd.f32 %v2780_v47, %v2737_v16  ;;  %v2782_v34 = vpop.f32.mrb[114].mxu0  ;;  %v2819_v19 = vpop.f32.mrb[112].mxu1 }
 0x1d0   :  { %v2916_v54 = vadd.f32 %v2908_v15, %v19463_v45  ;;  %v2910_v59 = vadd.f32 %v2819_v19, %v2738_v3  ;;  %v2783_v52 = vpop.f32.mrb[115].mxu0  ;;  %v2821_v40 = vpop.f32.mrb[113].mxu1 }
 0x1d1   :  { %v2917_v1 = vadd.f32 %v2909_v41, %v19463_v45  ;;  %v2911_v21 = vadd.f32 %v2821_v40, %v2739_v20  ;;  %v2823_v55 = vpop.f32.mrb[114].mxu1 }
 0x1d2   :  { %v2924_v51 = vmax.f32 %v2916_v54, 0.0  ;;  %v2918_v16 = vadd.f32 %v2910_v59, %v19463_v45  ;;  %17011 = vmatmul.mubr.msk.bf16.vlgmr.msra.gmra.mrb[220].mxu0 %vm128_vm1, %v19478_v5  ;;  %v2824_v53 = vpop.f32.mrb[115].mxu1 }
 0x1d3   :  { %v2925_v11 = vmax.f32 %v2917_v1, 0.0  ;;  %v2919_v3 = vadd.f32 %v2911_v21, %v19463_v45  ;;  %5244 = vmatpush1.bf16.msra.mxu0 %v19282_v63  ;;  %5275 = vmatprep.mubr.bf16.mxu0 %v22050_v22  ;;  %v1291_v21 = vmax.f32 %v1283_v10, 0.0 }
 0x1d4   :  { %v2932_v56 = vmax.f32 %v1287_v7, %v2924_v51  ;;  %v2926_v20 = vmax.f32 %v2918_v16, 0.0  ;;  %17013 = vmatmul.mubr.msk.bf16.vlgmr.msra.gmra.mrb[220].mxu1 %vm128_vm1, %v19478_v5  ;;  %17018 = vmatprep.subr.msk.bf16.mxu0 %vm132_vm0, %v19251_v26 }
 0x1d5   :  { %v2933_v17 = vmax.f32 %v1288_v13, %v2925_v11  ;;  %v2927_v61 = vmax.f32 %v2919_v3, 0.0  ;;  %v2860_v50 = vpop.f32.mrb[116].mxu0  ;;  %5285 = vmatpush1.bf16.msra.mxu1 %v19288_v38  ;;  %5316 = vmatprep.mubr.bf16.mxu1 %v22050_v22 }
 0x1d6   :  { %v2934_v2 = vmax.f32 %v1289_v43, %v2926_v20  ;;  %v2912_v15 = vadd.f32 %v2860_v50, %v19465_v24  ;;  %v2862_v47 = vpop.f32.mrb[117].mxu0  ;;  %17020 = vmatprep.subr.msk.bf16.mxu1 %vm132_vm0, %v19292_v35 }
 0x1d7   :  { %v2935_v41 = vmax.f32 %v1290_v30, %v2927_v61  ;;  %v2913_v34 = vadd.f32 %v2862_v47, %v19469_v32  ;;  %v2864_v19 = vpop.f32.mrb[118].mxu0  ;;  %v2901_v33 = vpop.f32.mrb[116].mxu1  ;;  %v19525_v54 = vmax.f32 %v2932_v56, %v2933_v17  ;;  %v5587_v17 = vld [vmem:[%s22042_s26 + $0x20] sm:$0xff] }
 0x1d8   :  { %v2920_v59 = vadd.f32 %v2912_v15, %v19463_v45  ;;  %v2914_v24 = vadd.f32 %v2901_v33, %v19471_v6  ;;  %v2865_v52 = vpop.f32.mrb[119].mxu0  ;;  %v17606_v40 = vpop.f32.mrb[117].mxu1  ;;  %v1293_v6 = vmax.f32 %v1285_v28, 0.0  ;;  %v5596_v15 = vrot.slane %v5587_v17, %v18435_v8 }
 0x1d9   :  { %22051 = vst [vmem:[#allocation10_spill] sm:$0xff] %v19525_v54  ;;  %v2921_v9 = vadd.f32 %v2913_v34, %v19463_v45  ;;  %v2905_v1 = vpop.f32.mrb[118].mxu1  ;;  %v19532_v31 = vmax.f32 %v2934_v2, %v2935_v41  ;;  %v5589_v41 = vcombine.high %v5587_v17, %v5587_v17 }
 0x1da   :  { %v2928_v32 = vmax.f32 %v2920_v59, 0.0  ;;  %v2922_v55 = vadd.f32 %v2914_v24, %v19463_v45  ;;  %17015 = vmatmul.mubr.msk.bf16.vlgmr.msra.gmra.mrb[224].mxu0 %vm128_vm1, %v19180_v46  ;;  %v17607_v7 = vpop.f32.mrb[119].mxu1  ;;  %v19568_v34 = vrot.slane %v5596_v15, %v18435_v8  ;;  %v5604_v52 = vcombine.high %v5596_v15, %v5596_v15 }
 0x1db   :  { %22052 = vst [vmem:[#allocation11_spill] sm:$0xff] %v19532_v31  ;;  %v2929_v51 = vmax.f32 %v2921_v9, 0.0  ;;  %5326 = vmatpush1.bf16.msra.mxu0 %v19306_v4  ;;  %5357 = vmatprep.mubr.bf16.mxu0 %v22050_v22  ;;  %v5603_v24 = vrot.slane %v5589_v41, %v18435_v8  ;;  %v19992_v31 = vld [vmem:[%s22045_s28 + $0x1c] sm:$0xf] }
 0x1dc   :  { %v2936_v16 = vmax.f32 %v1291_v21, %v2928_v32  ;;  %v2930_v53 = vmax.f32 %v2922_v55, 0.0  ;;  %17017 = vmatmul.mubr.msk.bf16.vlgmr.msra.gmra.mrb[224].mxu1 %vm128_vm1, %v19180_v46  ;;  %17022 = vmatprep.subr.msk.bf16.mxu0 %vm132_vm0, %v19202_v36  ;;  %v19575_v9 = vcombine.high %v19568_v34, %v19568_v34  ;;  %v22055_v21 = vld [vmem:[#allocation9_spill] sm:$0xff] }
 0x1dd   :  { %v2937_v13 = vmax.f32 %v1292_v57, %v2929_v51  ;;  %v2982_v11 = vpop.f32.mrb[120].mxu0  ;;  %5367 = vmatpush1.bf16.msra.mxu1 %v19317_v48  ;;  %5398 = vmatprep.mubr.bf16.mxu1 %v22050_v22  ;;  %v19587_v7 = vrot.slane %v5603_v24, %v18435_v8  ;;  %v19590_v57 = vrot.slane %v5604_v52, %v18435_v8 }
 0x1de   :  { %v2938_v3 = vmax.f32 %v1293_v6, %v2930_v53  ;;  %v2984_v43 = vpop.f32.mrb[121].mxu0  ;;  %17024 = vmatprep.subr.msk.bf16.mxu1 %vm132_vm0, %v19214_v25 }
 0x1df   :  { %v19547_v56 = vmax.f32 %v2936_v16, %v2937_v13  ;;  %v2986_v20 = vpop.f32.mrb[122].mxu0  ;;  %v3023_v30 = vpop.f32.mrb[120].mxu1  ;;  %v19602_v15 = vcombine.high %v19587_v7, %v19587_v7 }
 0x1e0   :  { %v2987_v61 = vpop.f32.mrb[123].mxu0  ;;  %v3025_v50 = vpop.f32.mrb[121].mxu1  ;;  %v19553_v10 = vmax.f32 %v2938_v3, %v19497_v62 }
 0x1e1   :  { %22053 = vst [vmem:[#allocation12_spill] sm:$0xff] %v19547_v56  ;;  %v3027_v2 = vpop.f32.mrb[122].mxu1  ;;  %v19598_v61 = vsel %vm132_vm0, %v19590_v57, 0 }
 0x1e2   :  { %22054 = vst [vmem:[#allocation13_spill] sm:$0xff] %v19553_v10  ;;  %17019 = vmatmul.mubr.msk.bf16.vlgmr.msra.gmra.mrb[228].mxu0 %vm128_vm1, %v19180_v46  ;;  %v3028_v47 = vpop.f32.mrb[123].mxu1 }
 0x1e3   :  { %5416 = vmatpush1.bf16.msra.mxu0 %v19230_v42  ;;  %5447 = vmatprep.mubr.bf16.mxu0 %v22050_v22 }
 0x1e4   :  { %17021 = vmatmul.mubr.msk.bf16.vlgmr.msra.gmra.mrb[228].mxu1 %vm128_vm1, %v19180_v46  ;;  %17026 = vmatprep.subr.msk.bf16.mxu0 %vm132_vm0, %v19234_v37 }
 0x1e5   :  { %v3064_v27 = vpop.f32.mrb[124].mxu0  ;;  %5457 = vmatpush1.bf16.msra.mxu1 %v19255_v39  ;;  %5488 = vmatprep.mubr.bf16.mxu1 %v22050_v22 }
 0x1e6   :  { %v3066_v62 = vpop.f32.mrb[125].mxu0  ;;  %17632 = vmatprep.subr.bf16.mxu1 %v22048_v58 }
 0x1e7   :  { %v3068_v19 = vpop.f32.mrb[126].mxu0  ;;  %v3105_v33 = vpop.f32.mrb[124].mxu1 }
 0x1e8   :  { %v3069_v28 = vpop.f32.mrb[127].mxu0  ;;  %v3107_v59 = vpop.f32.mrb[125].mxu1 }
 0x1e9   :  { %v3109_v46 = vpop.f32.mrb[126].mxu1 }
 0x1ea   :  { %17023 = vmatmul.mubr.msk.bf16.vlgmr.msra.gmra.mrb[232].mxu0 %vm128_vm1, %v19224_v0  ;;  %v3110_v40 = vpop.f32.mrb[127].mxu1 }
 0x1eb   :  { %5498 = vmatpush1.bf16.msra.mxu0 %v19268_v49  ;;  %5529 = vmatprep.mubr.bf16.mxu0 %v22050_v22 }
 0x1ec   :  { %17025 = vmatmul.mubr.msk.bf16.vlgmr.msra.gmra.mrb[232].mxu1 %vm128_vm1, %v19224_v0  ;;  %17029 = vmatprep.subr.msk.bf16.mxu0 %vm132_vm0, %v19568_v34 }
 0x1ed   :  { %v3146_v1 = vpop.f32.mrb[128].mxu0  ;;  %17633 = vmatpush3.bf16.msra.mxu1 %v22055_v21  ;;  %17634 = vmatprep.mubr.msk.bf16.mxu1 %vm18310_vm2, %v22048_v58 }
 0x1ee   :  { %v3147_v32 = vadd.f32 %v3146_v1, %v2982_v11  ;;  %v3148_v55 = vpop.f32.mrb[129].mxu0  ;;  %17031 = vmatprep.subr.msk.bf16.mxu1 %vm132_vm0, %v19575_v9  ;;  %v5605_v11 = vcombine.high %v5603_v24, %v5603_v24 }
 0x1ef   :  { %v3149_v51 = vadd.f32 %v3148_v55, %v2984_v43  ;;  %v3150_v6 = vpop.f32.mrb[130].mxu0  ;;  %v3187_v16 = vpop.f32.mrb[128].mxu1  ;;  %v19612_v43 = vcombine.high %v19590_v57, %v19590_v57  ;;  %v22056_v55 = vld [vmem:[#allocation7_spill] sm:$0xff] }
 0x1f0   :  { %v3151_v53 = vpop.f32.mrb[131].mxu0  ;;  %v3188_v13 = vadd.f32 %v3187_v16, %v3023_v30  ;;  %v3189_v3 = vpop.f32.mrb[129].mxu1  ;;  %v19619_v41 = vrot.slane %v5605_v11, %v18435_v8 }
 0x1f1   :  { %v3190_v20 = vadd.f32 %v3189_v3, %v3025_v50  ;;  %v3191_v17 = vpop.f32.mrb[130].mxu1  ;;  %v19623_v24 = vsel %vm132_vm0, %v19612_v43, 0 }
 0x1f2   :  { %17027 = vmatmul.mubr.msk.bf16.vlgmr.msra.gmra.mrb[236].mxu0 %vm128_vm1, %v19224_v0  ;;  %v3192_v2 = vpop.f32.mrb[131].mxu1  ;;  %v19631_v16 = vsel %vm132_vm0, %v19619_v41, 0 }
 0x1f3   :  { %5659 = vmatpush1.bf16.msra.mxu0 %v22050_v22  ;;  %5690 = vmatprep.mubr.bf16.mxu0 %v22050_v22 }
 0x1f4   :  { %17635 = vmatmul.mubr.msk.bf16.vlgmr.msra.gmra.mrb[236].mxu1 %vm128_vm1, %v19224_v0  ;;  %17033 = vmatprep.subr.msk.bf16.mxu0 %vm132_vm0, %v19587_v7 }
 0x1f5   :  { %v3228_v30 = vpop.f32.mrb[132].mxu0  ;;  %5700 = vmatpush1.bf16.msra.mxu1 %v19598_v61  ;;  %5731 = vmatprep.mubr.bf16.mxu1 %v22050_v22 }
 0x1f6   :  { %v3229_v50 = vadd.f32 %v3228_v30, %v3064_v27  ;;  %v3230_v47 = vpop.f32.mrb[133].mxu0  ;;  %17035 = vmatprep.subr.msk.bf16.mxu1 %vm132_vm0, %v19602_v15 }
 0x1f7   :  { %v3231_v0 = vadd.f32 %v3230_v47, %v3066_v62  ;;  %v3232_v19 = vpop.f32.mrb[134].mxu0  ;;  %v3269_v28 = vpop.f32.mrb[132].mxu1  ;;  %v19645_v47 = vsel %vm132_vm0, %v19568_v34, 0 }
 0x1f8   :  { %v3233_v46 = vpop.f32.mrb[135].mxu0  ;;  %v3270_v52 = vadd.f32 %v3269_v28, %v3105_v33  ;;  %v3271_v40 = vpop.f32.mrb[133].mxu1 }
 0x1f9   :  { %v19625_v1 = vadd.f32 %v3271_v40, %v3107_v59  ;;  %v3273_v27 = vpop.f32.mrb[134].mxu1  ;;  %v19651_v46 = vsel %vm132_vm0, %v19575_v9, 0 }
 0x1fa   :  { %17030 = vmatmul.mubr.msk.bf16.vlgmr.msra.gmra.mrb[240].mxu0 %vm128_vm1, %v22056_v55  ;;  %v3274_v6 = vpop.f32.mrb[135].mxu1 }
 0x1fb   :  { %5741 = vmatpush1.bf16.msra.mxu0 %v19623_v24  ;;  %5772 = vmatprep.mubr.bf16.mxu0 %v22050_v22 }
 0x1fc   :  { %17032 = vmatmul.mubr.msk.bf16.vlgmr.msra.gmra.mrb[240].mxu1 %vm128_vm1, %v22056_v55  ;;  %17037 = vmatprep.subr.msk.bf16.mxu0 %vm132_vm0, %v19590_v57 }
 0x1fd   :  { %v3310_v62 = vpop.f32.mrb[136].mxu0  ;;  %5782 = vmatpush1.bf16.msra.mxu1 %v19631_v16  ;;  %5813 = vmatprep.mubr.bf16.mxu1 %v22050_v22 }
 0x1fe   :  { %v3440_v33 = vadd.f32 %v3310_v62, %v3147_v32  ;;  %v3312_v59 = vpop.f32.mrb[137].mxu0  ;;  %17039 = vmatprep.subr.msk.bf16.mxu1 %vm132_vm0, %v19612_v43 }
 0x1ff   :  { %v3441_v53 = vadd.f32 %v3312_v59, %v3149_v51  ;;  %v3314_v3 = vpop.f32.mrb[138].mxu0  ;;  %v3351_v17 = vpop.f32.mrb[136].mxu1  ;;  %v19655_v51 = vcombine.high %v19619_v41, %v19619_v41 }
 0x200   :  { %v3315_v11 = vpop.f32.mrb[139].mxu0  ;;  %v3442_v2 = vadd.f32 %v3351_v17, %v3188_v13  ;;  %v3353_v30 = vpop.f32.mrb[137].mxu1 }
 0x201   :  { %v3443_v19 = vadd.f32 %v3353_v30, %v3190_v20  ;;  %v3355_v28 = vpop.f32.mrb[138].mxu1  ;;  %v22057_v30 = vld [vmem:[#allocation8_spill] sm:$0xff] }
 0x202   :  { %17034 = vmatmul.mubr.msk.bf16.vlgmr.msra.gmra.mrb[244].mxu0 %vm128_vm1, %v22056_v55  ;;  %v3356_v32 = vpop.f32.mrb[139].mxu1  ;;  %22060 = vst [vmem:[#allocation8_spill] sm:$0xff] %v19992_v31 }
 0x203   :  { %5835 = vmatpush1.bf16.msra.mxu0 %v19645_v47  ;;  %5866 = vmatprep.mubr.bf16.mxu0 %v22050_v22 }
 0x204   :  { %17036 = vmatmul.mubr.msk.bf16.vlgmr.msra.gmra.mrb[244].mxu1 %vm128_vm1, %v22056_v55  ;;  %17041 = vmatprep.subr.msk.bf16.mxu0 %vm132_vm0, %v19619_v41  ;;  %v19669_v55 = vsel %vm132_vm0, %v19587_v7, 0 }
 0x205   :  { %v3392_v13 = vpop.f32.mrb[140].mxu0  ;;  %5876 = vmatpush1.bf16.msra.mxu1 %v19651_v46  ;;  %5907 = vmatprep.mubr.bf16.mxu1 %v22050_v22 }
 0x206   :  { %v3444_v20 = vadd.f32 %v3392_v13, %v3229_v50  ;;  %v3394_v40 = vpop.f32.mrb[141].mxu0  ;;  %17043 = vmatprep.subr.msk.bf16.mxu1 %vm132_vm0, %v19655_v51  ;;  %v19675_v50 = vsel %vm132_vm0, %v19602_v15, 0 }
 0x207   :  { %v3445_v27 = vadd.f32 %v3394_v40, %v3231_v0  ;;  %v3396_v6 = vpop.f32.mrb[142].mxu0  ;;  %v3433_v62 = vpop.f32.mrb[140].mxu1 }
 0x208   :  { %v3397_v59 = vpop.f32.mrb[143].mxu0  ;;  %v3446_v3 = vadd.f32 %v3433_v62, %v3270_v52  ;;  %v17612_v17 = vpop.f32.mrb[141].mxu1 }
 0x209   :  { %v3437_v11 = vpop.f32.mrb[142].mxu1 }
 0x20a   :  { %17038 = vmatmul.mubr.msk.bf16.vlgmr.msra.gmra.mrb[248].mxu0 %vm128_vm1, %v22057_v30  ;;  %v17613_v28 = vpop.f32.mrb[143].mxu1 }
 0x20b   :  { %5917 = vmatpush1.bf16.msra.mxu0 %v19669_v55  ;;  %5948 = vmatprep.mubr.bf16.mxu0 %v22050_v22 }
 0x20c   :  { %17040 = vmatmul.mubr.msk.bf16.vlgmr.msra.gmra.mrb[248].mxu1 %vm128_vm1, %v22057_v30  ;;  %17045 = vmatprep.subr.msk.bf16.mxu0 %vm132_vm0, %v19575_v9 }
 0x20d   :  { %v3482_v0 = vpop.f32.mrb[144].mxu0  ;;  %5958 = vmatpush1.bf16.msra.mxu1 %v19675_v50  ;;  %5989 = vmatprep.mubr.bf16.mxu1 %v22050_v22 }
 0x20e   :  { %v3612_v52 = vadd.f32 %v3482_v0, %v3440_v33  ;;  %v3484_v32 = vpop.f32.mrb[145].mxu0  ;;  %17047 = vmatprep.subr.msk.bf16.mxu1 %vm132_vm0, %v19587_v7 }
 0x20f   :  { %v3613_v13 = vadd.f32 %v3484_v32, %v3441_v53  ;;  %v3486_v40 = vpop.f32.mrb[146].mxu0  ;;  %v3523_v6 = vpop.f32.mrb[144].mxu1 }
 0x210   :  { %v3614_v62 = vadd.f32 %v3523_v6, %v3442_v2  ;;  %v3487_v59 = vpop.f32.mrb[147].mxu0  ;;  %v3525_v17 = vpop.f32.mrb[145].mxu1 }
 0x211   :  { %v3615_v11 = vadd.f32 %v3525_v17, %v3443_v19  ;;  %v3527_v28 = vpop.f32.mrb[146].mxu1 }
 0x212   :  { %17042 = vmatmul.mubr.msk.bf16.vlgmr.msra.gmra.mrb[252].mxu0 %vm128_vm1, %v22057_v30  ;;  %v3528_v56 = vpop.f32.mrb[147].mxu1  ;;  %v19703_v28 = vsel %vm132_vm0, %v19655_v51, 0 }
 0x213   :  { %6007 = vmatpush1.bf16.msra.mxu0 %v19598_v61  ;;  %6038 = vmatprep.mubr.bf16.mxu0 %v22050_v22 }
 0x214   :  { %17044 = vmatmul.mubr.msk.bf16.vlgmr.msra.gmra.mrb[252].mxu1 %vm128_vm1, %v22057_v30  ;;  %17049 = vmatprep.subr.msk.bf16.mxu0 %vm132_vm0, %v19602_v15 }
 0x215   :  { %v3564_v33 = vpop.f32.mrb[148].mxu0  ;;  %6048 = vmatpush1.bf16.msra.mxu1 %v19623_v24  ;;  %6079 = vmatprep.mubr.bf16.mxu1 %v22050_v22 }
 0x216   :  { %v3616_v53 = vadd.f32 %v3564_v33, %v3444_v20  ;;  %v3566_v2 = vpop.f32.mrb[149].mxu0  ;;  %17638 = vmatprep.subr.bf16.mxu1 %v22048_v58 }
 0x217   :  { %v3617_v56 = vadd.f32 %v3566_v2, %v3445_v27  ;;  %v3568_v19 = vpop.f32.mrb[150].mxu0  ;;  %v3605_v0 = vpop.f32.mrb[148].mxu1 }
 0x218   :  { %v3618_v32 = vadd.f32 %v3605_v0, %v3446_v3  ;;  %v3569_v40 = vpop.f32.mrb[151].mxu0  ;;  %v3607_v6 = vpop.f32.mrb[149].mxu1 }
 0x219   :  { %v3619_v30 = vadd.f32 %v3607_v6, %v19625_v1  ;;  %v3609_v59 = vpop.f32.mrb[150].mxu1 }
 0x21a   :  { %17046 = vmatmul.mubr.msk.bf16.vlgmr.msra.gmra.mrb[0].mxu0 %vm128_vm1, %v19344_v44  ;;  %v3610_v17 = vpop.f32.mrb[151].mxu1 }
 0x21b   :  { %6089 = vmatpush1.bf16.msra.mxu0 %v19631_v16  ;;  %6120 = vmatprep.mubr.bf16.mxu0 %v22050_v22 }
 0x21c   :  { %17048 = vmatmul.mubr.msk.bf16.vlgmr.msra.gmra.mrb[0].mxu1 %vm128_vm1, %v19344_v44  ;;  %17052 = vmatprep.subr.msk.bf16.mxu0 %vm132_vm0, %v19217_v60 }
 0x21d   :  { %v3654_v1 = vpop.f32.mrb[152].mxu0  ;;  %17639 = vmatpush3.bf16.msra.mxu1 %v19703_v28  ;;  %17640 = vmatprep.mubr.msk.bf16.mxu1 %vm18310_vm2, %v22048_v58 }
 0x21e   :  { %v3784_v20 = vadd.f32 %v3654_v1, %v3612_v52  ;;  %v3656_v27 = vpop.f32.mrb[153].mxu0  ;;  %17054 = vmatprep.subr.msk.bf16.mxu1 %vm132_vm0, %v19244_v23 }
 0x21f   :  { %v3785_v3 = vadd.f32 %v3656_v27, %v3613_v13  ;;  %v3658_v33 = vpop.f32.mrb[154].mxu0  ;;  %v3695_v2 = vpop.f32.mrb[152].mxu1 }
 0x220   :  { %v3786_v19 = vadd.f32 %v3695_v2, %v3614_v62  ;;  %v3659_v0 = vpop.f32.mrb[155].mxu0  ;;  %v3697_v40 = vpop.f32.mrb[153].mxu1 }
 0x221   :  { %v3787_v6 = vadd.f32 %v3697_v40, %v3615_v11  ;;  %v3699_v59 = vpop.f32.mrb[154].mxu1 }
 0x222   :  { %17050 = vmatmul.mubr.msk.bf16.vlgmr.msra.gmra.mrb[4].mxu0 %vm128_vm1, %v19344_v44  ;;  %v3700_v60 = vpop.f32.mrb[155].mxu1 }
 0x223   :  { %6211 = vmatpush1.bf16.msra.mxu0 %v19282_v63  ;;  %6242 = vmatprep.mubr.bf16.mxu0 %v22050_v22 }
 0x224   :  { %17641 = vmatmul.mubr.msk.bf16.vlgmr.msra.gmra.mrb[4].mxu1 %vm128_vm1, %v19344_v44  ;;  %17056 = vmatprep.subr.msk.bf16.mxu0 %vm132_vm0, %v19251_v26 }
 0x225   :  { %v3736_v23 = vpop.f32.mrb[156].mxu0  ;;  %6252 = vmatpush1.bf16.msra.mxu1 %v19288_v38  ;;  %6283 = vmatprep.mubr.bf16.mxu1 %v22050_v22 }
 0x226   :  { %v3788_v52 = vadd.f32 %v3736_v23, %v3616_v53  ;;  %v3738_v13 = vpop.f32.mrb[157].mxu0  ;;  %17058 = vmatprep.subr.msk.bf16.mxu1 %vm132_vm0, %v19292_v35 }
 0x227   :  { %v3789_v62 = vadd.f32 %v3738_v13, %v3617_v56  ;;  %v3740_v63 = vpop.f32.mrb[158].mxu0  ;;  %v3777_v11 = vpop.f32.mrb[156].mxu1 }
 0x228   :  { %v3790_v17 = vadd.f32 %v3777_v11, %v3618_v32  ;;  %v3741_v1 = vpop.f32.mrb[159].mxu0  ;;  %v3779_v27 = vpop.f32.mrb[157].mxu1 }
 0x229   :  { %v19728_v44 = vadd.f32 %v3779_v27, %v3619_v30  ;;  %v3781_v33 = vpop.f32.mrb[158].mxu1 }
 0x22a   :  { %17053 = vmatmul.mubr.msk.bf16.vlgmr.msra.gmra.mrb[8].mxu0 %vm128_vm1, %v19380_v14  ;;  %v3782_v26 = vpop.f32.mrb[159].mxu1 }
 0x22b   :  { %6293 = vmatpush1.bf16.msra.mxu0 %v19306_v4  ;;  %6324 = vmatprep.mubr.bf16.mxu0 %v22050_v22 }
 0x22c   :  { %17055 = vmatmul.mubr.msk.bf16.vlgmr.msra.gmra.mrb[8].mxu1 %vm128_vm1, %v19380_v14  ;;  %17060 = vmatprep.subr.msk.bf16.mxu0 %vm132_vm0, %v19195_v29 }
 0x22d   :  { %v3826_v38 = vpop.f32.mrb[160].mxu0  ;;  %6334 = vmatpush1.bf16.msra.mxu1 %v19317_v48  ;;  %6365 = vmatprep.mubr.bf16.mxu1 %v22050_v22 }
 0x22e   :  { %v3956_v35 = vadd.f32 %v3826_v38, %v3784_v20  ;;  %v3828_v53 = vpop.f32.mrb[161].mxu0  ;;  %17062 = vmatprep.subr.msk.bf16.mxu1 %vm132_vm0, %v19202_v36 }
 0x22f   :  { %v3957_v56 = vadd.f32 %v3828_v53, %v3785_v3  ;;  %v3830_v4 = vpop.f32.mrb[162].mxu0  ;;  %v3867_v32 = vpop.f32.mrb[160].mxu1 }
 0x230   :  { %v3958_v30 = vadd.f32 %v3867_v32, %v3786_v19  ;;  %v3831_v2 = vpop.f32.mrb[163].mxu0  ;;  %v3869_v0 = vpop.f32.mrb[161].mxu1 }
 0x231   :  { %v3959_v40 = vadd.f32 %v3869_v0, %v3787_v6  ;;  %v3871_v59 = vpop.f32.mrb[162].mxu1 }
 0x232   :  { %17057 = vmatmul.mubr.msk.bf16.vlgmr.msra.gmra.mrb[12].mxu0 %vm128_vm1, %v19380_v14  ;;  %v3872_v29 = vpop.f32.mrb[163].mxu1 }
 0x233   :  { %6375 = vmatpush1.bf16.msra.mxu0 %v22050_v22  ;;  %6406 = vmatprep.mubr.bf16.mxu0 %v22050_v22 }
 0x234   :  { %17059 = vmatmul.mubr.msk.bf16.vlgmr.msra.gmra.mrb[12].mxu1 %vm128_vm1, %v19380_v14  ;;  %17064 = vmatprep.subr.msk.bf16.mxu0 %vm132_vm0, %v19214_v25 }
 0x235   :  { %v3908_v48 = vpop.f32.mrb[164].mxu0  ;;  %6416 = vmatpush1.bf16.msra.mxu1 %v19230_v42  ;;  %6447 = vmatprep.mubr.bf16.mxu1 %v22050_v22 }
 0x236   :  { %v3960_v20 = vadd.f32 %v3908_v48, %v3788_v52  ;;  %v3910_v3 = vpop.f32.mrb[165].mxu0  ;;  %17066 = vmatprep.subr.msk.bf16.mxu1 %vm132_vm0, %v19234_v37 }
 0x237   :  { %v3961_v19 = vadd.f32 %v3910_v3, %v3789_v62  ;;  %v3912_v6 = vpop.f32.mrb[166].mxu0  ;;  %v3949_v60 = vpop.f32.mrb[164].mxu1 }
 0x238   :  { %v3962_v23 = vadd.f32 %v3949_v60, %v3790_v17  ;;  %v3913_v13 = vpop.f32.mrb[167].mxu0  ;;  %v17618_v63 = vpop.f32.mrb[165].mxu1 }
 0x239   :  { %v3953_v14 = vpop.f32.mrb[166].mxu1 }
 0x23a   :  { %17061 = vmatmul.mubr.msk.bf16.vlgmr.msra.gmra.mrb[16].mxu0 %vm128_vm1, %v19409_v18  ;;  %v17619_v11 = vpop.f32.mrb[167].mxu1 }
 0x23b   :  { %6457 = vmatpush1.bf16.msra.mxu0 %v19255_v39  ;;  %6488 = vmatprep.mubr.bf16.mxu0 %v22050_v22 }
 0x23c   :  { %17063 = vmatmul.mubr.msk.bf16.vlgmr.msra.gmra.mrb[16].mxu1 %vm128_vm1, %v19409_v18  ;;  %17068 = vmatprep.subr.msk.bf16.mxu0 %vm132_vm0, %v19202_v36 }
 0x23d   :  { %v4069_v52 = vpop.f32.mrb[168].mxu0  ;;  %6498 = vmatpush1.bf16.msra.mxu1 %v19268_v49  ;;  %6529 = vmatprep.mubr.bf16.mxu1 %v22050_v22 }
 0x23e   :  { %v4199_v62 = vadd.f32 %v4069_v52, %v3956_v35  ;;  %v4071_v17 = vpop.f32.mrb[169].mxu0  ;;  %17070 = vmatprep.subr.msk.bf16.mxu1 %vm132_vm0, %v19214_v25 }
 0x23f   :  { %v4200_v1 = vadd.f32 %v4071_v17, %v3957_v56  ;;  %v4073_v27 = vpop.f32.mrb[170].mxu0  ;;  %v4110_v33 = vpop.f32.mrb[168].mxu1 }
 0x240   :  { %v4201_v26 = vadd.f32 %v4110_v33, %v3958_v30  ;;  %v4074_v38 = vpop.f32.mrb[171].mxu0  ;;  %v4112_v53 = vpop.f32.mrb[169].mxu1 }
 0x241   :  { %v4202_v4 = vadd.f32 %v4112_v53, %v3959_v40  ;;  %v4114_v32 = vpop.f32.mrb[170].mxu1 }
 0x242   :  { %17065 = vmatmul.mubr.msk.bf16.vlgmr.msra.gmra.mrb[20].mxu0 %vm128_vm1, %v19409_v18  ;;  %v4115_v36 = vpop.f32.mrb[171].mxu1 }
 0x243   :  { %6539 = vmatpush1.bf16.msra.mxu0 %v19230_v42  ;;  %6570 = vmatprep.mubr.bf16.mxu0 %v22050_v22 }
 0x244   :  { %17067 = vmatmul.mubr.msk.bf16.vlgmr.msra.gmra.mrb[20].mxu1 %vm128_vm1, %v19409_v18  ;;  %17072 = vmatprep.subr.msk.bf16.mxu0 %vm132_vm0, %v19234_v37 }
 0x245   :  { %v4151_v25 = vpop.f32.mrb[172].mxu0  ;;  %6580 = vmatpush1.bf16.msra.mxu1 %v19255_v39  ;;  %6611 = vmatprep.mubr.bf16.mxu1 %v22050_v22 }
 0x246   :  { %v4203_v35 = vadd.f32 %v4151_v25, %v3960_v20  ;;  %v4153_v56 = vpop.f32.mrb[173].mxu0  ;;  %17644 = vmatprep.subr.bf16.mxu1 %v22048_v58 }
 0x247   :  { %v4204_v30 = vadd.f32 %v4153_v56, %v3961_v19  ;;  %v4155_v2 = vpop.f32.mrb[174].mxu0  ;;  %v4192_v42 = vpop.f32.mrb[172].mxu1 }
 0x248   :  { %v4205_v0 = vadd.f32 %v4192_v42, %v3962_v23  ;;  %v4156_v40 = vpop.f32.mrb[175].mxu0  ;;  %v4194_v59 = vpop.f32.mrb[173].mxu1 }
 0x249   :  { %v4206_v18 = vadd.f32 %v4194_v59, %v19728_v44  ;;  %v4196_v29 = vpop.f32.mrb[174].mxu1 }
 0x24a   :  { %17069 = vmatmul.mubr.msk.bf16.vlgmr.msra.gmra.mrb[24].mxu0 %vm128_vm1, %v19438_v12  ;;  %v4197_v37 = vpop.f32.mrb[175].mxu1 }
 0x24b   :  { %6621 = vmatpush1.bf16.msra.mxu0 %v19268_v49  ;;  %6652 = vmatprep.mubr.bf16.mxu0 %v22050_v22 }
 0x24c   :  { %17071 = vmatmul.mubr.msk.bf16.vlgmr.msra.gmra.mrb[24].mxu1 %vm128_vm1, %v19438_v12  ;;  %17075 = vmatprep.subr.msk.bf16.mxu0 %vm132_vm0, %v19568_v34 }
 0x24d   :  { %v4245_v39 = vpop.f32.mrb[176].mxu0  ;;  %17645 = vmatpush3.bf16.msra.mxu1 %v22055_v21  ;;  %17646 = vmatprep.mubr.msk.bf16.mxu1 %vm18310_vm2, %v22048_v58 }
 0x24e   :  { %v4375_v44 = vadd.f32 %v4245_v39, %v4199_v62  ;;  %v4247_v48 = vpop.f32.mrb[177].mxu0  ;;  %17077 = vmatprep.subr.msk.bf16.mxu1 %vm132_vm0, %v19575_v9 }
 0x24f   :  { %v4376_v49 = vadd.f32 %v4247_v48, %v4200_v1  ;;  %v4249_v20 = vpop.f32.mrb[178].mxu0  ;;  %v4286_v3 = vpop.f32.mrb[176].mxu1 }
 0x250   :  { %v4377_v19 = vadd.f32 %v4286_v3, %v4201_v26  ;;  %v4250_v6 = vpop.f32.mrb[179].mxu0  ;;  %v4288_v60 = vpop.f32.mrb[177].mxu1  ;;  %v19846_v3 = vld [vmem:[%s22045_s28 + $0x10] sm:$0xf] }
 0x251   :  { %v4378_v23 = vadd.f32 %v4288_v60, %v4202_v4  ;;  %v4290_v13 = vpop.f32.mrb[178].mxu1 }
 0x252   :  { %17073 = vmatmul.mubr.msk.bf16.vlgmr.msra.gmra.mrb[28].mxu0 %vm128_vm1, %v19438_v12  ;;  %v4291_v21 = vpop.f32.mrb[179].mxu1 }
 0x253   :  { %6711 = vmatpush1.bf16.msra.mxu0 %v22050_v22  ;;  %6742 = vmatprep.mubr.bf16.mxu0 %v22050_v22  ;;  %v7226_v21 = vld [vmem:[%s22042_s26 + $0x28] sm:$0xff] }
 0x254   :  { %17647 = vmatmul.mubr.msk.bf16.vlgmr.msra.gmra.mrb[28].mxu1 %vm128_vm1, %v19438_v12  ;;  %17079 = vmatprep.subr.msk.bf16.mxu0 %vm132_vm0, %v19587_v7 }
 0x255   :  { %v4327_v63 = vpop.f32.mrb[180].mxu0  ;;  %6752 = vmatpush1.bf16.msra.mxu1 %v19598_v61  ;;  %6783 = vmatprep.mubr.bf16.mxu1 %v22050_v22 }
 0x256   :  { %v4379_v14 = vadd.f32 %v4327_v63, %v4203_v35  ;;  %v4329_v11 = vpop.f32.mrb[181].mxu0  ;;  %17081 = vmatprep.subr.msk.bf16.mxu1 %vm132_vm0, %v19602_v15 }
 0x257   :  { %v4380_v52 = vadd.f32 %v4329_v11, %v4204_v30  ;;  %v4331_v62 = vpop.f32.mrb[182].mxu0  ;;  %v4368_v17 = vpop.f32.mrb[180].mxu1 }
 0x258   :  { %v4381_v1 = vadd.f32 %v4368_v17, %v4205_v0  ;;  %v4332_v27 = vpop.f32.mrb[183].mxu0  ;;  %v4370_v33 = vpop.f32.mrb[181].mxu1 }
 0x259   :  { %v19803_v12 = vadd.f32 %v4370_v33, %v4206_v18  ;;  %v4372_v26 = vpop.f32.mrb[182].mxu1  ;;  %v7228_v27 = vcombine.high %v7226_v21, %v7226_v21 }
 0x25a   :  { %17076 = vmatmul.mubr.msk.bf16.vlgmr.msra.gmra.mrb[32].mxu0 %vm128_vm1, %v19478_v5  ;;  %v4373_v38 = vpop.f32.mrb[183].mxu1 }
 0x25b   :  { %6793 = vmatpush1.bf16.msra.mxu0 %v19623_v24  ;;  %6824 = vmatprep.mubr.bf16.mxu0 %v22050_v22 }
 0x25c   :  { %17078 = vmatmul.mubr.msk.bf16.vlgmr.msra.gmra.mrb[32].mxu1 %vm128_vm1, %v19478_v5  ;;  %17083 = vmatprep.subr.msk.bf16.mxu0 %vm132_vm0, %v19590_v57 }
 0x25d   :  { %v4417_v53 = vpop.f32.mrb[184].mxu0  ;;  %6834 = vmatpush1.bf16.msra.mxu1 %v19631_v16  ;;  %6865 = vmatprep.mubr.bf16.mxu1 %v22050_v22 }
 0x25e   :  { %v19815_v4 = vadd.f32 %v4417_v53, %v4375_v44  ;;  %v4419_v32 = vpop.f32.mrb[185].mxu0  ;;  %17085 = vmatprep.subr.msk.bf16.mxu1 %vm132_vm0, %v19612_v43 }
 0x25f   :  { %v19819_v36 = vadd.f32 %v4419_v32, %v4376_v49  ;;  %v4421_v25 = vpop.f32.mrb[186].mxu0  ;;  %v4458_v35 = vpop.f32.mrb[184].mxu1 }
 0x260   :  { %v19821_v56 = vadd.f32 %v4458_v35, %v4377_v19  ;;  %v4422_v30 = vpop.f32.mrb[187].mxu0  ;;  %v4460_v2 = vpop.f32.mrb[185].mxu1  ;;  %v19881_v35 = vld [vmem:[%s22045_s28 + $0x14] sm:$0xf] }
 0x261   :  { %v19823_v42 = vadd.f32 %v4460_v2, %v4378_v23  ;;  %v4462_v0 = vpop.f32.mrb[186].mxu1  ;;  %22058 = vst [vmem:[#allocation9_spill] sm:$0xff] %v19881_v35  ;;  %v7242_v30 = vrot.slane %v7228_v27, %v18435_v8 }
 0x262   :  { %17080 = vmatmul.mubr.msk.bf16.vlgmr.msra.gmra.mrb[36].mxu0 %vm128_vm1, %v19478_v5  ;;  %v4463_v40 = vpop.f32.mrb[187].mxu1 }
 0x263   :  { %6883 = vmatpush1.bf16.msra.mxu0 %v19645_v47  ;;  %6914 = vmatprep.mubr.bf16.mxu0 %v22050_v22 }
 0x264   :  { %17082 = vmatmul.mubr.msk.bf16.vlgmr.msra.gmra.mrb[36].mxu1 %vm128_vm1, %v19478_v5  ;;  %17087 = vmatprep.subr.msk.bf16.mxu0 %vm132_vm0, %v19619_v41 }
 0x265   :  { %v4499_v59 = vpop.f32.mrb[188].mxu0  ;;  %6924 = vmatpush1.bf16.msra.mxu1 %v19651_v46  ;;  %6955 = vmatprep.mubr.bf16.mxu1 %v22050_v22 }
 0x266   :  { %v19835_v18 = vadd.f32 %v4499_v59, %v4379_v14  ;;  %v4501_v29 = vpop.f32.mrb[189].mxu0  ;;  %17089 = vmatprep.subr.msk.bf16.mxu1 %vm132_vm0, %v19655_v51 }
 0x267   :  { %v19839_v37 = vadd.f32 %v4501_v29, %v4380_v52  ;;  %v4503_v39 = vpop.f32.mrb[190].mxu0  ;;  %v4540_v44 = vpop.f32.mrb[188].mxu1  ;;  %v7235_v52 = vrot.slane %v7226_v21, %v18435_v8 }
 0x268   :  { %v19841_v48 = vadd.f32 %v4540_v44, %v4381_v1  ;;  %v4504_v5 = vpop.f32.mrb[191].mxu0  ;;  %v17624_v49 = vpop.f32.mrb[189].mxu1  ;;  %v19900_v44 = vrot.slane %v7242_v30, %v18435_v8 }
 0x269   :  { %v4544_v20 = vpop.f32.mrb[190].mxu1  ;;  %v19876_v33 = vrot.slane %v7235_v52, %v18435_v8  ;;  %v7243_v2 = vcombine.high %v7235_v52, %v7235_v52 }
 0x26a   :  { %17084 = vmatmul.mubr.msk.bf16.vlgmr.msra.gmra.mrb[40].mxu0 %vm128_vm1, %v19846_v3  ;;  %v17625_v19 = vpop.f32.mrb[191].mxu1 }
 0x26b   :  { %6965 = vmatpush1.bf16.msra.mxu0 %v19669_v55  ;;  %6996 = vmatprep.mubr.bf16.mxu0 %v22050_v22  ;;  %v19888_v40 = vcombine.high %v19876_v33, %v19876_v33  ;;  %v19903_v5 = vrot.slane %v7243_v2, %v18435_v8 }
 0x26c   :  { %17086 = vmatmul.mubr.msk.bf16.vlgmr.msra.gmra.mrb[40].mxu1 %vm128_vm1, %v19846_v3  ;;  %17091 = vmatprep.subr.msk.bf16.mxu0 %vm132_vm0, %v19575_v9 }
 0x26d   :  { %v4605_v6 = vpop.f32.mrb[192].mxu0  ;;  %7006 = vmatpush1.bf16.msra.mxu1 %v19675_v50  ;;  %7037 = vmatprep.mubr.bf16.mxu1 %v22050_v22 }
 0x26e   :  { %v4607_v60 = vpop.f32.mrb[193].mxu0  ;;  %17093 = vmatprep.subr.msk.bf16.mxu1 %vm132_vm0, %v19587_v7 }
 0x26f   :  { %v4609_v23 = vpop.f32.mrb[194].mxu0  ;;  %v4646_v13 = vpop.f32.mrb[192].mxu1 }
 0x270   :  { %v4610_v63 = vpop.f32.mrb[195].mxu0  ;;  %v4648_v14 = vpop.f32.mrb[193].mxu1 }
 0x271   :  { %v4650_v11 = vpop.f32.mrb[194].mxu1 }
 0x272   :  { %17088 = vmatmul.mubr.msk.bf16.vlgmr.msra.gmra.mrb[44].mxu0 %vm128_vm1, %v19846_v3  ;;  %v4651_v62 = vpop.f32.mrb[195].mxu1 }
 0x273   :  { %7055 = vmatpush1.bf16.msra.mxu0 %v19598_v61  ;;  %7086 = vmatprep.mubr.bf16.mxu0 %v22050_v22  ;;  %v19911_v62 = vsel %vm132_vm0, %v19903_v5, 0 }
 0x274   :  { %17090 = vmatmul.mubr.msk.bf16.vlgmr.msra.gmra.mrb[44].mxu1 %vm128_vm1, %v19846_v3  ;;  %17095 = vmatprep.subr.msk.bf16.mxu0 %vm132_vm0, %v19602_v15 }
 0x275   :  { %v4687_v17 = vpop.f32.mrb[196].mxu0  ;;  %7096 = vmatpush1.bf16.msra.mxu1 %v19623_v24  ;;  %7127 = vmatprep.mubr.bf16.mxu1 %v22050_v22 }
 0x276   :  { %v4689_v1 = vpop.f32.mrb[197].mxu0  ;;  %17650 = vmatprep.subr.bf16.mxu1 %v22048_v58 }
 0x277   :  { %v4691_v26 = vpop.f32.mrb[198].mxu0  ;;  %v4728_v38 = vpop.f32.mrb[196].mxu1 }
 0x278   :  { %v4692_v53 = vpop.f32.mrb[199].mxu0  ;;  %v4730_v32 = vpop.f32.mrb[197].mxu1  ;;  %v19915_v26 = vcombine.high %v19900_v44, %v19900_v44 }
 0x279   :  { %v4732_v25 = vpop.f32.mrb[198].mxu1 }
 0x27a   :  { %17092 = vmatmul.mubr.msk.bf16.vlgmr.msra.gmra.mrb[48].mxu0 %vm128_vm1, %v19881_v35  ;;  %v4733_v0 = vpop.f32.mrb[199].mxu1 }
 0x27b   :  { %7137 = vmatpush1.bf16.msra.mxu0 %v19631_v16  ;;  %7168 = vmatprep.mubr.bf16.mxu0 %v22050_v22 }
 0x27c   :  { %17094 = vmatmul.mubr.msk.bf16.vlgmr.msra.gmra.mrb[48].mxu1 %vm128_vm1, %v19881_v35  ;;  %17098 = vmatprep.subr.msk.bf16.mxu0 %vm132_vm0, %v19876_v33 }
 0x27d   :  { %v4769_v59 = vpop.f32.mrb[200].mxu0  ;;  %17651 = vmatpush3.bf16.msra.mxu1 %v19703_v28  ;;  %17652 = vmatprep.mubr.msk.bf16.mxu1 %vm18310_vm2, %v22048_v58 }
 0x27e   :  { %v4770_v29 = vadd.f32 %v4769_v59, %v4605_v6  ;;  %v4771_v39 = vpop.f32.mrb[201].mxu0  ;;  %17100 = vmatprep.subr.msk.bf16.mxu1 %vm132_vm0, %v19888_v40  ;;  %v7244_v6 = vcombine.high %v7242_v30, %v7242_v30 }
 0x27f   :  { %v4772_v49 = vadd.f32 %v4771_v39, %v4607_v60  ;;  %v4773_v20 = vpop.f32.mrb[202].mxu0  ;;  %v4810_v19 = vpop.f32.mrb[200].mxu1  ;;  %v19925_v60 = vcombine.high %v19903_v5, %v19903_v5 }
 0x280   :  { %v4774_v23 = vpop.f32.mrb[203].mxu0  ;;  %v4811_v21 = vadd.f32 %v4810_v19, %v4646_v13  ;;  %v4812_v63 = vpop.f32.mrb[201].mxu1  ;;  %v19932_v25 = vrot.slane %v7244_v6, %v18435_v8 }
 0x281   :  { %v4813_v11 = vadd.f32 %v4812_v63, %v4648_v14  ;;  %v4814_v52 = vpop.f32.mrb[202].mxu1  ;;  %v19936_v39 = vsel %vm132_vm0, %v19925_v60, 0  ;;  %v19943_v63 = vld [vmem:[%s22045_s28 + $0x18] sm:$0xf] }
 0x282   :  { %17096 = vmatmul.mubr.msk.bf16.vlgmr.msra.gmra.mrb[52].mxu0 %vm128_vm1, %v19881_v35  ;;  %v4815_v27 = vpop.f32.mrb[203].mxu1  ;;  %22059 = vst [vmem:[#allocation7_spill] sm:$0xff] %v19943_v63  ;;  %v19949_v52 = vsel %vm132_vm0, %v19932_v25, 0 }
 0x283   :  { %7298 = vmatpush1.bf16.msra.mxu0 %v22050_v22  ;;  %7329 = vmatprep.mubr.bf16.mxu0 %v22050_v22 }
 0x284   :  { %17653 = vmatmul.mubr.msk.bf16.vlgmr.msra.gmra.mrb[52].mxu1 %vm128_vm1, %v19881_v35  ;;  %17102 = vmatprep.subr.msk.bf16.mxu0 %vm132_vm0, %v19900_v44 }
 0x285   :  { %v4851_v13 = vpop.f32.mrb[204].mxu0  ;;  %7339 = vmatpush1.bf16.msra.mxu1 %v19911_v62  ;;  %7370 = vmatprep.mubr.bf16.mxu1 %v22050_v22 }
 0x286   :  { %v4852_v14 = vadd.f32 %v4851_v13, %v4687_v17  ;;  %v4853_v53 = vpop.f32.mrb[205].mxu0  ;;  %17104 = vmatprep.subr.msk.bf16.mxu1 %vm132_vm0, %v19915_v26 }
 0x287   :  { %v4854_v30 = vadd.f32 %v4853_v53, %v4689_v1  ;;  %v4855_v2 = vpop.f32.mrb[206].mxu0  ;;  %v4892_v0 = vpop.f32.mrb[204].mxu1 }
 0x288   :  { %v4856_v59 = vpop.f32.mrb[207].mxu0  ;;  %v4893_v20 = vadd.f32 %v4892_v0, %v4728_v38  ;;  %v4894_v19 = vpop.f32.mrb[205].mxu1 }
 0x289   :  { %v19938_v23 = vadd.f32 %v4894_v19, %v4730_v32  ;;  %v4896_v17 = vpop.f32.mrb[206].mxu1  ;;  %v19963_v19 = vsel %vm132_vm0, %v19876_v33, 0 }
 0x28a   :  { %17099 = vmatmul.mubr.msk.bf16.vlgmr.msra.gmra.mrb[56].mxu0 %vm128_vm1, %v19943_v63  ;;  %v4897_v1 = vpop.f32.mrb[207].mxu1 }
 0x28b   :  { %7380 = vmatpush1.bf16.msra.mxu0 %v19936_v39  ;;  %7411 = vmatprep.mubr.bf16.mxu0 %v22050_v22 }
 0x28c   :  { %17101 = vmatmul.mubr.msk.bf16.vlgmr.msra.gmra.mrb[56].mxu1 %vm128_vm1, %v19943_v63  ;;  %17106 = vmatprep.subr.msk.bf16.mxu0 %vm132_vm0, %v19903_v5 }
 0x28d   :  { %v4933_v38 = vpop.f32.mrb[208].mxu0  ;;  %7421 = vmatpush1.bf16.msra.mxu1 %v19949_v52  ;;  %7452 = vmatprep.mubr.bf16.mxu1 %v22050_v22 }
 0x28e   :  { %v5063_v32 = vadd.f32 %v4933_v38, %v4770_v29  ;;  %v4935_v6 = vpop.f32.mrb[209].mxu0  ;;  %17108 = vmatprep.subr.msk.bf16.mxu1 %vm132_vm0, %v19925_v60  ;;  %v19969_v38 = vsel %vm132_vm0, %v19888_v40, 0 }
 0x28f   :  { %v5064_v27 = vadd.f32 %v4935_v6, %v4772_v49  ;;  %v4937_v13 = vpop.f32.mrb[210].mxu0  ;;  %v4974_v53 = vpop.f32.mrb[208].mxu1  ;;  %v19973_v49 = vcombine.high %v19932_v25, %v19932_v25 }
 0x290   :  { %v4938_v2 = vpop.f32.mrb[211].mxu0  ;;  %v5065_v0 = vadd.f32 %v4974_v53, %v4811_v21  ;;  %v4976_v59 = vpop.f32.mrb[209].mxu1 }
 0x291   :  { %v5066_v17 = vadd.f32 %v4976_v59, %v4813_v11  ;;  %v4978_v1 = vpop.f32.mrb[210].mxu1 }
 0x292   :  { %17103 = vmatmul.mubr.msk.bf16.vlgmr.msra.gmra.mrb[60].mxu0 %vm128_vm1, %v19943_v63  ;;  %v4979_v29 = vpop.f32.mrb[211].mxu1 }
 0x293   :  { %7474 = vmatpush1.bf16.msra.mxu0 %v19963_v19  ;;  %7505 = vmatprep.mubr.bf16.mxu0 %v22050_v22  ;;  %v19987_v29 = vsel %vm132_vm0, %v19900_v44, 0 }
 0x294   :  { %17105 = vmatmul.mubr.msk.bf16.vlgmr.msra.gmra.mrb[60].mxu1 %vm128_vm1, %v19943_v63  ;;  %17110 = vmatprep.subr.msk.bf16.mxu0 %vm132_vm0, %v19932_v25 }
 0x295   :  { %v5015_v21 = vpop.f32.mrb[212].mxu0  ;;  %7515 = vmatpush1.bf16.msra.mxu1 %v19969_v38  ;;  %7546 = vmatprep.mubr.bf16.mxu1 %v22050_v22 }
 0x296   :  { %v5067_v11 = vadd.f32 %v5015_v21, %v4852_v14  ;;  %v5017_v6 = vpop.f32.mrb[213].mxu0  ;;  %17112 = vmatprep.subr.msk.bf16.mxu1 %vm132_vm0, %v19973_v49 }
 0x297   :  { %v5068_v13 = vadd.f32 %v5017_v6, %v4854_v30  ;;  %v5019_v53 = vpop.f32.mrb[214].mxu0  ;;  %v5056_v2 = vpop.f32.mrb[212].mxu1  ;;  %v19998_v30 = vsel %vm132_vm0, %v19915_v26, 0 }
 0x298   :  { %v5020_v59 = vpop.f32.mrb[215].mxu0  ;;  %v5069_v1 = vadd.f32 %v5056_v2, %v4893_v20  ;;  %v17630_v54 = vpop.f32.mrb[213].mxu1 }
 0x299   :  { %v5060_v10 = vpop.f32.mrb[214].mxu1 }
 0x29a   :  { %17107 = vmatmul.mubr.msk.bf16.vlgmr.msra.gmra.mrb[64].mxu0 %vm128_vm1, %v19992_v31  ;;  %v17631_v14 = vpop.f32.mrb[215].mxu1 }
 0x29b   :  { %7556 = vmatpush1.bf16.msra.mxu0 %v19987_v29  ;;  %7587 = vmatprep.mubr.bf16.mxu0 %v22050_v22 }
 0x29c   :  { %17109 = vmatmul.mubr.msk.bf16.vlgmr.msra.gmra.mrb[64].mxu1 %vm128_vm1, %v19992_v31  ;;  %17114 = vmatprep.subr.msk.bf16.mxu0 %vm132_vm0, %v19888_v40 }
 0x29d   :  { %v5105_v54 = vpop.f32.mrb[216].mxu0  ;;  %7597 = vmatpush1.bf16.msra.mxu1 %v19998_v30  ;;  %7628 = vmatprep.mubr.bf16.mxu1 %v22050_v22 }
 0x29e   :  { %v5235_v10 = vadd.f32 %v5105_v54, %v5063_v32  ;;  %v5107_v20 = vpop.f32.mrb[217].mxu0  ;;  %17116 = vmatprep.subr.msk.bf16.mxu1 %vm132_vm0, %v19900_v44 }
 0x29f   :  { %v5236_v21 = vadd.f32 %v5107_v20, %v5064_v27  ;;  %v5109_v6 = vpop.f32.mrb[218].mxu0  ;;  %v5146_v53 = vpop.f32.mrb[216].mxu1 }
 0x2a0   :  { %v5237_v2 = vadd.f32 %v5146_v53, %v5065_v0  ;;  %v5110_v59 = vpop.f32.mrb[219].mxu0  ;;  %v5148_v14 = vpop.f32.mrb[217].mxu1 }
 0x2a1   :  { %v5238_v63 = vadd.f32 %v5148_v14, %v5066_v17  ;;  %v5150_v35 = vpop.f32.mrb[218].mxu1  ;;  %v20025_v14 = vld [vmem:[%s22045_s28 + $0x20] sm:$0xf] }
 0x2a2   :  { %17111 = vmatmul.mubr.msk.bf16.vlgmr.msra.gmra.mrb[68].mxu0 %vm128_vm1, %v19992_v31  ;;  %v5151_v8 = vpop.f32.mrb[219].mxu1 }
 0x2a3   :  { %7646 = vmatpush1.bf16.msra.mxu0 %v19911_v62  ;;  %7677 = vmatprep.mubr.bf16.mxu0 %v22050_v22 }
 0x2a4   :  { %17113 = vmatmul.mubr.msk.bf16.vlgmr.msra.gmra.mrb[68].mxu1 %vm128_vm1, %v19992_v31  ;;  %17118 = vmatprep.subr.msk.bf16.mxu0 %vm132_vm0, %v19915_v26 }
 0x2a5   :  { %v5187_v32 = vpop.f32.mrb[220].mxu0  ;;  %7687 = vmatpush1.bf16.msra.mxu1 %v19936_v39  ;;  %7718 = vmatprep.mubr.bf16.mxu1 %v22050_v22 }
 0x2a6   :  { %v5239_v35 = vadd.f32 %v5187_v32, %v5067_v11  ;;  %v5189_v27 = vpop.f32.mrb[221].mxu0  ;;  %17656 = vmatprep.subr.bf16.mxu1 %v22048_v58 }
 0x2a7   :  { %v5240_v8 = vadd.f32 %v5189_v27, %v5068_v13  ;;  %v5191_v0 = vpop.f32.mrb[222].mxu0  ;;  %v5228_v17 = vpop.f32.mrb[220].mxu1  ;;  %v20031_v13 = vsel %vm132_vm0, %v19973_v49, 0 }
 0x2a8   :  { %v5241_v54 = vadd.f32 %v5228_v17, %v5069_v1  ;;  %v5192_v20 = vpop.f32.mrb[223].mxu0  ;;  %v5230_v6 = vpop.f32.mrb[221].mxu1 }
 0x2a9   :  { %v5242_v53 = vadd.f32 %v5230_v6, %v19938_v23  ;;  %v5232_v59 = vpop.f32.mrb[222].mxu1 }
 0x2aa   :  { %17115 = vmatmul.mubr.msk.bf16.vlgmr.msra.gmra.mrb[72].mxu0 %vm128_vm1, %v20025_v14  ;;  %v5233_v11 = vpop.f32.mrb[223].mxu1 }
 0x2ab   :  { %7728 = vmatpush1.bf16.msra.mxu0 %v19949_v52  ;;  %7759 = vmatprep.mubr.bf16.mxu0 %v22050_v22 }
 0x2ac   :  { %17117 = vmatmul.mubr.msk.bf16.vlgmr.msra.gmra.mrb[72].mxu1 %vm128_vm1, %v20025_v14  ;;  %17121 = vmatprep.subr.msk.bf16.mxu0 %vm132_vm0, %v19590_v57 }
 0x2ad   :  { %v5277_v23 = vpop.f32.mrb[224].mxu0  ;;  %17657 = vmatpush3.bf16.msra.mxu1 %v20031_v13  ;;  %17658 = vmatprep.mubr.msk.bf16.mxu1 %vm18310_vm2, %v22048_v58 }
 0x2ae   :  { %v5407_v1 = vadd.f32 %v5277_v23, %v5235_v10  ;;  %v5279_v32 = vpop.f32.mrb[225].mxu0  ;;  %17123 = vmatprep.subr.msk.bf16.mxu1 %vm132_vm0, %v19612_v43 }
 0x2af   :  { %v5408_v27 = vadd.f32 %v5279_v32, %v5236_v21  ;;  %v5281_v0 = vpop.f32.mrb[226].mxu0  ;;  %v5318_v17 = vpop.f32.mrb[224].mxu1 }
 0x2b0   :  { %v5409_v20 = vadd.f32 %v5318_v17, %v5237_v2  ;;  %v5282_v6 = vpop.f32.mrb[227].mxu0  ;;  %v5320_v59 = vpop.f32.mrb[225].mxu1 }
 0x2b1   :  { %v5410_v11 = vadd.f32 %v5320_v59, %v5238_v63  ;;  %v5322_v31 = vpop.f32.mrb[226].mxu1 }
 0x2b2   :  { %17119 = vmatmul.mubr.msk.bf16.vlgmr.msra.gmra.mrb[76].mxu0 %vm128_vm1, %v20025_v14  ;;  %v5323_v57 = vpop.f32.mrb[227].mxu1 }
 0x2b3   :  { %7834 = vmatpush1.bf16.msra.mxu0 %v19645_v47  ;;  %7865 = vmatprep.mubr.bf16.mxu0 %v22050_v22 }
 0x2b4   :  { %17659 = vmatmul.mubr.msk.bf16.vlgmr.msra.gmra.mrb[76].mxu1 %vm128_vm1, %v20025_v14  ;;  %17125 = vmatprep.subr.msk.bf16.mxu0 %vm132_vm0, %v19619_v41  ;;  %v20061_v41 = vld [vmem:[%s22045_s28 + $0x4] sm:$0xf] }
 0x2b5   :  { %v5359_v43 = vpop.f32.mrb[228].mxu0  ;;  %7875 = vmatpush1.bf16.msra.mxu1 %v19651_v46  ;;  %7906 = vmatprep.mubr.bf16.mxu1 %v22050_v22 }
 0x2b6   :  { %v5411_v31 = vadd.f32 %v5359_v43, %v5239_v35  ;;  %v5361_v63 = vpop.f32.mrb[229].mxu0  ;;  %17127 = vmatprep.subr.msk.bf16.mxu1 %vm132_vm0, %v19655_v51 }
 0x2b7   :  { %v5412_v10 = vadd.f32 %v5361_v63, %v5240_v8  ;;  %v5363_v47 = vpop.f32.mrb[230].mxu0  ;;  %v5400_v21 = vpop.f32.mrb[228].mxu1 }
 0x2b8   :  { %v5413_v2 = vadd.f32 %v5400_v21, %v5241_v54  ;;  %v5364_v23 = vpop.f32.mrb[231].mxu0  ;;  %v5402_v32 = vpop.f32.mrb[229].mxu1 }
 0x2b9   :  { %v20056_v0 = vadd.f32 %v5402_v32, %v5242_v53  ;;  %v5404_v17 = vpop.f32.mrb[230].mxu1 }
 0x2ba   :  { %17122 = vmatmul.mubr.msk.bf16.vlgmr.msra.gmra.mrb[80].mxu0 %vm128_vm1, %v20061_v41  ;;  %v5405_v46 = vpop.f32.mrb[231].mxu1 }
 0x2bb   :  { %7916 = vmatpush1.bf16.msra.mxu0 %v19669_v55  ;;  %7947 = vmatprep.mubr.bf16.mxu0 %v22050_v22  ;;  %v20090_v46 = vld [vmem:[%s22045_s28] sm:$0xf] }
 0x2bc   :  { %17124 = vmatmul.mubr.msk.bf16.vlgmr.msra.gmra.mrb[80].mxu1 %vm128_vm1, %v20061_v41  ;;  %17129 = vmatprep.subr.msk.bf16.mxu0 %vm132_vm0, %v19568_v34 }
 0x2bd   :  { %v5449_v51 = vpop.f32.mrb[232].mxu0  ;;  %7957 = vmatpush1.bf16.msra.mxu1 %v19675_v50  ;;  %7988 = vmatprep.mubr.bf16.mxu1 %v22050_v22 }
 0x2be   :  { %v5579_v35 = vadd.f32 %v5449_v51, %v5407_v1  ;;  %v5451_v8 = vpop.f32.mrb[233].mxu0  ;;  %17131 = vmatprep.subr.msk.bf16.mxu1 %vm132_vm0, %v19575_v9 }
 0x2bf   :  { %v5580_v54 = vadd.f32 %v5451_v8, %v5408_v27  ;;  %v5453_v55 = vpop.f32.mrb[234].mxu0  ;;  %v5490_v53 = vpop.f32.mrb[232].mxu1 }
 0x2c0   :  { %v5581_v6 = vadd.f32 %v5490_v53, %v5409_v20  ;;  %v5454_v59 = vpop.f32.mrb[235].mxu0  ;;  %v5492_v57 = vpop.f32.mrb[233].mxu1 }
 0x2c1   :  { %v5582_v43 = vadd.f32 %v5492_v57, %v5410_v11  ;;  %v5494_v63 = vpop.f32.mrb[234].mxu1 }
 0x2c2   :  { %17126 = vmatmul.mubr.msk.bf16.vlgmr.msra.gmra.mrb[84].mxu0 %vm128_vm1, %v20061_v41  ;;  %v5495_v34 = vpop.f32.mrb[235].mxu1 }
 0x2c3   :  { %7998 = vmatpush1.bf16.msra.mxu0 %v22050_v22  ;;  %8029 = vmatprep.mubr.bf16.mxu0 %v22050_v22 }
 0x2c4   :  { %17128 = vmatmul.mubr.msk.bf16.vlgmr.msra.gmra.mrb[84].mxu1 %vm128_vm1, %v20061_v41  ;;  %17133 = vmatprep.subr.msk.bf16.mxu0 %vm132_vm0, %v19587_v7 }
 0x2c5   :  { %v5531_v50 = vpop.f32.mrb[236].mxu0  ;;  %8039 = vmatpush1.bf16.msra.mxu1 %v19598_v61  ;;  %8070 = vmatprep.mubr.bf16.mxu1 %v22050_v22 }
 0x2c6   :  { %v5583_v1 = vadd.f32 %v5531_v50, %v5411_v31  ;;  %v5533_v27 = vpop.f32.mrb[237].mxu0  ;;  %17135 = vmatprep.subr.msk.bf16.mxu1 %vm132_vm0, %v19602_v15 }
 0x2c7   :  { %v5584_v20 = vadd.f32 %v5533_v27, %v5412_v10  ;;  %v5535_v11 = vpop.f32.mrb[238].mxu0  ;;  %v5572_v47 = vpop.f32.mrb[236].mxu1 }
 0x2c8   :  { %v5585_v21 = vadd.f32 %v5572_v47, %v5413_v2  ;;  %v5536_v23 = vpop.f32.mrb[239].mxu0  ;;  %v17636_v32 = vpop.f32.mrb[237].mxu1 }
 0x2c9   :  { %v5576_v17 = vpop.f32.mrb[238].mxu1 }
 0x2ca   :  { %17130 = vmatmul.mubr.msk.bf16.vlgmr.msra.gmra.mrb[88].mxu0 %vm128_vm1, %v20090_v46  ;;  %v17637_v31 = vpop.f32.mrb[239].mxu1 }
 0x2cb   :  { %8080 = vmatpush1.bf16.msra.mxu0 %v19623_v24  ;;  %8111 = vmatprep.mubr.bf16.mxu0 %v22050_v22 }
 0x2cc   :  { %17132 = vmatmul.mubr.msk.bf16.vlgmr.msra.gmra.mrb[88].mxu1 %vm128_vm1, %v20090_v46  ;;  %17137 = vmatprep.subr.msk.bf16.mxu0 %vm132_vm0, %v19575_v9 }
 0x2cd   :  { %v5692_v10 = vpop.f32.mrb[240].mxu0  ;;  %8121 = vmatpush1.bf16.msra.mxu1 %v19631_v16  ;;  %8152 = vmatprep.mubr.bf16.mxu1 %v22050_v22 }
 0x2ce   :  { %v5822_v2 = vadd.f32 %v5692_v10, %v5579_v35  ;;  %v5694_v51 = vpop.f32.mrb[241].mxu0  ;;  %17139 = vmatprep.subr.msk.bf16.mxu1 %vm132_vm0, %v19587_v7 }
 0x2cf   :  { %v5823_v8 = vadd.f32 %v5694_v51, %v5580_v54  ;;  %v5696_v55 = vpop.f32.mrb[242].mxu0  ;;  %v5733_v53 = vpop.f32.mrb[240].mxu1 }
 0x2d0   :  { %v5824_v59 = vadd.f32 %v5733_v53, %v5581_v6  ;;  %v5697_v57 = vpop.f32.mrb[243].mxu0  ;;  %v5735_v63 = vpop.f32.mrb[241].mxu1 }
 0x2d1   :  { %v5825_v34 = vadd.f32 %v5735_v63, %v5582_v43  ;;  %v5737_v50 = vpop.f32.mrb[242].mxu1 }
 0x2d2   :  { %17134 = vmatmul.mubr.msk.bf16.vlgmr.msra.gmra.mrb[92].mxu0 %vm128_vm1, %v20090_v46  ;;  %v5738_v9 = vpop.f32.mrb[243].mxu1 }
 0x2d3   :  { %8162 = vmatpush1.bf16.msra.mxu0 %v19598_v61  ;;  %8193 = vmatprep.mubr.bf16.mxu0 %v22050_v22 }
 0x2d4   :  { %17136 = vmatmul.mubr.msk.bf16.vlgmr.msra.gmra.mrb[92].mxu1 %vm128_vm1, %v20090_v46  ;;  %17141 = vmatprep.subr.msk.bf16.mxu0 %vm132_vm0, %v19602_v15  ;;  %v20119_v15 = vld [vmem:[%s22045_s28 + $0x8] sm:$0xf] }
 0x2d5   :  { %v5774_v7 = vpop.f32.mrb[244].mxu0  ;;  %8203 = vmatpush1.bf16.msra.mxu1 %v19623_v24  ;;  %8234 = vmatprep.mubr.bf16.mxu1 %v22050_v22 }
 0x2d6   :  { %v5826_v35 = vadd.f32 %v5774_v7, %v5583_v1  ;;  %v5776_v54 = vpop.f32.mrb[245].mxu0  ;;  %17662 = vmatprep.subr.bf16.mxu1 %v22048_v58 }
 0x2d7   :  { %v5827_v6 = vadd.f32 %v5776_v54, %v5584_v20  ;;  %v5778_v43 = vpop.f32.mrb[246].mxu0  ;;  %v5815_v61 = vpop.f32.mrb[244].mxu1  ;;  %v4562_v54 = vadd.f32 %v19803_v12, %v19463_v45 }
 0x2d8   :  { %v5828_v27 = vadd.f32 %v5815_v61, %v5585_v21  ;;  %v5779_v11 = vpop.f32.mrb[247].mxu0  ;;  %v5817_v47 = vpop.f32.mrb[245].mxu1 }
 0x2d9   :  { %v5829_v23 = vadd.f32 %v5817_v47, %v20056_v0  ;;  %v5819_v32 = vpop.f32.mrb[246].mxu1  ;;  %v4570_v12 = vmax.f32 %v4562_v54, 0.0 }
 0x2da   :  { %17138 = vmatmul.mubr.msk.bf16.vlgmr.msra.gmra.mrb[96].mxu0 %vm128_vm1, %v20119_v15  ;;  %v5820_v24 = vpop.f32.mrb[247].mxu1 }
 0x2db   :  { %8244 = vmatpush1.bf16.msra.mxu0 %v19631_v16  ;;  %8275 = vmatprep.mubr.bf16.mxu0 %v22050_v22 }
 0x2dc   :  { %17140 = vmatmul.mubr.msk.bf16.vlgmr.msra.gmra.mrb[96].mxu1 %vm128_vm1, %v20119_v15  ;;  %17144 = vmatprep.subr.msk.bf16.mxu0 %vm132_vm0, %v19876_v33 }
 0x2dd   :  { %v5868_v0 = vpop.f32.mrb[248].mxu0  ;;  %17663 = vmatpush3.bf16.msra.mxu1 %v19703_v28  ;;  %17664 = vmatprep.mubr.msk.bf16.mxu1 %vm18310_vm2, %v22048_v58 }
 0x2de   :  { %v5998_v1 = vadd.f32 %v5868_v0, %v5822_v2  ;;  %v5870_v20 = vpop.f32.mrb[249].mxu0  ;;  %17146 = vmatprep.subr.msk.bf16.mxu1 %vm132_vm0, %v19888_v40  ;;  %v4556_v0 = vadd.f32 %v19819_v36, %v19463_v45 }
 0x2df   :  { %v5999_v16 = vadd.f32 %v5870_v20, %v5823_v8  ;;  %v5872_v21 = vpop.f32.mrb[250].mxu0  ;;  %v5909_v17 = vpop.f32.mrb[248].mxu1 }
 0x2e0   :  { %v6000_v31 = vadd.f32 %v5909_v17, %v5824_v59  ;;  %v5873_v10 = vpop.f32.mrb[251].mxu0  ;;  %v5911_v51 = vpop.f32.mrb[249].mxu1 }
 0x2e1   :  { %v6001_v55 = vadd.f32 %v5911_v51, %v5825_v34  ;;  %v5913_v53 = vpop.f32.mrb[250].mxu1  ;;  %v4557_v51 = vadd.f32 %v19821_v56, %v19463_v45 }
 0x2e2   :  { %17142 = vmatmul.mubr.msk.bf16.vlgmr.msra.gmra.mrb[100].mxu0 %vm128_vm1, %v20119_v15  ;;  %v5914_v28 = vpop.f32.mrb[251].mxu1 }
 0x2e3   :  { %8334 = vmatpush1.bf16.msra.mxu0 %v22050_v22  ;;  %8365 = vmatprep.mubr.bf16.mxu0 %v22050_v22 }
 0x2e4   :  { %17665 = vmatmul.mubr.msk.bf16.vlgmr.msra.gmra.mrb[100].mxu1 %vm128_vm1, %v20119_v15  ;;  %17148 = vmatprep.subr.msk.bf16.mxu0 %vm132_vm0, %v19900_v44 }
 0x2e5   :  { %v5950_v2 = vpop.f32.mrb[252].mxu0  ;;  %8375 = vmatpush1.bf16.msra.mxu1 %v19911_v62  ;;  %8406 = vmatprep.mubr.bf16.mxu1 %v22050_v22 }
 0x2e6   :  { %v20144_v8 = vadd.f32 %v5950_v2, %v5826_v35  ;;  %v5952_v59 = vpop.f32.mrb[253].mxu0  ;;  %17150 = vmatprep.subr.msk.bf16.mxu1 %vm132_vm0, %v19915_v26  ;;  %v20157_v35 = vld [vmem:[%s22045_s28 + $0xc] sm:$0xf]  ;;  %v4558_v2 = vadd.f32 %v19823_v42, %v19463_v45  ;;  %v4565_v42 = vmax.f32 %v4557_v51, 0.0 }
 0x2e7   :  { %v20148_v57 = vadd.f32 %v5952_v59, %v5827_v6  ;;  %v5954_v63 = vpop.f32.mrb[254].mxu0  ;;  %v5991_v34 = vpop.f32.mrb[252].mxu1 }
 0x2e8   :  { %v20150_v50 = vadd.f32 %v5991_v34, %v5828_v27  ;;  %v5955_v9 = vpop.f32.mrb[255].mxu0  ;;  %v5993_v7 = vpop.f32.mrb[253].mxu1 }
 0x2e9   :  { %v6005_v43 = vadd.f32 %v5993_v7, %v5829_v23  ;;  %v5995_v61 = vpop.f32.mrb[254].mxu1  ;;  %v4555_v23 = vadd.f32 %v19815_v4, %v19463_v45  ;;  %v4564_v7 = vmax.f32 %v4556_v0, 0.0 }
 0x2ea   :  { %17145 = vmatmul.mubr.msk.bf16.vlgmr.msra.gmra.mrb[104].mxu0 %vm128_vm1, %v20157_v35  ;;  %v5996_v6 = vpop.f32.mrb[255].mxu1  ;;  %v4566_v61 = vmax.f32 %v4558_v2, 0.0 }
 0x2eb   :  { %v6185_v11 = vadd.f32 %v6005_v43, %v19463_v45  ;;  %8416 = vmatpush1.bf16.msra.mxu0 %v19936_v39  ;;  %8447 = vmatprep.mubr.bf16.mxu0 %v22050_v22  ;;  %v4563_v34 = vmax.f32 %v4555_v23, 0.0 }
 0x2ec   :  { %17147 = vmatmul.mubr.msk.bf16.vlgmr.msra.gmra.mrb[104].mxu1 %vm128_vm1, %v20157_v35  ;;  %17152 = vmatprep.subr.msk.bf16.mxu0 %vm132_vm0, %v19903_v5 }
 0x2ed   :  { %v6193_v27 = vmax.f32 %v6185_v11, 0.0  ;;  %v6040_v47 = vpop.f32.mrb[0].mxu0  ;;  %8457 = vmatpush1.bf16.msra.mxu1 %v19949_v52  ;;  %8488 = vmatprep.mubr.bf16.mxu1 %v22050_v22 }
 0x2ee   :  { %v6170_v32 = vadd.f32 %v6040_v47, %v5998_v1  ;;  %v6042_v24 = vpop.f32.mrb[1].mxu0  ;;  %17154 = vmatprep.subr.msk.bf16.mxu1 %vm132_vm0, %v19925_v60 }
 0x2ef   :  { %v20176_v20 = vmax.f32 %v4570_v12, %v6193_v27  ;;  %v6171_v21 = vadd.f32 %v6042_v24, %v5999_v16  ;;  %v6044_v17 = vpop.f32.mrb[2].mxu0  ;;  %v6081_v10 = vpop.f32.mrb[0].mxu1  ;;  %v4559_v27 = vadd.f32 %v19835_v18, %v19463_v45  ;;  %v4560_v24 = vadd.f32 %v19839_v37, %v19463_v45 }
 0x2f0   :  { %v6178_v53 = vadd.f32 %v6170_v32, %v19463_v45  ;;  %v6172_v28 = vadd.f32 %v6081_v10, %v6000_v31  ;;  %v6045_v4 = vpop.f32.mrb[3].mxu0  ;;  %v6083_v1 = vpop.f32.mrb[1].mxu1  ;;  %v4561_v18 = vadd.f32 %v19841_v48, %v19463_v45 }
 0x2f1   :  { %v6179_v59 = vadd.f32 %v6171_v21, %v19463_v45  ;;  %v6173_v63 = vadd.f32 %v6083_v1, %v6001_v55  ;;  %v6085_v36 = vpop.f32.mrb[2].mxu1  ;;  %v4568_v48 = vmax.f32 %v4560_v24, 0.0 }
 0x2f2   :  { %v6186_v9 = vmax.f32 %v6178_v53, 0.0  ;;  %v6180_v16 = vadd.f32 %v6172_v28, %v19463_v45  ;;  %17149 = vmatmul.mubr.msk.bf16.vlgmr.msra.gmra.mrb[108].mxu0 %vm128_vm1, %v20157_v35  ;;  %v6086_v56 = vpop.f32.mrb[3].mxu1 }
 0x2f3   :  { %v6187_v54 = vmax.f32 %v6179_v59, 0.0  ;;  %v6181_v31 = vadd.f32 %v6173_v63, %v19463_v45  ;;  %8506 = vmatpush1.bf16.msra.mxu0 %v19963_v19  ;;  %8537 = vmatprep.mubr.bf16.mxu0 %v22050_v22  ;;  %v4567_v59 = vmax.f32 %v4559_v27, 0.0 }
 0x2f4   :  { %v6194_v43 = vmax.f32 %v4563_v34, %v6186_v9  ;;  %v6188_v55 = vmax.f32 %v6180_v16, 0.0  ;;  %17151 = vmatmul.mubr.msk.bf16.vlgmr.msra.gmra.mrb[108].mxu1 %vm128_vm1, %v20157_v35  ;;  %17156 = vmatprep.subr.msk.bf16.mxu0 %vm132_vm0, %v19932_v25 }
 0x2f5   :  { %v6195_v6 = vmax.f32 %v4564_v7, %v6187_v54  ;;  %v6189_v11 = vmax.f32 %v6181_v31, 0.0  ;;  %v6122_v12 = vpop.f32.mrb[4].mxu0  ;;  %8547 = vmatpush1.bf16.msra.mxu1 %v19969_v38  ;;  %8578 = vmatprep.mubr.bf16.mxu1 %v22050_v22 }
 0x2f6   :  { %v6196_v47 = vmax.f32 %v4565_v42, %v6188_v55  ;;  %v6174_v23 = vadd.f32 %v6122_v12, %v20144_v8  ;;  %v6124_v32 = vpop.f32.mrb[5].mxu0  ;;  %17158 = vmatprep.subr.msk.bf16.mxu1 %vm132_vm0, %v19973_v49 }
 0x2f7   :  { %v6197_v0 = vmax.f32 %v4566_v61, %v6189_v11  ;;  %v6175_v21 = vadd.f32 %v6124_v32, %v20148_v57  ;;  %v6126_v17 = vpop.f32.mrb[6].mxu0  ;;  %v6163_v10 = vpop.f32.mrb[4].mxu1  ;;  %v20204_v51 = vmax.f32 %v6194_v43, %v6195_v6  ;;  %v8849_v61 = vld [vmem:[%s22042_s26 + $0x30] sm:$0xff] }
 0x2f8   :  { %v6182_v53 = vadd.f32 %v6174_v23, %v19463_v45  ;;  %v6176_v8 = vadd.f32 %v6163_v10, %v20150_v50  ;;  %v6127_v28 = vpop.f32.mrb[7].mxu0  ;;  %v17642_v4 = vpop.f32.mrb[5].mxu1  ;;  %v4569_v50 = vmax.f32 %v4561_v18, 0.0 }
 0x2f9   :  { %22061 = vst [vmem:[#allocation14_spill] sm:$0xff] %v20204_v51  ;;  %v20210_v1 = vmax.f32 %v6196_v47, %v6197_v0  ;;  %v6183_v37 = vadd.f32 %v6175_v21, %v19463_v45  ;;  %v6167_v2 = vpop.f32.mrb[6].mxu1  ;;  %v22065_v47 = vld [vmem:[#allocation6_spill] sm:$0xff]  ;;  %v8851_v0 = vcombine.high %v8849_v61, %v8849_v61 }
 0x2fa   :  { %v6190_v57 = vmax.f32 %v6182_v53, 0.0  ;;  %v6184_v63 = vadd.f32 %v6176_v8, %v19463_v45  ;;  %17153 = vmatmul.mubr.msk.bf16.vlgmr.msra.gmra.mrb[112].mxu0 %vm128_vm1, %v19846_v3  ;;  %v17643_v36 = vpop.f32.mrb[7].mxu1  ;;  %v8858_v23 = vrot.slane %v8849_v61, %v22065_v47  ;;  %v22066_v8 = vld [vmem:[#allocation9_spill] sm:$0xff] }
 0x2fb   :  { %22062 = vst [vmem:[#allocation15_spill] sm:$0xff] %v20210_v1  ;;  %v6191_v34 = vmax.f32 %v6183_v37, 0.0  ;;  %8588 = vmatpush1.bf16.msra.mxu0 %v19987_v29  ;;  %8619 = vmatprep.mubr.bf16.mxu0 %v22050_v22  ;;  %v8865_v28 = vrot.slane %v8851_v0, %v22065_v47  ;;  %v18274_v1 = vld [vmem:[%s22045_s28 + $0x1c] sm:$0xf] }
 0x2fc   :  { %v6198_v9 = vmax.f32 %v4567_v59, %v6190_v57  ;;  %v6192_v16 = vmax.f32 %v6184_v63, 0.0  ;;  %17155 = vmatmul.mubr.msk.bf16.vlgmr.msra.gmra.mrb[112].mxu1 %vm128_vm1, %v19846_v3  ;;  %17160 = vmatprep.subr.msk.bf16.mxu0 %vm132_vm0, %v19888_v40  ;;  %v20247_v21 = vrot.slane %v8858_v23, %v22065_v47  ;;  %v8866_v4 = vcombine.high %v8858_v23, %v8858_v23 }
 0x2fd   :  { %v6199_v56 = vmax.f32 %v4568_v48, %v6191_v34  ;;  %v6244_v7 = vpop.f32.mrb[8].mxu0  ;;  %8629 = vmatpush1.bf16.msra.mxu1 %v19998_v30  ;;  %8660 = vmatprep.mubr.bf16.mxu1 %v22050_v22  ;;  %v20266_v63 = vrot.slane %v8865_v28, %v22065_v47 }
 0x2fe   :  { %v6200_v54 = vmax.f32 %v4569_v50, %v6192_v16  ;;  %v6246_v31 = vpop.f32.mrb[9].mxu0  ;;  %17162 = vmatprep.subr.msk.bf16.mxu1 %vm132_vm0, %v19900_v44  ;;  %v20254_v2 = vcombine.high %v20247_v21, %v20247_v21  ;;  %v20269_v36 = vrot.slane %v8866_v4, %v22065_v47 }
 0x2ff   :  { %v20226_v42 = vmax.f32 %v6198_v9, %v6199_v56  ;;  %v6248_v43 = vpop.f32.mrb[10].mxu0  ;;  %v6285_v55 = vpop.f32.mrb[8].mxu1 }
 0x300   :  { %v6249_v6 = vpop.f32.mrb[11].mxu0  ;;  %v6287_v11 = vpop.f32.mrb[9].mxu1  ;;  %v20232_v12 = vmax.f32 %v6200_v54, %v20176_v20 }
 0x301   :  { %22063 = vst [vmem:[#allocation16_spill] sm:$0xff] %v20226_v42  ;;  %v6289_v27 = vpop.f32.mrb[10].mxu1  ;;  %v8867_v6 = vcombine.high %v8865_v28, %v8865_v28 }
 0x302   :  { %22064 = vst [vmem:[#allocation17_spill] sm:$0xff] %v20232_v12  ;;  %17157 = vmatmul.mubr.msk.bf16.vlgmr.msra.gmra.mrb[116].mxu0 %vm128_vm1, %v19846_v3  ;;  %v6290_v32 = vpop.f32.mrb[11].mxu1  ;;  %v20277_v27 = vsel %vm132_vm0, %v20269_v36, 0 }
 0x303   :  { %8678 = vmatpush1.bf16.msra.mxu0 %v19911_v62  ;;  %8709 = vmatprep.mubr.bf16.mxu0 %v22050_v22  ;;  %v20298_v32 = vrot.slane %v8867_v6, %v22065_v47 }
 0x304   :  { %17159 = vmatmul.mubr.msk.bf16.vlgmr.msra.gmra.mrb[116].mxu1 %vm128_vm1, %v19846_v3  ;;  %17164 = vmatprep.subr.msk.bf16.mxu0 %vm132_vm0, %v19915_v26 }
 0x305   :  { %v6326_v24 = vpop.f32.mrb[12].mxu0  ;;  %8719 = vmatpush1.bf16.msra.mxu1 %v19936_v39  ;;  %8750 = vmatprep.mubr.bf16.mxu1 %v22050_v22 }
 0x306   :  { %v6328_v20 = vpop.f32.mrb[13].mxu0  ;;  %17668 = vmatprep.subr.bf16.mxu1 %v22048_v58 }
 0x307   :  { %v6330_v17 = vpop.f32.mrb[14].mxu0  ;;  %v6367_v10 = vpop.f32.mrb[12].mxu1 }
 0x308   :  { %v6331_v18 = vpop.f32.mrb[15].mxu0  ;;  %v6369_v53 = vpop.f32.mrb[13].mxu1 }
 0x309   :  { %v6371_v3 = vpop.f32.mrb[14].mxu1 }
 0x30a   :  { %17161 = vmatmul.mubr.msk.bf16.vlgmr.msra.gmra.mrb[120].mxu0 %vm128_vm1, %v22066_v8  ;;  %v6372_v37 = vpop.f32.mrb[15].mxu1 }
 0x30b   :  { %8760 = vmatpush1.bf16.msra.mxu0 %v19949_v52  ;;  %8791 = vmatprep.mubr.bf16.mxu0 %v22050_v22 }
 0x30c   :  { %17163 = vmatmul.mubr.msk.bf16.vlgmr.msra.gmra.mrb[120].mxu1 %vm128_vm1, %v22066_v8  ;;  %17167 = vmatprep.subr.msk.bf16.mxu0 %vm132_vm0, %v20247_v21 }
 0x30d   :  { %v6408_v59 = vpop.f32.mrb[16].mxu0  ;;  %17669 = vmatpush3.bf16.msra.mxu1 %v20031_v13  ;;  %17670 = vmatprep.mubr.msk.bf16.mxu1 %vm18310_vm2, %v22048_v58 }
 0x30e   :  { %v6410_v57 = vpop.f32.mrb[17].mxu0  ;;  %17169 = vmatprep.subr.msk.bf16.mxu1 %vm132_vm0, %v20254_v2  ;;  %v6409_v48 = vadd.f32 %v6408_v59, %v6244_v7  ;;  %v20281_v7 = vcombine.high %v20266_v63, %v20266_v63 }
 0x30f   :  { %v6412_v34 = vpop.f32.mrb[18].mxu0  ;;  %v6449_v50 = vpop.f32.mrb[16].mxu1  ;;  %v6411_v9 = vadd.f32 %v6410_v57, %v6246_v31  ;;  %v20291_v31 = vcombine.high %v20269_v36, %v20269_v36 }
 0x310   :  { %v6413_v16 = vpop.f32.mrb[19].mxu0  ;;  %v6451_v56 = vpop.f32.mrb[17].mxu1  ;;  %v6450_v54 = vadd.f32 %v6449_v50, %v6285_v55  ;;  %v22067_v34 = vld [vmem:[#allocation7_spill] sm:$0xff] }
 0x311   :  { %v6453_v43 = vpop.f32.mrb[18].mxu1  ;;  %v6452_v61 = vadd.f32 %v6451_v56, %v6287_v11  ;;  %v20302_v28 = vsel %vm132_vm0, %v20291_v31, 0 }
 0x312   :  { %17165 = vmatmul.mubr.msk.bf16.vlgmr.msra.gmra.mrb[124].mxu0 %vm128_vm1, %v22066_v8  ;;  %v6454_v23 = vpop.f32.mrb[19].mxu1 }
 0x313   :  { %8921 = vmatpush1.bf16.msra.mxu0 %v22050_v22  ;;  %8952 = vmatprep.mubr.bf16.mxu0 %v22050_v22 }
 0x314   :  { %17671 = vmatmul.mubr.msk.bf16.vlgmr.msra.gmra.mrb[124].mxu1 %vm128_vm1, %v22066_v8  ;;  %17171 = vmatprep.subr.msk.bf16.mxu0 %vm132_vm0, %v20266_v63 }
 0x315   :  { %v6490_v55 = vpop.f32.mrb[20].mxu0  ;;  %8962 = vmatpush1.bf16.msra.mxu1 %v20277_v27  ;;  %8993 = vmatprep.mubr.bf16.mxu1 %v22050_v22 }
 0x316   :  { %v6492_v11 = vpop.f32.mrb[21].mxu0  ;;  %17173 = vmatprep.subr.msk.bf16.mxu1 %vm132_vm0, %v20281_v7  ;;  %v6491_v0 = vadd.f32 %v6490_v55, %v6326_v24  ;;  %v20310_v24 = vsel %vm132_vm0, %v20298_v32, 0 }
 0x317   :  { %v6494_v17 = vpop.f32.mrb[22].mxu0  ;;  %v6531_v18 = vpop.f32.mrb[20].mxu1  ;;  %v6493_v3 = vadd.f32 %v6492_v11, %v6328_v20  ;;  %v20324_v11 = vsel %vm132_vm0, %v20247_v21, 0 }
 0x318   :  { %v6495_v8 = vpop.f32.mrb[23].mxu0  ;;  %v6532_v4 = vadd.f32 %v6531_v18, %v6367_v10  ;;  %v6533_v37 = vpop.f32.mrb[21].mxu1 }
 0x319   :  { %v20304_v59 = vadd.f32 %v6533_v37, %v6369_v53  ;;  %v6535_v57 = vpop.f32.mrb[22].mxu1  ;;  %v20330_v37 = vsel %vm132_vm0, %v20254_v2, 0 }
 0x31a   :  { %17168 = vmatmul.mubr.msk.bf16.vlgmr.msra.gmra.mrb[128].mxu0 %vm128_vm1, %v22067_v34  ;;  %v6536_v50 = vpop.f32.mrb[23].mxu1 }
 0x31b   :  { %9003 = vmatpush1.bf16.msra.mxu0 %v20302_v28  ;;  %9034 = vmatprep.mubr.bf16.mxu0 %v22050_v22 }
 0x31c   :  { %17170 = vmatmul.mubr.msk.bf16.vlgmr.msra.gmra.mrb[128].mxu1 %vm128_vm1, %v22067_v34  ;;  %17175 = vmatprep.subr.msk.bf16.mxu0 %vm132_vm0, %v20269_v36 }
 0x31d   :  { %v6572_v20 = vpop.f32.mrb[24].mxu0  ;;  %9044 = vmatpush1.bf16.msra.mxu1 %v20310_v24  ;;  %9075 = vmatprep.mubr.bf16.mxu1 %v22050_v22 }
 0x31e   :  { %v6574_v10 = vpop.f32.mrb[25].mxu0  ;;  %17177 = vmatprep.subr.msk.bf16.mxu1 %vm132_vm0, %v20291_v31  ;;  %v6702_v53 = vadd.f32 %v6572_v20, %v6409_v48  ;;  %v20334_v48 = vcombine.high %v20298_v32, %v20298_v32 }
 0x31f   :  { %v6576_v16 = vpop.f32.mrb[26].mxu0  ;;  %v6613_v56 = vpop.f32.mrb[24].mxu1  ;;  %v6703_v43 = vadd.f32 %v6574_v10, %v6411_v9 }
 0x320   :  { %v6577_v6 = vpop.f32.mrb[27].mxu0  ;;  %v6704_v23 = vadd.f32 %v6613_v56, %v6450_v54  ;;  %v6615_v55 = vpop.f32.mrb[25].mxu1 }
 0x321   :  { %v6705_v17 = vadd.f32 %v6615_v55, %v6452_v61  ;;  %v6617_v18 = vpop.f32.mrb[26].mxu1  ;;  %v71_v6 = vld [vmem:[%s21995_s8] sm:$0xff] }
 0x322   :  { %17172 = vmatmul.mubr.msk.bf16.vlgmr.msra.gmra.mrb[132].mxu0 %vm128_vm1, %v22067_v34  ;;  %v6618_v8 = vpop.f32.mrb[27].mxu1  ;;  %12787 = vperm.xlu0 %18136, %v71_v6   ;;  %v22068_v18 = vld [vmem:[#allocation8_spill] sm:$0xff] }
 0x323   :  { %9097 = vmatpush1.bf16.msra.mxu0 %v20324_v11  ;;  %9128 = vmatprep.mubr.bf16.mxu0 %v22050_v22 }
 0x324   :  { %17174 = vmatmul.mubr.msk.bf16.vlgmr.msra.gmra.mrb[132].mxu1 %vm128_vm1, %v22067_v34  ;;  %17179 = vmatprep.subr.msk.bf16.mxu0 %vm132_vm0, %v20298_v32  ;;  %v20348_v34 = vsel %vm132_vm0, %v20266_v63, 0 }
 0x325   :  { %v6654_v9 = vpop.f32.mrb[28].mxu0  ;;  %9138 = vmatpush1.bf16.msra.mxu1 %v20330_v37  ;;  %9169 = vmatprep.mubr.bf16.mxu1 %v22050_v22 }
 0x326   :  { %v6656_v54 = vpop.f32.mrb[29].mxu0  ;;  %17181 = vmatprep.subr.msk.bf16.mxu1 %vm132_vm0, %v20334_v48  ;;  %v6706_v61 = vadd.f32 %v6654_v9, %v6491_v0 }
 0x327   :  { %v6658_v57 = vpop.f32.mrb[30].mxu0  ;;  %v6695_v50 = vpop.f32.mrb[28].mxu1  ;;  %v6707_v20 = vadd.f32 %v6656_v54, %v6493_v3  ;;  %v20357_v3 = vsel %vm132_vm0, %v20281_v7, 0 }
 0x328   :  { %v6659_v10 = vpop.f32.mrb[31].mxu0  ;;  %v6708_v16 = vadd.f32 %v6695_v50, %v6532_v4  ;;  %v17648_v56 = vpop.f32.mrb[29].mxu1 }
 0x329   :  { %v6699_v55 = vpop.f32.mrb[30].mxu1 }
 0x32a   :  { %17176 = vmatmul.mubr.msk.bf16.vlgmr.msra.gmra.mrb[136].mxu0 %vm128_vm1, %v22068_v18  ;;  %v17649_v0 = vpop.f32.mrb[31].mxu1 }
 0x32b   :  { %9179 = vmatpush1.bf16.msra.mxu0 %v20348_v34  ;;  %9210 = vmatprep.mubr.bf16.mxu0 %v22050_v22 }
 0x32c   :  { %17178 = vmatmul.mubr.msk.bf16.vlgmr.msra.gmra.mrb[136].mxu1 %vm128_vm1, %v22068_v18  ;;  %17183 = vmatprep.subr.msk.bf16.mxu0 %vm132_vm0, %v20254_v2 }
 0x32d   :  { %v6744_v4 = vpop.f32.mrb[32].mxu0  ;;  %9220 = vmatpush1.bf16.msra.mxu1 %v20357_v3  ;;  %9251 = vmatprep.mubr.bf16.mxu1 %v22050_v22 }
 0x32e   :  { %v6874_v8 = vadd.f32 %v6744_v4, %v6702_v53  ;;  %v6746_v9 = vpop.f32.mrb[33].mxu0  ;;  %17185 = vmatprep.subr.msk.bf16.mxu1 %vm132_vm0, %v20266_v63 }
 0x32f   :  { %v6875_v54 = vadd.f32 %v6746_v9, %v6703_v43  ;;  %v6748_v57 = vpop.f32.mrb[34].mxu0  ;;  %v6785_v50 = vpop.f32.mrb[32].mxu1 }
 0x330   :  { %v6876_v10 = vadd.f32 %v6785_v50, %v6704_v23  ;;  %v6749_v56 = vpop.f32.mrb[35].mxu0  ;;  %v6787_v6 = vpop.f32.mrb[33].mxu1 }
 0x331   :  { %v6877_v55 = vadd.f32 %v6787_v6, %v6705_v17  ;;  %v6789_v0 = vpop.f32.mrb[34].mxu1 }
 0x332   :  { %17180 = vmatmul.mubr.msk.bf16.vlgmr.msra.gmra.mrb[140].mxu0 %vm128_vm1, %v22068_v18  ;;  %v6790_v12 = vpop.f32.mrb[35].mxu1  ;;  %v20385_v0 = vsel %vm132_vm0, %v20334_v48, 0 }
 0x333   :  { %9269 = vmatpush1.bf16.msra.mxu0 %v20277_v27  ;;  %9300 = vmatprep.mubr.bf16.mxu0 %v22050_v22 }
 0x334   :  { %17182 = vmatmul.mubr.msk.bf16.vlgmr.msra.gmra.mrb[140].mxu1 %vm128_vm1, %v22068_v18  ;;  %17187 = vmatprep.subr.msk.bf16.mxu0 %vm132_vm0, %v20281_v7 }
 0x335   :  { %v6826_v53 = vpop.f32.mrb[36].mxu0  ;;  %9310 = vmatpush1.bf16.msra.mxu1 %v20302_v28  ;;  %9341 = vmatprep.mubr.bf16.mxu1 %v22050_v22 }
 0x336   :  { %v6878_v43 = vadd.f32 %v6826_v53, %v6706_v61  ;;  %v6828_v23 = vpop.f32.mrb[37].mxu0  ;;  %17674 = vmatprep.subr.bf16.mxu1 %v22048_v58 }
 0x337   :  { %v6879_v12 = vadd.f32 %v6828_v23, %v6707_v20  ;;  %v6830_v17 = vpop.f32.mrb[38].mxu0  ;;  %v6867_v4 = vpop.f32.mrb[36].mxu1 }
 0x338   :  { %v6831_v9 = vpop.f32.mrb[39].mxu0  ;;  %v6869_v57 = vpop.f32.mrb[37].mxu1  ;;  %v6880_v50 = vadd.f32 %v6867_v4, %v6708_v16 }
 0x339   :  { %v6871_v56 = vpop.f32.mrb[38].mxu1  ;;  %v6881_v18 = vadd.f32 %v6869_v57, %v20304_v59 }
 0x33a   :  { %17184 = vmatmul.mubr.msk.bf16.vlgmr.msra.gmra.mrb[144].mxu0 %vm128_vm1, %v20025_v14  ;;  %v6872_v6 = vpop.f32.mrb[39].mxu1 }
 0x33b   :  { %9351 = vmatpush1.bf16.msra.mxu0 %v20310_v24  ;;  %9382 = vmatprep.mubr.bf16.mxu0 %v22050_v22 }
 0x33c   :  { %17186 = vmatmul.mubr.msk.bf16.vlgmr.msra.gmra.mrb[144].mxu1 %vm128_vm1, %v20025_v14  ;;  %17190 = vmatprep.subr.msk.bf16.mxu0 %vm132_vm0, %v19903_v5 }
 0x33d   :  { %v6916_v61 = vpop.f32.mrb[40].mxu0  ;;  %17675 = vmatpush3.bf16.msra.mxu1 %v20385_v0  ;;  %17676 = vmatprep.mubr.msk.bf16.mxu1 %vm18310_vm2, %v22048_v58 }
 0x33e   :  { %v6918_v59 = vpop.f32.mrb[41].mxu0  ;;  %17192 = vmatprep.subr.msk.bf16.mxu1 %vm132_vm0, %v19925_v60  ;;  %v7046_v20 = vadd.f32 %v6916_v61, %v6874_v8 }
 0x33f   :  { %v6920_v16 = vpop.f32.mrb[42].mxu0  ;;  %v6957_v53 = vpop.f32.mrb[40].mxu1  ;;  %v7047_v23 = vadd.f32 %v6918_v59, %v6875_v54 }
 0x340   :  { %v7048_v17 = vadd.f32 %v6957_v53, %v6876_v10  ;;  %v6921_v4 = vpop.f32.mrb[43].mxu0  ;;  %v6959_v9 = vpop.f32.mrb[41].mxu1 }
 0x341   :  { %v7049_v57 = vadd.f32 %v6959_v9, %v6877_v55  ;;  %v6961_v56 = vpop.f32.mrb[42].mxu1 }
 0x342   :  { %17188 = vmatmul.mubr.msk.bf16.vlgmr.msra.gmra.mrb[148].mxu0 %vm128_vm1, %v20025_v14  ;;  %v6962_v5 = vpop.f32.mrb[43].mxu1 }
 0x343   :  { %9473 = vmatpush1.bf16.msra.mxu0 %v19963_v19  ;;  %9504 = vmatprep.mubr.bf16.mxu0 %v22050_v22 }
 0x344   :  { %17677 = vmatmul.mubr.msk.bf16.vlgmr.msra.gmra.mrb[148].mxu1 %vm128_vm1, %v20025_v14  ;;  %17194 = vmatprep.subr.msk.bf16.mxu0 %vm132_vm0, %v19932_v25 }
 0x345   :  { %v6998_v60 = vpop.f32.mrb[44].mxu0  ;;  %9514 = vmatpush1.bf16.msra.mxu1 %v19969_v38  ;;  %9545 = vmatprep.mubr.bf16.mxu1 %v22050_v22 }
 0x346   :  { %v7000_v8 = vpop.f32.mrb[45].mxu0  ;;  %17196 = vmatprep.subr.msk.bf16.mxu1 %vm132_vm0, %v19973_v49  ;;  %v7050_v54 = vadd.f32 %v6998_v60, %v6878_v43 }
 0x347   :  { %v7002_v10 = vpop.f32.mrb[46].mxu0  ;;  %v7039_v19 = vpop.f32.mrb[44].mxu1  ;;  %v7051_v55 = vadd.f32 %v7000_v8, %v6879_v12 }
 0x348   :  { %v7052_v6 = vadd.f32 %v7039_v19, %v6880_v50  ;;  %v7003_v61 = vpop.f32.mrb[47].mxu0  ;;  %v7041_v59 = vpop.f32.mrb[45].mxu1 }
 0x349   :  { %v20410_v14 = vadd.f32 %v7041_v59, %v6881_v18  ;;  %v7043_v16 = vpop.f32.mrb[46].mxu1 }
 0x34a   :  { %17191 = vmatmul.mubr.msk.bf16.vlgmr.msra.gmra.mrb[152].mxu0 %vm128_vm1, %v20061_v41  ;;  %v7044_v25 = vpop.f32.mrb[47].mxu1 }
 0x34b   :  { %9555 = vmatpush1.bf16.msra.mxu0 %v19987_v29  ;;  %9586 = vmatprep.mubr.bf16.mxu0 %v22050_v22 }
 0x34c   :  { %17193 = vmatmul.mubr.msk.bf16.vlgmr.msra.gmra.mrb[152].mxu1 %vm128_vm1, %v20061_v41  ;;  %17198 = vmatprep.subr.msk.bf16.mxu0 %vm132_vm0, %v19876_v33 }
 0x34d   :  { %v7088_v38 = vpop.f32.mrb[48].mxu0  ;;  %9596 = vmatpush1.bf16.msra.mxu1 %v19998_v30  ;;  %9627 = vmatprep.mubr.bf16.mxu1 %v22050_v22 }
 0x34e   :  { %v7218_v49 = vadd.f32 %v7088_v38, %v7046_v20  ;;  %v7090_v43 = vpop.f32.mrb[49].mxu0  ;;  %17200 = vmatprep.subr.msk.bf16.mxu1 %vm132_vm0, %v19888_v40 }
 0x34f   :  { %v7219_v12 = vadd.f32 %v7090_v43, %v7047_v23  ;;  %v7092_v29 = vpop.f32.mrb[50].mxu0  ;;  %v7129_v50 = vpop.f32.mrb[48].mxu1 }
 0x350   :  { %v7220_v18 = vadd.f32 %v7129_v50, %v7048_v17  ;;  %v7093_v53 = vpop.f32.mrb[51].mxu0  ;;  %v7131_v4 = vpop.f32.mrb[49].mxu1 }
 0x351   :  { %v7221_v9 = vadd.f32 %v7131_v4, %v7049_v57  ;;  %v7133_v56 = vpop.f32.mrb[50].mxu1 }
 0x352   :  { %17195 = vmatmul.mubr.msk.bf16.vlgmr.msra.gmra.mrb[156].mxu0 %vm128_vm1, %v20061_v41  ;;  %v7134_v33 = vpop.f32.mrb[51].mxu1 }
 0x353   :  { %9637 = vmatpush1.bf16.msra.mxu0 %v22050_v22  ;;  %9668 = vmatprep.mubr.bf16.mxu0 %v22050_v22 }
 0x354   :  { %17197 = vmatmul.mubr.msk.bf16.vlgmr.msra.gmra.mrb[156].mxu1 %vm128_vm1, %v20061_v41  ;;  %17202 = vmatprep.subr.msk.bf16.mxu0 %vm132_vm0, %v19900_v44 }
 0x355   :  { %v7170_v30 = vpop.f32.mrb[52].mxu0  ;;  %9678 = vmatpush1.bf16.msra.mxu1 %v19911_v62  ;;  %9709 = vmatprep.mubr.bf16.mxu1 %v22050_v22 }
 0x356   :  { %v7222_v20 = vadd.f32 %v7170_v30, %v7050_v54  ;;  %v7172_v23 = vpop.f32.mrb[53].mxu0  ;;  %17204 = vmatprep.subr.msk.bf16.mxu1 %vm132_vm0, %v19915_v26 }
 0x357   :  { %v7223_v17 = vadd.f32 %v7172_v23, %v7051_v55  ;;  %v7174_v57 = vpop.f32.mrb[54].mxu0  ;;  %v7211_v5 = vpop.f32.mrb[52].mxu1 }
 0x358   :  { %v7224_v60 = vadd.f32 %v7211_v5, %v7052_v6  ;;  %v7175_v8 = vpop.f32.mrb[55].mxu0  ;;  %v17654_v10 = vpop.f32.mrb[53].mxu1 }
 0x359   :  { %v7215_v41 = vpop.f32.mrb[54].mxu1 }
 0x35a   :  { %17199 = vmatmul.mubr.msk.bf16.vlgmr.msra.gmra.mrb[160].mxu0 %vm128_vm1, %v20090_v46  ;;  %v17655_v19 = vpop.f32.mrb[55].mxu1 }
 0x35b   :  { %9719 = vmatpush1.bf16.msra.mxu0 %v19936_v39  ;;  %9750 = vmatprep.mubr.bf16.mxu0 %v22050_v22 }
 0x35c   :  { %17201 = vmatmul.mubr.msk.bf16.vlgmr.msra.gmra.mrb[160].mxu1 %vm128_vm1, %v20090_v46  ;;  %17206 = vmatprep.subr.msk.bf16.mxu0 %vm132_vm0, %v19888_v40 }
 0x35d   :  { %v7331_v54 = vpop.f32.mrb[56].mxu0  ;;  %9760 = vmatpush1.bf16.msra.mxu1 %v19949_v52  ;;  %9791 = vmatprep.mubr.bf16.mxu1 %v22050_v22 }
 0x35e   :  { %v7461_v55 = vadd.f32 %v7331_v54, %v7218_v49  ;;  %v7333_v6 = vpop.f32.mrb[57].mxu0  ;;  %17208 = vmatprep.subr.msk.bf16.mxu1 %vm132_vm0, %v19900_v44 }
 0x35f   :  { %v7462_v61 = vadd.f32 %v7333_v6, %v7219_v12  ;;  %v7335_v59 = vpop.f32.mrb[58].mxu0  ;;  %v7372_v16 = vpop.f32.mrb[56].mxu1 }
 0x360   :  { %v7463_v25 = vadd.f32 %v7372_v16, %v7220_v18  ;;  %v7336_v38 = vpop.f32.mrb[59].mxu0  ;;  %v7374_v43 = vpop.f32.mrb[57].mxu1 }
 0x361   :  { %v7464_v29 = vadd.f32 %v7374_v43, %v7221_v9  ;;  %v7376_v50 = vpop.f32.mrb[58].mxu1 }
 0x362   :  { %17203 = vmatmul.mubr.msk.bf16.vlgmr.msra.gmra.mrb[164].mxu0 %vm128_vm1, %v20090_v46  ;;  %v7377_v40 = vpop.f32.mrb[59].mxu1 }
 0x363   :  { %9801 = vmatpush1.bf16.msra.mxu0 %v19911_v62  ;;  %9832 = vmatprep.mubr.bf16.mxu0 %v22050_v22 }
 0x364   :  { %17205 = vmatmul.mubr.msk.bf16.vlgmr.msra.gmra.mrb[164].mxu1 %vm128_vm1, %v20090_v46  ;;  %17210 = vmatprep.subr.msk.bf16.mxu0 %vm132_vm0, %v19915_v26 }
 0x365   :  { %v7413_v44 = vpop.f32.mrb[60].mxu0  ;;  %9842 = vmatpush1.bf16.msra.mxu1 %v19936_v39  ;;  %9873 = vmatprep.mubr.bf16.mxu1 %v22050_v22 }
 0x366   :  { %v7465_v49 = vadd.f32 %v7413_v44, %v7222_v20  ;;  %v7415_v12 = vpop.f32.mrb[61].mxu0  ;;  %17680 = vmatprep.subr.bf16.mxu1 %v22048_v58 }
 0x367   :  { %v7466_v18 = vadd.f32 %v7415_v12, %v7223_v17  ;;  %v7417_v53 = vpop.f32.mrb[62].mxu0  ;;  %v7454_v62 = vpop.f32.mrb[60].mxu1 }
 0x368   :  { %v7467_v4 = vadd.f32 %v7454_v62, %v7224_v60  ;;  %v7418_v9 = vpop.f32.mrb[63].mxu0  ;;  %v7456_v56 = vpop.f32.mrb[61].mxu1 }
 0x369   :  { %v7468_v46 = vadd.f32 %v7456_v56, %v20410_v14  ;;  %v7458_v33 = vpop.f32.mrb[62].mxu1 }
 0x36a   :  { %17207 = vmatmul.mubr.msk.bf16.vlgmr.msra.gmra.mrb[168].mxu0 %vm128_vm1, %v20119_v15  ;;  %v7459_v26 = vpop.f32.mrb[63].mxu1 }
 0x36b   :  { %9883 = vmatpush1.bf16.msra.mxu0 %v19949_v52  ;;  %9914 = vmatprep.mubr.bf16.mxu0 %v22050_v22 }
 0x36c   :  { %17209 = vmatmul.mubr.msk.bf16.vlgmr.msra.gmra.mrb[168].mxu1 %vm128_vm1, %v20119_v15  ;;  %17213 = vmatprep.subr.msk.bf16.mxu0 %vm132_vm0, %v20247_v21 }
 0x36d   :  { %v7507_v39 = vpop.f32.mrb[64].mxu0  ;;  %17681 = vmatpush3.bf16.msra.mxu1 %v20031_v13  ;;  %17682 = vmatprep.mubr.msk.bf16.mxu1 %vm18310_vm2, %v22048_v58 }
 0x36e   :  { %v7637_v14 = vadd.f32 %v7507_v39, %v7461_v55  ;;  %v7509_v30 = vpop.f32.mrb[65].mxu0  ;;  %17215 = vmatprep.subr.msk.bf16.mxu1 %vm132_vm0, %v20254_v2 }
 0x36f   :  { %v7638_v52 = vadd.f32 %v7509_v30, %v7462_v61  ;;  %v7511_v20 = vpop.f32.mrb[66].mxu0  ;;  %v7548_v23 = vpop.f32.mrb[64].mxu1 }
 0x370   :  { %v7639_v17 = vadd.f32 %v7548_v23, %v7463_v25  ;;  %v7512_v57 = vpop.f32.mrb[67].mxu0  ;;  %v7550_v5 = vpop.f32.mrb[65].mxu1  ;;  %v20528_v23 = vld [vmem:[%s22045_s28 + $0x10] sm:$0xf] }
 0x371   :  { %v7640_v60 = vadd.f32 %v7550_v5, %v7464_v29  ;;  %v7552_v8 = vpop.f32.mrb[66].mxu1 }
 0x372   :  { %17211 = vmatmul.mubr.msk.bf16.vlgmr.msra.gmra.mrb[172].mxu0 %vm128_vm1, %v20119_v15  ;;  %v7553_v13 = vpop.f32.mrb[67].mxu1 }
 0x373   :  { %9973 = vmatpush1.bf16.msra.mxu0 %v22050_v22  ;;  %10004 = vmatprep.mubr.bf16.mxu0 %v22050_v22  ;;  %v10488_v13 = vld [vmem:[%s22042_s26 + $0x38] sm:$0xff] }
 0x374   :  { %17683 = vmatmul.mubr.msk.bf16.vlgmr.msra.gmra.mrb[172].mxu1 %vm128_vm1, %v20119_v15  ;;  %17217 = vmatprep.subr.msk.bf16.mxu0 %vm132_vm0, %v20266_v63 }
 0x375   :  { %v7589_v10 = vpop.f32.mrb[68].mxu0  ;;  %10014 = vmatpush1.bf16.msra.mxu1 %v20277_v27  ;;  %10045 = vmatprep.mubr.bf16.mxu1 %v22050_v22 }
 0x376   :  { %v7641_v41 = vadd.f32 %v7589_v10, %v7465_v49  ;;  %v7591_v19 = vpop.f32.mrb[69].mxu0  ;;  %17219 = vmatprep.subr.msk.bf16.mxu1 %vm132_vm0, %v20281_v7 }
 0x377   :  { %v7642_v54 = vadd.f32 %v7591_v19, %v7466_v18  ;;  %v7593_v55 = vpop.f32.mrb[70].mxu0  ;;  %v7630_v6 = vpop.f32.mrb[68].mxu1 }
 0x378   :  { %v7594_v61 = vpop.f32.mrb[71].mxu0  ;;  %v7632_v59 = vpop.f32.mrb[69].mxu1  ;;  %v7643_v16 = vadd.f32 %v7630_v6, %v7467_v4 }
 0x379   :  { %v20485_v15 = vadd.f32 %v7632_v59, %v7468_v46  ;;  %v7634_v25 = vpop.f32.mrb[70].mxu1  ;;  %v10490_v59 = vcombine.high %v10488_v13, %v10488_v13 }
 0x37a   :  { %17214 = vmatmul.mubr.msk.bf16.vlgmr.msra.gmra.mrb[176].mxu0 %vm128_vm1, %v20157_v35  ;;  %v7635_v38 = vpop.f32.mrb[71].mxu1 }
 0x37b   :  { %10055 = vmatpush1.bf16.msra.mxu0 %v20302_v28  ;;  %10086 = vmatprep.mubr.bf16.mxu0 %v22050_v22 }
 0x37c   :  { %17216 = vmatmul.mubr.msk.bf16.vlgmr.msra.gmra.mrb[176].mxu1 %vm128_vm1, %v20157_v35  ;;  %17221 = vmatprep.subr.msk.bf16.mxu0 %vm132_vm0, %v20269_v36 }
 0x37d   :  { %v7679_v43 = vpop.f32.mrb[72].mxu0  ;;  %10096 = vmatpush1.bf16.msra.mxu1 %v20310_v24  ;;  %10127 = vmatprep.mubr.bf16.mxu1 %v22050_v22 }
 0x37e   :  { %v20497_v29 = vadd.f32 %v7679_v43, %v7637_v14  ;;  %v7681_v50 = vpop.f32.mrb[73].mxu0  ;;  %17223 = vmatprep.subr.msk.bf16.mxu1 %vm132_vm0, %v20291_v31 }
 0x37f   :  { %v20501_v40 = vadd.f32 %v7681_v50, %v7638_v52  ;;  %v7683_v44 = vpop.f32.mrb[74].mxu0  ;;  %v7720_v49 = vpop.f32.mrb[72].mxu1 }
 0x380   :  { %v20503_v12 = vadd.f32 %v7720_v49, %v7639_v17  ;;  %v7684_v18 = vpop.f32.mrb[75].mxu0  ;;  %v7722_v53 = vpop.f32.mrb[73].mxu1  ;;  %v20563_v49 = vld [vmem:[%s22045_s28 + $0x14] sm:$0xf] }
 0x381   :  { %v20505_v62 = vadd.f32 %v7722_v53, %v7640_v60  ;;  %v7724_v4 = vpop.f32.mrb[74].mxu1  ;;  %22069 = vst [vmem:[#allocation6_spill] sm:$0xff] %v20563_v49  ;;  %v10504_v18 = vrot.slane %v10490_v59, %v22065_v47 }
 0x382   :  { %17218 = vmatmul.mubr.msk.bf16.vlgmr.msra.gmra.mrb[180].mxu0 %vm128_vm1, %v20157_v35  ;;  %v7725_v9 = vpop.f32.mrb[75].mxu1 }
 0x383   :  { %10145 = vmatpush1.bf16.msra.mxu0 %v20324_v11  ;;  %10176 = vmatprep.mubr.bf16.mxu0 %v22050_v22 }
 0x384   :  { %17220 = vmatmul.mubr.msk.bf16.vlgmr.msra.gmra.mrb[180].mxu1 %vm128_vm1, %v20157_v35  ;;  %17225 = vmatprep.subr.msk.bf16.mxu0 %vm132_vm0, %v20298_v32 }
 0x385   :  { %v7761_v56 = vpop.f32.mrb[76].mxu0  ;;  %10186 = vmatpush1.bf16.msra.mxu1 %v20330_v37  ;;  %10217 = vmatprep.mubr.bf16.mxu1 %v22050_v22 }
 0x386   :  { %v20517_v46 = vadd.f32 %v7761_v56, %v7641_v41  ;;  %v7763_v33 = vpop.f32.mrb[77].mxu0  ;;  %17227 = vmatprep.subr.msk.bf16.mxu1 %vm132_vm0, %v20334_v48 }
 0x387   :  { %v20521_v26 = vadd.f32 %v7763_v33, %v7642_v54  ;;  %v7765_v39 = vpop.f32.mrb[78].mxu0  ;;  %v7802_v14 = vpop.f32.mrb[76].mxu1  ;;  %v10497_v54 = vrot.slane %v10488_v13, %v22065_v47 }
 0x388   :  { %v20523_v30 = vadd.f32 %v7802_v14, %v7643_v16  ;;  %v7766_v35 = vpop.f32.mrb[79].mxu0  ;;  %v17660_v52 = vpop.f32.mrb[77].mxu1  ;;  %v20582_v14 = vrot.slane %v10504_v18, %v22065_v47 }
 0x389   :  { %v7806_v20 = vpop.f32.mrb[78].mxu1  ;;  %v20558_v16 = vrot.slane %v10497_v54, %v22065_v47  ;;  %v10505_v53 = vcombine.high %v10497_v54, %v10497_v54 }
 0x38a   :  { %17222 = vmatmul.mubr.msk.bf16.vlgmr.msra.gmra.mrb[184].mxu0 %vm128_vm1, %v20528_v23  ;;  %v17661_v17 = vpop.f32.mrb[79].mxu1  ;;  %v20597_v59 = vcombine.high %v20582_v14, %v20582_v14 }
 0x38b   :  { %10227 = vmatpush1.bf16.msra.mxu0 %v20348_v34  ;;  %10258 = vmatprep.mubr.bf16.mxu0 %v22050_v22  ;;  %v20570_v9 = vcombine.high %v20558_v16, %v20558_v16  ;;  %v20587_v35 = vrot.slane %v10505_v53, %v22065_v47 }
 0x38c   :  { %17224 = vmatmul.mubr.msk.bf16.vlgmr.msra.gmra.mrb[184].mxu1 %vm128_vm1, %v20528_v23  ;;  %17229 = vmatprep.subr.msk.bf16.mxu0 %vm132_vm0, %v20254_v2 }
 0x38d   :  { %v7867_v57 = vpop.f32.mrb[80].mxu0  ;;  %10268 = vmatpush1.bf16.msra.mxu1 %v20357_v3  ;;  %10299 = vmatprep.mubr.bf16.mxu1 %v22050_v22 }
 0x38e   :  { %v7869_v5 = vpop.f32.mrb[81].mxu0  ;;  %17231 = vmatprep.subr.msk.bf16.mxu1 %vm132_vm0, %v20266_v63 }
 0x38f   :  { %v7871_v60 = vpop.f32.mrb[82].mxu0  ;;  %v7908_v8 = vpop.f32.mrb[80].mxu1 }
 0x390   :  { %v7872_v10 = vpop.f32.mrb[83].mxu0  ;;  %v7910_v41 = vpop.f32.mrb[81].mxu1 }
 0x391   :  { %v7912_v19 = vpop.f32.mrb[82].mxu1 }
 0x392   :  { %17226 = vmatmul.mubr.msk.bf16.vlgmr.msra.gmra.mrb[188].mxu0 %vm128_vm1, %v20528_v23  ;;  %v7913_v55 = vpop.f32.mrb[83].mxu1 }
 0x393   :  { %10317 = vmatpush1.bf16.msra.mxu0 %v20277_v27  ;;  %10348 = vmatprep.mubr.bf16.mxu0 %v22050_v22 }
 0x394   :  { %17228 = vmatmul.mubr.msk.bf16.vlgmr.msra.gmra.mrb[188].mxu1 %vm128_vm1, %v20528_v23  ;;  %17233 = vmatprep.subr.msk.bf16.mxu0 %vm132_vm0, %v20281_v7 }
 0x395   :  { %v7949_v6 = vpop.f32.mrb[84].mxu0  ;;  %10358 = vmatpush1.bf16.msra.mxu1 %v20302_v28  ;;  %10389 = vmatprep.mubr.bf16.mxu1 %v22050_v22 }
 0x396   :  { %v7951_v61 = vpop.f32.mrb[85].mxu0  ;;  %17686 = vmatprep.subr.bf16.mxu1 %v22048_v58 }
 0x397   :  { %v7953_v25 = vpop.f32.mrb[86].mxu0  ;;  %v7990_v38 = vpop.f32.mrb[84].mxu1 }
 0x398   :  { %v7954_v43 = vpop.f32.mrb[87].mxu0  ;;  %v7992_v50 = vpop.f32.mrb[85].mxu1 }
 0x399   :  { %v7994_v44 = vpop.f32.mrb[86].mxu1 }
 0x39a   :  { %17230 = vmatmul.mubr.msk.bf16.vlgmr.msra.gmra.mrb[192].mxu0 %vm128_vm1, %v20563_v49  ;;  %v7995_v4 = vpop.f32.mrb[87].mxu1 }
 0x39b   :  { %10399 = vmatpush1.bf16.msra.mxu0 %v20310_v24  ;;  %10430 = vmatprep.mubr.bf16.mxu0 %v22050_v22 }
 0x39c   :  { %17232 = vmatmul.mubr.msk.bf16.vlgmr.msra.gmra.mrb[192].mxu1 %vm128_vm1, %v20563_v49  ;;  %17236 = vmatprep.subr.msk.bf16.mxu0 %vm132_vm0, %v20558_v16 }
 0x39d   :  { %v8031_v56 = vpop.f32.mrb[88].mxu0  ;;  %17687 = vmatpush3.bf16.msra.mxu1 %v20385_v0  ;;  %17688 = vmatprep.mubr.msk.bf16.mxu1 %vm18310_vm2, %v22048_v58 }
 0x39e   :  { %v8032_v33 = vadd.f32 %v8031_v56, %v7867_v57  ;;  %v8033_v39 = vpop.f32.mrb[89].mxu0  ;;  %17238 = vmatprep.subr.msk.bf16.mxu1 %vm132_vm0, %v20570_v9  ;;  %v20593_v57 = vsel %vm132_vm0, %v20587_v35, 0 }
 0x39f   :  { %v8034_v52 = vadd.f32 %v8033_v39, %v7869_v5  ;;  %v8035_v20 = vpop.f32.mrb[90].mxu0  ;;  %v8072_v17 = vpop.f32.mrb[88].mxu1  ;;  %v10506_v5 = vcombine.high %v10504_v18, %v10504_v18 }
 0x3a0   :  { %v8036_v60 = vpop.f32.mrb[91].mxu0  ;;  %v8073_v13 = vadd.f32 %v8072_v17, %v7908_v8  ;;  %v8074_v10 = vpop.f32.mrb[89].mxu1  ;;  %v20607_v8 = vcombine.high %v20587_v35, %v20587_v35 }
 0x3a1   :  { %v8075_v19 = vadd.f32 %v8074_v10, %v7910_v41  ;;  %v8076_v54 = vpop.f32.mrb[90].mxu1  ;;  %v20614_v44 = vrot.slane %v10506_v5, %v22065_v47  ;;  %v18273_v10 = vld [vmem:[%s22045_s28 + $0x18] sm:$0xf] }
 0x3a2   :  { %17234 = vmatmul.mubr.msk.bf16.vlgmr.msra.gmra.mrb[196].mxu0 %vm128_vm1, %v20563_v49  ;;  %v8077_v55 = vpop.f32.mrb[91].mxu1  ;;  %v20618_v39 = vsel %vm132_vm0, %v20607_v8, 0 }
 0x3a3   :  { %10560 = vmatpush1.bf16.msra.mxu0 %v22050_v22  ;;  %10591 = vmatprep.mubr.bf16.mxu0 %v22050_v22 }
 0x3a4   :  { %17689 = vmatmul.mubr.msk.bf16.vlgmr.msra.gmra.mrb[196].mxu1 %vm128_vm1, %v20563_v49  ;;  %17240 = vmatprep.subr.msk.bf16.mxu0 %vm132_vm0, %v20582_v14 }
 0x3a5   :  { %v8113_v41 = vpop.f32.mrb[92].mxu0  ;;  %10601 = vmatpush1.bf16.msra.mxu1 %v20593_v57  ;;  %10632 = vmatprep.mubr.bf16.mxu1 %v22050_v22 }
 0x3a6   :  { %v8114_v25 = vadd.f32 %v8113_v41, %v7949_v6  ;;  %v8115_v43 = vpop.f32.mrb[93].mxu0  ;;  %17242 = vmatprep.subr.msk.bf16.mxu1 %vm132_vm0, %v20597_v59 }
 0x3a7   :  { %v8116_v18 = vadd.f32 %v8115_v43, %v7951_v61  ;;  %v8117_v53 = vpop.f32.mrb[94].mxu0  ;;  %v8154_v4 = vpop.f32.mrb[92].mxu1  ;;  %v20628_v61 = vsel %vm132_vm0, %v20614_v44, 0 }
 0x3a8   :  { %v8118_v56 = vpop.f32.mrb[95].mxu0  ;;  %v8155_v20 = vadd.f32 %v8154_v4, %v7990_v38  ;;  %v8156_v17 = vpop.f32.mrb[93].mxu1 }
 0x3a9   :  { %v20620_v60 = vadd.f32 %v8156_v17, %v7992_v50  ;;  %v8158_v6 = vpop.f32.mrb[94].mxu1  ;;  %v20641_v56 = vsel %vm132_vm0, %v20558_v16, 0 }
 0x3aa   :  { %17237 = vmatmul.mubr.msk.bf16.vlgmr.msra.gmra.mrb[200].mxu0 %vm128_vm1, %v18273_v10  ;;  %v8159_v47 = vpop.f32.mrb[95].mxu1 }
 0x3ab   :  { %10642 = vmatpush1.bf16.msra.mxu0 %v20618_v39  ;;  %10673 = vmatprep.mubr.bf16.mxu0 %v22050_v22 }
 0x3ac   :  { %17239 = vmatmul.mubr.msk.bf16.vlgmr.msra.gmra.mrb[200].mxu1 %vm128_vm1, %v18273_v10  ;;  %17244 = vmatprep.subr.msk.bf16.mxu0 %vm132_vm0, %v20587_v35 }
 0x3ad   :  { %v8195_v38 = vpop.f32.mrb[96].mxu0  ;;  %10683 = vmatpush1.bf16.msra.mxu1 %v20628_v61  ;;  %10714 = vmatprep.mubr.bf16.mxu1 %v22050_v22 }
 0x3ae   :  { %v8325_v50 = vadd.f32 %v8195_v38, %v8032_v33  ;;  %v8197_v54 = vpop.f32.mrb[97].mxu0  ;;  %17246 = vmatprep.subr.msk.bf16.mxu1 %vm132_vm0, %v20607_v8  ;;  %v20646_v33 = vsel %vm132_vm0, %v20570_v9, 0 }
 0x3af   :  { %v8326_v55 = vadd.f32 %v8197_v54, %v8034_v52  ;;  %v8199_v5 = vpop.f32.mrb[98].mxu0  ;;  %v8236_v41 = vpop.f32.mrb[96].mxu1  ;;  %v20650_v52 = vcombine.high %v20614_v44, %v20614_v44 }
 0x3b0   :  { %v8200_v43 = vpop.f32.mrb[99].mxu0  ;;  %v8327_v53 = vadd.f32 %v8236_v41, %v8073_v13  ;;  %v8238_v4 = vpop.f32.mrb[97].mxu1 }
 0x3b1   :  { %v8328_v17 = vadd.f32 %v8238_v4, %v8075_v19  ;;  %v8240_v6 = vpop.f32.mrb[98].mxu1 }
 0x3b2   :  { %17241 = vmatmul.mubr.msk.bf16.vlgmr.msra.gmra.mrb[204].mxu0 %vm128_vm1, %v18273_v10  ;;  %v8241_v47 = vpop.f32.mrb[99].mxu1 }
 0x3b3   :  { %10736 = vmatpush1.bf16.msra.mxu0 %v20641_v56  ;;  %10767 = vmatprep.mubr.bf16.mxu0 %v22050_v22 }
 0x3b4   :  { %17243 = vmatmul.mubr.msk.bf16.vlgmr.msra.gmra.mrb[204].mxu1 %vm128_vm1, %v18273_v10  ;;  %17248 = vmatprep.subr.msk.bf16.mxu0 %vm132_vm0, %v20614_v44  ;;  %v20663_v10 = vsel %vm132_vm0, %v20582_v14, 0 }
 0x3b5   :  { %v8277_v13 = vpop.f32.mrb[100].mxu0  ;;  %10777 = vmatpush1.bf16.msra.mxu1 %v20646_v33  ;;  %10808 = vmatprep.mubr.bf16.mxu1 %v22050_v22 }
 0x3b6   :  { %v8329_v19 = vadd.f32 %v8277_v13, %v8114_v25  ;;  %v8279_v38 = vpop.f32.mrb[101].mxu0  ;;  %17250 = vmatprep.subr.msk.bf16.mxu1 %vm132_vm0, %v20650_v52 }
 0x3b7   :  { %v8330_v54 = vadd.f32 %v8279_v38, %v8116_v18  ;;  %v8281_v5 = vpop.f32.mrb[102].mxu0  ;;  %v8318_v41 = vpop.f32.mrb[100].mxu1  ;;  %v20671_v18 = vsel %vm132_vm0, %v20597_v59, 0 }
 0x3b8   :  { %v8282_v43 = vpop.f32.mrb[103].mxu0  ;;  %v17666_v4 = vpop.f32.mrb[101].mxu1  ;;  %v8331_v6 = vadd.f32 %v8318_v41, %v8155_v20 }
 0x3b9   :  { %v8322_v47 = vpop.f32.mrb[102].mxu1 }
 0x3ba   :  { %17245 = vmatmul.mubr.msk.bf16.vlgmr.msra.gmra.mrb[208].mxu0 %vm128_vm1, %v18274_v1  ;;  %v17667_v25 = vpop.f32.mrb[103].mxu1 }
 0x3bb   :  { %10818 = vmatpush1.bf16.msra.mxu0 %v20663_v10  ;;  %10849 = vmatprep.mubr.bf16.mxu0 %v22050_v22 }
 0x3bc   :  { %17247 = vmatmul.mubr.msk.bf16.vlgmr.msra.gmra.mrb[208].mxu1 %vm128_vm1, %v18274_v1  ;;  %17252 = vmatprep.subr.msk.bf16.mxu0 %vm132_vm0, %v20570_v9 }
 0x3bd   :  { %v8367_v20 = vpop.f32.mrb[104].mxu0  ;;  %10859 = vmatpush1.bf16.msra.mxu1 %v20671_v18  ;;  %10890 = vmatprep.mubr.bf16.mxu1 %v22050_v22 }
 0x3be   :  { %v8497_v13 = vadd.f32 %v8367_v20, %v8325_v50  ;;  %v8369_v38 = vpop.f32.mrb[105].mxu0  ;;  %17254 = vmatprep.subr.msk.bf16.mxu1 %vm132_vm0, %v20582_v14 }
 0x3bf   :  { %v8498_v5 = vadd.f32 %v8369_v38, %v8326_v55  ;;  %v8371_v41 = vpop.f32.mrb[106].mxu0  ;;  %v8408_v43 = vpop.f32.mrb[104].mxu1 }
 0x3c0   :  { %v8499_v4 = vadd.f32 %v8408_v43, %v8327_v53  ;;  %v8372_v47 = vpop.f32.mrb[107].mxu0  ;;  %v8410_v25 = vpop.f32.mrb[105].mxu1 }
 0x3c1   :  { %v8500_v42 = vadd.f32 %v8410_v25, %v8328_v17  ;;  %v8412_v51 = vpop.f32.mrb[106].mxu1  ;;  %v18275_v47 = vld [vmem:[%s22045_s28 + $0x20] sm:$0xf] }
 0x3c2   :  { %17249 = vmatmul.mubr.msk.bf16.vlgmr.msra.gmra.mrb[212].mxu0 %vm128_vm1, %v18274_v1  ;;  %v8413_v49 = vpop.f32.mrb[107].mxu1 }
 0x3c3   :  { %10908 = vmatpush1.bf16.msra.mxu0 %v20593_v57  ;;  %10939 = vmatprep.mubr.bf16.mxu0 %v22050_v22 }
 0x3c4   :  { %17251 = vmatmul.mubr.msk.bf16.vlgmr.msra.gmra.mrb[212].mxu1 %vm128_vm1, %v18274_v1  ;;  %17256 = vmatprep.subr.msk.bf16.mxu0 %vm132_vm0, %v20597_v59 }
 0x3c5   :  { %v8449_v50 = vpop.f32.mrb[108].mxu0  ;;  %10949 = vmatpush1.bf16.msra.mxu1 %v20618_v39  ;;  %10980 = vmatprep.mubr.bf16.mxu1 %v22050_v22 }
 0x3c6   :  { %v8501_v55 = vadd.f32 %v8449_v50, %v8329_v19  ;;  %v8451_v53 = vpop.f32.mrb[109].mxu0  ;;  %17692 = vmatprep.subr.bf16.mxu1 %v22048_v58  ;;  %v20698_v19 = vsel %vm132_vm0, %v20650_v52, 0 }
 0x3c7   :  { %v8502_v51 = vadd.f32 %v8451_v53, %v8330_v54  ;;  %v8453_v49 = vpop.f32.mrb[110].mxu0  ;;  %v8490_v17 = vpop.f32.mrb[108].mxu1 }
 0x3c8   :  { %v8503_v20 = vadd.f32 %v8490_v17, %v8331_v6  ;;  %v8454_v38 = vpop.f32.mrb[111].mxu0  ;;  %v8492_v41 = vpop.f32.mrb[109].mxu1 }
 0x3c9   :  { %v8504_v1 = vadd.f32 %v8492_v41, %v20620_v60  ;;  %v8494_v43 = vpop.f32.mrb[110].mxu1 }
 0x3ca   :  { %17253 = vmatmul.mubr.msk.bf16.vlgmr.msra.gmra.mrb[216].mxu0 %vm128_vm1, %v18275_v47  ;;  %v8495_v25 = vpop.f32.mrb[111].mxu1 }
 0x3cb   :  { %10990 = vmatpush1.bf16.msra.mxu0 %v20628_v61  ;;  %11021 = vmatprep.mubr.bf16.mxu0 %v22050_v22 }
 0x3cc   :  { %17255 = vmatmul.mubr.msk.bf16.vlgmr.msra.gmra.mrb[216].mxu1 %vm128_vm1, %v18275_v47  ;;  %17259 = vmatprep.subr.msk.bf16.mxu0 %vm132_vm0, %v20269_v36 }
 0x3cd   :  { %v8539_v60 = vpop.f32.mrb[112].mxu0  ;;  %17693 = vmatpush3.bf16.msra.mxu1 %v20698_v19  ;;  %17694 = vmatprep.mubr.msk.bf16.mxu1 %vm18310_vm2, %v22048_v58 }
 0x3ce   :  { %v8669_v54 = vadd.f32 %v8539_v60, %v8497_v13  ;;  %v8541_v6 = vpop.f32.mrb[113].mxu0  ;;  %17261 = vmatprep.subr.msk.bf16.mxu1 %vm132_vm0, %v20291_v31 }
 0x3cf   :  { %v8670_v50 = vadd.f32 %v8541_v6, %v8498_v5  ;;  %v8543_v53 = vpop.f32.mrb[114].mxu0  ;;  %v8580_v49 = vpop.f32.mrb[112].mxu1 }
 0x3d0   :  { %v8671_v17 = vadd.f32 %v8580_v49, %v8499_v4  ;;  %v8544_v38 = vpop.f32.mrb[115].mxu0  ;;  %v8582_v41 = vpop.f32.mrb[113].mxu1 }
 0x3d1   :  { %v8672_v43 = vadd.f32 %v8582_v41, %v8500_v42  ;;  %v8584_v25 = vpop.f32.mrb[114].mxu1 }
 0x3d2   :  { %17257 = vmatmul.mubr.msk.bf16.vlgmr.msra.gmra.mrb[220].mxu0 %vm128_vm1, %v18275_v47  ;;  %v8585_v36 = vpop.f32.mrb[115].mxu1 }
 0x3d3   :  { %11096 = vmatpush1.bf16.msra.mxu0 %v20324_v11  ;;  %11127 = vmatprep.mubr.bf16.mxu0 %v22050_v22 }
 0x3d4   :  { %17695 = vmatmul.mubr.msk.bf16.vlgmr.msra.gmra.mrb[220].mxu1 %vm128_vm1, %v18275_v47  ;;  %17263 = vmatprep.subr.msk.bf16.mxu0 %vm132_vm0, %v20298_v32  ;;  %v18276_v32 = vld [vmem:[%s22045_s28 + $0x4] sm:$0xf] }
 0x3d5   :  { %v8621_v31 = vpop.f32.mrb[116].mxu0  ;;  %11137 = vmatpush1.bf16.msra.mxu1 %v20330_v37  ;;  %11168 = vmatprep.mubr.bf16.mxu1 %v22050_v22 }
 0x3d6   :  { %v8673_v13 = vadd.f32 %v8621_v31, %v8501_v55  ;;  %v8623_v42 = vpop.f32.mrb[117].mxu0  ;;  %17265 = vmatprep.subr.msk.bf16.mxu1 %vm132_vm0, %v20334_v48 }
 0x3d7   :  { %v8674_v5 = vadd.f32 %v8623_v42, %v8502_v51  ;;  %v8625_v4 = vpop.f32.mrb[118].mxu0  ;;  %v8662_v11 = vpop.f32.mrb[116].mxu1 }
 0x3d8   :  { %v8675_v60 = vadd.f32 %v8662_v11, %v8503_v20  ;;  %v8626_v6 = vpop.f32.mrb[119].mxu0  ;;  %v8664_v53 = vpop.f32.mrb[117].mxu1 }
 0x3d9   :  { %v8666_v47 = vpop.f32.mrb[118].mxu1  ;;  %v20720_v49 = vadd.f32 %v8664_v53, %v8504_v1 }
 0x3da   :  { %17260 = vmatmul.mubr.msk.bf16.vlgmr.msra.gmra.mrb[224].mxu0 %vm128_vm1, %v18276_v32  ;;  %v8667_v37 = vpop.f32.mrb[119].mxu1  ;;  %v18277_v47 = vld [vmem:[%s22045_s28] sm:$0xf] }
 0x3db   :  { %11178 = vmatpush1.bf16.msra.mxu0 %v20348_v34  ;;  %11209 = vmatprep.mubr.bf16.mxu0 %v22050_v22 }
 0x3dc   :  { %17262 = vmatmul.mubr.msk.bf16.vlgmr.msra.gmra.mrb[224].mxu1 %vm128_vm1, %v18276_v32  ;;  %17267 = vmatprep.subr.msk.bf16.mxu0 %vm132_vm0, %v20247_v21 }
 0x3dd   :  { %v8711_v48 = vpop.f32.mrb[120].mxu0  ;;  %11219 = vmatpush1.bf16.msra.mxu1 %v20357_v3  ;;  %11250 = vmatprep.mubr.bf16.mxu1 %v22050_v22 }
 0x3de   :  { %v8841_v55 = vadd.f32 %v8711_v48, %v8669_v54  ;;  %v8713_v51 = vpop.f32.mrb[121].mxu0  ;;  %17269 = vmatprep.subr.msk.bf16.mxu1 %vm132_vm0, %v20254_v2 }
 0x3df   :  { %v8842_v20 = vadd.f32 %v8713_v51, %v8670_v50  ;;  %v8715_v1 = vpop.f32.mrb[122].mxu0  ;;  %v8752_v34 = vpop.f32.mrb[120].mxu1 }
 0x3e0   :  { %v8716_v38 = vpop.f32.mrb[123].mxu0  ;;  %v8754_v41 = vpop.f32.mrb[121].mxu1  ;;  %v8843_v25 = vadd.f32 %v8752_v34, %v8671_v17 }
 0x3e1   :  { %v8756_v36 = vpop.f32.mrb[122].mxu1  ;;  %v8844_v31 = vadd.f32 %v8754_v41, %v8672_v43 }
 0x3e2   :  { %17264 = vmatmul.mubr.msk.bf16.vlgmr.msra.gmra.mrb[228].mxu0 %vm128_vm1, %v18276_v32  ;;  %v8757_v21 = vpop.f32.mrb[123].mxu1 }
 0x3e3   :  { %11260 = vmatpush1.bf16.msra.mxu0 %v22050_v22  ;;  %11291 = vmatprep.mubr.bf16.mxu0 %v22050_v22 }
 0x3e4   :  { %17266 = vmatmul.mubr.msk.bf16.vlgmr.msra.gmra.mrb[228].mxu1 %vm128_vm1, %v18276_v32  ;;  %17271 = vmatprep.subr.msk.bf16.mxu0 %vm132_vm0, %v20266_v63 }
 0x3e5   :  { %v8793_v3 = vpop.f32.mrb[124].mxu0  ;;  %11301 = vmatpush1.bf16.msra.mxu1 %v20277_v27  ;;  %11332 = vmatprep.mubr.bf16.mxu1 %v22050_v22 }
 0x3e6   :  { %v8845_v54 = vadd.f32 %v8793_v3, %v8673_v13  ;;  %v8795_v50 = vpop.f32.mrb[125].mxu0  ;;  %17273 = vmatprep.subr.msk.bf16.mxu1 %vm132_vm0, %v20281_v7 }
 0x3e7   :  { %v8846_v17 = vadd.f32 %v8795_v50, %v8674_v5  ;;  %v8797_v43 = vpop.f32.mrb[126].mxu0  ;;  %v8834_v42 = vpop.f32.mrb[124].mxu1 }
 0x3e8   :  { %v8798_v4 = vpop.f32.mrb[127].mxu0  ;;  %v17672_v11 = vpop.f32.mrb[125].mxu1  ;;  %v8847_v6 = vadd.f32 %v8834_v42, %v8675_v60 }
 0x3e9   :  { %v8838_v53 = vpop.f32.mrb[126].mxu1 }
 0x3ea   :  { %17268 = vmatmul.mubr.msk.bf16.vlgmr.msra.gmra.mrb[232].mxu0 %vm128_vm1, %v18277_v47  ;;  %v17673_v32 = vpop.f32.mrb[127].mxu1 }
 0x3eb   :  { %11342 = vmatpush1.bf16.msra.mxu0 %v20302_v28  ;;  %11373 = vmatprep.mubr.bf16.mxu0 %v22050_v22 }
 0x3ec   :  { %17270 = vmatmul.mubr.msk.bf16.vlgmr.msra.gmra.mrb[232].mxu1 %vm128_vm1, %v18277_v47  ;;  %17275 = vmatprep.subr.msk.bf16.mxu0 %vm132_vm0, %v20254_v2 }
 0x3ed   :  { %v8954_v13 = vpop.f32.mrb[128].mxu0  ;;  %11383 = vmatpush1.bf16.msra.mxu1 %v20310_v24  ;;  %11414 = vmatprep.mubr.bf16.mxu1 %v22050_v22 }
 0x3ee   :  { %v9084_v5 = vadd.f32 %v8954_v13, %v8841_v55  ;;  %v8956_v60 = vpop.f32.mrb[129].mxu0  ;;  %17277 = vmatprep.subr.msk.bf16.mxu1 %vm132_vm0, %v20266_v63 }
 0x3ef   :  { %v9085_v37 = vadd.f32 %v8956_v60, %v8842_v20  ;;  %v8958_v48 = vpop.f32.mrb[130].mxu0  ;;  %v8995_v51 = vpop.f32.mrb[128].mxu1 }
 0x3f0   :  { %v8959_v1 = vpop.f32.mrb[131].mxu0  ;;  %v8997_v34 = vpop.f32.mrb[129].mxu1  ;;  %v9086_v38 = vadd.f32 %v8995_v51, %v8843_v25 }
 0x3f1   :  { %v8999_v41 = vpop.f32.mrb[130].mxu1  ;;  %v9087_v36 = vadd.f32 %v8997_v34, %v8844_v31 }
 0x3f2   :  { %17272 = vmatmul.mubr.msk.bf16.vlgmr.msra.gmra.mrb[236].mxu0 %vm128_vm1, %v18277_v47  ;;  %v9000_v2 = vpop.f32.mrb[131].mxu1  ;;  %v7824_v41 = vadd.f32 %v20485_v15, %v19463_v45 }
 0x3f3   :  { %11424 = vmatpush1.bf16.msra.mxu0 %v20277_v27  ;;  %11455 = vmatprep.mubr.bf16.mxu0 %v22050_v22 }
 0x3f4   :  { %17274 = vmatmul.mubr.msk.bf16.vlgmr.msra.gmra.mrb[236].mxu1 %vm128_vm1, %v18277_v47  ;;  %17279 = vmatprep.subr.msk.bf16.mxu0 %vm132_vm0, %v20281_v7  ;;  %v18278_v7 = vld [vmem:[%s22045_s28 + $0x8] sm:$0xf]  ;;  %v7832_v15 = vmax.f32 %v7824_v41, 0.0 }
 0x3f5   :  { %v9036_v63 = vpop.f32.mrb[132].mxu0  ;;  %11465 = vmatpush1.bf16.msra.mxu1 %v20302_v28  ;;  %11496 = vmatprep.mubr.bf16.mxu1 %v22050_v22 }
 0x3f6   :  { %v9088_v55 = vadd.f32 %v9036_v63, %v8845_v54  ;;  %v9038_v20 = vpop.f32.mrb[133].mxu0  ;;  %17698 = vmatprep.subr.bf16.mxu1 %v22048_v58  ;;  %v18279_v63 = vld [vmem:[%s22045_s28 + $0xc] sm:$0xf] }
 0x3f7   :  { %v9089_v25 = vadd.f32 %v9038_v20, %v8846_v17  ;;  %v9040_v31 = vpop.f32.mrb[134].mxu0  ;;  %v9077_v21 = vpop.f32.mrb[132].mxu1 }
 0x3f8   :  { %v9090_v27 = vadd.f32 %v9077_v21, %v8847_v6  ;;  %v9041_v3 = vpop.f32.mrb[135].mxu0  ;;  %v9079_v50 = vpop.f32.mrb[133].mxu1  ;;  %v7817_v21 = vadd.f32 %v20497_v29, %v19463_v45 }
 0x3f9   :  { %v9091_v43 = vadd.f32 %v9079_v50, %v20720_v49  ;;  %v9081_v42 = vpop.f32.mrb[134].mxu1  ;;  %v7818_v50 = vadd.f32 %v20501_v40, %v19463_v45 }
 0x3fa   :  { %17276 = vmatmul.mubr.msk.bf16.vlgmr.msra.gmra.mrb[240].mxu0 %vm128_vm1, %v18278_v7  ;;  %v9082_v28 = vpop.f32.mrb[135].mxu1 }
 0x3fb   :  { %11506 = vmatpush1.bf16.msra.mxu0 %v20310_v24  ;;  %11537 = vmatprep.mubr.bf16.mxu0 %v22050_v22  ;;  %v7819_v28 = vadd.f32 %v20503_v12, %v19463_v45  ;;  %v7826_v12 = vmax.f32 %v7818_v50, 0.0 }
 0x3fc   :  { %17278 = vmatmul.mubr.msk.bf16.vlgmr.msra.gmra.mrb[240].mxu1 %vm128_vm1, %v18278_v7  ;;  %17282 = vmatprep.subr.msk.bf16.mxu0 %vm132_vm0, %v20558_v16 }
 0x3fd   :  { %v9130_v54 = vpop.f32.mrb[136].mxu0  ;;  %17699 = vmatpush3.bf16.msra.mxu1 %v20385_v0  ;;  %17700 = vmatprep.mubr.msk.bf16.mxu1 %vm18310_vm2, %v22048_v58 }
 0x3fe   :  { %v9260_v49 = vadd.f32 %v9130_v54, %v9084_v5  ;;  %v9132_v17 = vpop.f32.mrb[137].mxu0  ;;  %17284 = vmatprep.subr.msk.bf16.mxu1 %vm132_vm0, %v20570_v9 }
 0x3ff   :  { %v9261_v4 = vadd.f32 %v9132_v17, %v9085_v37  ;;  %v9134_v24 = vpop.f32.mrb[138].mxu0  ;;  %v9171_v11 = vpop.f32.mrb[136].mxu1 }
 0x400   :  { %v9262_v6 = vadd.f32 %v9171_v11, %v9086_v38  ;;  %v9135_v53 = vpop.f32.mrb[139].mxu0  ;;  %v9173_v47 = vpop.f32.mrb[137].mxu1  ;;  %v7820_v24 = vadd.f32 %v20505_v62, %v19463_v45  ;;  %v7827_v62 = vmax.f32 %v7819_v28, 0.0 }
 0x401   :  { %v9263_v32 = vadd.f32 %v9173_v47, %v9087_v36  ;;  %v9175_v13 = vpop.f32.mrb[138].mxu1  ;;  %v7825_v53 = vmax.f32 %v7817_v21, 0.0 }
 0x402   :  { %17280 = vmatmul.mubr.msk.bf16.vlgmr.msra.gmra.mrb[244].mxu0 %vm128_vm1, %v18278_v7  ;;  %v9176_v16 = vpop.f32.mrb[139].mxu1 }
 0x403   :  { %11596 = vmatpush1.bf16.msra.mxu0 %v22050_v22  ;;  %11627 = vmatprep.mubr.bf16.mxu0 %v22050_v22 }
 0x404   :  { %17701 = vmatmul.mubr.msk.bf16.vlgmr.msra.gmra.mrb[244].mxu1 %vm128_vm1, %v18278_v7  ;;  %17286 = vmatprep.subr.msk.bf16.mxu0 %vm132_vm0, %v20582_v14 }
 0x405   :  { %v9212_v0 = vpop.f32.mrb[140].mxu0  ;;  %11637 = vmatpush1.bf16.msra.mxu1 %v20593_v57  ;;  %11668 = vmatprep.mubr.bf16.mxu1 %v22050_v22 }
 0x406   :  { %v20790_v5 = vadd.f32 %v9212_v0, %v9088_v55  ;;  %v9214_v60 = vpop.f32.mrb[141].mxu0  ;;  %17288 = vmatprep.subr.msk.bf16.mxu1 %vm132_vm0, %v20597_v59 }
 0x407   :  { %v20794_v37 = vadd.f32 %v9214_v60, %v9089_v25  ;;  %v9216_v48 = vpop.f32.mrb[142].mxu0  ;;  %v9253_v51 = vpop.f32.mrb[140].mxu1 }
 0x408   :  { %v20796_v1 = vadd.f32 %v9253_v51, %v9090_v27  ;;  %v9217_v34 = vpop.f32.mrb[143].mxu0  ;;  %v9255_v38 = vpop.f32.mrb[141].mxu1 }
 0x409   :  { %v9267_v36 = vadd.f32 %v9255_v38, %v9091_v43  ;;  %v9257_v2 = vpop.f32.mrb[142].mxu1 }
 0x40a   :  { %17283 = vmatmul.mubr.msk.bf16.vlgmr.msra.gmra.mrb[248].mxu0 %vm128_vm1, %v18279_v63  ;;  %v9258_v55 = vpop.f32.mrb[143].mxu1 }
 0x40b   :  { %v9447_v20 = vadd.f32 %v9267_v36, %v19463_v45  ;;  %11678 = vmatpush1.bf16.msra.mxu0 %v20618_v39  ;;  %11709 = vmatprep.mubr.bf16.mxu0 %v22050_v22 }
 0x40c   :  { %17285 = vmatmul.mubr.msk.bf16.vlgmr.msra.gmra.mrb[248].mxu1 %vm128_vm1, %v18279_v63  ;;  %17290 = vmatprep.subr.msk.bf16.mxu0 %vm132_vm0, %v20587_v35 }
 0x40d   :  { %v9455_v25 = vmax.f32 %v9447_v20, 0.0  ;;  %v9302_v31 = vpop.f32.mrb[144].mxu0  ;;  %11719 = vmatpush1.bf16.msra.mxu1 %v20628_v61  ;;  %11750 = vmatprep.mubr.bf16.mxu1 %v22050_v22 }
 0x40e   :  { %v9432_v27 = vadd.f32 %v9302_v31, %v9260_v49  ;;  %v9304_v3 = vpop.f32.mrb[145].mxu0  ;;  %17292 = vmatprep.subr.msk.bf16.mxu1 %vm132_vm0, %v20607_v8 }
 0x40f   :  { %v20818_v43 = vmax.f32 %v7832_v15, %v9455_v25  ;;  %v9433_v35 = vadd.f32 %v9304_v3, %v9261_v4  ;;  %v9306_v42 = vpop.f32.mrb[146].mxu0  ;;  %v9343_v7 = vpop.f32.mrb[144].mxu1 }
 0x410   :  { %v9440_v54 = vadd.f32 %v9432_v27, %v19463_v45  ;;  %v9434_v17 = vadd.f32 %v9343_v7, %v9262_v6  ;;  %v9307_v29 = vpop.f32.mrb[147].mxu0  ;;  %v9345_v49 = vpop.f32.mrb[145].mxu1 }
 0x411   :  { %v9441_v8 = vadd.f32 %v9433_v35, %v19463_v45  ;;  %v9435_v11 = vadd.f32 %v9345_v49, %v9263_v32  ;;  %v9347_v40 = vpop.f32.mrb[146].mxu1  ;;  %v7828_v32 = vmax.f32 %v7820_v24, 0.0 }
 0x412   :  { %v9448_v47 = vmax.f32 %v9440_v54, 0.0  ;;  %v9442_v4 = vadd.f32 %v9434_v17, %v19463_v45  ;;  %17287 = vmatmul.mubr.msk.bf16.vlgmr.msra.gmra.mrb[252].mxu0 %vm128_vm1, %v18279_v63  ;;  %v9348_v13 = vpop.f32.mrb[147].mxu1 }
 0x413   :  { %v9449_v16 = vmax.f32 %v9441_v8, 0.0  ;;  %v9443_v6 = vadd.f32 %v9435_v11, %v19463_v45  ;;  %11768 = vmatpush1.bf16.msra.mxu0 %v20641_v56  ;;  %11799 = vmatprep.mubr.bf16.mxu0 %v22050_v22  ;;  %v7821_v56 = vadd.f32 %v20517_v46, %v19463_v45  ;;  %v7823_v46 = vadd.f32 %v20523_v30, %v19463_v45 }
 0x414   :  { %v9456_v0 = vmax.f32 %v7825_v53, %v9448_v47  ;;  %v9450_v60 = vmax.f32 %v9442_v4, 0.0  ;;  %17289 = vmatmul.mubr.msk.bf16.vlgmr.msra.gmra.mrb[252].mxu1 %vm128_vm1, %v18279_v63  ;;  %17294 = vmatprep.subr.msk.bf16.mxu0 %vm132_vm0, %v20614_v44  ;;  %v7822_v44 = vadd.f32 %v20521_v26, %v19463_v45 }
 0x415   :  { %v9457_v48 = vmax.f32 %v7826_v12, %v9449_v16  ;;  %v9451_v51 = vmax.f32 %v9443_v6, 0.0  ;;  %v9384_v34 = vpop.f32.mrb[148].mxu0  ;;  %11809 = vmatpush1.bf16.msra.mxu1 %v20646_v33  ;;  %11840 = vmatprep.mubr.bf16.mxu1 %v22050_v22  ;;  %v7829_v27 = vmax.f32 %v7821_v56, 0.0  ;;  %v22070_v12 = vld [vmem:[#allocation6_spill] sm:$0xff]  ;;  %v22074_v56 = vld [vmem:[#allocation12_spill] sm:$0xff] }
 0x416   :  { %v9458_v38 = vmax.f32 %v7827_v62, %v9450_v60  ;;  %v9436_v41 = vadd.f32 %v9384_v34, %v20790_v5  ;;  %v9386_v36 = vpop.f32.mrb[149].mxu0  ;;  %17296 = vmatprep.subr.msk.bf16.mxu1 %vm132_vm0, %v20650_v52  ;;  %v7830_v30 = vmax.f32 %v7822_v44, 0.0  ;;  %v22073_v60 = vld [vmem:[#allocation10_spill] sm:$0xff] }
 0x417   :  { %v20843_v2 = vmax.f32 %v9456_v0, %v9457_v48  ;;  %v9459_v63 = vmax.f32 %v7828_v32, %v9451_v51  ;;  %v9437_v33 = vadd.f32 %v9386_v36, %v20794_v37  ;;  %v9388_v55 = vpop.f32.mrb[150].mxu0  ;;  %v9425_v20 = vpop.f32.mrb[148].mxu1  ;;  %v20905_v32 = vpack.c.bf16 %v22073_v60, %v22073_v60 }
 0x418   :  { %v9444_v15 = vadd.f32 %v9436_v41, %v19463_v45  ;;  %v9438_v5 = vadd.f32 %v9425_v20, %v20796_v1  ;;  %v9389_v25 = vpop.f32.mrb[151].mxu0  ;;  %v17678_v31 = vpop.f32.mrb[149].mxu1  ;;  %v7831_v1 = vmax.f32 %v7823_v46, 0.0 }
 0x419   :  { %v20850_v52 = vmax.f32 %v9458_v38, %v9459_v63  ;;  %v9445_v26 = vadd.f32 %v9437_v33, %v19463_v45  ;;  %v9429_v21 = vpop.f32.mrb[150].mxu1  ;;  %v20909_v38 = vpack.c.bf16 %v22074_v56, %v22074_v56  ;;  %v20915_v33 = vsel %vm12158_vm3, %v20905_v32, 0  ;;  %v20934_v25 = vld [vmem:[%s21994_s7 + $0x20] sm:$0xff]   ;;  %v22077_v56 = vld [vmem:[#allocation15_spill] sm:$0xff] }
 0x41a   :  { %v9452_v3 = vmax.f32 %v9444_v15, 0.0  ;;  %v9446_v37 = vadd.f32 %v9438_v5, %v19463_v45  ;;  %17291 = vmatmul.mubr.msk.bf16.vlgmr.msra.gmra.mrb[0].mxu0 %vm128_vm1, %v20528_v23  ;;  %v17679_v50 = vpop.f32.mrb[151].mxu1 }
 0x41b   :  { %v9453_v35 = vmax.f32 %v9445_v26, 0.0  ;;  %11850 = vmatpush1.bf16.msra.mxu0 %v20663_v10  ;;  %11881 = vmatprep.mubr.bf16.mxu0 %v22050_v22  ;;  %v20925_v20 = vsel %vm12158_vm3, %v20909_v38, 0 }
 0x41c   :  { %v9460_v42 = vmax.f32 %v7829_v27, %v9452_v3  ;;  %v9454_v7 = vmax.f32 %v9446_v37, 0.0  ;;  %17293 = vmatmul.mubr.msk.bf16.vlgmr.msra.gmra.mrb[0].mxu1 %vm128_vm1, %v20528_v23  ;;  %17298 = vmatprep.subr.msk.bf16.mxu0 %vm132_vm0, %v20570_v9 }
 0x41d   :  { %v9461_v28 = vmax.f32 %v7830_v30, %v9453_v35  ;;  %v9506_v54 = vpop.f32.mrb[152].mxu0  ;;  %11891 = vmatpush1.bf16.msra.mxu1 %v20671_v18  ;;  %11922 = vmatprep.mubr.bf16.mxu1 %v22050_v22 }
 0x41e   :  { %v9462_v17 = vmax.f32 %v7831_v1, %v9454_v7  ;;  %v9508_v29 = vpop.f32.mrb[153].mxu0  ;;  %17300 = vmatprep.subr.msk.bf16.mxu1 %vm132_vm0, %v20582_v14 }
 0x41f   :  { %v20866_v10 = vmax.f32 %v9460_v42, %v9461_v28  ;;  %v9510_v49 = vpop.f32.mrb[154].mxu0  ;;  %v9547_v24 = vpop.f32.mrb[152].mxu1 }
 0x420   :  { %v20869_v8 = vmax.f32 %v9462_v17, %v20818_v43  ;;  %v9511_v11 = vpop.f32.mrb[155].mxu0  ;;  %v9549_v9 = vpop.f32.mrb[153].mxu1 }
 0x421   :  { %v9551_v40 = vpop.f32.mrb[154].mxu1 }
 0x422   :  { %17295 = vmatmul.mubr.msk.bf16.vlgmr.msra.gmra.mrb[4].mxu0 %vm128_vm1, %v20528_v23  ;;  %v9552_v18 = vpop.f32.mrb[155].mxu1 }
 0x423   :  { %11940 = vmatpush1.bf16.msra.mxu0 %v20593_v57  ;;  %11971 = vmatprep.mubr.bf16.mxu0 %v22050_v22  ;;  %v20956_v18 = vld [vmem:[%s21994_s7 + $0x18] sm:$0xff]  }
 0x424   :  { %17297 = vmatmul.mubr.msk.bf16.vlgmr.msra.gmra.mrb[4].mxu1 %vm128_vm1, %v20528_v23  ;;  %17302 = vmatprep.subr.msk.bf16.mxu0 %vm132_vm0, %v20597_v59  ;;  %v22071_v23 = vld [vmem:[#allocation11_spill] sm:$0xff] }
 0x425   :  { %v9588_v14 = vpop.f32.mrb[156].mxu0  ;;  %11981 = vmatpush1.bf16.msra.mxu1 %v20618_v39  ;;  %12012 = vmatprep.mubr.bf16.mxu1 %v22050_v22  ;;  %v20886_v16 = vpack.c.bf16 %v22071_v23, %v22071_v23  ;;  %v22072_v39 = vld [vmem:[#allocation13_spill] sm:$0xff] }
 0x426   :  { %v9590_v43 = vpop.f32.mrb[157].mxu0  ;;  %17704 = vmatprep.subr.bf16.mxu1 %v22048_v58  ;;  %v20896_v6 = vpack.c.bf16 %v22072_v39, %v22072_v39 }
 0x427   :  { %v9592_v53 = vpop.f32.mrb[158].mxu0  ;;  %v9629_v47 = vpop.f32.mrb[156].mxu1  ;;  %v20948_v1 = vsel %vm12158_vm3, %v20886_v16, 0 }
 0x428   :  { %v9593_v4 = vpop.f32.mrb[159].mxu0  ;;  %v9631_v57 = vpop.f32.mrb[157].mxu1 }
 0x429   :  { %v9633_v13 = vpop.f32.mrb[158].mxu1  ;;  %v22075_v4 = vld [vmem:[#allocation14_spill] sm:$0xff] }
 0x42a   :  { %17299 = vmatmul.mubr.msk.bf16.vlgmr.msra.gmra.mrb[8].mxu0 %vm128_vm1, %v22070_v12  ;;  %v9634_v59 = vpop.f32.mrb[159].mxu1 }
 0x42b   :  { %12022 = vmatpush1.bf16.msra.mxu0 %v20628_v61  ;;  %12053 = vmatprep.mubr.bf16.mxu0 %v22050_v22  ;;  %v22076_v59 = vld [vmem:[#allocation16_spill] sm:$0xff] }
 0x42c   :  { %17310 = vmatprep.subr.msk.bf16.mxu0 %vm12158_vm3, %v20886_v16  ;;  %17301 = vmatmul.mubr.msk.bf16.vlgmr.msra.gmra.mrb[8].mxu1 %vm128_vm1, %v22070_v12  ;;  %v20968_v39 = vpack.c.bf16 %v22076_v59, %v22076_v59 }
 0x42d   :  { %17705 = vmatpush3.bf16.msra.mxu1 %v20698_v19  ;;  %v9670_v62 = vpop.f32.mrb[160].mxu0  ;;  %17706 = vmatprep.mubr.msk.bf16.mxu1 %vm18310_vm2, %v22048_v58 }
 0x42e   :  { %v9671_v61 = vadd.f32 %v9670_v62, %v9506_v54  ;;  %17312 = vmatprep.subr.msk.bf16.mxu1 %vm12158_vm3, %v20896_v6  ;;  %v9672_v0 = vpop.f32.mrb[161].mxu0 }
 0x42f   :  { %v9673_v48 = vadd.f32 %v9672_v0, %v9508_v29  ;;  %v9674_v51 = vpop.f32.mrb[162].mxu0  ;;  %v9711_v34 = vpop.f32.mrb[160].mxu1 }
 0x430   :  { %v9675_v19 = vpop.f32.mrb[163].mxu0  ;;  %v9712_v41 = vadd.f32 %v9711_v34, %v9547_v24  ;;  %v9713_v36 = vpop.f32.mrb[161].mxu1  ;;  %v72_v34 = vld [vmem:[%s21995_s8 + $0x8] sm:$0xff]  ;;  %s22085_s8 = sld [smem:[#allocation22_spill]] }
 0x431   :  { %v9714_v44 = vadd.f32 %v9713_v36, %v9549_v9  ;;  %v9715_v63 = vpop.f32.mrb[162].mxu1  ;;  %12792 = vperm.xlu1 %18137, %v72_v34   ;;  %v20988_v19 = vpack.c.bf16 %v22077_v56, %v22077_v56 }
 0x432   :  { %17303 = vmatmul.mubr.msk.bf16.vlgmr.msra.gmra.mrb[12].mxu0 %vm128_vm1, %v22070_v12  ;;  %v9716_v55 = vpop.f32.mrb[163].mxu1 }
 0x433   :  { %12172 = vmatpush1.bf16.msra.mxu0 %v20915_v33  ;;  %12203 = vmatprep.mubr.bf16.mxu0 %v22050_v22 }
 0x434   :  { %17315 = vmatprep.subr.msk.bf16.mxu0 %vm12158_vm3, %v20905_v32  ;;  %17707 = vmatmul.mubr.msk.bf16.vlgmr.msra.gmra.mrb[12].mxu1 %vm128_vm1, %v22070_v12 }
 0x435   :  { %12215 = vmatpush1.bf16.msra.mxu1 %v20925_v20  ;;  %v9752_v46 = vpop.f32.mrb[164].mxu0  ;;  %12246 = vmatprep.mubr.bf16.mxu1 %v22050_v22 }
 0x436   :  { %v9753_v15 = vadd.f32 %v9752_v46, %v9588_v14  ;;  %17317 = vmatprep.subr.msk.bf16.mxu1 %vm12158_vm3, %v20909_v38  ;;  %v9754_v5 = vpop.f32.mrb[165].mxu0 }
 0x437   :  { %v9755_v31 = vadd.f32 %v9754_v5, %v9590_v43  ;;  %v9756_v26 = vpop.f32.mrb[166].mxu0  ;;  %v9793_v21 = vpop.f32.mrb[164].mxu1 }
 0x438   :  { %v9757_v27 = vpop.f32.mrb[167].mxu0  ;;  %v9794_v3 = vadd.f32 %v9793_v21, %v9629_v47  ;;  %v9795_v37 = vpop.f32.mrb[165].mxu1  ;;  %v20999_v21 = vsel %vm12158_vm3, %v20988_v19, 0 }
 0x439   :  { %v20936_v50 = vadd.f32 %v9795_v37, %v9631_v57  ;;  %v9797_v30 = vpop.f32.mrb[166].mxu1  ;;  %v20962_v57 = vpack.c.bf16 %v22075_v4, %v22075_v4  ;;  %v22078_v27 = vld [vmem:[#allocation17_spill] sm:$0xff] }
 0x43a   :  { %17311 = vmatmul.mubr.msk.bf16.vlgmr.msra.gmra.mrb[16].mxu0 %vm12154_vm4, %v20934_v25  ;;  %v9798_v35 = vpop.f32.mrb[167].mxu1 }
 0x43b   :  { %12268 = vmatpush1.bf16.msra.mxu0 %v22050_v22  ;;  %12299 = vmatprep.mubr.bf16.mxu0 %v22050_v22 }
 0x43c   :  { %17322 = vmatprep.subr.msk.bf16.mxu0 %vm12158_vm3, %v20909_v38  ;;  %17313 = vmatmul.mubr.msk.bf16.vlgmr.msra.gmra.mrb[16].mxu1 %vm12154_vm4, %v20934_v25 }
 0x43d   :  { %12311 = vmatpush1.bf16.msra.mxu1 %v20948_v1  ;;  %v9834_v42 = vpop.f32.mrb[168].mxu0  ;;  %12342 = vmatprep.mubr.bf16.mxu1 %v22050_v22 }
 0x43e   :  { %v9964_v7 = vadd.f32 %v9834_v42, %v9671_v61  ;;  %v9836_v28 = vpop.f32.mrb[169].mxu0  ;;  %17710 = vmatprep.subr.bf16.mxu1 %v22048_v58  ;;  %v20976_v61 = vsel %vm12158_vm3, %v20896_v6, 0  ;;  %v21018_v42 = vld [vmem:[%s21994_s7 + $0x30] sm:$0xff]  }
 0x43f   :  { %v9965_v54 = vadd.f32 %v9836_v28, %v9673_v48  ;;  %v9838_v17 = vpop.f32.mrb[170].mxu0  ;;  %v9875_v29 = vpop.f32.mrb[168].mxu1 }
 0x440   :  { %v9839_v49 = vpop.f32.mrb[171].mxu0  ;;  %v9966_v24 = vadd.f32 %v9875_v29, %v9712_v41  ;;  %v9877_v11 = vpop.f32.mrb[169].mxu1  ;;  %v20993_v41 = vld [vmem:[%s21994_s7 + $0x28] sm:$0xff]  }
 0x441   :  { %v9967_v9 = vadd.f32 %v9877_v11, %v9714_v44  ;;  %v9879_v40 = vpop.f32.mrb[170].mxu1 }
 0x442   :  { %v9880_v14 = vpop.f32.mrb[171].mxu1  ;;  %v21024_v40 = vsel %vm12158_vm3, %v20968_v39, 0 }
 0x445   :  { %v9916_v43 = vpop.f32.mrb[172].mxu0 }
 0x446   :  { %v9968_v53 = vadd.f32 %v9916_v43, %v9753_v15  ;;  %v9918_v47 = vpop.f32.mrb[173].mxu0  ;;  %17316 = vmatmul.mubr.msk.bf16.vlgmr.msra.gmra.mrb[16].mxu0 %vm12154_vm4, %v20956_v18 }
 0x447   :  { %v9969_v13 = vadd.f32 %v9918_v47, %v9755_v31  ;;  %12365 = vmatpush1.bf16.msra.mxu0 %v20948_v1  ;;  %v9920_v12 = vpop.f32.mrb[174].mxu0  ;;  %v9957_v23 = vpop.f32.mrb[172].mxu1  ;;  %12396 = vmatprep.mubr.bf16.mxu0 %v22050_v22  ;;  %v21033_v47 = vld [vmem:[%s21994_s7 + $0x38] sm:$0xff]  }
 0x448   :  { %17328 = vmatprep.subr.msk.bf16.mxu0 %vm12158_vm3, %v20962_v57  ;;  %v9921_v62 = vpop.f32.mrb[175].mxu0  ;;  %17318 = vmatmul.mubr.msk.bf16.vlgmr.msra.gmra.mrb[16].mxu1 %vm12154_vm4, %v20956_v18  ;;  %v9970_v0 = vadd.f32 %v9957_v23, %v9794_v3  ;;  %v17684_v60 = vpop.f32.mrb[173].mxu1  ;;  %v21003_v3 = vpack.c.bf16 %v22078_v27, %v22078_v27 }
 0x449   :  { %17711 = vmatpush3.bf16.msra.mxu1 %v20976_v61  ;;  %v9961_v48 = vpop.f32.mrb[174].mxu1  ;;  %17712 = vmatprep.mubr.msk.bf16.mxu1 %vm18310_vm2, %v22048_v58 }
 0x44a   :  { %17330 = vmatprep.subr.msk.bf16.mxu1 %vm12158_vm3, %v20968_v39  ;;  %v17685_v51 = vpop.f32.mrb[175].mxu1 }
 0x44b   :  { %v21049_v51 = vsel %vm12158_vm3, %v21003_v3, 0 }
 0x44d   :  { %v10006_v36 = vpop.f32.mrb[176].mxu0 }
 0x44e   :  { %v10136_v44 = vadd.f32 %v10006_v36, %v9964_v7  ;;  %v10008_v63 = vpop.f32.mrb[177].mxu0 }
 0x44f   :  { %v10137_v55 = vadd.f32 %v10008_v63, %v9965_v54  ;;  %v10010_v46 = vpop.f32.mrb[178].mxu0  ;;  %v10047_v15 = vpop.f32.mrb[176].mxu1 }
 0x450   :  { %v10138_v5 = vadd.f32 %v10047_v15, %v9966_v24  ;;  %v10011_v31 = vpop.f32.mrb[179].mxu0  ;;  %v10049_v26 = vpop.f32.mrb[177].mxu1  ;;  %17713 = vmatmul.mubr.msk.bf16.vlgmr.msra.gmra.mrb[20].mxu1 %vm12154_vm4, %v20993_v41 }
 0x451   :  { %v10139_v37 = vadd.f32 %v10049_v26, %v9967_v9  ;;  %12522 = vmatpush1.bf16.msra.mxu1 %v20999_v21  ;;  %v10051_v30 = vpop.f32.mrb[178].mxu1  ;;  %12553 = vmatprep.mubr.bf16.mxu1 %v22050_v22 }
 0x452   :  { %17337 = vmatprep.subr.msk.bf16.mxu1 %vm12158_vm3, %v21003_v3  ;;  %17323 = vmatmul.mubr.msk.bf16.vlgmr.msra.gmra.mrb[16].mxu0 %vm12154_vm4, %v20993_v41  ;;  %v10052_v35 = vpop.f32.mrb[179].mxu1 }
 0x453   :  { %12479 = vmatpush1.bf16.msra.mxu0 %v22050_v22  ;;  %12510 = vmatprep.mubr.bf16.mxu0 %v22050_v22 }
 0x454   :  { %17335 = vmatprep.subr.msk.bf16.mxu0 %vm12158_vm3, %v20988_v19 }
 0x455   :  { %v10088_v7 = vpop.f32.mrb[180].mxu0 }
 0x456   :  { %v10140_v28 = vadd.f32 %v10088_v7, %v9968_v53  ;;  %v10090_v54 = vpop.f32.mrb[181].mxu0 }
 0x457   :  { %v10141_v17 = vadd.f32 %v10090_v54, %v9969_v13  ;;  %v10092_v29 = vpop.f32.mrb[182].mxu0  ;;  %v10129_v49 = vpop.f32.mrb[180].mxu1 }
 0x458   :  { %v10142_v24 = vadd.f32 %v10129_v49, %v9970_v0  ;;  %v10093_v11 = vpop.f32.mrb[183].mxu0  ;;  %v10131_v9 = vpop.f32.mrb[181].mxu1  ;;  %17331 = vmatmul.mubr.msk.bf16.vlgmr.msra.gmra.mrb[24].mxu1 %vm12154_vm4, %v21018_v42 }
 0x459   :  { %v10143_v14 = vadd.f32 %v10131_v9, %v20936_v50  ;;  %12630 = vmatpush1.bf16.msra.mxu1 %v21024_v40  ;;  %v10133_v43 = vpop.f32.mrb[182].mxu1  ;;  %12661 = vmatprep.mubr.bf16.mxu1 %v22050_v22  ;;  %v21039_v50 = vsel %vm12158_vm3, %v20962_v57, 0 }
 0x45a   :  { %v10134_v53 = vpop.f32.mrb[183].mxu1  ;;  %17716 = vmatprep.subr.bf16.mxu1 %v22048_v58 }
 0x45d   :  { %v10178_v4 = vpop.f32.mrb[184].mxu0 }
 0x45e   :  { %v10308_v13 = vadd.f32 %v10178_v4, %v10136_v44  ;;  %v10180_v12 = vpop.f32.mrb[185].mxu0  ;;  %17329 = vmatmul.mubr.msk.bf16.vlgmr.msra.gmra.mrb[16].mxu0 %vm12154_vm4, %v21018_v42  ;;  %v21059_v44 = vld [vmem:[%s21994_s7 + $0x40] sm:$0xff]  }
 0x45f   :  { %v10309_v23 = vadd.f32 %v10180_v12, %v10137_v55  ;;  %12587 = vmatpush1.bf16.msra.mxu0 %v21039_v50  ;;  %v10182_v59 = vpop.f32.mrb[186].mxu0  ;;  %v10219_v62 = vpop.f32.mrb[184].mxu1  ;;  %12618 = vmatprep.mubr.bf16.mxu0 %v22050_v22 }
 0x460   :  { %v10310_v0 = vadd.f32 %v10219_v62, %v10138_v5  ;;  %17342 = vmatprep.subr.msk.bf16.mxu0 %vm12158_vm3, %v20968_v39  ;;  %v10183_v60 = vpop.f32.mrb[187].mxu0  ;;  %v10221_v48 = vpop.f32.mrb[185].mxu1  ;;  %17338 = vmatmul.mubr.msk.bf16.vlgmr.msra.gmra.mrb[28].mxu1 %vm12154_vm4, %v21033_v47 }
 0x461   :  { %v10311_v34 = vadd.f32 %v10221_v48, %v10139_v37  ;;  %17717 = vmatpush3.bf16.msra.mxu1 %v21049_v51  ;;  %v10223_v56 = vpop.f32.mrb[186].mxu1  ;;  %17718 = vmatprep.mubr.msk.bf16.mxu1 %vm18310_vm2, %v22048_v58  ;;  %v21094_v48 = vld [vmem:[%s21994_s7] sm:$0xff]  }
 0x462   :  { %17350 = vmatprep.subr.msk.bf16.mxu1 %vm12158_vm3, %v20896_v6  ;;  %v10224_v36 = vpop.f32.mrb[187].mxu1 }
 0x465   :  { %v10260_v63 = vpop.f32.mrb[188].mxu0 }
 0x466   :  { %v10312_v55 = vadd.f32 %v10260_v63, %v10140_v28  ;;  %v10262_v46 = vpop.f32.mrb[189].mxu0 }
 0x467   :  { %v10313_v15 = vadd.f32 %v10262_v46, %v10141_v17  ;;  %v10264_v5 = vpop.f32.mrb[190].mxu0  ;;  %v10301_v31 = vpop.f32.mrb[188].mxu1 }
 0x468   :  { %v10314_v26 = vadd.f32 %v10301_v31, %v10142_v24  ;;  %v10265_v27 = vpop.f32.mrb[191].mxu0  ;;  %v10303_v37 = vpop.f32.mrb[189].mxu1  ;;  %17719 = vmatmul.mubr.msk.bf16.vlgmr.msra.gmra.mrb[32].mxu1 %vm12154_vm4, %v21059_v44  ;;  %v21112_v31 = vld [vmem:[%s21994_s7 + $0x10] sm:$0xff]  }
 0x469   :  { %v21063_v30 = vadd.f32 %v10303_v37, %v10143_v14  ;;  %12876 = vmatpush1.bf16.msra.mxu1 %v20925_v20  ;;  %v10305_v6 = vpop.f32.mrb[190].mxu1  ;;  %12907 = vmatprep.mubr.bf16.mxu1 %v22050_v22  ;;  %v21078_v20 = vld [vmem:[%s21994_s7 + $0x8] sm:$0xff]  }
 0x46a   :  { %17355 = vmatprep.subr.msk.bf16.mxu1 %vm12158_vm3, %v20909_v38  ;;  %17336 = vmatmul.mubr.msk.bf16.vlgmr.msra.gmra.mrb[16].mxu0 %vm12154_vm4, %v21033_v47  ;;  %v10306_v35 = vpop.f32.mrb[191].mxu1 }
 0x46b   :  { %12692 = vmatpush1.bf16.msra.mxu0 %v20999_v21  ;;  %12723 = vmatprep.mubr.bf16.mxu0 %v22050_v22 }
 0x46c   :  { %17348 = vmatprep.subr.msk.bf16.mxu0 %vm12158_vm3, %v20886_v16 }
 0x46d   :  { %v10350_v7 = vpop.f32.mrb[192].mxu0 }
 0x46e   :  { %v10480_v28 = vadd.f32 %v10350_v7, %v10308_v13  ;;  %v10352_v54 = vpop.f32.mrb[193].mxu0 }
 0x46f   :  { %v10481_v17 = vadd.f32 %v10352_v54, %v10309_v23  ;;  %v10354_v29 = vpop.f32.mrb[194].mxu0  ;;  %v10391_v49 = vpop.f32.mrb[192].mxu1 }
 0x470   :  { %v10482_v24 = vadd.f32 %v10391_v49, %v10310_v0  ;;  %v10355_v11 = vpop.f32.mrb[195].mxu0  ;;  %v10393_v9 = vpop.f32.mrb[193].mxu1  ;;  %17351 = vmatmul.mubr.msk.bf16.vlgmr.msra.gmra.mrb[36].mxu1 %vm12154_vm4, %v21078_v20 }
 0x471   :  { %v10483_v14 = vadd.f32 %v10393_v9, %v10311_v34  ;;  %12970 = vmatpush1.bf16.msra.mxu1 %v20948_v1  ;;  %v10395_v16 = vpop.f32.mrb[194].mxu1  ;;  %13001 = vmatprep.mubr.bf16.mxu1 %v22050_v22 }
 0x472   :  { %v10396_v43 = vpop.f32.mrb[195].mxu1  ;;  %17722 = vmatprep.subr.bf16.mxu1 %v22048_v58 }
 0x475   :  { %v10432_v53 = vpop.f32.mrb[196].mxu0 }
 0x476   :  { %v10484_v4 = vadd.f32 %v10432_v53, %v10312_v55  ;;  %v10434_v13 = vpop.f32.mrb[197].mxu0  ;;  %17343 = vmatmul.mubr.msk.bf16.vlgmr.msra.gmra.mrb[16].mxu0 %vm12154_vm4, %v21059_v44 }
 0x477   :  { %v10485_v12 = vadd.f32 %v10434_v13, %v10313_v15  ;;  %12833 = vmatpush1.bf16.msra.mxu0 %v20915_v33  ;;  %v10436_v23 = vpop.f32.mrb[198].mxu0  ;;  %v10473_v59 = vpop.f32.mrb[196].mxu1  ;;  %12864 = vmatprep.mubr.bf16.mxu0 %v22050_v22 }
 0x478   :  { %v10486_v62 = vadd.f32 %v10473_v59, %v10314_v26  ;;  %17353 = vmatprep.subr.msk.bf16.mxu0 %vm12158_vm3, %v20905_v32  ;;  %v10437_v0 = vpop.f32.mrb[199].mxu0  ;;  %v17690_v60 = vpop.f32.mrb[197].mxu1 }
 0x479   :  { %v10477_v34 = vpop.f32.mrb[198].mxu1  ;;  %v21134_v0 = vpack.c.bf16 %v20866_v10, %v20866_v10 }
 0x47a   :  { %v17691_v56 = vpop.f32.mrb[199].mxu1 }
 0x47c   :  { %17356 = vmatmul.mubr.msk.bf16.vlgmr.msra.gmra.mrb[36].mxu1 %vm12154_vm4, %v21094_v48 }
 0x47d   :  { %17723 = vmatpush3.bf16.msra.mxu1 %v20976_v61  ;;  %v10593_v33 = vpop.f32.mrb[200].mxu0  ;;  %17724 = vmatprep.mubr.msk.bf16.mxu1 %vm18310_vm2, %v22048_v58 }
 0x47e   :  { %v10723_v36 = vadd.f32 %v10593_v33, %v10480_v28  ;;  %17365 = vmatprep.subr.msk.bf16.mxu1 %vm12158_vm3, %v20968_v39  ;;  %v10595_v32 = vpop.f32.mrb[201].mxu0  ;;  %17349 = vmatmul.mubr.msk.bf16.vlgmr.msra.gmra.mrb[20].mxu0 %vm12154_vm4, %v21078_v20 }
 0x47f   :  { %v10724_v63 = vadd.f32 %v10595_v32, %v10481_v17  ;;  %12927 = vmatpush1.bf16.msra.mxu0 %v22050_v22  ;;  %v10597_v55 = vpop.f32.mrb[202].mxu0  ;;  %v10634_v46 = vpop.f32.mrb[200].mxu1  ;;  %12958 = vmatprep.mubr.bf16.mxu0 %v22050_v22  ;;  %v21149_v32 = vpack.c.bf16 %v20850_v52, %v20850_v52  ;;  %v21163_v52 = vpack.c.bf16 %v20869_v8, %v20869_v8 }
 0x480   :  { %v10725_v61 = vadd.f32 %v10634_v46, %v10482_v24  ;;  %17360 = vmatprep.subr.msk.bf16.mxu0 %vm12158_vm3, %v20909_v38  ;;  %v10598_v15 = vpop.f32.mrb[203].mxu0  ;;  %v10636_v5 = vpop.f32.mrb[201].mxu1 }
 0x481   :  { %v10726_v26 = vadd.f32 %v10636_v5, %v10483_v14  ;;  %v10638_v27 = vpop.f32.mrb[202].mxu1 }
 0x482   :  { %v10639_v37 = vpop.f32.mrb[203].mxu1 }
 0x484   :  { %17725 = vmatmul.mubr.msk.bf16.vlgmr.msra.gmra.mrb[40].mxu1 %vm12154_vm4, %v21112_v31 }
 0x485   :  { %13161 = vmatpush1.bf16.msra.mxu1 %v20999_v21  ;;  %v10675_v6 = vpop.f32.mrb[204].mxu0  ;;  %13192 = vmatprep.mubr.bf16.mxu1 %v22050_v22 }
 0x486   :  { %v10727_v35 = vadd.f32 %v10675_v6, %v10484_v4  ;;  %17369 = vmatprep.subr.msk.bf16.mxu1 %vm12158_vm3, %v21003_v3  ;;  %v10677_v38 = vpop.f32.mrb[205].mxu0 }
 0x487   :  { %v10728_v7 = vadd.f32 %v10677_v38, %v10485_v12  ;;  %v10679_v28 = vpop.f32.mrb[206].mxu0  ;;  %v10716_v54 = vpop.f32.mrb[204].mxu1 }
 0x488   :  { %v10729_v17 = vadd.f32 %v10716_v54, %v10486_v62  ;;  %v10680_v29 = vpop.f32.mrb[207].mxu0  ;;  %v10718_v49 = vpop.f32.mrb[205].mxu1 }
 0x489   :  { %v10730_v24 = vadd.f32 %v10718_v49, %v21063_v30  ;;  %v10720_v11 = vpop.f32.mrb[206].mxu1 }
 0x48a   :  { %17354 = vmatmul.mubr.msk.bf16.vlgmr.msra.gmra.mrb[20].mxu0 %vm12154_vm4, %v21094_v48  ;;  %v10721_v9 = vpop.f32.mrb[207].mxu1 }
 0x48b   :  { %13024 = vmatpush1.bf16.msra.mxu0 %v20948_v1  ;;  %13055 = vmatprep.mubr.bf16.mxu0 %v22050_v22 }
 0x48c   :  { %17363 = vmatprep.subr.msk.bf16.mxu0 %vm12158_vm3, %v20962_v57  ;;  %17366 = vmatmul.mubr.msk.bf16.vlgmr.msra.gmra.mrb[44].mxu1 %vm12154_vm4, %v20956_v18 }
 0x48d   :  { %13255 = vmatpush1.bf16.msra.mxu1 %v21024_v40  ;;  %v10769_v14 = vpop.f32.mrb[208].mxu0  ;;  %13286 = vmatprep.mubr.bf16.mxu1 %v22050_v22 }
 0x48e   :  { %v10899_v30 = vadd.f32 %v10769_v14, %v10723_v36  ;;  %v10771_v16 = vpop.f32.mrb[209].mxu0  ;;  %17728 = vmatprep.subr.bf16.mxu1 %v22048_v58 }
 0x48f   :  { %v10900_v43 = vadd.f32 %v10771_v16, %v10724_v63  ;;  %v10773_v53 = vpop.f32.mrb[210].mxu0  ;;  %v10810_v1 = vpop.f32.mrb[208].mxu1 }
 0x490   :  { %v10901_v4 = vadd.f32 %v10810_v1, %v10725_v61  ;;  %v10774_v13 = vpop.f32.mrb[211].mxu0  ;;  %v10812_v12 = vpop.f32.mrb[209].mxu1 }
 0x491   :  { %v10902_v23 = vadd.f32 %v10812_v12, %v10726_v26  ;;  %v10814_v59 = vpop.f32.mrb[210].mxu1  ;;  %v21159_v26 = vsel %vm12158_vm3, %v21149_v32, 0 }
 0x492   :  { %v10815_v62 = vpop.f32.mrb[211].mxu1 }
 0x494   :  { %17370 = vmatmul.mubr.msk.bf16.vlgmr.msra.gmra.mrb[48].mxu1 %vm12154_vm4, %v20934_v25 }
 0x495   :  { %17729 = vmatpush3.bf16.msra.mxu1 %v21049_v51  ;;  %v10851_v60 = vpop.f32.mrb[212].mxu0  ;;  %17730 = vmatprep.mubr.msk.bf16.mxu1 %vm18310_vm2, %v22048_v58 }
 0x496   :  { %v10903_v34 = vadd.f32 %v10851_v60, %v10727_v35  ;;  %17376 = vmatprep.subr.msk.bf16.mxu1 %vm12158_vm3, %v21134_v0  ;;  %v10853_v56 = vpop.f32.mrb[213].mxu0  ;;  %17361 = vmatmul.mubr.msk.bf16.vlgmr.msra.gmra.mrb[20].mxu0 %vm12154_vm4, %v21112_v31  ;;  %v21213_v60 = vpack.c.bf16 %v20843_v2, %v20843_v2 }
 0x497   :  { %v10904_v33 = vadd.f32 %v10853_v56, %v10728_v7  ;;  %13118 = vmatpush1.bf16.msra.mxu0 %v22050_v22  ;;  %v10855_v10 = vpop.f32.mrb[214].mxu0  ;;  %v10892_v36 = vpop.f32.mrb[212].mxu1  ;;  %13149 = vmatprep.mubr.bf16.mxu0 %v22050_v22 }
 0x498   :  { %v10905_v63 = vadd.f32 %v10892_v36, %v10729_v17  ;;  %17367 = vmatprep.subr.msk.bf16.mxu0 %vm12158_vm3, %v20988_v19  ;;  %v10856_v55 = vpop.f32.mrb[215].mxu0  ;;  %v10894_v46 = vpop.f32.mrb[213].mxu1 }
 0x499   :  { %v21153_v61 = vadd.f32 %v10894_v46, %v10730_v24  ;;  %v10896_v15 = vpop.f32.mrb[214].mxu1  ;;  %v21187_v24 = vsel %vm12158_vm3, %v21134_v0, 0 }
 0x49a   :  { %v10897_v5 = vpop.f32.mrb[215].mxu1 }
 0x49c   :  { %17731 = vmatmul.mubr.msk.bf16.vlgmr.msra.gmra.mrb[52].mxu1 %vm12154_vm4, %v20993_v41 }
 0x49d   :  { %13452 = vmatpush1.bf16.msra.mxu1 %v21159_v26  ;;  %v10941_v27 = vpop.f32.mrb[216].mxu0  ;;  %13483 = vmatprep.mubr.bf16.mxu1 %v22050_v22 }
 0x49e   :  { %v21167_v37 = vadd.f32 %v10941_v27, %v10899_v30  ;;  %17380 = vmatprep.subr.msk.bf16.mxu1 %vm12158_vm3, %v21163_v52  ;;  %v10943_v6 = vpop.f32.mrb[217].mxu0 }
 0x49f   :  { %v21171_v35 = vadd.f32 %v10943_v6, %v10900_v43  ;;  %v10945_v38 = vpop.f32.mrb[218].mxu0  ;;  %v10982_v7 = vpop.f32.mrb[216].mxu1 }
 0x4a0   :  { %v21173_v28 = vadd.f32 %v10982_v7, %v10901_v4  ;;  %v10946_v54 = vpop.f32.mrb[219].mxu0  ;;  %v10984_v8 = vpop.f32.mrb[217].mxu1 }
 0x4a1   :  { %v21175_v17 = vadd.f32 %v10984_v8, %v10902_v23  ;;  %v10986_v29 = vpop.f32.mrb[218].mxu1  ;;  %v21202_v23 = vsel %vm12158_vm3, %v21163_v52, 0 }
 0x4a2   :  { %17364 = vmatmul.mubr.msk.bf16.vlgmr.msra.gmra.mrb[20].mxu0 %vm12154_vm4, %v20956_v18  ;;  %v10987_v49 = vpop.f32.mrb[219].mxu1 }
 0x4a3   :  { %13212 = vmatpush1.bf16.msra.mxu0 %v21039_v50  ;;  %13243 = vmatprep.mubr.bf16.mxu0 %v22050_v22 }
 0x4a4   :  { %17371 = vmatprep.subr.msk.bf16.mxu0 %vm12158_vm3, %v20968_v39  ;;  %17377 = vmatmul.mubr.msk.bf16.vlgmr.msra.gmra.mrb[56].mxu1 %vm12154_vm4, %v21018_v42 }
 0x4a5   :  { %13549 = vmatpush1.bf16.msra.mxu1 %v21187_v24  ;;  %v11023_v11 = vpop.f32.mrb[220].mxu0  ;;  %13580 = vmatprep.mubr.bf16.mxu1 %v22050_v22 }
 0x4a6   :  { %v21191_v9 = vadd.f32 %v11023_v11, %v10903_v34  ;;  %v11025_v14 = vpop.f32.mrb[221].mxu0  ;;  %17734 = vmatprep.subr.bf16.mxu1 %v22048_v58 }
 0x4a7   :  { %v21194_v30 = vadd.f32 %v11025_v14, %v10904_v33  ;;  %v11027_v16 = vpop.f32.mrb[222].mxu0  ;;  %v11064_v43 = vpop.f32.mrb[220].mxu1 }
 0x4a8   :  { %v21196_v53 = vadd.f32 %v11064_v43, %v10905_v63  ;;  %v11028_v1 = vpop.f32.mrb[223].mxu0  ;;  %v17696_v4 = vpop.f32.mrb[221].mxu1 }
 0x4a9   :  { %v11068_v13 = vpop.f32.mrb[222].mxu1 }
 0x4aa   :  { %v17697_v12 = vpop.f32.mrb[223].mxu1 }
 0x4ac   :  { %17381 = vmatmul.mubr.msk.bf16.vlgmr.msra.gmra.mrb[60].mxu1 %vm12154_vm4, %v21033_v47 }
 0x4ad   :  { %17735 = vmatpush3.bf16.msra.mxu1 %v21202_v23  ;;  %v11129_v59 = vpop.f32.mrb[224].mxu0  ;;  %17736 = vmatprep.mubr.msk.bf16.mxu1 %vm18310_vm2, %v22048_v58 }
 0x4ae   :  { %17387 = vmatprep.subr.msk.bf16.mxu1 %vm12158_vm3, %v21003_v3  ;;  %v11131_v62 = vpop.f32.mrb[225].mxu0  ;;  %17368 = vmatmul.mubr.msk.bf16.vlgmr.msra.gmra.mrb[20].mxu0 %vm12154_vm4, %v20934_v25 }
 0x4af   :  { %13306 = vmatpush1.bf16.msra.mxu0 %v20999_v21  ;;  %v11133_v34 = vpop.f32.mrb[226].mxu0  ;;  %13337 = vmatprep.mubr.bf16.mxu0 %v22050_v22  ;;  %v11170_v56 = vpop.f32.mrb[224].mxu1 }
 0x4b0   :  { %17374 = vmatprep.subr.msk.bf16.mxu0 %vm12158_vm3, %v21213_v60  ;;  %v11134_v33 = vpop.f32.mrb[227].mxu0  ;;  %v11172_v10 = vpop.f32.mrb[225].mxu1 }
 0x4b1   :  { %v11174_v3 = vpop.f32.mrb[226].mxu1 }
 0x4b2   :  { %v11175_v36 = vpop.f32.mrb[227].mxu1 }
 0x4b4   :  { %17737 = vmatmul.mubr.msk.bf16.vlgmr.msra.gmra.mrb[64].mxu1 %vm12154_vm4, %v21059_v44 }
 0x4b5   :  { %13761 = vmatpush1.bf16.msra.mxu1 %v21024_v40  ;;  %v11211_v2 = vpop.f32.mrb[228].mxu0  ;;  %13792 = vmatprep.mubr.bf16.mxu1 %v22050_v22 }
 0x4b6   :  { %17391 = vmatprep.subr.msk.bf16.mxu1 %vm12158_vm3, %v20968_v39  ;;  %v11213_v63 = vpop.f32.mrb[229].mxu0 }
 0x4b7   :  { %v11215_v55 = vpop.f32.mrb[230].mxu0  ;;  %v11252_v46 = vpop.f32.mrb[228].mxu1 }
 0x4b8   :  { %v11216_v15 = vpop.f32.mrb[231].mxu0  ;;  %v11254_v5 = vpop.f32.mrb[229].mxu1 }
 0x4b9   :  { %v11256_v27 = vpop.f32.mrb[230].mxu1 }
 0x4ba   :  { %17372 = vmatmul.mubr.msk.bf16.vlgmr.msra.gmra.mrb[20].mxu0 %vm12154_vm4, %v20993_v41  ;;  %v11257_v6 = vpop.f32.mrb[231].mxu1 }
 0x4bb   :  { %13409 = vmatpush1.bf16.msra.mxu0 %v22050_v22  ;;  %13440 = vmatprep.mubr.bf16.mxu0 %v22050_v22 }
 0x4bc   :  { %17378 = vmatprep.subr.msk.bf16.mxu0 %vm12158_vm3, %v21149_v32  ;;  %17388 = vmatmul.mubr.msk.bf16.vlgmr.msra.gmra.mrb[68].mxu1 %vm12154_vm4, %v21078_v20 }
 0x4bd   :  { %13847 = vmatpush1.bf16.msra.mxu1 %v20999_v21  ;;  %v11293_v40 = vpop.f32.mrb[232].mxu0  ;;  %13878 = vmatprep.mubr.bf16.mxu1 %v22050_v22 }
 0x4be   :  { %v11294_v38 = vadd.f32 %v11293_v40, %v11129_v59  ;;  %v11295_v7 = vpop.f32.mrb[233].mxu0  ;;  %17740 = vmatprep.subr.bf16.mxu1 %v22048_v58  ;;  %v21240_v59 = vsel %vm12158_vm3, %v21213_v60, 0 }
 0x4bf   :  { %v11296_v54 = vadd.f32 %v11295_v7, %v11131_v62  ;;  %v11297_v8 = vpop.f32.mrb[234].mxu0  ;;  %v11334_v29 = vpop.f32.mrb[232].mxu1 }
 0x4c0   :  { %v11298_v49 = vpop.f32.mrb[235].mxu0  ;;  %v11335_v11 = vadd.f32 %v11334_v29, %v11170_v56  ;;  %v11336_v14 = vpop.f32.mrb[233].mxu1 }
 0x4c1   :  { %v11337_v16 = vadd.f32 %v11336_v14, %v11172_v10  ;;  %v11338_v43 = vpop.f32.mrb[234].mxu1 }
 0x4c2   :  { %v11339_v1 = vpop.f32.mrb[235].mxu1 }
 0x4c5   :  { %v11375_v4 = vpop.f32.mrb[236].mxu0 }
 0x4c6   :  { %v11376_v13 = vadd.f32 %v11375_v4, %v11211_v2  ;;  %v11377_v12 = vpop.f32.mrb[237].mxu0  ;;  %17375 = vmatmul.mubr.msk.bf16.vlgmr.msra.gmra.mrb[20].mxu0 %vm12154_vm4, %v21018_v42 }
 0x4c7   :  { %v11378_v34 = vadd.f32 %v11377_v12, %v11213_v63  ;;  %13506 = vmatpush1.bf16.msra.mxu0 %v21240_v59  ;;  %v11379_v62 = vpop.f32.mrb[238].mxu0  ;;  %v11416_v33 = vpop.f32.mrb[236].mxu1  ;;  %13537 = vmatprep.mubr.bf16.mxu0 %v22050_v22 }
 0x4c8   :  { %17382 = vmatprep.subr.msk.bf16.mxu0 %vm12158_vm3, %v21134_v0  ;;  %v11380_v56 = vpop.f32.mrb[239].mxu0  ;;  %17392 = vmatmul.mubr.msk.bf16.vlgmr.msra.gmra.mrb[68].mxu1 %vm12154_vm4, %v21094_v48  ;;  %v11417_v10 = vadd.f32 %v11416_v33, %v11252_v46  ;;  %v11418_v3 = vpop.f32.mrb[237].mxu1 }
 0x4c9   :  { %17741 = vmatpush3.bf16.msra.mxu1 %v21049_v51  ;;  %v21249_v36 = vadd.f32 %v11418_v3, %v11254_v5  ;;  %v11420_v2 = vpop.f32.mrb[238].mxu1  ;;  %17742 = vmatprep.mubr.msk.bf16.mxu1 %vm18310_vm2, %v22048_v58 }
 0x4ca   :  { %17398 = vmatprep.subr.msk.bf16.mxu1 %vm12158_vm3, %v21134_v0  ;;  %v11421_v63 = vpop.f32.mrb[239].mxu1 }
 0x4cd   :  { %v11457_v55 = vpop.f32.mrb[240].mxu0 }
 0x4ce   :  { %v11587_v15 = vadd.f32 %v11457_v55, %v11294_v38  ;;  %v11459_v27 = vpop.f32.mrb[241].mxu0 }
 0x4cf   :  { %v11588_v6 = vadd.f32 %v11459_v27, %v11296_v54  ;;  %v11461_v40 = vpop.f32.mrb[242].mxu0  ;;  %v11498_v7 = vpop.f32.mrb[240].mxu1 }
 0x4d0   :  { %v11462_v46 = vpop.f32.mrb[243].mxu0  ;;  %17743 = vmatmul.mubr.msk.bf16.vlgmr.msra.gmra.mrb[72].mxu1 %vm12154_vm4, %v21112_v31  ;;  %v11589_v51 = vadd.f32 %v11498_v7, %v11335_v11  ;;  %v11500_v5 = vpop.f32.mrb[241].mxu1 }
 0x4d1   :  { %14027 = vmatpush1.bf16.msra.mxu1 %v21159_v26  ;;  %v11590_v8 = vadd.f32 %v11500_v5, %v11337_v16  ;;  %14058 = vmatprep.mubr.bf16.mxu1 %v22050_v22  ;;  %v11502_v29 = vpop.f32.mrb[242].mxu1 }
 0x4d2   :  { %17402 = vmatprep.subr.msk.bf16.mxu1 %vm12158_vm3, %v21163_v52  ;;  %17379 = vmatmul.mubr.msk.bf16.vlgmr.msra.gmra.mrb[20].mxu0 %vm12154_vm4, %v21033_v47  ;;  %v11503_v38 = vpop.f32.mrb[243].mxu1 }
 0x4d3   :  { %13600 = vmatpush1.bf16.msra.mxu0 %v21159_v26  ;;  %13631 = vmatprep.mubr.bf16.mxu0 %v22050_v22 }
 0x4d4   :  { %17385 = vmatprep.subr.msk.bf16.mxu0 %vm12158_vm3, %v20988_v19 }
 0x4d5   :  { %v11539_v54 = vpop.f32.mrb[244].mxu0 }
 0x4d6   :  { %v11591_v49 = vadd.f32 %v11539_v54, %v11376_v13  ;;  %v11541_v11 = vpop.f32.mrb[245].mxu0 }
 0x4d7   :  { %v11592_v14 = vadd.f32 %v11541_v11, %v11378_v34  ;;  %v11543_v16 = vpop.f32.mrb[246].mxu0  ;;  %v11580_v43 = vpop.f32.mrb[244].mxu1 }
 0x4d8   :  { %v11544_v1 = vpop.f32.mrb[247].mxu0  ;;  %17399 = vmatmul.mubr.msk.bf16.vlgmr.msra.gmra.mrb[76].mxu1 %vm12154_vm4, %v20956_v18  ;;  %v11593_v4 = vadd.f32 %v11580_v43, %v11417_v10  ;;  %v17702_v12 = vpop.f32.mrb[245].mxu1 }
 0x4d9   :  { %14121 = vmatpush1.bf16.msra.mxu1 %v21187_v24  ;;  %v11584_v62 = vpop.f32.mrb[246].mxu1  ;;  %14152 = vmatprep.mubr.bf16.mxu1 %v22050_v22 }
 0x4da   :  { %v17703_v33 = vpop.f32.mrb[247].mxu1  ;;  %17746 = vmatprep.subr.bf16.mxu1 %v22048_v58 }
 0x4dd   :  { %v11629_v19 = vpop.f32.mrb[248].mxu0 }
 0x4de   :  { %v11759_v13 = vadd.f32 %v11629_v19, %v11587_v15  ;;  %v11631_v56 = vpop.f32.mrb[249].mxu0  ;;  %17383 = vmatmul.mubr.msk.bf16.vlgmr.msra.gmra.mrb[20].mxu0 %vm12154_vm4, %v21059_v44 }
 0x4df   :  { %v11760_v34 = vadd.f32 %v11631_v56, %v11588_v6  ;;  %13718 = vmatpush1.bf16.msra.mxu0 %v21039_v50  ;;  %v11633_v3 = vpop.f32.mrb[250].mxu0  ;;  %v11670_v10 = vpop.f32.mrb[248].mxu1  ;;  %13749 = vmatprep.mubr.bf16.mxu0 %v22050_v22 }
 0x4e0   :  { %v11761_v2 = vadd.f32 %v11670_v10, %v11589_v51  ;;  %17389 = vmatprep.subr.msk.bf16.mxu0 %vm12158_vm3, %v20962_v57  ;;  %v11634_v63 = vpop.f32.mrb[251].mxu0  ;;  %v11672_v55 = vpop.f32.mrb[249].mxu1  ;;  %17403 = vmatmul.mubr.msk.bf16.vlgmr.msra.gmra.mrb[80].mxu1 %vm12154_vm4, %v20934_v25 }
 0x4e1   :  { %v11762_v15 = vadd.f32 %v11672_v55, %v11590_v8  ;;  %17747 = vmatpush3.bf16.msra.mxu1 %v21202_v23  ;;  %v11674_v27 = vpop.f32.mrb[250].mxu1  ;;  %17748 = vmatprep.mubr.msk.bf16.mxu1 %vm18310_vm2, %v22048_v58 }
 0x4e2   :  { %v11675_v50 = vpop.f32.mrb[251].mxu1 }
 0x4e5   :  { %v11711_v6 = vpop.f32.mrb[252].mxu0 }
 0x4e6   :  { %v11763_v40 = vadd.f32 %v11711_v6, %v11591_v49  ;;  %v11713_v7 = vpop.f32.mrb[253].mxu0  ;;  %17386 = vmatmul.mubr.msk.bf16.vlgmr.msra.gmra.mrb[24].mxu0 %vm12154_vm4, %v21078_v20 }
 0x4e7   :  { %v11764_v57 = vadd.f32 %v11713_v7, %v11592_v14  ;;  %13804 = vmatpush1.bf16.msra.mxu0 %v22050_v22  ;;  %v11715_v46 = vpop.f32.mrb[254].mxu0  ;;  %v11752_v51 = vpop.f32.mrb[252].mxu1  ;;  %13835 = vmatprep.mubr.bf16.mxu0 %v22050_v22 }
 0x4e8   :  { %v11765_v25 = vadd.f32 %v11752_v51, %v11593_v4  ;;  %17393 = vmatprep.subr.msk.bf16.mxu0 %vm12158_vm3, %v20968_v39  ;;  %v11716_v5 = vpop.f32.mrb[255].mxu0  ;;  %v11754_v8 = vpop.f32.mrb[253].mxu1  ;;  %17749 = vmatmul.mubr.msk.bf16.vlgmr.msra.gmra.mrb[84].mxu1 %vm12154_vm4, %v20993_v41 }
 0x4e9   :  { %v11766_v29 = vadd.f32 %v11754_v8, %v21249_v36  ;;  %v11756_v38 = vpop.f32.mrb[254].mxu1  ;;  %14349 = vmatprep.mubr.bf16.mxu1 %v22050_v22 }
 0x4ea   :  { %v11757_v54 = vpop.f32.mrb[255].mxu1 }
 0x4ed   :  { %v11801_v49 = vpop.f32.mrb[0].mxu0 }
 0x4ee   :  { %v11931_v11 = vadd.f32 %v11801_v49, %v11759_v13  ;;  %v11803_v14 = vpop.f32.mrb[1].mxu0 }
 0x4ef   :  { %v11932_v16 = vadd.f32 %v11803_v14, %v11760_v34  ;;  %v11805_v43 = vpop.f32.mrb[2].mxu0  ;;  %v11842_v1 = vpop.f32.mrb[0].mxu1  ;;  %v11082_v14 = vadd.f32 %v21175_v17, %v19463_v45 }
 0x4f0   :  { %v11933_v4 = vadd.f32 %v11842_v1, %v11761_v2  ;;  %v11806_v12 = vpop.f32.mrb[3].mxu0  ;;  %v11844_v39 = vpop.f32.mrb[1].mxu1 }
 0x4f1   :  { %v11934_v62 = vadd.f32 %v11844_v39, %v11762_v15  ;;  %v11846_v33 = vpop.f32.mrb[2].mxu1  ;;  %v11086_v15 = vadd.f32 %v21153_v61, %v19463_v45 }
 0x4f2   :  { %17390 = vmatmul.mubr.msk.bf16.vlgmr.msra.gmra.mrb[24].mxu0 %vm12154_vm4, %v21094_v48  ;;  %v11847_v19 = vpop.f32.mrb[3].mxu1 }
 0x4f3   :  { %13890 = vmatpush1.bf16.msra.mxu0 %v20999_v21  ;;  %13921 = vmatprep.mubr.bf16.mxu0 %v22050_v22  ;;  %v11094_v7 = vmax.f32 %v11086_v15, 0.0 }
 0x4f4   :  { %17396 = vmatprep.subr.msk.bf16.mxu0 %vm12158_vm3, %v21213_v60 }
 0x4f5   :  { %v11883_v36 = vpop.f32.mrb[4].mxu0 }
 0x4f6   :  { %v11935_v13 = vadd.f32 %v11883_v36, %v11763_v40  ;;  %v11885_v56 = vpop.f32.mrb[5].mxu0  ;;  %v11079_v40 = vadd.f32 %v21167_v37, %v19463_v45  ;;  %v11081_v37 = vadd.f32 %v21173_v28, %v19463_v45 }
 0x4f7   :  { %v11936_v34 = vadd.f32 %v11885_v56, %v11764_v57  ;;  %v11887_v3 = vpop.f32.mrb[6].mxu0  ;;  %v11924_v10 = vpop.f32.mrb[4].mxu1 }
 0x4f8   :  { %v11937_v2 = vadd.f32 %v11924_v10, %v11765_v25  ;;  %v11888_v63 = vpop.f32.mrb[7].mxu0  ;;  %v11926_v55 = vpop.f32.mrb[5].mxu1  ;;  %v11080_v25 = vadd.f32 %v21171_v35, %v19463_v45  ;;  %v11087_v12 = vmax.f32 %v11079_v40, 0.0  ;;  %v11089_v56 = vmax.f32 %v11081_v37, 0.0 }
 0x4f9   :  { %v11938_v27 = vadd.f32 %v11926_v55, %v11766_v29  ;;  %v11928_v50 = vpop.f32.mrb[6].mxu1  ;;  %v11090_v63 = vmax.f32 %v11082_v14, 0.0 }
 0x4fa   :  { %v11929_v21 = vpop.f32.mrb[7].mxu1  ;;  %v11088_v19 = vmax.f32 %v11080_v25, 0.0 }
 0x4fb   :  { %v12118_v6 = vadd.f32 %v11938_v27, %v19463_v45 }
 0x4fd   :  { %v12126_v46 = vmax.f32 %v12118_v6, 0.0  ;;  %v11973_v51 = vpop.f32.mrb[8].mxu0  ;;  %v11084_v6 = vadd.f32 %v21194_v30, %v19463_v45 }
 0x4fe   :  { %v12103_v57 = vadd.f32 %v11973_v51, %v11931_v11  ;;  %v11975_v5 = vpop.f32.mrb[9].mxu0  ;;  %17394 = vmatmul.mubr.msk.bf16.vlgmr.msra.gmra.mrb[24].mxu0 %vm12154_vm4, %v21112_v31 }
 0x4ff   :  { %v21308_v61 = vmax.f32 %v11094_v7, %v12126_v46  ;;  %v12104_v8 = vadd.f32 %v11975_v5, %v11932_v16  ;;  %13984 = vmatpush1.bf16.msra.mxu0 %v22050_v22  ;;  %v11977_v29 = vpop.f32.mrb[10].mxu0  ;;  %v12014_v38 = vpop.f32.mrb[8].mxu1  ;;  %14015 = vmatprep.mubr.bf16.mxu0 %v22050_v22  ;;  %v11085_v5 = vadd.f32 %v21196_v53, %v19463_v45 }
 0x500   :  { %v12111_v54 = vadd.f32 %v12103_v57, %v19463_v45  ;;  %v12105_v49 = vadd.f32 %v12014_v38, %v11933_v4  ;;  %17400 = vmatprep.subr.msk.bf16.mxu0 %vm12158_vm3, %v21149_v32  ;;  %v11978_v11 = vpop.f32.mrb[11].mxu0  ;;  %v12016_v35 = vpop.f32.mrb[9].mxu1 }
 0x501   :  { %v12112_v16 = vadd.f32 %v12104_v8, %v19463_v45  ;;  %v12106_v43 = vadd.f32 %v12016_v35, %v11934_v62  ;;  %v12018_v1 = vpop.f32.mrb[10].mxu1  ;;  %v11083_v62 = vadd.f32 %v21191_v9, %v19463_v45  ;;  %v11092_v11 = vmax.f32 %v11084_v6, 0.0 }
 0x502   :  { %v12119_v39 = vmax.f32 %v12111_v54, 0.0  ;;  %v12113_v33 = vadd.f32 %v12105_v49, %v19463_v45  ;;  %v12019_v28 = vpop.f32.mrb[11].mxu1  ;;  %v11093_v53 = vmax.f32 %v11085_v5, 0.0 }
 0x503   :  { %v12120_v36 = vmax.f32 %v12112_v16, 0.0  ;;  %v12114_v4 = vadd.f32 %v12106_v43, %v19463_v45  ;;  %v11091_v54 = vmax.f32 %v11083_v62, 0.0 }
 0x504   :  { %v12127_v3 = vmax.f32 %v11087_v12, %v12119_v39  ;;  %v12121_v10 = vmax.f32 %v12113_v33, 0.0 }
 0x505   :  { %v12128_v55 = vmax.f32 %v11088_v19, %v12120_v36  ;;  %v12122_v15 = vmax.f32 %v12114_v4, 0.0  ;;  %v12055_v17 = vpop.f32.mrb[12].mxu0 }
 0x506   :  { %v12129_v27 = vmax.f32 %v11089_v56, %v12121_v10  ;;  %v12107_v50 = vadd.f32 %v12055_v17, %v11935_v13  ;;  %v12057_v21 = vpop.f32.mrb[13].mxu0 }
 0x507   :  { %v12135_v7 = vmax.f32 %v12127_v3, %v12128_v55  ;;  %v12130_v46 = vmax.f32 %v11090_v63, %v12122_v15  ;;  %v12108_v51 = vadd.f32 %v12057_v21, %v11936_v34  ;;  %v12059_v40 = vpop.f32.mrb[14].mxu0  ;;  %v12096_v57 = vpop.f32.mrb[12].mxu1 }
 0x508   :  { %v12115_v25 = vadd.f32 %v12107_v50, %v19463_v45  ;;  %v12109_v8 = vadd.f32 %v12096_v57, %v11937_v2  ;;  %v12060_v29 = vpop.f32.mrb[15].mxu0  ;;  %v17708_v38 = vpop.f32.mrb[13].mxu1 }
 0x509   :  { %v12136_v9 = vmax.f32 %v12129_v27, %v12130_v46  ;;  %v12116_v13 = vadd.f32 %v12108_v51, %v19463_v45  ;;  %v12100_v37 = vpop.f32.mrb[14].mxu1  ;;  %v21360_v28 = vpack.c.bf16 %v12135_v7, %v12135_v7 }
 0x50a   :  { %v12123_v49 = vmax.f32 %v12115_v25, 0.0  ;;  %v12117_v30 = vadd.f32 %v12109_v8, %v19463_v45  ;;  %17397 = vmatmul.mubr.msk.bf16.vlgmr.msra.gmra.mrb[24].mxu0 %vm12154_vm4, %v20956_v18  ;;  %v17709_v34 = vpop.f32.mrb[15].mxu1 }
 0x50b   :  { %v12124_v35 = vmax.f32 %v12116_v13, 0.0  ;;  %14078 = vmatpush1.bf16.msra.mxu0 %v21240_v59  ;;  %14109 = vmatprep.mubr.bf16.mxu0 %v22050_v22  ;;  %v21337_v1 = vpack.c.bf16 %v12136_v9, %v12136_v9  ;;  %v21402_v7 = vsel %vm12158_vm3, %v21360_v28, 0 }
 0x50c   :  { %v12131_v2 = vmax.f32 %v11091_v54, %v12123_v49  ;;  %v12125_v14 = vmax.f32 %v12117_v30, 0.0  ;;  %17404 = vmatprep.subr.msk.bf16.mxu0 %vm12158_vm3, %v21134_v0  ;;  %v21440_v30 = vpop.permute.xlu1 %12792 }
 0x50d   :  { %v12132_v16 = vmax.f32 %v11092_v11, %v12124_v35  ;;  %v21348_v33 = vsel %vm12158_vm3, %v21337_v1, 0 }
 0x50e   :  { %v12133_v43 = vmax.f32 %v11093_v53, %v12125_v14 }
 0x50f   :  { %v12137_v45 = vmax.f32 %v12131_v2, %v12132_v16 }
 0x510   :  { %v12138_v18 = vmax.f32 %v12133_v43, %v21308_v61  ;;  %v21356_v61 = vld [vmem:[%s21994_s7 + $0x20] sm:$0xff]  }
 0x511   :  { %v21340_v12 = vpack.c.bf16 %v12137_v45, %v12137_v45 }
 0x512   :  { %v21342_v39 = vpack.c.bf16 %v12138_v18, %v12138_v18 }
 0x513   :  { %17409 = vmatprep.subr.msk.bf16.mxu1 %vm12158_vm3, %v21340_v12  ;;  %v21367_v19 = vsel %vm12158_vm3, %v21340_v12, 0 }
 0x514   :  { %14318 = vmatpush1.bf16.msra.mxu1 %v21348_v33  ;;  %v21379_v10 = vsel %vm12158_vm3, %v21342_v39, 0 }
 0x515   :  { %17413 = vmatprep.subr.msk.bf16.mxu1 %vm12158_vm3, %v21342_v39 }
 0x516   :  { %17401 = vmatmul.mubr.msk.bf16.vlgmr.msra.gmra.mrb[24].mxu0 %vm12154_vm4, %v21356_v61 }
 0x517   :  { %14172 = vmatpush1.bf16.msra.mxu0 %v21159_v26  ;;  %17410 = vmatmul.mubr.msk.bf16.vlgmr.msra.gmra.mrb[88].mxu1 %vm12154_vm4, %v21018_v42 }
 0x518   :  { %17407 = vmatprep.subr.msk.bf16.mxu0 %vm12158_vm3, %v21360_v28  ;;  %14415 = vmatpush1.bf16.msra.mxu1 %v21367_v19 }
 0x519   :  { %14446 = vmatprep.mubr.bf16.mxu1 %v22050_v22  ;;  %17752 = vmatprep.subr.bf16.mxu1 %v22048_v58 }
 0x51a   :  { %14203 = vmatprep.mubr.bf16.mxu0 %v22050_v22 }
 0x51b   :  { %v12344_v36 = vpop.f32.mrb[16].mxu1 }
 0x51c   :  { %v12346_v4 = vpop.f32.mrb[17].mxu1 }
 0x51d   :  { %v12348_v56 = vpop.f32.mrb[18].mxu1 }
 0x51e   :  { %v12350_v3 = vpop.f32.mrb[19].mxu1 }
 0x51f   :  { %17414 = vmatmul.mubr.msk.bf16.vlgmr.msra.gmra.mrb[92].mxu1 %vm12154_vm4, %v21033_v47 }
 0x520   :  { %17753 = vmatpush3.bf16.msra.mxu1 %v21379_v10  ;;  %17754 = vmatprep.mubr.msk.bf16.mxu1 %vm18310_vm2, %v22048_v58 }
 0x521   :  { %17420 = vmatprep.subr.msk.bf16.mxu1 %vm12158_vm3, %v21163_v52 }
 0x522   :  { %17405 = vmatmul.mubr.msk.bf16.vlgmr.msra.gmra.mrb[24].mxu0 %vm12154_vm4, %v20993_v41 }
 0x523   :  { %14275 = vmatpush1.bf16.msra.mxu0 %v22050_v22  ;;  %v12441_v63 = vpop.f32.mrb[20].mxu1  ;;  %14306 = vmatprep.mubr.bf16.mxu0 %v22050_v22 }
 0x524   :  { %17411 = vmatprep.subr.msk.bf16.mxu0 %vm12158_vm3, %v21337_v1  ;;  %v12452_v55 = vadd.f32 %v12441_v63, %v12344_v36  ;;  %v17714_v15 = vpop.f32.mrb[21].mxu1 }
 0x525   :  { %v12445_v17 = vpop.f32.mrb[22].mxu1 }
 0x526   :  { %v12456_v62 = vadd.f32 %v12445_v17, %v12348_v56  ;;  %v17715_v27 = vpop.f32.mrb[23].mxu1 }
 0x527   :  { %17755 = vmatmul.mubr.msk.bf16.vlgmr.msra.gmra.mrb[96].mxu1 %vm12154_vm4, %v21059_v44 }
 0x528   :  { %14627 = vmatpush1.bf16.msra.mxu1 %v21187_v24  ;;  %14658 = vmatprep.mubr.bf16.mxu1 %v22050_v22 }
 0x529   :  { %17424 = vmatprep.subr.msk.bf16.mxu1 %vm12158_vm3, %v21134_v0 }
 0x52b   :  { %v12555_v41 = vpop.f32.mrb[24].mxu1 }
 0x52c   :  { %v12566_v52 = vadd.f32 %v12555_v41, %v12452_v55  ;;  %v12557_v50 = vpop.f32.mrb[25].mxu1 }
 0x52d   :  { %v12567_v21 = vadd.f32 %v12557_v50, %v12346_v4  ;;  %v12559_v6 = vpop.f32.mrb[26].mxu1 }
 0x52e   :  { %17408 = vmatmul.mubr.msk.bf16.vlgmr.msra.gmra.mrb[24].mxu0 %vm12154_vm4, %v21018_v42  ;;  %v12570_v46 = vadd.f32 %v12559_v6, %v12456_v62  ;;  %v12561_v51 = vpop.f32.mrb[27].mxu1 }
 0x52f   :  { %14372 = vmatpush1.bf16.msra.mxu0 %v21402_v7  ;;  %17421 = vmatmul.mubr.msk.bf16.vlgmr.msra.gmra.mrb[100].mxu1 %vm12154_vm4, %v21078_v20  ;;  %v12571_v24 = vadd.f32 %v12561_v51, %v12350_v3 }
 0x530   :  { %17415 = vmatprep.subr.msk.bf16.mxu0 %vm12158_vm3, %v21340_v12  ;;  %14713 = vmatpush1.bf16.msra.mxu1 %v21159_v26 }
 0x531   :  { %14403 = vmatprep.mubr.bf16.mxu0 %v22050_v22  ;;  %14744 = vmatprep.mubr.bf16.mxu1 %v22050_v22 }
 0x532   :  { %17758 = vmatprep.subr.bf16.mxu1 %v22048_v58 }
 0x533   :  { %v12663_v42 = vpop.f32.mrb[28].mxu1 }
 0x534   :  { %v12674_v40 = vadd.f32 %v12663_v42, %v12566_v52  ;;  %v12665_v57 = vpop.f32.mrb[29].mxu1 }
 0x535   :  { %v12675_v5 = vadd.f32 %v12665_v57, %v12567_v21  ;;  %v12667_v25 = vpop.f32.mrb[30].mxu1 }
 0x536   :  { %v12678_v8 = vadd.f32 %v12667_v25, %v12570_v46  ;;  %v12669_v29 = vpop.f32.mrb[31].mxu1 }
 0x537   :  { %v12679_v38 = vadd.f32 %v12669_v29, %v12571_v24 }
 0x53a   :  { %17412 = vmatmul.mubr.msk.bf16.vlgmr.msra.gmra.mrb[24].mxu0 %vm12154_vm4, %v21033_v47 }
 0x53b   :  { %14466 = vmatpush1.bf16.msra.mxu0 %v21348_v33  ;;  %v12768_v9 = vpop.f32.mrb[32].mxu1  ;;  %17425 = vmatmul.mubr.msk.bf16.vlgmr.msra.gmra.mrb[100].mxu1 %vm12154_vm4, %v21094_v48 }
 0x53c   :  { %v12779_v13 = vadd.f32 %v12768_v9, %v12674_v40  ;;  %17418 = vmatprep.subr.msk.bf16.mxu0 %vm12158_vm3, %v21149_v32  ;;  %17759 = vmatpush3.bf16.msra.mxu1 %v21202_v23  ;;  %v17720_v37 = vpop.f32.mrb[33].mxu1  ;;  %v21436_v32 = vpop.permute.xlu0 %12787 }
 0x53d   :  { %17431 = vmatprep.subr.msk.bf16.mxu1 %vm12158_vm3, %v21340_v12  ;;  %17760 = vmatprep.mubr.msk.bf16.mxu1 %vm18310_vm2, %v22048_v58  ;;  %v12772_v47 = vpop.f32.mrb[34].mxu1  ;;  %v12798_v43 = vadd.f32 %v21436_v32, %v12675_v5 }
 0x53e   :  { %14497 = vmatprep.mubr.bf16.mxu0 %v22050_v22  ;;  %v12783_v54 = vadd.f32 %v12772_v47, %v12678_v8  ;;  %v17721_v49 = vpop.f32.mrb[35].mxu1  ;;  %v12797_v35 = vadd.f32 %v21436_v32, %v12779_v13 }
 0x53f   :  { %v12806_v15 = vmax.f32 %v12798_v43, 0.0 }
 0x540   :  { %v12805_v4 = vmax.f32 %v12797_v35, 0.0 }
 0x543   :  { %17761 = vmatmul.mubr.msk.bf16.vlgmr.msra.gmra.mrb[104].mxu1 %vm12154_vm4, %v21112_v31 }
 0x544   :  { %14893 = vmatpush1.bf16.msra.mxu1 %v21348_v33  ;;  %14924 = vmatprep.mubr.bf16.mxu1 %v22050_v22 }
 0x545   :  { %17435 = vmatprep.subr.msk.bf16.mxu1 %vm12158_vm3, %v21342_v39  ;;  %v12802_v39 = vadd.f32 %v21440_v30, %v12679_v38 }
 0x546   :  { %17416 = vmatmul.mubr.msk.bf16.vlgmr.msra.gmra.mrb[24].mxu0 %vm12154_vm4, %v21059_v44 }
 0x547   :  { %14584 = vmatpush1.bf16.msra.mxu0 %v21240_v59  ;;  %14615 = vmatprep.mubr.bf16.mxu0 %v22050_v22  ;;  %v21448_v59 = vld [vmem:[%s21994_s7 + $0x18] sm:$0xff]   ;;  %v12810_v41 = vmax.f32 %v12802_v39, 0.0 }
 0x548   :  { %17422 = vmatprep.subr.msk.bf16.mxu0 %vm12158_vm3, %v21213_v60  ;;  %v12801_v60 = vadd.f32 %v21440_v30, %v12783_v54 }
 0x549   :  { %v12725_v23 = vpop.f32.mrb[16].mxu0 }
 0x54a   :  { %v12795_v34 = vadd.f32 %v21436_v32, %v12725_v23  ;;  %v12727_v11 = vpop.f32.mrb[17].mxu0 }
 0x54b   :  { %v12796_v53 = vadd.f32 %v21436_v32, %v12727_v11  ;;  %v12729_v44 = vpop.f32.mrb[18].mxu0  ;;  %17432 = vmatmul.mubr.msk.bf16.vlgmr.msra.gmra.mrb[108].mxu1 %vm12154_vm4, %v21448_v59 }
 0x54c   :  { %v12803_v2 = vmax.f32 %v12795_v34, 0.0  ;;  %v12799_v14 = vadd.f32 %v21440_v30, %v12729_v44  ;;  %14987 = vmatpush1.bf16.msra.mxu1 %v21367_v19  ;;  %v12731_v16 = vpop.f32.mrb[19].mxu0  ;;  %15018 = vmatprep.mubr.bf16.mxu1 %v22050_v22  ;;  %v12809_v19 = vmax.f32 %v12801_v60, 0.0 }
 0x54d   :  { %v12804_v45 = vmax.f32 %v12796_v53, 0.0  ;;  %v12800_v18 = vadd.f32 %v21440_v30, %v12731_v16  ;;  %17764 = vmatprep.subr.bf16.mxu1 %v22048_v58 }
 0x54e   :  { %v12807_v36 = vmax.f32 %v12799_v14, 0.0  ;;  %17419 = vmatmul.mubr.msk.bf16.vlgmr.msra.gmra.mrb[28].mxu0 %vm12154_vm4, %v21078_v20 }
 0x54f   :  { %v12813_v56 = vadd.f32 %v12804_v45, %v12803_v2  ;;  %v12808_v3 = vmax.f32 %v12800_v18, 0.0  ;;  %14670 = vmatpush1.bf16.msra.mxu0 %v22050_v22  ;;  %14701 = vmatprep.mubr.bf16.mxu0 %v22050_v22  ;;  %v13003_v63 = vpop.f32.mrb[36].mxu1 }
 0x550   :  { %17426 = vmatprep.subr.msk.bf16.mxu0 %vm12158_vm3, %v21134_v0  ;;  %v13005_v55 = vpop.f32.mrb[37].mxu1 }
 0x551   :  { %v12815_v17 = vadd.f32 %v12813_v56, %v12805_v4  ;;  %v12814_v62 = vadd.f32 %v12808_v3, %v12807_v36  ;;  %v13007_v27 = vpop.f32.mrb[38].mxu1 }
 0x552   :  { %v13009_v52 = vpop.f32.mrb[39].mxu1 }
 0x553   :  { %v12816_v20 = vadd.f32 %v12814_v62, %v12809_v19  ;;  %17436 = vmatmul.mubr.msk.bf16.vlgmr.msra.gmra.mrb[112].mxu1 %vm12154_vm4, %v21356_v61  ;;  %v21468_v50 = vadd.f32 %v12815_v17, %v12806_v15 }
 0x554   :  { %17765 = vmatpush3.bf16.msra.mxu1 %v21379_v10  ;;  %17766 = vmatprep.mubr.msk.bf16.mxu1 %vm18310_vm2, %v22048_v58  ;;  %v18282_v10 = vld [vmem:[%s21994_s7 + $0x28] sm:$0xff]  }
 0x555   :  { %v21473_v21 = vadd.f32 %v12816_v20, %v12810_v41 }
 0x557   :  { %v13100_v0 = vpop.f32.mrb[40].mxu1 }
 0x558   :  { %v13111_v6 = vadd.f32 %v13100_v0, %v13003_v63  ;;  %v17726_v46 = vpop.f32.mrb[41].mxu1 }
 0x559   :  { %v13104_v51 = vpop.f32.mrb[42].mxu1 }
 0x55a   :  { %17423 = vmatmul.mubr.msk.bf16.vlgmr.msra.gmra.mrb[28].mxu0 %vm12154_vm4, %v21094_v48  ;;  %v13115_v24 = vadd.f32 %v13104_v51, %v13007_v27  ;;  %v17727_v42 = vpop.f32.mrb[43].mxu1 }
 0x55b   :  { %14756 = vmatpush1.bf16.msra.mxu0 %v21159_v26  ;;  %17767 = vmatmul.mubr.msk.bf16.vlgmr.msra.gmra.mrb[116].mxu1 %vm12154_vm4, %v18282_v10 }
 0x55c   :  { %17429 = vmatprep.subr.msk.bf16.mxu0 %vm12158_vm3, %v21360_v28  ;;  %14787 = vmatprep.mubr.bf16.mxu0 %v22050_v22 }
 0x55d   :  { %15327 = vmatprep.mubr.f32.mxu1 %v22048_v58 }
 0x55f   :  { %v13194_v40 = vpop.f32.mrb[44].mxu1 }
 0x560   :  { %v13205_v57 = vadd.f32 %v13194_v40, %v13111_v6  ;;  %v13196_v48 = vpop.f32.mrb[45].mxu1 }
 0x561   :  { %v13206_v5 = vadd.f32 %v13196_v48, %v13005_v55  ;;  %v13198_v25 = vpop.f32.mrb[46].mxu1 }
 0x562   :  { %v13209_v8 = vadd.f32 %v13198_v25, %v13115_v24  ;;  %v13200_v26 = vpop.f32.mrb[47].mxu1 }
 0x563   :  { %v13210_v29 = vadd.f32 %v13200_v26, %v13009_v52 }
 0x566   :  { %17427 = vmatmul.mubr.msk.bf16.vlgmr.msra.gmra.mrb[28].mxu0 %vm12154_vm4, %v21112_v31 }
 0x567   :  { %14850 = vmatpush1.bf16.msra.mxu0 %v22050_v22  ;;  %14881 = vmatprep.mubr.bf16.mxu0 %v22050_v22  ;;  %v13288_v28 = vpop.f32.mrb[48].mxu1 }
 0x568   :  { %17433 = vmatprep.subr.msk.bf16.mxu0 %vm12158_vm3, %v21337_v1  ;;  %v13299_v38 = vadd.f32 %v13288_v28, %v13205_v57  ;;  %v13290_v9 = vpop.f32.mrb[49].mxu1 }
 0x569   :  { %v13300_v13 = vadd.f32 %v13290_v9, %v13206_v5  ;;  %v13292_v37 = vpop.f32.mrb[50].mxu1 }
 0x56a   :  { %v13303_v47 = vadd.f32 %v13292_v37, %v13209_v8  ;;  %v13294_v54 = vpop.f32.mrb[51].mxu1 }
 0x56b   :  { %v13304_v49 = vadd.f32 %v13294_v54, %v13210_v29 }
 0x56f   :  { %v13382_v23 = vpop.f32.mrb[52].mxu1 }
 0x570   :  { %v13393_v34 = vadd.f32 %v13382_v23, %v13299_v38  ;;  %v17732_v11 = vpop.f32.mrb[53].mxu1 }
 0x571   :  { %v13386_v35 = vpop.f32.mrb[54].mxu1 }
 0x572   :  { %17430 = vmatmul.mubr.msk.bf16.vlgmr.msra.gmra.mrb[28].mxu0 %vm12154_vm4, %v21448_v59  ;;  %v13397_v31 = vadd.f32 %v13386_v35, %v13303_v47  ;;  %v17733_v53 = vpop.f32.mrb[55].mxu1 }
 0x573   :  { %14944 = vmatpush1.bf16.msra.mxu0 %v21402_v7  ;;  %14975 = vmatprep.mubr.bf16.mxu0 %v22050_v22 }
 0x574   :  { %17437 = vmatprep.subr.msk.bf16.mxu0 %vm12158_vm3, %v21340_v12 }
 0x577   :  { %v13485_v1 = vpop.f32.mrb[56].mxu1 }
 0x578   :  { %v13496_v44 = vadd.f32 %v13485_v1, %v13393_v34  ;;  %v13487_v60 = vpop.f32.mrb[57].mxu1 }
 0x579   :  { %v13497_v2 = vadd.f32 %v13487_v60, %v13300_v13  ;;  %v13489_v14 = vpop.f32.mrb[58].mxu1 }
 0x57a   :  { %v13500_v16 = vadd.f32 %v13489_v14, %v13397_v31  ;;  %v13491_v43 = vpop.f32.mrb[59].mxu1 }
 0x57b   :  { %v13501_v45 = vadd.f32 %v13491_v43, %v13304_v49 }
 0x57e   :  { %17434 = vmatmul.mubr.msk.bf16.vlgmr.msra.gmra.mrb[28].mxu0 %vm12154_vm4, %v21356_v61 }
 0x57f   :  { %15038 = vmatpush1.bf16.msra.mxu0 %v21348_v33  ;;  %v13582_v59 = vpop.f32.mrb[60].mxu1  ;;  %15069 = vmatprep.mubr.bf16.mxu0 %v22050_v22 }
 0x580   :  { %v13593_v7 = vadd.f32 %v13582_v59, %v13496_v44  ;;  %v13584_v18 = vpop.f32.mrb[61].mxu1 }
 0x581   :  { %v13594_v39 = vadd.f32 %v13584_v18, %v13497_v2  ;;  %v13586_v12 = vpop.f32.mrb[62].mxu1 }
 0x582   :  { %v13597_v36 = vadd.f32 %v13586_v12, %v13500_v16  ;;  %v13588_v4 = vpop.f32.mrb[63].mxu1 }
 0x583   :  { %v13598_v56 = vadd.f32 %v13588_v4, %v13501_v45  ;;  %v13696_v49 = vadd.f32 %v13594_v39, %v21436_v32 }
 0x585   :  { %v13700_v16 = vadd.f32 %v13598_v56, %v21440_v30 }
 0x587   :  { %v13676_v3 = vpop.f32.mrb[64].mxu1  ;;  %v13708_v4 = vmax.f32 %v13700_v16, 0.0 }
 0x588   :  { %v13687_v19 = vadd.f32 %v13676_v3, %v13593_v7  ;;  %v17738_v63 = vpop.f32.mrb[65].mxu1  ;;  %v13704_v7 = vmax.f32 %v13696_v49, 0.0 }
 0x589   :  { %v13680_v55 = vpop.f32.mrb[66].mxu1 }
 0x58a   :  { %17438 = vmatmul.mubr.msk.bf16.vlgmr.msra.gmra.mrb[28].mxu0 %vm12154_vm4, %v18282_v10  ;;  %v13691_v15 = vadd.f32 %v13680_v55, %v13597_v36  ;;  %v17739_v61 = vpop.f32.mrb[67].mxu1  ;;  %v13695_v38 = vadd.f32 %v13687_v19, %v21436_v32 }
 0x58c   :  { %v13699_v31 = vadd.f32 %v13691_v15, %v21440_v30  ;;  %v13703_v43 = vmax.f32 %v13695_v38, 0.0 }
 0x58e   :  { %v13707_v18 = vmax.f32 %v13699_v31, 0.0 }
 0x59b   :  { %v13880_v17 = vpop.f32.mrb[68].mxu1 }
 0x59c   :  { %v13882_v33 = vpop.f32.mrb[69].mxu1 }
 0x59d   :  { %v13884_v62 = vpop.f32.mrb[70].mxu1 }
 0x59e   :  { %v13886_v27 = vpop.f32.mrb[71].mxu1 }
 0x5a3   :  { %v13966_v22 = vpop.f32.mrb[72].mxu1 }
 0x5a4   :  { %v13977_v41 = vadd.f32 %v13966_v22, %v13880_v17  ;;  %v17744_v52 = vpop.f32.mrb[73].mxu1 }
 0x5a5   :  { %v13970_v20 = vpop.f32.mrb[74].mxu1 }
 0x5a6   :  { %v13981_v0 = vadd.f32 %v13970_v20, %v13884_v62  ;;  %v17745_v6 = vpop.f32.mrb[75].mxu1  ;;  %v15155_v20 = vld [vmem:[%s22079_s2] sm:$0xff] }
 0x5a7   :  { %17774 = vmatprep.mubr.f32.mxu0 %v15155_v20 }
 0x5ab   :  { %v14060_v46 = vpop.f32.mrb[76].mxu1 }
 0x5ac   :  { %v14071_v51 = vadd.f32 %v14060_v46, %v13977_v41  ;;  %v14062_v24 = vpop.f32.mrb[77].mxu1 }
 0x5ad   :  { %v14072_v42 = vadd.f32 %v14062_v24, %v13882_v33  ;;  %v14064_v40 = vpop.f32.mrb[78].mxu1 }
 0x5ae   :  { %v14075_v57 = vadd.f32 %v14064_v40, %v13981_v0  ;;  %v14066_v48 = vpop.f32.mrb[79].mxu1 }
 0x5af   :  { %v14076_v10 = vadd.f32 %v14066_v48, %v13886_v27 }
 0x5b1   :  { %v13633_v5 = vpop.f32.mrb[20].mxu0 }
 0x5b2   :  { %v13693_v25 = vadd.f32 %v13633_v5, %v21436_v32  ;;  %v13635_v8 = vpop.f32.mrb[21].mxu0  ;;  %v15255_v5 = vld [vmem:[%s21997_s10 + $0x18] sm:$0xff] }
 0x5b3   :  { %v13694_v26 = vadd.f32 %v13635_v8, %v21436_v32  ;;  %v13637_v29 = vpop.f32.mrb[22].mxu0  ;;  %v14154_v28 = vpop.f32.mrb[80].mxu1 }
 0x5b4   :  { %v13701_v9 = vmax.f32 %v13693_v25, 0.0  ;;  %v13697_v13 = vadd.f32 %v13637_v29, %v21440_v30  ;;  %v13639_v37 = vpop.f32.mrb[23].mxu0  ;;  %v14165_v47 = vadd.f32 %v14154_v28, %v14071_v51  ;;  %v14156_v54 = vpop.f32.mrb[81].mxu1  ;;  %v15252_v25 = vld [vmem:[%s21997_s10] sm:$0xff]  ;;  %v15254_v28 = vld [vmem:[%s21997_s10 + $0x10] sm:$0xff] }
 0x5b5   :  { %v13702_v23 = vmax.f32 %v13694_v26, 0.0  ;;  %v13698_v34 = vadd.f32 %v13639_v37, %v21440_v30  ;;  %v14166_v11 = vadd.f32 %v14156_v54, %v14072_v42  ;;  %v14158_v35 = vpop.f32.mrb[82].mxu1 }
 0x5b6   :  { %v13709_v53 = vadd.f32 %v13701_v9, %v21468_v50  ;;  %v13705_v1 = vmax.f32 %v13697_v13, 0.0  ;;  %v14169_v44 = vadd.f32 %v14158_v35, %v14075_v57  ;;  %v14160_v60 = vpop.f32.mrb[83].mxu1  ;;  %v17826_v9 = vpack.c.bf16 %v15254_v28, %v15252_v25 }
 0x5b7   :  { %v13706_v2 = vmax.f32 %v13698_v34, 0.0  ;;  %v14170_v14 = vadd.f32 %v14160_v60, %v14076_v10  ;;  %v15253_v10 = vld [vmem:[%s21997_s10 + $0x8] sm:$0xff] }
 0x5b8   :  { %v13711_v45 = vadd.f32 %v13709_v53, %v13702_v23  ;;  %v13710_v59 = vadd.f32 %v13705_v1, %v21473_v21  ;;  %v17824_v29 = vpack.c.bf16 %v15255_v5, %v15253_v10 }
 0x5ba   :  { %v13713_v39 = vadd.f32 %v13711_v45, %v13703_v43  ;;  %v13712_v12 = vadd.f32 %v13710_v59, %v13706_v2  ;;  %17825 = vmatprep.subr.bf16.mxu1 %v17824_v29 }
 0x5bb   :  { %v14248_v36 = vpop.f32.mrb[84].mxu1  ;;  %17827 = vmatpush1.bf16.msra.mxu1 %v17826_v9 }
 0x5bc   :  { %v13714_v3 = vadd.f32 %v13712_v12, %v13707_v18  ;;  %v14259_v19 = vadd.f32 %v14248_v36, %v14165_v47  ;;  %v17750_v50 = vpop.f32.mrb[85].mxu1  ;;  %v13715_v63 = vadd.f32 %v13713_v39, %v13704_v7 }
 0x5bd   :  { %v14252_v55 = vpop.f32.mrb[86].mxu1 }
 0x5be   :  { %v14263_v15 = vadd.f32 %v14252_v55, %v14169_v44  ;;  %v17751_v61 = vpop.f32.mrb[87].mxu1  ;;  %v21513_v17 = vadd.f32 %v13714_v3, %v13708_v4 }
 0x5ea   :  { %v14351_v56 = vpop.f32.mrb[88].mxu1 }
 0x5eb   :  { %v14362_v33 = vadd.f32 %v14351_v56, %v14259_v19  ;;  %v14353_v62 = vpop.f32.mrb[89].mxu1 }
 0x5ec   :  { %v14363_v27 = vadd.f32 %v14353_v62, %v14166_v11  ;;  %v14355_v21 = vpop.f32.mrb[90].mxu1 }
 0x5ed   :  { %v14366_v22 = vadd.f32 %v14355_v21, %v14263_v15  ;;  %v14357_v41 = vpop.f32.mrb[91].mxu1 }
 0x5ee   :  { %v14367_v52 = vadd.f32 %v14357_v41, %v14170_v14 }
 0x5f2   :  { %v14448_v0 = vpop.f32.mrb[92].mxu1 }
 0x5f3   :  { %v14459_v6 = vadd.f32 %v14448_v0, %v14362_v33  ;;  %v14450_v46 = vpop.f32.mrb[93].mxu1 }
 0x5f4   :  { %v14460_v51 = vadd.f32 %v14450_v46, %v14363_v27  ;;  %v14452_v24 = vpop.f32.mrb[94].mxu1 }
 0x5f5   :  { %v14463_v42 = vadd.f32 %v14452_v24, %v14366_v22  ;;  %v14454_v40 = vpop.f32.mrb[95].mxu1 }
 0x5f6   :  { %v14464_v57 = vadd.f32 %v14454_v40, %v14367_v52  ;;  %v14562_v18 = vadd.f32 %v14460_v51, %v21436_v32 }
 0x5f8   :  { %v14566_v50 = vadd.f32 %v14464_v57, %v21440_v30  ;;  %v14570_v22 = vmax.f32 %v14562_v18, 0.0 }
 0x5fa   :  { %v14542_v48 = vpop.f32.mrb[96].mxu1  ;;  %v14574_v46 = vmax.f32 %v14566_v50, 0.0 }
 0x5fb   :  { %v14553_v8 = vadd.f32 %v14542_v48, %v14459_v6  ;;  %v17756_v26 = vpop.f32.mrb[97].mxu1 }
 0x5fc   :  { %v14546_v38 = vpop.f32.mrb[98].mxu1 }
 0x5fd   :  { %v14557_v13 = vadd.f32 %v14546_v38, %v14463_v42  ;;  %v17757_v37 = vpop.f32.mrb[99].mxu1  ;;  %v14561_v43 = vadd.f32 %v14553_v8, %v21436_v32 }
 0x5ff   :  { %v14565_v36 = vadd.f32 %v14557_v13, %v21440_v30  ;;  %v14569_v56 = vmax.f32 %v14561_v43, 0.0 }
 0x601   :  { %v14573_v20 = vmax.f32 %v14565_v36, 0.0 }
 0x60e   :  { %v14746_v47 = vpop.f32.mrb[100].mxu1 }
 0x60f   :  { %v14748_v54 = vpop.f32.mrb[101].mxu1 }
 0x610   :  { %v14750_v49 = vpop.f32.mrb[102].mxu1 }
 0x611   :  { %v14752_v23 = vpop.f32.mrb[103].mxu1 }
 0x616   :  { %v14832_v34 = vpop.f32.mrb[104].mxu1 }
 0x617   :  { %v14843_v11 = vadd.f32 %v14832_v34, %v14746_v47  ;;  %v17762_v35 = vpop.f32.mrb[105].mxu1 }
 0x618   :  { %v14836_v31 = vpop.f32.mrb[106].mxu1 }
 0x619   :  { %v14499_v53 = vpop.f32.mrb[24].mxu0  ;;  %v14847_v1 = vadd.f32 %v14836_v31, %v14750_v49  ;;  %v17763_v44 = vpop.f32.mrb[107].mxu1 }
 0x61a   :  { %v14559_v60 = vadd.f32 %v14499_v53, %v21436_v32  ;;  %v14501_v2 = vpop.f32.mrb[25].mxu0 }
 0x61b   :  { %v14560_v14 = vadd.f32 %v14501_v2, %v21436_v32  ;;  %v14503_v16 = vpop.f32.mrb[26].mxu0 }
 0x61c   :  { %v14567_v45 = vmax.f32 %v14559_v60, 0.0  ;;  %v14563_v59 = vadd.f32 %v14503_v16, %v21440_v30  ;;  %v14505_v7 = vpop.f32.mrb[27].mxu0 }
 0x61d   :  { %v14568_v39 = vmax.f32 %v14560_v14, 0.0  ;;  %v14564_v12 = vadd.f32 %v14505_v7, %v21440_v30 }
 0x61e   :  { %v14575_v4 = vadd.f32 %v14567_v45, %v13715_v63  ;;  %v14571_v3 = vmax.f32 %v14563_v59, 0.0  ;;  %v14926_v19 = vpop.f32.mrb[108].mxu1 }
 0x61f   :  { %v14572_v55 = vmax.f32 %v14564_v12, 0.0  ;;  %v14937_v15 = vadd.f32 %v14926_v19, %v14843_v11  ;;  %v14928_v61 = vpop.f32.mrb[109].mxu1 }
 0x620   :  { %v14577_v33 = vadd.f32 %v14575_v4, %v14568_v39  ;;  %v14576_v62 = vadd.f32 %v14571_v3, %v21513_v17  ;;  %v14938_v27 = vadd.f32 %v14928_v61, %v14748_v54  ;;  %v14930_v21 = vpop.f32.mrb[110].mxu1  ;;  %v15249_v61 = vld [vmem:[%s21996_s9 + $0x8] sm:$0xff] }
 0x621   :  { %v14941_v41 = vadd.f32 %v14930_v21, %v14847_v1  ;;  %v14932_v52 = vpop.f32.mrb[111].mxu1 }
 0x622   :  { %v14579_v0 = vadd.f32 %v14577_v33, %v14569_v56  ;;  %v14578_v6 = vadd.f32 %v14576_v62, %v14572_v55  ;;  %v14942_v63 = vadd.f32 %v14932_v52, %v14752_v23  ;;  %v15251_v56 = vld [vmem:[%s21996_s9 + $0x18] sm:$0xff]  ;;  %v15635_v62 = vld [vmem:[%s22001_s14 + $0x8] sm:$0xff] }
 0x623   :  { %v17828_v33 = vpack.c.bf16 %v15251_v56, %v15249_v61 }
 0x624   :  { %v14580_v51 = vadd.f32 %v14578_v6, %v14573_v20  ;;  %v14581_v24 = vadd.f32 %v14579_v0, %v14570_v22  ;;  %v15634_v22 = vld [vmem:[%s22001_s14] sm:$0xff]  ;;  %v15639_v20 = vld [vmem:[%s22001_s14 + $0x28] sm:$0xff]  ;;  %v15641_v0 = vld [vmem:[%s22001_s14 + $0x38] sm:$0xff] }
 0x625   :  { %17829 = vmatprep.subr.bf16.mxu1 %v17828_v33  ;;  %v21586_v6 = vpack.c.bf16 %v15641_v0, %v15639_v20 }
 0x626   :  { %v15020_v42 = vpop.f32.mrb[112].mxu1  ;;  %v14582_v40 = vadd.f32 %v14580_v51, %v14574_v46  ;;  %v15640_v46 = vld [vmem:[%s22001_s14 + $0x30] sm:$0xff] }
 0x627   :  { %v15031_v57 = vadd.f32 %v15020_v42, %v14937_v15  ;;  %v15022_v48 = vpop.f32.mrb[113].mxu1  ;;  %v15158_v15 = vld [vmem:[%s22079_s2 + $0x18] sm:$0xff] }
 0x628   :  { %v15032_v10 = vadd.f32 %v15022_v48, %v14938_v27  ;;  %v15024_v5 = vpop.f32.mrb[114].mxu1  ;;  %v15637_v27 = vld [vmem:[%s22001_s14 + $0x18] sm:$0xff]  ;;  %v15644_v48 = vld [vmem:[%s22001_s14 + $0x50] sm:$0xff] }
 0x629   :  { %v15035_v25 = vadd.f32 %v15024_v5, %v14941_v41  ;;  %v15026_v17 = vpop.f32.mrb[115].mxu1  ;;  %v21569_v21 = vpack.c.bf16 %v15637_v27, %v15635_v62  ;;  %v15636_v41 = vld [vmem:[%s22001_s14 + $0x10] sm:$0xff]  ;;  %v15645_v42 = vld [vmem:[%s22001_s14 + $0x58] sm:$0xff]  ;;  %v15647_v5 = vld [vmem:[%s22001_s14 + $0x68] sm:$0xff] }
 0x62a   :  { %v15036_v8 = vadd.f32 %v15026_v17, %v14942_v63  ;;  %v15134_v44 = vadd.f32 %v15032_v10, %v21436_v32  ;;  %v21578_v52 = vpack.c.bf16 %v15636_v41, %v15634_v22  ;;  %v15638_v63 = vld [vmem:[%s22001_s14 + $0x20] sm:$0xff] }
 0x62b   :  { %v21595_v51 = vpack.c.bf16 %v15640_v46, %v15638_v63 }
 0x62c   :  { %v15138_v43 = vadd.f32 %v15036_v8, %v21440_v30  ;;  %v15142_v18 = vmax.f32 %v15134_v44, 0.0  ;;  %v15646_v8 = vld [vmem:[%s22001_s14 + $0x60] sm:$0xff] }
 0x62e   :  { %v15114_v26 = vpop.f32.mrb[116].mxu1  ;;  %v15146_v4 = vmax.f32 %v15138_v43, 0.0 }
 0x62f   :  { %v15125_v29 = vadd.f32 %v15114_v26, %v15031_v57  ;;  %v17768_v28 = vpop.f32.mrb[117].mxu1  ;;  %v15642_v57 = vld [vmem:[%s22001_s14 + $0x40] sm:$0xff]  ;;  %v15648_v26 = vld [vmem:[%s22001_s14 + $0x70] sm:$0xff] }
 0x630   :  { %v15118_v38 = vpop.f32.mrb[118].mxu1  ;;  %v21614_v10 = vpack.c.bf16 %v15644_v48, %v15642_v57 }
 0x631   :  { %v15129_v9 = vadd.f32 %v15118_v38, %v15035_v25  ;;  %v17769_v13 = vpop.f32.mrb[119].mxu1  ;;  %v15133_v34 = vadd.f32 %v15125_v29, %v21436_v32  ;;  %v15649_v25 = vld [vmem:[%s22001_s14 + $0x78] sm:$0xff]  ;;  %v21631_v29 = vpack.c.bf16 %v15648_v26, %v15646_v8  ;;  %v15248_v38 = vld [vmem:[%s21996_s9] sm:$0xff] }
 0x632   :  { %v21622_v17 = vpack.c.bf16 %v15649_v25, %v15647_v5 }
 0x633   :  { %v15137_v60 = vadd.f32 %v15129_v9, %v21440_v30  ;;  %v15141_v45 = vmax.f32 %v15133_v34, 0.0  ;;  %v15250_v9 = vld [vmem:[%s21996_s9 + $0x10] sm:$0xff] }
 0x635   :  { %v15145_v39 = vmax.f32 %v15137_v60, 0.0 }
 0x65d   :  { %v15071_v37 = vpop.f32.mrb[28].mxu0 }
 0x65e   :  { %v15131_v47 = vadd.f32 %v15071_v37, %v21436_v32  ;;  %v15073_v54 = vpop.f32.mrb[29].mxu0  ;;  %v15424_v37 = vld [vmem:[%s21998_s11 + $0x8] sm:$0xff] }
 0x65f   :  { %v15132_v49 = vadd.f32 %v15073_v54, %v21436_v32  ;;  %v15075_v23 = vpop.f32.mrb[30].mxu0  ;;  %v15156_v32 = vld [vmem:[%s22079_s2 + $0x8] sm:$0xff]  ;;  %v17830_v54 = vpack.c.bf16 %v15250_v9, %v15248_v38 }
 0x660   :  { %v15139_v11 = vmax.f32 %v15131_v47, 0.0  ;;  %v15135_v35 = vadd.f32 %v15075_v23, %v21440_v30  ;;  %v15077_v31 = vpop.f32.mrb[31].mxu0  ;;  %v15426_v47 = vld [vmem:[%s21998_s11 + $0x18] sm:$0xf] }
 0x661   :  { %v15140_v53 = vmax.f32 %v15132_v49, 0.0  ;;  %v15136_v1 = vadd.f32 %v15077_v31, %v21440_v30  ;;  %v15157_v30 = vld [vmem:[%s22079_s2 + $0x10] sm:$0xff]  ;;  %v17832_v23 = vpack.c.bf16 %v15426_v47, %v15424_v37 }
 0x662   :  { %v15147_v2 = vadd.f32 %v15139_v11, %v14581_v24  ;;  %v15143_v14 = vmax.f32 %v15135_v35, 0.0  ;;  %v15643_v24 = vld [vmem:[%s22001_s14 + $0x48] sm:$0xff]  ;;  %v15423_v35 = vld [vmem:[%s21998_s11] sm:$0xff]  ;;  %v15425_v31 = vld [vmem:[%s21998_s11 + $0x10] sm:$0xf]  ;;  %s22082_s14 = sld [smem:[#allocation20_spill]] }
 0x663   :  { %v15144_v16 = vmax.f32 %v15136_v1, 0.0  ;;  %v15524_v1 = vld [vmem:[%s21999_s12 + $0x18] sm:$0xf]  ;;  %v17835_v44 = vpack.c.bf16 %v15425_v31, %v15423_v35 }
 0x664   :  { %v15149_v59 = vadd.f32 %v15147_v2, %v15140_v53  ;;  %v15148_v7 = vadd.f32 %v15143_v14, %v14582_v40  ;;  %v21604_v40 = vpack.c.bf16 %v15645_v42, %v15643_v24  ;;  %v15522_v53 = vld [vmem:[%s21999_s12 + $0x8] sm:$0xff]  ;;  %v15521_v2 = vld [vmem:[%s21999_s12] sm:$0xff]  ;;  %v15523_v14 = vld [vmem:[%s21999_s12 + $0x10] sm:$0xf] }
 0x665   :  { %v17838_v60 = vpack.c.bf16 %v15524_v1, %v15522_v53  ;;  %v17841_v43 = vpack.c.bf16 %v15523_v14, %v15521_v2 }
 0x666   :  { %v15151_v12 = vadd.f32 %v15149_v59, %v15141_v45  ;;  %v15150_v36 = vadd.f32 %v15148_v7, %v15144_v16 }
 0x668   :  { %v15152_v3 = vadd.f32 %v15150_v36, %v15145_v39  ;;  %v15153_v19 = vadd.f32 %v15151_v12, %v15142_v18  ;;  %v15244_v16 = vld [vmem:[%s22082_s14] sm:$0xff]  ;;  %v15245_v45 = vld [vmem:[%s22082_s14 + $0x8] sm:$0xff]  ;;  %v15246_v59 = vld [vmem:[%s22082_s14 + $0x10] sm:$0xff] }
 0x669   :  { %v15247_v7 = vld [vmem:[%s22082_s14 + $0x18] sm:$0xff]  ;;  %v22083_v12 = vld [vmem:[#allocation5_spill] sm:$0xff] }
 0x66a   :  { %v15154_v50 = vadd.f32 %v15152_v3, %v15146_v4  ;;  %v15622_v36 = vsub.s32 0, %v22083_v12  ;;  %v15618_v4 = vld [vmem:[%s22000_s13] sm:$0x3]  ;;  %s18312_s13 = smov 64  }
 0x66c   :  { %v17820_v55 = vpack.c.bf16 %v15154_v50, %v15153_v19  ;;  %v15623_v3 = vrot.slane %v15618_v4, %v15622_v36  ;;  %v15626_v50 = vsub.s32 1, %v22083_v12 }
 0x66e   :  { %17821 = vmatprep.subr.bf16.mxu0 %v17820_v55 }
 0x66f   :  { %17823 = vmatpush3.bf16.xpose.msra.mxu0 %v17820_v55 }
 0x670   :  { %17845 = vmatprep.subr.bf16.mxu0 %v21569_v21 }
 0x676   :  { %17775 = vmatmul.mubr.f32.vlgmr.msra.gmra.mrb[32].mxu0 %v15156_v32 }
 0x677   :  { %17777 = vmatprep.mubr.f32.mxu0 %v15157_v30  ;;  %17847 = vmatpush1.bf16.msra.mxu0 %v21578_v52 }
 0x678   :  { %17849 = vmatprep.subr.bf16.mxu0 %v21586_v6 }
 0x67a   :  { %17778 = vmatmul.mubr.f32.gmra.mrb[34].mxu0 %v15158_v15  ;;  %v15627_v15 = vrot.slane %v15618_v4, %v15626_v50 }
 0x67b   :  { %15718 = vmatprep.mubr.f32.mxu0 %v22048_v58  ;;  %17851 = vmatpush1.bf16.msra.mxu0 %v21595_v51 }
 0x67c   :  { %17853 = vmatprep.subr.bf16.mxu0 %v21604_v40 }
 0x67f   :  { %17855 = vmatpush1.bf16.msra.mxu0 %v21614_v10 }
 0x680   :  { %17857 = vmatprep.subr.bf16.mxu0 %v21622_v17 }
 0x683   :  { %17859 = vmatpush1.bf16.msra.mxu0 %v21631_v29 }
 0x684   :  { %17861 = vmatprep.subr.bf16.mxu0 %v21569_v21 }
 0x686   :  { %15719 = vmatmul.mubr.f32.vlgmr.msra.gmra.mrb[36].mxu0 %v22048_v58 }
 0x687   :  { %17863 = vmatpush1.bf16.msra.mxu0 %v21578_v52  ;;  %15823 = vmatprep.mubr.f32.mxu0 %v22048_v58 }
 0x688   :  { %17865 = vmatprep.subr.bf16.mxu0 %v21586_v6 }
 0x68b   :  { %17867 = vmatpush1.bf16.msra.mxu0 %v21595_v51 }
 0x68c   :  { %17869 = vmatprep.subr.bf16.mxu0 %v21604_v40 }
 0x68f   :  { %17871 = vmatpush1.bf16.msra.mxu0 %v21614_v10 }
 0x690   :  { %17873 = vmatprep.subr.bf16.mxu0 %v21622_v17 }
 0x693   :  { %17875 = vmatpush1.bf16.msra.mxu0 %v21631_v29 }
 0x694   :  { %17893 = vmatprep.subr.bf16.mxu0 %v21569_v21 }
 0x749   :  { %v17776_v28 = vpop.f32.mrb[32].mxu0 }
 0x74a   :  { %v15225_v13 = vpop.f32.mrb[33].mxu0 }
 0x74d   :  { %v17779_v49 = vpop.f32.mrb[34].mxu0 }
 0x74e   :  { %v15235_v34 = vpop.f32.mrb[35].mxu0 }
 0x74f   :  { %17440 = vmatmul.mubr.msk.f32.vlgmr.msra.gmra.mrb[120].mxu1 %vm15256_vm5, %v15235_v34 }
 0x750   :  { %17831 = vmatpush1.bf16.msra.mxu1 %v17830_v54  ;;  %15333 = vmatprep.mubr.f32.mxu1 %v22048_v58 }
 0x751   :  { %17834 = vmatprep.subr.msk.bf16.mxu1 %vm21659_vm7, %v17832_v23 }
 0x753   :  { %17441 = vmatmul.mubr.msk.f32.gmra.mrb[122].mxu1 %vm15256_vm5, %v17779_v49 }
 0x754   :  { %15410 = vmatprep.mubr.f32.mxu1 %v22048_v58 }
 0x757   :  { %17442 = vmatmul.mubr.msk.f32.vlgmr.msra.gmra.mrb[120].mxu1 %vm15256_vm5, %v15225_v13 }
 0x758   :  { %17837 = vmatpush1.bf16.msk.msra.mxu1 %vm21659_vm7, %v17835_v44  ;;  %15416 = vmatprep.mubr.f32.mxu1 %v22048_v58 }
 0x759   :  { %17840 = vmatprep.subr.msk.bf16.mxu1 %vm21659_vm7, %v17838_v60  ;;  %v15720_v18 = vpop.f32.mrb[36].mxu0 }
 0x75a   :  { %v15722_v39 = vpop.f32.mrb[37].mxu0 }
 0x75b   :  { %17443 = vmatmul.mubr.msk.f32.gmra.mrb[122].mxu1 %vm15256_vm5, %v17776_v28 }
 0x75c   :  { %15504 = vmatprep.mubr.f32.mxu1 %v22048_v58 }
 0x75f   :  { %17446 = vmatmul.mubr.msk.f32.vlgmr.msra.gmra.mrb[120].mxu1 %vm15427_vm8, %v15244_v16 }
 0x760   :  { %17843 = vmatpush1.bf16.msk.msra.mxu1 %vm21659_vm7, %v17841_v43  ;;  %15510 = vmatprep.mubr.f32.mxu1 %v22048_v58 }
 0x761   :  { %17877 = vmatprep.subr.bf16.mxu1 %v21569_v21 }
 0x763   :  { %17447 = vmatmul.mubr.msk.f32.gmra.mrb[122].mxu1 %vm15427_vm8, %v15245_v45 }
 0x764   :  { %15601 = vmatprep.mubr.f32.mxu1 %v22048_v58 }
 0x767   :  { %17450 = vmatmul.mubr.msk.f32.vlgmr.msra.gmra.mrb[120].mxu1 %vm15427_vm8, %v15246_v59 }
 0x768   :  { %15607 = vmatprep.mubr.f32.mxu1 %v22048_v58  ;;  %17879 = vmatpush1.bf16.msra.mxu1 %v21578_v52 }
 0x769   :  { %17881 = vmatprep.subr.bf16.mxu1 %v21586_v6 }
 0x76b   :  { %17451 = vmatmul.mubr.msk.f32.gmra.mrb[122].mxu1 %vm15427_vm8, %v15247_v7 }
 0x76c   :  { %17883 = vmatpush1.bf16.msra.mxu1 %v21595_v51  ;;  %15939 = vmatprep.mubr.f32.mxu1 %v22048_v58 }
 0x76d   :  { %17885 = vmatprep.subr.bf16.mxu1 %v21604_v40 }
 0x770   :  { %17887 = vmatpush1.bf16.msra.mxu1 %v21614_v10 }
 0x771   :  { %17889 = vmatprep.subr.bf16.mxu1 %v21622_v17 }
 0x774   :  { %17891 = vmatpush1.bf16.msra.mxu1 %v21631_v29 }
 0x775   :  { %17909 = vmatprep.subr.bf16.mxu1 %v21569_v21 }
 0x83a   :  { %v15603_v19 = vpop.f32.mrb[120].mxu1 }
 0x83b   :  { %v21727_v55 = vadd.f32 %v15623_v3, %v15603_v19  ;;  %v15605_v32 = vpop.f32.mrb[121].mxu1 }
 0x83c   :  { %v21734_v22 = vadd.f32 %v15627_v15, %v15605_v32 }
 0x83d   :  { %v15725_v30 = vadd.f32 %v15720_v18, %v21727_v55 }
 0x83e   :  { %v15609_v61 = vpop.f32.mrb[122].mxu1  ;;  %v15726_v41 = vadd.f32 %v15722_v39, %v21734_v22 }
 0x83f   :  { %v17452_v56 = vmul.f32 -1.442695, %v15725_v30  ;;  %v21730_v33 = vadd.f32 %v15623_v3, %v15609_v61  ;;  %v15611_v62 = vpop.f32.mrb[123].mxu1 }
 0x840   :  { %v21732_v27 = vadd.f32 %v15627_v15, %v15611_v62  ;;  %v17453_v42 = vmul.f32 -1.442695, %v15726_v41 }
 0x841   :  { %18155 = vpow2.f32 %v17452_v56 }
 0x842   :  { %18157 = vtanh.f32 %v15726_v41 }
 0x84b   :  { %v18156_v20 = vpop.eup %18155 }
 0x84c   :  { %v15730_v0 = vadd.f32 1.0, %v18156_v20  ;;  %v18158_v63 = vpop.eup %18157 }
 0x84e   :  { %18159 = vrcp.f32 %v15730_v0 }
 0x84f   :  { %18161 = vpow2.f32 %v17453_v42 }
 0x858   :  { %v18160_v46 = vpop.eup %18159 }
 0x859   :  { %v15741_v24 = vmul.f32 %v18160_v46, %v18158_v63  ;;  %v18162_v57 = vpop.eup %18161  ;;  %v15740_v5 = vmul.f32 0.0, %v18160_v46 }
 0x85a   :  { %v15737_v48 = vadd.f32 1.0, %v18162_v57 }
 0x85b   :  { %15743 = vrot.lane.b32.xlu1 %v15741_v24, %s18312_s13 }
 0x85c   :  { %18163 = vrcp.f32 %v15737_v48 }
 0x866   :  { %v18164_v26 = vpop.eup %18163 }
 0x8cd   :  { %v15744_v25 = vpop.permute.xlu1 %15743 }
 0x8ce   :  { %v15746_v8 = vadd.f32 %v15744_v25, %v15740_v5 }
 0x8d0   :  { %18165 = vtanh.f32 %v15746_v8  ;;  %v15852_v53 = vrot.slane %v15746_v8, 6 }
 0x8da   :  { %v18166_v28 = vpop.eup %18165 }
 0x8db   :  { %v15748_v38 = vmul.f32 %v18166_v28, %v18164_v26 }
 0x8dd   :  { %15751 = vrot.lane.b32.xlu0 %v15748_v38, %s18312_s13 }
 0x94f   :  { %v21739_v9 = vpop.permute.xlu0 %15751 }
 0x950   :  { %17454 = vmatmul.mubr.msk.f32.vlgmr.msra.gmra.mrb[38].mxu0 %vm15650_vm9, %v21739_v9 }
 0x951   :  { %17895 = vmatpush1.bf16.msra.mxu0 %v21578_v52  ;;  %16055 = vmatprep.mubr.f32.mxu0 %v22048_v58 }
 0x952   :  { %17897 = vmatprep.subr.bf16.mxu0 %v21586_v6 }
 0x955   :  { %17899 = vmatpush1.bf16.msra.mxu0 %v21595_v51 }
 0x956   :  { %17901 = vmatprep.subr.bf16.mxu0 %v21604_v40 }
 0x959   :  { %17903 = vmatpush1.bf16.msra.mxu0 %v21614_v10 }
 0x95a   :  { %17905 = vmatprep.subr.bf16.mxu0 %v21622_v17 }
 0x95d   :  { %17907 = vmatpush1.bf16.msra.mxu0 %v21631_v29 }
 0x95e   :  { %17925 = vmatprep.subr.bf16.mxu0 %v21569_v21 }
 0xa23   :  { %v15825_v13 = vpop.f32.mrb[38].mxu0 }
 0xa24   :  { %v15832_v37 = vrot.slane %v15825_v13, 6  ;;  %v15827_v47 = vpop.f32.mrb[39].mxu0 }
 0xa25   :  { %v15833_v23 = vrot.slane %v15827_v47, 6 }
 0xa26   :  { %v15836_v54 = vadd.f32 %v15832_v37, %v21727_v55 }
 0xa27   :  { %v15837_v34 = vadd.f32 %v15833_v23, %v21734_v22 }
 0xa28   :  { %v17455_v49 = vmul.f32 -1.442695, %v15836_v54 }
 0xa29   :  { %v17456_v2 = vmul.f32 -1.442695, %v15837_v34 }
 0xa2a   :  { %18167 = vpow2.f32 %v17455_v49 }
 0xa2b   :  { %18169 = vtanh.f32 %v15837_v34 }
 0xa34   :  { %v18168_v11 = vpop.eup %18167 }
 0xa35   :  { %v15841_v35 = vadd.f32 1.0, %v18168_v11  ;;  %v18170_v31 = vpop.eup %18169 }
 0xa37   :  { %18171 = vrcp.f32 %v15841_v35 }
 0xa38   :  { %18173 = vpow2.f32 %v17456_v2 }
 0xa41   :  { %v18172_v1 = vpop.eup %18171 }
 0xa42   :  { %v15855_v44 = vmul.f32 %v18172_v1, %v18170_v31  ;;  %v15854_v60 = vmul.f32 %v18172_v1, %v15852_v53  ;;  %v18174_v14 = vpop.eup %18173 }
 0xa43   :  { %v15848_v16 = vadd.f32 1.0, %v18174_v14 }
 0xa44   :  { %15857 = vrot.lane.b32.xlu1 %v15855_v44, %s18312_s13 }
 0xa45   :  { %18175 = vrcp.f32 %v15848_v16 }
 0xa4f   :  { %v18176_v59 = vpop.eup %18175 }
 0xab6   :  { %v15858_v43 = vpop.permute.xlu1 %15857 }
 0xab7   :  { %v15860_v45 = vadd.f32 %v15858_v43, %v15854_v60 }
 0xab9   :  { %18177 = vtanh.f32 %v15860_v45  ;;  %v15968_v62 = vrot.slane %v15860_v45, 6 }
 0xac3   :  { %v18178_v7 = vpop.eup %18177 }
 0xac4   :  { %v15862_v18 = vmul.f32 %v18178_v7, %v18176_v59 }
 0xac6   :  { %v15866_v39 = vrot.slane %v15862_v18, 2 }
 0xac8   :  { %15867 = vrot.lane.b32.xlu0 %v15866_v39, %s18312_s13 }
 0xb3a   :  { %v21756_v12 = vpop.permute.xlu0 %15867 }
 0xb3b   :  { %17458 = vmatmul.mubr.msk.f32.vlgmr.msra.gmra.mrb[124].mxu1 %vm15650_vm9, %v21756_v12 }
 0xb3c   :  { %17911 = vmatpush1.bf16.msra.mxu1 %v21578_v52  ;;  %16171 = vmatprep.mubr.f32.mxu1 %v22048_v58 }
 0xb3d   :  { %17913 = vmatprep.subr.bf16.mxu1 %v21586_v6 }
 0xb40   :  { %17915 = vmatpush1.bf16.msra.mxu1 %v21595_v51 }
 0xb41   :  { %17917 = vmatprep.subr.bf16.mxu1 %v21604_v40 }
 0xb44   :  { %17919 = vmatpush1.bf16.msra.mxu1 %v21614_v10 }
 0xb45   :  { %17921 = vmatprep.subr.bf16.mxu1 %v21622_v17 }
 0xb48   :  { %17923 = vmatpush1.bf16.msra.mxu1 %v21631_v29 }
 0xb49   :  { %17941 = vmatprep.subr.bf16.mxu1 %v21569_v21 }
 0xc0e   :  { %v15941_v36 = vpop.f32.mrb[124].mxu1 }
 0xc0f   :  { %v15948_v4 = vrot.slane %v15941_v36, 4  ;;  %v15943_v3 = vpop.f32.mrb[125].mxu1 }
 0xc10   :  { %v15949_v32 = vrot.slane %v15943_v3, 4 }
 0xc11   :  { %v15952_v19 = vadd.f32 %v15948_v4, %v21727_v55 }
 0xc12   :  { %v15953_v30 = vadd.f32 %v15949_v32, %v21734_v22 }
 0xc13   :  { %v17459_v50 = vmul.f32 -1.442695, %v15952_v19 }
 0xc14   :  { %v17460_v63 = vmul.f32 -1.442695, %v15953_v30 }
 0xc15   :  { %18179 = vpow2.f32 %v17459_v50 }
 0xc16   :  { %18181 = vtanh.f32 %v15953_v30 }
 0xc1f   :  { %v18180_v15 = vpop.eup %18179 }
 0xc20   :  { %v15957_v61 = vadd.f32 1.0, %v18180_v15  ;;  %v18182_v56 = vpop.eup %18181 }
 0xc22   :  { %18183 = vrcp.f32 %v15957_v61 }
 0xc23   :  { %18185 = vpow2.f32 %v17460_v63 }
 0xc2c   :  { %v18184_v41 = vpop.eup %18183 }
 0xc2d   :  { %v15971_v20 = vmul.f32 %v18184_v41, %v18182_v56  ;;  %v15970_v0 = vmul.f32 %v18184_v41, %v15968_v62  ;;  %v18186_v46 = vpop.eup %18185 }
 0xc2e   :  { %v15964_v24 = vadd.f32 1.0, %v18186_v46 }
 0xc2f   :  { %15973 = vrot.lane.b32.xlu1 %v15971_v20, %s18312_s13 }
 0xc30   :  { %18187 = vrcp.f32 %v15964_v24 }
 0xc3a   :  { %v18188_v48 = vpop.eup %18187 }
 0xca1   :  { %v15974_v42 = vpop.permute.xlu1 %15973 }
 0xca2   :  { %v15976_v57 = vadd.f32 %v15974_v42, %v15970_v0 }
 0xca4   :  { %18189 = vtanh.f32 %v15976_v57  ;;  %v16084_v35 = vrot.slane %v15976_v57, 6 }
 0xcae   :  { %v18190_v5 = vpop.eup %18189 }
 0xcaf   :  { %v15978_v25 = vmul.f32 %v18190_v5, %v18188_v48 }
 0xcb1   :  { %v15982_v8 = vrot.slane %v15978_v25, 4 }
 0xcb3   :  { %15983 = vrot.lane.b32.xlu0 %v15982_v8, %s18312_s13 }
 0xd25   :  { %v21773_v26 = vpop.permute.xlu0 %15983 }
 0xd26   :  { %17462 = vmatmul.mubr.msk.f32.vlgmr.msra.gmra.mrb[40].mxu0 %vm15650_vm9, %v21773_v26 }
 0xd27   :  { %17927 = vmatpush1.bf16.msra.mxu0 %v21578_v52  ;;  %16280 = vmatprep.mubr.f32.mxu0 %v22048_v58 }
 0xd28   :  { %17929 = vmatprep.subr.bf16.mxu0 %v21586_v6 }
 0xd2b   :  { %17931 = vmatpush1.bf16.msra.mxu0 %v21595_v51 }
 0xd2c   :  { %17933 = vmatprep.subr.bf16.mxu0 %v21604_v40 }
 0xd2f   :  { %17935 = vmatpush1.bf16.msra.mxu0 %v21614_v10 }
 0xd30   :  { %17937 = vmatprep.subr.bf16.mxu0 %v21622_v17 }
 0xd33   :  { %17939 = vmatpush1.bf16.msra.mxu0 %v21631_v29 }
 0xd34   :  { %17957 = vmatprep.subr.bf16.mxu0 %v21569_v21 }
 0xdf9   :  { %v16057_v28 = vpop.f32.mrb[40].mxu0 }
 0xdfa   :  { %v16064_v38 = vrot.slane %v16057_v28, 2  ;;  %v16059_v13 = vpop.f32.mrb[41].mxu0 }
 0xdfb   :  { %v16065_v54 = vrot.slane %v16059_v13, 2 }
 0xdfc   :  { %v16068_v37 = vadd.f32 %v16064_v38, %v21727_v55 }
 0xdfd   :  { %v16069_v49 = vadd.f32 %v16065_v54, %v21734_v22 }
 0xdfe   :  { %v17463_v47 = vmul.f32 -1.442695, %v16068_v37 }
 0xdff   :  { %v17464_v21 = vmul.f32 -1.442695, %v16069_v49 }
 0xe00   :  { %18191 = vpow2.f32 %v17463_v47 }
 0xe01   :  { %18193 = vtanh.f32 %v16069_v49 }
 0xe0a   :  { %v18192_v23 = vpop.eup %18191 }
 0xe0b   :  { %v16073_v34 = vadd.f32 1.0, %v18192_v23  ;;  %v18194_v11 = vpop.eup %18193 }
 0xe0d   :  { %18195 = vrcp.f32 %v16073_v34 }
 0xe0e   :  { %18197 = vpow2.f32 %v17464_v21 }
 0xe17   :  { %v18196_v31 = vpop.eup %18195 }
 0xe18   :  { %v16087_v53 = vmul.f32 %v18196_v31, %v18194_v11  ;;  %v16086_v1 = vmul.f32 %v18196_v31, %v16084_v35  ;;  %v18198_v44 = vpop.eup %18197 }
 0xe19   :  { %v16080_v55 = vadd.f32 1.0, %v18198_v44 }
 0xe1a   :  { %16089 = vrot.lane.b32.xlu1 %v16087_v53, %s18312_s13 }
 0xe1b   :  { %18199 = vrcp.f32 %v16080_v55 }
 0xe25   :  { %v18200_v22 = vpop.eup %18199 }
 0xe8c   :  { %v16090_v60 = vpop.permute.xlu1 %16089 }
 0xe8d   :  { %v16092_v2 = vadd.f32 %v16090_v60, %v16086_v1 }
 0xe8f   :  { %18201 = vtanh.f32 %v16092_v2  ;;  %v16194_v50 = vrot.slane %v16092_v2, 6 }
 0xe99   :  { %v18202_v14 = vpop.eup %18201 }
 0xe9a   :  { %v16094_v16 = vmul.f32 %v18202_v14, %v18200_v22 }
 0xe9c   :  { %v16098_v43 = vrot.slane %v16094_v16, 6 }
 0xe9e   :  { %16099 = vrot.lane.b32.xlu0 %v16098_v43, %s18312_s13 }
 0xf10   :  { %v21790_v45 = vpop.permute.xlu0 %16099 }
 0xf11   :  { %17466 = vmatmul.mubr.msk.f32.vlgmr.msra.gmra.mrb[126].mxu1 %vm15650_vm9, %v21790_v45 }
 0xf12   :  { %17943 = vmatpush1.bf16.msra.mxu1 %v21578_v52  ;;  %16396 = vmatprep.mubr.f32.mxu1 %v22048_v58 }
 0xf13   :  { %17945 = vmatprep.subr.bf16.mxu1 %v21586_v6 }
 0xf16   :  { %17947 = vmatpush1.bf16.msra.mxu1 %v21595_v51 }
 0xf17   :  { %17949 = vmatprep.subr.bf16.mxu1 %v21604_v40 }
 0xf1a   :  { %17951 = vmatpush1.bf16.msra.mxu1 %v21614_v10 }
 0xf1b   :  { %17953 = vmatprep.subr.bf16.mxu1 %v21622_v17 }
 0xf1e   :  { %17955 = vmatpush1.bf16.msra.mxu1 %v21631_v29 }
 0xfe4   :  { %v16173_v59 = vpop.f32.mrb[126].mxu1 }
 0xfe5   :  { %v16178_v7 = vadd.f32 %v16173_v59, %v21730_v33  ;;  %v16175_v18 = vpop.f32.mrb[127].mxu1 }
 0xfe6   :  { %v16179_v36 = vadd.f32 %v16175_v18, %v21732_v27 }
 0xfe7   :  { %v17467_v39 = vmul.f32 -1.442695, %v16178_v7 }
 0xfe8   :  { %v17468_v61 = vmul.f32 -1.442695, %v16179_v36 }
 0xfe9   :  { %18203 = vpow2.f32 %v17467_v39  ;;  %v21834_v39 = vld [vmem:[%s22084_s3] sm:$0x3] }
 0xfea   :  { %18205 = vtanh.f32 %v16179_v36  ;;  %v21839_v36 = vld [vmem:[%s22084_s3 + $0x2] sm:$0x3] }
 0xff3   :  { %v18204_v4 = vpop.eup %18203 }
 0xff4   :  { %v16183_v3 = vadd.f32 1.0, %v18204_v4  ;;  %v18206_v19 = vpop.eup %18205  ;;  %v15872_v4 = vadd.f32 %v21839_v36, %v21834_v39 }
 0xff6   :  { %18207 = vrcp.f32 %v16183_v3  ;;  %v21846_v3 = vld [vmem:[%s22084_s3 + $0x4] sm:$0x3] }
 0xff7   :  { %18209 = vpow2.f32 %v17468_v61 }
0x1000   :  { %v18208_v32 = vpop.eup %18207 }
0x1001   :  { %v16197_v30 = vmul.f32 %v18208_v32, %v18206_v19  ;;  %v16196_v15 = vmul.f32 %v18208_v32, %v16194_v50  ;;  %v18210_v56 = vpop.eup %18209  ;;  %v15988_v19 = vadd.f32 %v21846_v3, %v15872_v4  ;;  %v21852_v32 = vld [vmem:[%s22084_s3 + $0x6] sm:$0x3] }
0x1002   :  { %v16190_v62 = vadd.f32 1.0, %v18210_v56  ;;  %v21858_v56 = vld [vmem:[%s22084_s3 + $0x8] sm:$0x3] }
0x1003   :  { %16199 = vrot.lane.b32.xlu1 %v16197_v30, %s18312_s13  ;;  %v16104_v30 = vadd.f32 %v21852_v32, %v15988_v19 }
0x1004   :  { %18211 = vrcp.f32 %v16190_v62 }
0x100e   :  { %v18212_v0 = vpop.eup %18211 }
0x1075   :  { %v16200_v41 = vpop.permute.xlu1 %16199 }
0x1076   :  { %v16202_v20 = vadd.f32 %v16200_v41, %v16196_v15  ;;  %v16213_v41 = vadd.f32 %v21858_v56, %v16104_v30 }
0x1078   :  { %18213 = vtanh.f32 %v16202_v20 }
0x1082   :  { %v18214_v63 = vpop.eup %18213 }
0x1083   :  { %v16204_v46 = vmul.f32 %v18214_v63, %v18212_v0  ;;  %v21870_v63 = vld [vmem:[%s22084_s3 + $0xc] sm:$0x3] }
0x1085   :  { %16208 = vrot.lane.b32.xlu0 %v16204_v46, %s18312_s13 }
0x10f7   :  { %v21806_v24 = vpop.permute.xlu0 %16208 }
0x10f8   :  { %17470 = vmatmul.mubr.msk.f32.vlgmr.msra.gmra.mrb[42].mxu0 %vm15650_vm9, %v21806_v24 }
0x10f9   :  { %17959 = vmatpush1.bf16.msra.mxu0 %v21578_v52  ;;  %16512 = vmatprep.mubr.f32.mxu0 %v22048_v58 }
0x10fa   :  { %17961 = vmatprep.subr.bf16.mxu0 %v21586_v6 }
0x10fd   :  { %17963 = vmatpush1.bf16.msra.mxu0 %v21595_v51 }
0x10fe   :  { %17965 = vmatprep.subr.bf16.mxu0 %v21604_v40 }
0x1101   :  { %17967 = vmatpush1.bf16.msra.mxu0 %v21614_v10  ;;  %v16309_v10 = vrot.slane %v16202_v20, 6  ;;  %v21864_v20 = vld [vmem:[%s22084_s3 + $0xa] sm:$0x3] }
0x1102   :  { %17969 = vmatprep.subr.bf16.mxu0 %v21622_v17  ;;  %v16329_v0 = vadd.f32 %v21864_v20, %v16213_v41  ;;  %v16688_v41 = vld [vmem:[%s22006_s19 + $0x8] sm:$0xff] }
0x1104   :  { %v16445_v46 = vadd.f32 %v21870_v63, %v16329_v0 }
0x1105   :  { %17971 = vmatpush1.bf16.msra.mxu0 %v21631_v29 }
0x11cb   :  { %v16282_v42 = vpop.f32.mrb[42].mxu0 }
0x11cc   :  { %v16289_v57 = vrot.slane %v16282_v42, 6  ;;  %v16284_v48 = vpop.f32.mrb[43].mxu0  ;;  %v21876_v42 = vld [vmem:[%s22084_s3 + $0xe] sm:$0x3] }
0x11cd   :  { %v16290_v25 = vrot.slane %v16284_v48, 6 }
0x11ce   :  { %v16293_v5 = vadd.f32 %v16289_v57, %v21730_v33 }
0x11cf   :  { %v16294_v6 = vadd.f32 %v16290_v25, %v21732_v27 }
0x11d0   :  { %v17471_v52 = vmul.f32 -1.442695, %v16293_v5 }
0x11d1   :  { %v17472_v29 = vmul.f32 -1.442695, %v16294_v6 }
0x11d2   :  { %18215 = vpow2.f32 %v17471_v52  ;;  %v16561_v52 = vadd.f32 %v21876_v42, %v16445_v46  ;;  %v16690_v46 = vld [vmem:[%s22006_s19 + $0x18] sm:$0xff] }
0x11d3   :  { %18217 = vtanh.f32 %v16294_v6 }
0x11d4   :  { %v16562_v6 = vmax.f32 %v16561_v52, 1e-06 }
0x11dc   :  { %v18216_v8 = vpop.eup %18215 }
0x11dd   :  { %v16298_v51 = vadd.f32 1.0, %v18216_v8  ;;  %v18218_v40 = vpop.eup %18217 }
0x11df   :  { %18219 = vrcp.f32 %v16298_v51 }
0x11e0   :  { %18221 = vpow2.f32 %v17472_v29 }
0x11e9   :  { %v18220_v28 = vpop.eup %18219 }
0x11ea   :  { %v16312_v17 = vmul.f32 %v18220_v28, %v18218_v40  ;;  %v16311_v38 = vmul.f32 %v18220_v28, %v16309_v10  ;;  %v18222_v13 = vpop.eup %18221 }
0x11eb   :  { %v16305_v37 = vadd.f32 1.0, %v18222_v13 }
0x11ec   :  { %16314 = vrot.lane.b32.xlu1 %v16312_v17, %s18312_s13 }
0x11ed   :  { %18223 = vrcp.f32 %v16305_v37 }
0x11f7   :  { %v18224_v49 = vpop.eup %18223 }
0x125e   :  { %v16315_v47 = vpop.permute.xlu1 %16314 }
0x125f   :  { %v16317_v54 = vadd.f32 %v16315_v47, %v16311_v38 }
0x1261   :  { %18225 = vtanh.f32 %v16317_v54  ;;  %v16425_v16 = vrot.slane %v16317_v54, 6 }
0x126b   :  { %v18226_v23 = vpop.eup %18225 }
0x126c   :  { %v16319_v34 = vmul.f32 %v18226_v23, %v18224_v49 }
0x126e   :  { %v16323_v11 = vrot.slane %v16319_v34, 2 }
0x1270   :  { %16324 = vrot.lane.b32.xlu0 %v16323_v11, %s18312_s13  ;;  %v16592_v11 = vld [vmem:[%s22004_s17] sm:$0xff] }
0x12e2   :  { %v21822_v35 = vpop.permute.xlu0 %16324 }
0x12e3   :  { %17474 = vmatmul.mubr.msk.f32.vlgmr.msra.gmra.mrb[128].mxu1 %vm15650_vm9, %v21822_v35 }
0x12e4   :  { %17798 = vmatprep.mubr.msk.f32.mxu1 %vm18310_vm2, %v22048_v58 }
0x13b6   :  { %v16398_v31 = vpop.f32.mrb[128].mxu1 }
0x13b7   :  { %v16405_v53 = vrot.slane %v16398_v31, 4  ;;  %v16400_v1 = vpop.f32.mrb[129].mxu1  ;;  %v18313_v31 = vmov 0.0|0.0  }
0x13b8   :  { %v16406_v55 = vrot.slane %v16400_v1, 4  ;;  %17972 = vmatprep.subr.bf16.mxu1 %v18313_v31  ;;  %v16594_v1 = vld [vmem:[%s22004_s17 + $0x10] sm:$0xff]  ;;  %17984 = vmatprep.subr.bf16.mxu0 %v18313_v31 }
0x13b9   :  { %v16409_v21 = vadd.f32 %v16405_v53, %v21730_v33 }
0x13ba   :  { %v16410_v60 = vadd.f32 %v16406_v55, %v21732_v27 }
0x13bb   :  { %v17475_v44 = vmul.f32 -1.442695, %v16409_v21  ;;  %v16595_v21 = vld [vmem:[%s22004_s17 + $0x18] sm:$0xff] }
0x13bc   :  { %v17476_v18 = vmul.f32 -1.442695, %v16410_v60 }
0x13bd   :  { %18227 = vpow2.f32 %v17475_v44  ;;  %v17976_v44 = vpack.c.bf16 %v16595_v21, %v16594_v1 }
0x13be   :  { %18229 = vtanh.f32 %v16410_v60 }
0x13c7   :  { %v18228_v2 = vpop.eup %18227 }
0x13c8   :  { %v16414_v22 = vadd.f32 1.0, %v18228_v2  ;;  %v18230_v14 = vpop.eup %18229 }
0x13ca   :  { %18231 = vrcp.f32 %v16414_v22 }
0x13cb   :  { %18233 = vpow2.f32 %v17476_v18  ;;  %v16599_v18 = vld [vmem:[%s22004_s17 + $0x38] sm:$0xff] }
0x13d4   :  { %v18232_v43 = vpop.eup %18231 }
0x13d5   :  { %v16428_v59 = vmul.f32 %v18232_v43, %v18230_v14  ;;  %v16427_v7 = vmul.f32 %v18232_v43, %v16425_v16  ;;  %v18234_v50 = vpop.eup %18233  ;;  %v16596_v16 = vld [vmem:[%s22004_s17 + $0x20] sm:$0xff]  ;;  %v16597_v43 = vld [vmem:[%s22004_s17 + $0x28] sm:$0xff] }
0x13d6   :  { %v16421_v15 = vadd.f32 1.0, %v18234_v50 }
0x13d7   :  { %16430 = vrot.lane.b32.xlu1 %v16428_v59, %s18312_s13  ;;  %v17979_v59 = vpack.c.bf16 %v16597_v43, %v16596_v16 }
0x13d8   :  { %18235 = vrcp.f32 %v16421_v15  ;;  %v16600_v15 = vld [vmem:[%s22004_s17 + $0x40] sm:$0x7f] }
0x13e2   :  { %v18236_v57 = vpop.eup %18235 }
0x1449   :  { %v16431_v61 = vpop.permute.xlu1 %16430 }
0x144a   :  { %v16433_v62 = vadd.f32 %v16431_v61, %v16427_v7  ;;  %v16598_v7 = vld [vmem:[%s22004_s17 + $0x30] sm:$0xff] }
0x144b   :  { %v17982_v4 = vpack.c.bf16 %v16599_v18, %v16598_v7 }
0x144c   :  { %18237 = vtanh.f32 %v16433_v62  ;;  %v16541_v54 = vrot.slane %v16433_v62, 6  ;;  %v16687_v62 = vld [vmem:[%s22006_s19] sm:$0xff] }
0x144d   :  { %v17985_v0 = vpack.c.bf16 %v16688_v41, %v16687_v62 }
0x1456   :  { %v18238_v48 = vpop.eup %18237 }
0x1457   :  { %v16435_v5 = vmul.f32 %v18238_v48, %v18236_v57  ;;  %v16691_v48 = vld [vmem:[%s22006_s19 + $0x20] sm:$0xff] }
0x1459   :  { %v16439_v25 = vrot.slane %v16435_v5, 4  ;;  %v16692_v5 = vld [vmem:[%s22006_s19 + $0x28] sm:$0xff] }
0x145a   :  { %v17991_v52 = vpack.c.bf16 %v16692_v5, %v16691_v48 }
0x145b   :  { %16440 = vrot.lane.b32.xlu0 %v16439_v25, %s18312_s13  ;;  %v15870_v25 = vmul.f32 %v21839_v36, %v21756_v12  ;;  %v16327_v12 = vmul.f32 %v21864_v20, %v21822_v35  ;;  %v17483_v35 = vld [vmem:[%s22003_s16] ss:$0 sm:$0xff] }
0x145f   :  { %16565 = vperm.xlu0 %18136, %v16562_v6   ;;  %v15754_v6 = vmul.f32 %v21739_v9, %v21834_v39 }
0x14cd   :  { %v21880_v8 = vpop.permute.xlu0 %16440 }
0x14ce   :  { %17478 = vmatmul.mubr.msk.f32.vlgmr.msra.gmra.mrb[44].mxu0 %vm15650_vm9, %v21880_v8  ;;  %v16443_v9 = vmul.f32 %v21870_v63, %v21880_v8  ;;  %v16694_v8 = vld [vmem:[%s22006_s19 + $0x38] sm:$0xff] }
0x14cf   :  { %17817 = vmatprep.mubr.msk.f32.mxu0 %vm18310_vm2, %v22048_v58  ;;  %17986 = vmatpush3.bf16.msra.mxu0 %v17985_v0 }
0x14d0   :  { %17987 = vmatprep.subr.bf16.mxu0 %v18313_v31 }
0x15a1   :  { %v16514_v51 = vpop.f32.mrb[44].mxu0 }
0x15a2   :  { %v16521_v40 = vrot.slane %v16514_v51, 2  ;;  %v16516_v10 = vpop.f32.mrb[45].mxu0  ;;  %v15986_v51 = vmul.f32 %v21846_v3, %v21773_v26 }
0x15a3   :  { %v16522_v38 = vrot.slane %v16516_v10, 2  ;;  %v16102_v10 = vmul.f32 %v21852_v32, %v21790_v45 }
0x15a4   :  { %v16525_v28 = vadd.f32 %v16521_v40, %v21730_v33  ;;  %v16586_v33 = vld [vmem:[%s22085_s8] sm:$0x3]  ;;  %v15871_v40 = vadd.f32 %v15870_v25, %v15754_v6 }
0x15a5   :  { %v16526_v29 = vadd.f32 %v16522_v38, %v21732_v27  ;;  %v16593_v27 = vld [vmem:[%s22004_s17 + $0x8] sm:$0xff]  ;;  %16588 = vrot.lane.b32.xlu0 %v16586_v33, %s18312_s13  ;;  %v16211_v38 = vmul.f32 %v21858_v56, %v21806_v24  ;;  %v17482_v24 = vld [vmem:[%s22002_s15] ss:$0 sm:$0xff] }
0x15a6   :  { %v17479_v17 = vmul.f32 -1.442695, %v16525_v28  ;;  %v17973_v53 = vpack.c.bf16 %v16593_v27, %v16592_v11  ;;  %v16566_v28 = vpop.permute.xlu0 %16565  ;;  %v17487_v27 = vld [vmem:[%s22007_s20] ss:$0 sm:$0xff] }
0x15a7   :  { %v17480_v55 = vmul.f32 -1.442695, %v16526_v29 }
0x15a8   :  { %18239 = vpow2.f32 %v17479_v17  ;;  %17974 = vmatpush3.bf16.msra.mxu1 %v17973_v53  ;;  %v15987_v17 = vadd.f32 %v15986_v51, %v15871_v40 }
0x15a9   :  { %18241 = vtanh.f32 %v16526_v29  ;;  %17975 = vmatprep.subr.bf16.mxu1 %v18313_v31 }
0x15aa   :  { %v16103_v29 = vadd.f32 %v16102_v10, %v15987_v17 }
0x15ac   :  { %17977 = vmatpush3.bf16.msra.mxu1 %v17976_v44  ;;  %v16212_v36 = vadd.f32 %v16211_v38, %v16103_v29 }
0x15ad   :  { %17978 = vmatprep.subr.bf16.mxu1 %v18313_v31 }
0x15ae   :  { %v16328_v39 = vadd.f32 %v16327_v12, %v16212_v36 }
0x15b0   :  { %17980 = vmatpush3.bf16.msra.mxu1 %v17979_v59  ;;  %v16444_v3 = vadd.f32 %v16443_v9, %v16328_v39 }
0x15b1   :  { %17981 = vmatprep.subr.bf16.mxu1 %v18313_v31 }
0x15b2   :  { %v18240_v13 = vpop.eup %18239 }
0x15b3   :  { %v16530_v37 = vadd.f32 1.0, %v18240_v13  ;;  %v18242_v47 = vpop.eup %18241 }
0x15b4   :  { %17983 = vmatpush3.bf16.msra.mxu1 %v17982_v4 }
0x15b5   :  { %18243 = vrcp.f32 %v16530_v37  ;;  %17796 = vmatprep.subr.mxu1 %v22048_v58  ;;  %v16689_v58 = vld [vmem:[%s22006_s19 + $0x10] sm:$0xff] }
0x15b6   :  { %18245 = vpow2.f32 %v17480_v55  ;;  %v17988_v57 = vpack.c.bf16 %v16690_v46, %v16689_v58 }
0x15b8   :  { %17797 = vmatpush3.msk.msra.mxu1 %vm16612_vm10, %v16600_v15  ;;  %17989 = vmatpush3.bf16.msra.mxu0 %v17988_v57 }
0x15b9   :  { %17990 = vmatprep.subr.bf16.mxu0 %v18313_v31 }
0x15bc   :  { %17992 = vmatpush3.bf16.msra.mxu0 %v17991_v52 }
0x15bd   :  { %17993 = vmatprep.subr.bf16.mxu0 %v18313_v31 }
0x15bf   :  { %v18244_v49 = vpop.eup %18243 }
0x15c0   :  { %v16544_v23 = vmul.f32 %v18244_v49, %v18242_v47  ;;  %v16543_v34 = vmul.f32 %v18244_v49, %v16541_v54  ;;  %v18246_v60 = vpop.eup %18245  ;;  %v17484_v49 = vld [vmem:[%s22005_s18] ss:$0 sm:$0xff] }
0x15c1   :  { %v16537_v2 = vadd.f32 1.0, %v18246_v60 }
0x15c2   :  { %16546 = vrot.lane.b32.xlu1 %v16544_v23, %s18312_s13 }
0x15c3   :  { %18247 = vrcp.f32 %v16537_v2 }
0x15cd   :  { %v18248_v19 = vpop.eup %18247 }
0x1617   :  { %v16589_v37 = vpop.permute.xlu0 %16588 }
0x1634   :  { %v16547_v22 = vpop.permute.xlu1 %16546 }
0x1635   :  { %v16549_v14 = vadd.f32 %v16547_v22, %v16543_v34 }
0x1637   :  { %18249 = vtanh.f32 %v16549_v14 }
0x1638   :  { %18251 = vrcp.f32 %v16566_v28 }
0x1641   :  { %v18250_v50 = vpop.eup %18249 }
0x1642   :  { %v16551_v30 = vmul.f32 %v18250_v50, %v18248_v19  ;;  %v18252_v32 = vpop.eup %18251 }
0x1644   :  { %v16555_v61 = vrot.slane %v16551_v30, 6 }
0x1646   :  { %16556 = vrot.lane.b32.xlu1 %v16555_v61, %s18312_s13 }
0x16b8   :  { %v16557_v26 = vpop.permute.xlu1 %16556 }
0x16b9   :  { %v16559_v13 = vmul.f32 %v21876_v42, %v16557_v26  ;;  %v16693_v42 = vld [vmem:[%s22006_s19 + $0x30] sm:$0xff]  ;;  %s18283_s19 = scalar_lea.vmem %s16784_s22, 32 }
0x16ba   :  { %v17994_v54 = vpack.c.bf16 %v16694_v8, %v16693_v42  ;;  %p18284_p0 = scmp.ne.s32.totalorder %s16784_s22, %s18283_s19  ;;  %p18289_p2 = scmp.lt.s32.totalorder %s18283_s19, %s18283_s19 }
0x16bb   :  { %v16560_v45 = vadd.f32 %v16559_v13, %v16444_v3 }
0x16bc   :  { %17995 = vmatpush3.bf16.msra.mxu0 %v17994_v54  ;;  %p18290_p3 = por %p18289_p2, %p18288_p1 }
0x16bd   :  { %v16569_v56 = vmul.f32 %v18252_v32, %v16560_v45 }
0x16be   :  { %p18291_p4 = pnand %p18290_p3, %p18284_p0 }
0x16bf   :  { %v16577_v20 = vmul.f32 %v17482_v24, %v16569_v56 }
0x16c1   :  { %v16585_v47 = vadd.f32 %v17483_v35, %v16577_v20 }
0x16c3   :  { %v16591_v63 = vsel %vm15650_vm9, %v16585_v47, %v16589_v37 }
0x16c4   :  { %17799 = vmatmul.mubr.msk.f32.vlgmr.msra.gmra.mrb[130].mxu1 %vm16608_vm11, %v16591_v63 }
0x1797   :  { %v16682_v23 = vpop.f32.mrb[130].mxu1 }
0x1798   :  { %v16683_v34 = vadd.f32 %v17484_v49, %v16682_v23  ;;  %v17800_v33 = vpop.f32.mrb[131].mxu1 }
0x179a   :  { %v16686_v11 = vmax.f32 %v16683_v34, 0.0 }
0x179c   :  { %17818 = vmatmul.mubr.msk.f32.vlgmr.msra.gmra.mrb[46].mxu0 %vm15650_vm9, %v16686_v11 }
0x186f   :  { %v16771_v31 = vpop.f32.mrb[46].mxu0 }
0x1870   :  { %v16772_v53 = vadd.f32 %v17487_v27, %v16771_v31  ;;  %v17819_v1 = vpop.f32.mrb[47].mxu0 }
0x1872   :  { %16776 = vst.msk [vmem:[#allocation2] sm:$0x3] %vm16775_vm12, %v16772_v53 }
0x1873   :  { %18294 = shalt.err (!%p18291_p4)
}
0x1874   :  { %s18295_s23 = scalar_lea.hbm %s22008_s21, 32 }
0x1875   :  { %p18296_p5 = scmp.ne.s32.totalorder %s22008_s21, %s18295_s23  ;;  %p18299_p6 = scmp.lt.u32.totalorder %s18295_s23, %s22008_s21 }
0x1877   :  { %p18301_p7 = pnand %p18299_p6, %p18296_p5 }
0x1879   :  { %18304 = shalt.err (!%p18301_p7)
}
0x187a   :  { %16786 = dma.vmem_to_hbm [thread:$0]  %s16784_s22, 32, %s22008_s21, [#allocation3]  }
0x187b   :  { %18305 = dma.done.wait [#allocation3], 32  }
0x187c   :  { %18306 = vsyncadd [#allocation3], 4294967264 }
0x187d   :  { %16790 = vsyncpa [#allocation3], 1 }

</bundles_post_ra>
